<compile_context>
chip_gen: v6e
topology: v6e:2x2x1
jax: 0.10.0
libtpu: 0.0.40
codegen_flags: <defaults>
</compile_context>

<pallas_src>
import jax
import jax.numpy as jnp
from jax.experimental import pallas as pl
from jax.experimental.pallas import tpu as pltpu

_D = 768
_VMEM_LIMIT = 32 * 1024 * 1024  # safe scoped-VMEM limit on v5e/v6e/v7x


# --------------------------------------------------------------------------
# Pallas kernel: `nb` branches (3 chained Linears + sigmoid each) per grid step
# --------------------------------------------------------------------------
def _tfg_kernel(y_ref, w_ref, s_ref, b_ref, o_ref):
    # y_ref: (Bp, D)        f32   shared input (constant-index block, fetched once)
    # w_ref: (3*nb, D, D)   int8  quantized weights, (in, out) layout
    # s_ref: (3*nb, 1, D)   f32   per-output-channel dequant scales
    # b_ref: (3*nb, 1, D)   f32   biases
    # o_ref: (nb, Bp, D)    f32   sigmoid(branch outputs)
    nb = o_ref.shape[0]
    y = y_ref[...]
    for br in range(nb):                      # static unroll over branches
        h = y
        for layer in range(3):                # static unroll: 3 chained matmuls
            idx = br * 3 + layer
            w = w_ref[idx].astype(jnp.bfloat16)        # exact int8 -> bf16 dequant
            acc = jnp.dot(h.astype(jnp.bfloat16), w,
                          preferred_element_type=jnp.float32)
            # per-output-channel scale factors out of the dot: (x@q)*s == x@(q*s)
            h = acc * s_ref[idx] + b_ref[idx]
        # Numerically stable sigmoid: exp argument is always <= 0, never overflows.
        e = jnp.exp(-jnp.abs(h))
        sig = jnp.where(h >= 0.0, 1.0 / (1.0 + e), e / (1.0 + e))
        o_ref[br] = sig.astype(o_ref.dtype)


def _tensorcores_per_chip():
    """Best-effort detection; only used to pick grid=(1,) vs grid=(3,)."""
    try:
        kind = jax.devices()[0].device_kind.lower()
    except Exception:
        return 1
    return 2 if ("v7" in kind or "7x" in kind or "v4" in kind) else 1


def tfg_block_forward(params, y):
    """TFGBlock.forward: y (B, 768) -> (tf1, tf2, tf3), each (B, 3, 256)."""
    y = y.astype(jnp.float32)
    B, D = y.shape
    assert D == _D, D

    # Pad batch to the 8-row sublane tile (tiny; sliced off below).
    Bp = max(8, ((B + 7) // 8) * 8)
    if Bp != B:
        y = jnp.pad(y, ((0, Bp - B), (0, 0)))

    multicore = _tensorcores_per_chip() > 1
    nb = 1 if multicore else 3                # branches per grid step
    steps = 3 // nb
    sem = "parallel" if multicore else "arbitrary"

    out = pl.pallas_call(
        _tfg_kernel,
        out_shape=jax.ShapeDtypeStruct((3, Bp, D), jnp.float32),
        grid=(steps,),
        in_specs=[
            pl.BlockSpec((Bp, D), lambda i: (0, 0)),            # shared input
            pl.BlockSpec((3 * nb, D, D), lambda i: (i, 0, 0)),   # int8 weights
            pl.BlockSpec((3 * nb, 1, D), lambda i: (i, 0, 0)),   # dequant scales
            pl.BlockSpec((3 * nb, 1, D), lambda i: (i, 0, 0)),   # biases
        ],
        out_specs=pl.BlockSpec((nb, Bp, D), lambda i: (i, 0, 0)),
        compiler_params=pltpu.CompilerParams(
            dimension_semantics=(sem,),
            vmem_limit_bytes=_VMEM_LIMIT),
    )(y, params["w_q"], params["w_scale"], params["b"])

    out = out[:, :B, :]                       # drop batch padding
    tf1 = out[0].reshape(B, 3, 256)           # row-major reshape == torch.reshape
    tf2 = out[1].reshape(B, 3, 256)
    tf3 = out[2].reshape(B, 3, 256)
    return tf1, tf2, tf3


# --------------------------------------------------------------------------
# Parameters: synthetic init + per-output-channel symmetric int8 quantization
# --------------------------------------------------------------------------
def quantize_weights(w):
    """w: (9, in, out) f32  ->  (w_q int8, scale f32 (9, 1, out)) with w ~ w_q*scale."""
    amax = jnp.max(jnp.abs(w), axis=1, keepdims=True)            # per output channel
    scale = jnp.maximum(amax, 1e-12) / 127.0
    w_q = jnp.clip(jnp.round(w / scale), -127, 127).astype(jnp.int8)
    return w_q, scale.astype(jnp.float32)


def init_tfg_params(key, d=_D):
    # Weight order: [FC11, FC12, FC13, FC21, FC22, FC23, FC31, FC32, FC33],
    # each stored as (in, out) so the kernel computes x @ W (== x @ W_pt.T).
    # Real PyTorch checkpoints must be transposed from (out, in) before use.
    # TODO(synk): synthetic normal init, not PyTorch's kaiming_uniform default.
    kw, kb = jax.random.split(key)
    w = jax.random.normal(kw, (9, d, d), jnp.float32) * (d ** -0.5)
    b = jax.random.normal(kb, (9, 1, d), jnp.float32) * 0.01
    w_q, w_scale = quantize_weights(w)
    return {"w_q": w_q, "w_scale": w_scale, "b": b}


# --------------------------------------------------------------------------
if __name__ == "__main__":
    key = jax.random.PRNGKey(0)
    pkey, xkey = jax.random.split(key)
    params = init_tfg_params(pkey)
    y = jax.random.normal(xkey, (2, _D), jnp.float32)   # batch=2, hidden=768

    fwd = jax.jit(tfg_block_forward)
    tf1, tf2, tf3 = jax.block_until_ready(fwd(params, y))

    assert tf1.shape == (2, 3, 256), tf1.shape
    assert tf2.shape == (2, 3, 256), tf2.shape
    assert tf3.shape == (2, 3, 256), tf3.shape

    # Pure-JAX reference using the same (dequantized) weights, full f32 math.
    w_deq = params["w_q"].astype(jnp.float32) * params["w_scale"]   # (9, D, D)
    refs = []
    for br in range(3):
        h = y
        for layer in range(3):
            idx = br * 3 + layer
            h = jnp.dot(h, w_deq[idx],
                        precision=jax.lax.Precision.HIGHEST) + params["b"][idx]
        refs.append(jax.nn.sigmoid(h).reshape(2, 3, 256))

    for t, r in zip((tf1, tf2, tf3), refs):
        assert bool(jnp.all(jnp.isfinite(t)))
        assert bool(jnp.all((t >= 0.0) & (t <= 1.0)))        # sigmoid range
        err = float(jnp.max(jnp.abs(t - r)))
        assert err < 2e-2, err   # bf16-activation matmul vs f32 reference
    print("KERNEL_OK")
</pallas_src>

<mosaic_0001>
module attributes {stable_mosaic.version = 11 : i64} {
  func.func @_tfg_kernel(%arg0: i32, %arg1: memref<8x768xf32, #tpu.memory_space<vmem>>, %arg2: memref<9x768x768xi8, #tpu.memory_space<vmem>>, %arg3: memref<9x1x768xf32, #tpu.memory_space<vmem>>, %arg4: memref<9x1x768xf32, #tpu.memory_space<vmem>>, %arg5: memref<3x8x768xf32, #tpu.memory_space<vmem>>) attributes {dimension_semantics = [#tpu.dimension_semantics<arbitrary>], iteration_bounds = array<i64: 1>, scalar_prefetch = 0 : i64, scratch_operands = 0 : i64, tpu.core_type = #tpu.core_type<tc>, window_params = [{pipeline_mode = #tpu.pipeline_mode<synchronous>, transform_indices = @transform_0, window_bounds = array<i64: 8, 768>}, {transform_indices = @transform_1, window_bounds = array<i64: 9, 768, 768>}, {transform_indices = @transform_2, window_bounds = array<i64: 9, 1, 768>}, {transform_indices = @transform_3, window_bounds = array<i64: 9, 1, 768>}, {transform_indices = @transform_4, window_bounds = array<i64: 3, 8, 768>}]} {
    %c0 = arith.constant 0 : index
    %c0_0 = arith.constant 0 : index
    %0 = vector.load %arg1[%c0, %c0_0] : memref<8x768xf32, #tpu.memory_space<vmem>>, vector<8x768xf32>
    %c0_1 = arith.constant 0 : index
    %c0_2 = arith.constant 0 : index
    %c0_3 = arith.constant 0 : index
    %1 = vector.load %arg2[%c0_1, %c0_2, %c0_3] : memref<9x768x768xi8, #tpu.memory_space<vmem>>, vector<1x768x768xi8>
    %2 = vector.shape_cast %1 : vector<1x768x768xi8> to vector<768x768xi8>
    %3 = arith.sitofp %2 : vector<768x768xi8> to vector<768x768xbf16>
    %4 = arith.truncf %0 : vector<8x768xf32> to vector<8x768xbf16>
    %cst = arith.constant dense<0.000000e+00> : vector<8x768xf32>
    %5 = tpu.matmul %4, %3, %cst {dimension_numbers = #tpu.dot_dimension_numbers<[1], [0], [0], [1], [0, 0, 1, 1], [], []>} : vector<8x768xbf16>, vector<768x768xbf16>, vector<8x768xf32> -> vector<8x768xf32>
    %c0_4 = arith.constant 0 : index
    %c0_5 = arith.constant 0 : index
    %c0_6 = arith.constant 0 : index
    %6 = vector.load %arg3[%c0_4, %c0_5, %c0_6] : memref<9x1x768xf32, #tpu.memory_space<vmem>>, vector<1x1x768xf32>
    %7 = vector.shape_cast %6 : vector<1x1x768xf32> to vector<1x768xf32>
    %8 = vector.broadcast %7 : vector<1x768xf32> to vector<8x768xf32>
    %9 = arith.mulf %5, %8 : vector<8x768xf32>
    %c0_7 = arith.constant 0 : index
    %c0_8 = arith.constant 0 : index
    %c0_9 = arith.constant 0 : index
    %10 = vector.load %arg4[%c0_7, %c0_8, %c0_9] : memref<9x1x768xf32, #tpu.memory_space<vmem>>, vector<1x1x768xf32>
    %11 = vector.shape_cast %10 : vector<1x1x768xf32> to vector<1x768xf32>
    %12 = vector.broadcast %11 : vector<1x768xf32> to vector<8x768xf32>
    %13 = arith.addf %9, %12 : vector<8x768xf32>
    %c1 = arith.constant 1 : index
    %c0_10 = arith.constant 0 : index
    %c0_11 = arith.constant 0 : index
    %14 = vector.load %arg2[%c1, %c0_10, %c0_11] : memref<9x768x768xi8, #tpu.memory_space<vmem>>, vector<1x768x768xi8>
    %15 = vector.shape_cast %14 : vector<1x768x768xi8> to vector<768x768xi8>
    %16 = arith.sitofp %15 : vector<768x768xi8> to vector<768x768xbf16>
    %17 = arith.truncf %13 : vector<8x768xf32> to vector<8x768xbf16>
    %cst_12 = arith.constant dense<0.000000e+00> : vector<8x768xf32>
    %18 = tpu.matmul %17, %16, %cst_12 {dimension_numbers = #tpu.dot_dimension_numbers<[1], [0], [0], [1], [0, 0, 1, 1], [], []>} : vector<8x768xbf16>, vector<768x768xbf16>, vector<8x768xf32> -> vector<8x768xf32>
    %c1_13 = arith.constant 1 : index
    %c0_14 = arith.constant 0 : index
    %c0_15 = arith.constant 0 : index
    %19 = vector.load %arg3[%c1_13, %c0_14, %c0_15] : memref<9x1x768xf32, #tpu.memory_space<vmem>>, vector<1x1x768xf32>
    %20 = vector.shape_cast %19 : vector<1x1x768xf32> to vector<1x768xf32>
    %21 = vector.broadcast %20 : vector<1x768xf32> to vector<8x768xf32>
    %22 = arith.mulf %18, %21 : vector<8x768xf32>
    %c1_16 = arith.constant 1 : index
    %c0_17 = arith.constant 0 : index
    %c0_18 = arith.constant 0 : index
    %23 = vector.load %arg4[%c1_16, %c0_17, %c0_18] : memref<9x1x768xf32, #tpu.memory_space<vmem>>, vector<1x1x768xf32>
    %24 = vector.shape_cast %23 : vector<1x1x768xf32> to vector<1x768xf32>
    %25 = vector.broadcast %24 : vector<1x768xf32> to vector<8x768xf32>
    %26 = arith.addf %22, %25 : vector<8x768xf32>
    %c2 = arith.constant 2 : index
    %c0_19 = arith.constant 0 : index
    %c0_20 = arith.constant 0 : index
    %27 = vector.load %arg2[%c2, %c0_19, %c0_20] : memref<9x768x768xi8, #tpu.memory_space<vmem>>, vector<1x768x768xi8>
    %28 = vector.shape_cast %27 : vector<1x768x768xi8> to vector<768x768xi8>
    %29 = arith.sitofp %28 : vector<768x768xi8> to vector<768x768xbf16>
    %30 = arith.truncf %26 : vector<8x768xf32> to vector<8x768xbf16>
    %cst_21 = arith.constant dense<0.000000e+00> : vector<8x768xf32>
    %31 = tpu.matmul %30, %29, %cst_21 {dimension_numbers = #tpu.dot_dimension_numbers<[1], [0], [0], [1], [0, 0, 1, 1], [], []>} : vector<8x768xbf16>, vector<768x768xbf16>, vector<8x768xf32> -> vector<8x768xf32>
    %c2_22 = arith.constant 2 : index
    %c0_23 = arith.constant 0 : index
    %c0_24 = arith.constant 0 : index
    %32 = vector.load %arg3[%c2_22, %c0_23, %c0_24] : memref<9x1x768xf32, #tpu.memory_space<vmem>>, vector<1x1x768xf32>
    %33 = vector.shape_cast %32 : vector<1x1x768xf32> to vector<1x768xf32>
    %34 = vector.broadcast %33 : vector<1x768xf32> to vector<8x768xf32>
    %35 = arith.mulf %31, %34 : vector<8x768xf32>
    %c2_25 = arith.constant 2 : index
    %c0_26 = arith.constant 0 : index
    %c0_27 = arith.constant 0 : index
    %36 = vector.load %arg4[%c2_25, %c0_26, %c0_27] : memref<9x1x768xf32, #tpu.memory_space<vmem>>, vector<1x1x768xf32>
    %37 = vector.shape_cast %36 : vector<1x1x768xf32> to vector<1x768xf32>
    %38 = vector.broadcast %37 : vector<1x768xf32> to vector<8x768xf32>
    %39 = arith.addf %35, %38 : vector<8x768xf32>
    %40 = math.absf %39 : vector<8x768xf32>
    %cst_28 = arith.constant 0.000000e+00 : f32
    %41 = vector.broadcast %cst_28 : f32 to vector<8x768xf32>
    %42 = arith.subf %41, %40 : vector<8x768xf32>
    %43 = math.exp %42 : vector<8x768xf32>
    %cst_29 = arith.constant 0.000000e+00 : f32
    %44 = vector.broadcast %cst_29 : f32 to vector<8x768xf32>
    %45 = arith.cmpf oge, %39, %44 : vector<8x768xf32>
    %cst_30 = arith.constant 1.000000e+00 : f32
    %46 = vector.broadcast %cst_30 : f32 to vector<8x768xf32>
    %47 = arith.addf %46, %43 : vector<8x768xf32>
    %cst_31 = arith.constant 1.000000e+00 : f32
    %48 = vector.broadcast %cst_31 : f32 to vector<8x768xf32>
    %49 = arith.divf %48, %47 : vector<8x768xf32>
    %cst_32 = arith.constant 1.000000e+00 : f32
    %50 = vector.broadcast %cst_32 : f32 to vector<8x768xf32>
    %51 = arith.addf %50, %43 : vector<8x768xf32>
    %52 = arith.divf %43, %51 : vector<8x768xf32>
    %53 = arith.select %45, %49, %52 : vector<8x768xi1>, vector<8x768xf32>
    %c0_33 = arith.constant 0 : index
    %c0_34 = arith.constant 0 : index
    %c0_35 = arith.constant 0 : index
    %54 = vector.load %arg5[%c0_33, %c0_34, %c0_35] : memref<3x8x768xf32, #tpu.memory_space<vmem>>, vector<1x8x768xf32>
    %55 = vector.shape_cast %54 : vector<1x8x768xf32> to vector<8x768xf32>
    %56 = vector.shape_cast %53 : vector<8x768xf32> to vector<1x8x768xf32>
    tpu.vector_store %arg5[%c0_33, %c0_34, %c0_35], %56 {strides = array<i32>} : memref<3x8x768xf32, #tpu.memory_space<vmem>>, vector<1x8x768xf32>,
    %c3 = arith.constant 3 : index
    %c0_36 = arith.constant 0 : index
    %c0_37 = arith.constant 0 : index
    %57 = vector.load %arg2[%c3, %c0_36, %c0_37] : memref<9x768x768xi8, #tpu.memory_space<vmem>>, vector<1x768x768xi8>
    %58 = vector.shape_cast %57 : vector<1x768x768xi8> to vector<768x768xi8>
    %59 = arith.sitofp %58 : vector<768x768xi8> to vector<768x768xbf16>
    %60 = arith.truncf %0 : vector<8x768xf32> to vector<8x768xbf16>
    %cst_38 = arith.constant dense<0.000000e+00> : vector<8x768xf32>
    %61 = tpu.matmul %60, %59, %cst_38 {dimension_numbers = #tpu.dot_dimension_numbers<[1], [0], [0], [1], [0, 0, 1, 1], [], []>} : vector<8x768xbf16>, vector<768x768xbf16>, vector<8x768xf32> -> vector<8x768xf32>
    %c3_39 = arith.constant 3 : index
    %c0_40 = arith.constant 0 : index
    %c0_41 = arith.constant 0 : index
    %62 = vector.load %arg3[%c3_39, %c0_40, %c0_41] : memref<9x1x768xf32, #tpu.memory_space<vmem>>, vector<1x1x768xf32>
    %63 = vector.shape_cast %62 : vector<1x1x768xf32> to vector<1x768xf32>
    %64 = vector.broadcast %63 : vector<1x768xf32> to vector<8x768xf32>
    %65 = arith.mulf %61, %64 : vector<8x768xf32>
    %c3_42 = arith.constant 3 : index
    %c0_43 = arith.constant 0 : index
    %c0_44 = arith.constant 0 : index
    %66 = vector.load %arg4[%c3_42, %c0_43, %c0_44] : memref<9x1x768xf32, #tpu.memory_space<vmem>>, vector<1x1x768xf32>
    %67 = vector.shape_cast %66 : vector<1x1x768xf32> to vector<1x768xf32>
    %68 = vector.broadcast %67 : vector<1x768xf32> to vector<8x768xf32>
    %69 = arith.addf %65, %68 : vector<8x768xf32>
    %c4 = arith.constant 4 : index
    %c0_45 = arith.constant 0 : index
    %c0_46 = arith.constant 0 : index
    %70 = vector.load %arg2[%c4, %c0_45, %c0_46] : memref<9x768x768xi8, #tpu.memory_space<vmem>>, vector<1x768x768xi8>
    %71 = vector.shape_cast %70 : vector<1x768x768xi8> to vector<768x768xi8>
    %72 = arith.sitofp %71 : vector<768x768xi8> to vector<768x768xbf16>
    %73 = arith.truncf %69 : vector<8x768xf32> to vector<8x768xbf16>
    %cst_47 = arith.constant dense<0.000000e+00> : vector<8x768xf32>
    %74 = tpu.matmul %73, %72, %cst_47 {dimension_numbers = #tpu.dot_dimension_numbers<[1], [0], [0], [1], [0, 0, 1, 1], [], []>} : vector<8x768xbf16>, vector<768x768xbf16>, vector<8x768xf32> -> vector<8x768xf32>
    %c4_48 = arith.constant 4 : index
    %c0_49 = arith.constant 0 : index
    %c0_50 = arith.constant 0 : index
    %75 = vector.load %arg3[%c4_48, %c0_49, %c0_50] : memref<9x1x768xf32, #tpu.memory_space<vmem>>, vector<1x1x768xf32>
    %76 = vector.shape_cast %75 : vector<1x1x768xf32> to vector<1x768xf32>
    %77 = vector.broadcast %76 : vector<1x768xf32> to vector<8x768xf32>
    %78 = arith.mulf %74, %77 : vector<8x768xf32>
    %c4_51 = arith.constant 4 : index
    %c0_52 = arith.constant 0 : index
    %c0_53 = arith.constant 0 : index
    %79 = vector.load %arg4[%c4_51, %c0_52, %c0_53] : memref<9x1x768xf32, #tpu.memory_space<vmem>>, vector<1x1x768xf32>
    %80 = vector.shape_cast %79 : vector<1x1x768xf32> to vector<1x768xf32>
    %81 = vector.broadcast %80 : vector<1x768xf32> to vector<8x768xf32>
    %82 = arith.addf %78, %81 : vector<8x768xf32>
    %c5 = arith.constant 5 : index
    %c0_54 = arith.constant 0 : index
    %c0_55 = arith.constant 0 : index
    %83 = vector.load %arg2[%c5, %c0_54, %c0_55] : memref<9x768x768xi8, #tpu.memory_space<vmem>>, vector<1x768x768xi8>
    %84 = vector.shape_cast %83 : vector<1x768x768xi8> to vector<768x768xi8>
    %85 = arith.sitofp %84 : vector<768x768xi8> to vector<768x768xbf16>
    %86 = arith.truncf %82 : vector<8x768xf32> to vector<8x768xbf16>
    %cst_56 = arith.constant dense<0.000000e+00> : vector<8x768xf32>
    %87 = tpu.matmul %86, %85, %cst_56 {dimension_numbers = #tpu.dot_dimension_numbers<[1], [0], [0], [1], [0, 0, 1, 1], [], []>} : vector<8x768xbf16>, vector<768x768xbf16>, vector<8x768xf32> -> vector<8x768xf32>
    %c5_57 = arith.constant 5 : index
    %c0_58 = arith.constant 0 : index
    %c0_59 = arith.constant 0 : index
    %88 = vector.load %arg3[%c5_57, %c0_58, %c0_59] : memref<9x1x768xf32, #tpu.memory_space<vmem>>, vector<1x1x768xf32>
    %89 = vector.shape_cast %88 : vector<1x1x768xf32> to vector<1x768xf32>
    %90 = vector.broadcast %89 : vector<1x768xf32> to vector<8x768xf32>
    %91 = arith.mulf %87, %90 : vector<8x768xf32>
    %c5_60 = arith.constant 5 : index
    %c0_61 = arith.constant 0 : index
    %c0_62 = arith.constant 0 : index
    %92 = vector.load %arg4[%c5_60, %c0_61, %c0_62] : memref<9x1x768xf32, #tpu.memory_space<vmem>>, vector<1x1x768xf32>
    %93 = vector.shape_cast %92 : vector<1x1x768xf32> to vector<1x768xf32>
    %94 = vector.broadcast %93 : vector<1x768xf32> to vector<8x768xf32>
    %95 = arith.addf %91, %94 : vector<8x768xf32>
    %96 = math.absf %95 : vector<8x768xf32>
    %cst_63 = arith.constant 0.000000e+00 : f32
    %97 = vector.broadcast %cst_63 : f32 to vector<8x768xf32>
    %98 = arith.subf %97, %96 : vector<8x768xf32>
    %99 = math.exp %98 : vector<8x768xf32>
    %cst_64 = arith.constant 0.000000e+00 : f32
    %100 = vector.broadcast %cst_64 : f32 to vector<8x768xf32>
    %101 = arith.cmpf oge, %95, %100 : vector<8x768xf32>
    %cst_65 = arith.constant 1.000000e+00 : f32
    %102 = vector.broadcast %cst_65 : f32 to vector<8x768xf32>
    %103 = arith.addf %102, %99 : vector<8x768xf32>
    %cst_66 = arith.constant 1.000000e+00 : f32
    %104 = vector.broadcast %cst_66 : f32 to vector<8x768xf32>
    %105 = arith.divf %104, %103 : vector<8x768xf32>
    %cst_67 = arith.constant 1.000000e+00 : f32
    %106 = vector.broadcast %cst_67 : f32 to vector<8x768xf32>
    %107 = arith.addf %106, %99 : vector<8x768xf32>
    %108 = arith.divf %99, %107 : vector<8x768xf32>
    %109 = arith.select %101, %105, %108 : vector<8x768xi1>, vector<8x768xf32>
    %c1_68 = arith.constant 1 : index
    %c0_69 = arith.constant 0 : index
    %c0_70 = arith.constant 0 : index
    %110 = vector.load %arg5[%c1_68, %c0_69, %c0_70] : memref<3x8x768xf32, #tpu.memory_space<vmem>>, vector<1x8x768xf32>
    %111 = vector.shape_cast %110 : vector<1x8x768xf32> to vector<8x768xf32>
    %112 = vector.shape_cast %109 : vector<8x768xf32> to vector<1x8x768xf32>
    tpu.vector_store %arg5[%c1_68, %c0_69, %c0_70], %112 {strides = array<i32>} : memref<3x8x768xf32, #tpu.memory_space<vmem>>, vector<1x8x768xf32>,
    %c6 = arith.constant 6 : index
    %c0_71 = arith.constant 0 : index
    %c0_72 = arith.constant 0 : index
    %113 = vector.load %arg2[%c6, %c0_71, %c0_72] : memref<9x768x768xi8, #tpu.memory_space<vmem>>, vector<1x768x768xi8>
    %114 = vector.shape_cast %113 : vector<1x768x768xi8> to vector<768x768xi8>
    %115 = arith.sitofp %114 : vector<768x768xi8> to vector<768x768xbf16>
    %116 = arith.truncf %0 : vector<8x768xf32> to vector<8x768xbf16>
    %cst_73 = arith.constant dense<0.000000e+00> : vector<8x768xf32>
    %117 = tpu.matmul %116, %115, %cst_73 {dimension_numbers = #tpu.dot_dimension_numbers<[1], [0], [0], [1], [0, 0, 1, 1], [], []>} : vector<8x768xbf16>, vector<768x768xbf16>, vector<8x768xf32> -> vector<8x768xf32>
    %c6_74 = arith.constant 6 : index
    %c0_75 = arith.constant 0 : index
    %c0_76 = arith.constant 0 : index
    %118 = vector.load %arg3[%c6_74, %c0_75, %c0_76] : memref<9x1x768xf32, #tpu.memory_space<vmem>>, vector<1x1x768xf32>
    %119 = vector.shape_cast %118 : vector<1x1x768xf32> to vector<1x768xf32>
    %120 = vector.broadcast %119 : vector<1x768xf32> to vector<8x768xf32>
    %121 = arith.mulf %117, %120 : vector<8x768xf32>
    %c6_77 = arith.constant 6 : index
    %c0_78 = arith.constant 0 : index
    %c0_79 = arith.constant 0 : index
    %122 = vector.load %arg4[%c6_77, %c0_78, %c0_79] : memref<9x1x768xf32, #tpu.memory_space<vmem>>, vector<1x1x768xf32>
    %123 = vector.shape_cast %122 : vector<1x1x768xf32> to vector<1x768xf32>
    %124 = vector.broadcast %123 : vector<1x768xf32> to vector<8x768xf32>
    %125 = arith.addf %121, %124 : vector<8x768xf32>
    %c7 = arith.constant 7 : index
    %c0_80 = arith.constant 0 : index
    %c0_81 = arith.constant 0 : index
    %126 = vector.load %arg2[%c7, %c0_80, %c0_81] : memref<9x768x768xi8, #tpu.memory_space<vmem>>, vector<1x768x768xi8>
    %127 = vector.shape_cast %126 : vector<1x768x768xi8> to vector<768x768xi8>
    %128 = arith.sitofp %127 : vector<768x768xi8> to vector<768x768xbf16>
    %129 = arith.truncf %125 : vector<8x768xf32> to vector<8x768xbf16>
    %cst_82 = arith.constant dense<0.000000e+00> : vector<8x768xf32>
    %130 = tpu.matmul %129, %128, %cst_82 {dimension_numbers = #tpu.dot_dimension_numbers<[1], [0], [0], [1], [0, 0, 1, 1], [], []>} : vector<8x768xbf16>, vector<768x768xbf16>, vector<8x768xf32> -> vector<8x768xf32>
    %c7_83 = arith.constant 7 : index
    %c0_84 = arith.constant 0 : index
    %c0_85 = arith.constant 0 : index
    %131 = vector.load %arg3[%c7_83, %c0_84, %c0_85] : memref<9x1x768xf32, #tpu.memory_space<vmem>>, vector<1x1x768xf32>
    %132 = vector.shape_cast %131 : vector<1x1x768xf32> to vector<1x768xf32>
    %133 = vector.broadcast %132 : vector<1x768xf32> to vector<8x768xf32>
    %134 = arith.mulf %130, %133 : vector<8x768xf32>
    %c7_86 = arith.constant 7 : index
    %c0_87 = arith.constant 0 : index
    %c0_88 = arith.constant 0 : index
    %135 = vector.load %arg4[%c7_86, %c0_87, %c0_88] : memref<9x1x768xf32, #tpu.memory_space<vmem>>, vector<1x1x768xf32>
    %136 = vector.shape_cast %135 : vector<1x1x768xf32> to vector<1x768xf32>
    %137 = vector.broadcast %136 : vector<1x768xf32> to vector<8x768xf32>
    %138 = arith.addf %134, %137 : vector<8x768xf32>
    %c8 = arith.constant 8 : index
    %c0_89 = arith.constant 0 : index
    %c0_90 = arith.constant 0 : index
    %139 = vector.load %arg2[%c8, %c0_89, %c0_90] : memref<9x768x768xi8, #tpu.memory_space<vmem>>, vector<1x768x768xi8>
    %140 = vector.shape_cast %139 : vector<1x768x768xi8> to vector<768x768xi8>
    %141 = arith.sitofp %140 : vector<768x768xi8> to vector<768x768xbf16>
    %142 = arith.truncf %138 : vector<8x768xf32> to vector<8x768xbf16>
    %cst_91 = arith.constant dense<0.000000e+00> : vector<8x768xf32>
    %143 = tpu.matmul %142, %141, %cst_91 {dimension_numbers = #tpu.dot_dimension_numbers<[1], [0], [0], [1], [0, 0, 1, 1], [], []>} : vector<8x768xbf16>, vector<768x768xbf16>, vector<8x768xf32> -> vector<8x768xf32>
    %c8_92 = arith.constant 8 : index
    %c0_93 = arith.constant 0 : index
    %c0_94 = arith.constant 0 : index
    %144 = vector.load %arg3[%c8_92, %c0_93, %c0_94] : memref<9x1x768xf32, #tpu.memory_space<vmem>>, vector<1x1x768xf32>
    %145 = vector.shape_cast %144 : vector<1x1x768xf32> to vector<1x768xf32>
    %146 = vector.broadcast %145 : vector<1x768xf32> to vector<8x768xf32>
    %147 = arith.mulf %143, %146 : vector<8x768xf32>
    %c8_95 = arith.constant 8 : index
    %c0_96 = arith.constant 0 : index
    %c0_97 = arith.constant 0 : index
    %148 = vector.load %arg4[%c8_95, %c0_96, %c0_97] : memref<9x1x768xf32, #tpu.memory_space<vmem>>, vector<1x1x768xf32>
    %149 = vector.shape_cast %148 : vector<1x1x768xf32> to vector<1x768xf32>
    %150 = vector.broadcast %149 : vector<1x768xf32> to vector<8x768xf32>
    %151 = arith.addf %147, %150 : vector<8x768xf32>
    %152 = math.absf %151 : vector<8x768xf32>
    %cst_98 = arith.constant 0.000000e+00 : f32
    %153 = vector.broadcast %cst_98 : f32 to vector<8x768xf32>
    %154 = arith.subf %153, %152 : vector<8x768xf32>
    %155 = math.exp %154 : vector<8x768xf32>
    %cst_99 = arith.constant 0.000000e+00 : f32
    %156 = vector.broadcast %cst_99 : f32 to vector<8x768xf32>
    %157 = arith.cmpf oge, %151, %156 : vector<8x768xf32>
    %cst_100 = arith.constant 1.000000e+00 : f32
    %158 = vector.broadcast %cst_100 : f32 to vector<8x768xf32>
    %159 = arith.addf %158, %155 : vector<8x768xf32>
    %cst_101 = arith.constant 1.000000e+00 : f32
    %160 = vector.broadcast %cst_101 : f32 to vector<8x768xf32>
    %161 = arith.divf %160, %159 : vector<8x768xf32>
    %cst_102 = arith.constant 1.000000e+00 : f32
    %162 = vector.broadcast %cst_102 : f32 to vector<8x768xf32>
    %163 = arith.addf %162, %155 : vector<8x768xf32>
    %164 = arith.divf %155, %163 : vector<8x768xf32>
    %165 = arith.select %157, %161, %164 : vector<8x768xi1>, vector<8x768xf32>
    %c2_103 = arith.constant 2 : index
    %c0_104 = arith.constant 0 : index
    %c0_105 = arith.constant 0 : index
    %166 = vector.load %arg5[%c2_103, %c0_104, %c0_105] : memref<3x8x768xf32, #tpu.memory_space<vmem>>, vector<1x8x768xf32>
    %167 = vector.shape_cast %166 : vector<1x8x768xf32> to vector<8x768xf32>
    %168 = vector.shape_cast %165 : vector<8x768xf32> to vector<1x8x768xf32>
    tpu.vector_store %arg5[%c2_103, %c0_104, %c0_105], %168 {strides = array<i32>} : memref<3x8x768xf32, #tpu.memory_space<vmem>>, vector<1x8x768xf32>,
    return
  }
  func.func @transform_0(%arg0: i32) -> (i32, i32) {
    %c0_i32 = arith.constant 0 : i32
    %c0_i32_0 = arith.constant 0 : i32
    %c0_i32_1 = arith.constant 0 : i32
    return %c0_i32, %c0_i32_0 : i32, i32
  }
  func.func @transform_1(%arg0: i32) -> (i32, i32, i32) {
    %c0_i32 = arith.constant 0 : i32
    %c0_i32_0 = arith.constant 0 : i32
    %c0_i32_1 = arith.constant 0 : i32
    return %arg0, %c0_i32, %c0_i32_0 : i32, i32, i32
  }
  func.func @transform_2(%arg0: i32) -> (i32, i32, i32) {
    %c0_i32 = arith.constant 0 : i32
    %c0_i32_0 = arith.constant 0 : i32
    %c0_i32_1 = arith.constant 0 : i32
    return %arg0, %c0_i32, %c0_i32_0 : i32, i32, i32
  }
  func.func @transform_3(%arg0: i32) -> (i32, i32, i32) {
    %c0_i32 = arith.constant 0 : i32
    %c0_i32_0 = arith.constant 0 : i32
    %c0_i32_1 = arith.constant 0 : i32
    return %arg0, %c0_i32, %c0_i32_0 : i32, i32, i32
  }
  func.func @transform_4(%arg0: i32) -> (i32, i32, i32) {
    %c0_i32 = arith.constant 0 : i32
    %c0_i32_0 = arith.constant 0 : i32
    %c0_i32_1 = arith.constant 0 : i32
    return %arg0, %c0_i32, %c0_i32_0 : i32, i32, i32
  }
}

</mosaic_0001>

<bundles_post_ra>
// kernel: tfg_block_forward.1
= control target key start
LH: loop header
LB: loop body
LE: loop exit
PB: predicated region body
PF: predicated region fallthrough
CT: control target
= control target key end

     0   :  { %9 = vsyncpa [#allocation3], 0  ;;  %s9389_s0 = inlined_call_operand.vmem [shape: f32[8,768], index: 0, kind: input, shape index: {}]   ;;  %s9390_s1 = inlined_call_operand.hbm [shape: s8[9,768,768], index: 1, kind: input, shape index: {}]   ;;  %s9391_s2 = inlined_call_operand.hbm [shape: f32[9,1,768], index: 2, kind: input, shape index: {}]   ;;  %s9392_s3 = inlined_call_operand.hbm [shape: f32[9,1,768], index: 3, kind: input, shape index: {}]   ;;  %s9393_s4 = inlined_call_operand.vmem [shape: f32[3,8,768], index: 4, kind: output, shape index: {}]  }
   0x1   :  { %10 = vsyncpa [#allocation5], 0  ;;  %s8388_s15 = smov [#allocation4]  }
   0x2   :  { %s30_s16 = sshll.u32 %s8388_s15, 4  ;;  %s31_s16 = int_to_ptr.vmem [resolvable:$true] %s30_s16 }
   0x3   :  { %s8332_s17 = scalar_lea.vmem %s31_s16, 864  ;;  %p8337_p1 = scmp.lt.s32.totalorder %s31_s16, %s31_s16 }
   0x4   :  { %p8333_p0 = scmp.ne.s32.totalorder %s31_s16, %s8332_s17  ;;  %p8338_p2 = scmp.lt.s32.totalorder %s8332_s17, %s8332_s17 }
   0x6   :  { %p8339_p3 = por %p8338_p2, %p8337_p1 }
   0x8   :  { %p8340_p4 = pnand %p8339_p3, %p8333_p0 }
   0xa   :  { %8343 = shalt.err (!%p8340_p4)
}
   0xb   :  { %s8389_s18 = smov 96   ;;  %s8390_s19 = smov 6  }
   0xc   :  { %36 = dma.hbm_to_vmem [thread:$0]  %s9391_s2, 864, %s31_s16, [#allocation5], %s8389_s18, %s8389_s18, %s8390_s19  }
   0xd   :  { %s8391_s22 = smov [#allocation2]  }
   0xe   :  { %s18_s23 = sshll.u32 %s8391_s22, 4  ;;  %s19_s23 = int_to_ptr.vmem [resolvable:$true] %s18_s23 }
   0xf   :  { %s8352_s24 = scalar_lea.vmem %s19_s23, 165888  ;;  %p8357_p6 = scmp.lt.s32.totalorder %s19_s23, %s19_s23 }
  0x10   :  { %p8353_p5 = scmp.ne.s32.totalorder %s19_s23, %s8352_s24  ;;  %p8358_p7 = scmp.lt.s32.totalorder %s8352_s24, %s8352_s24 }
  0x12   :  { %p8359_p8 = por %p8358_p7, %p8357_p6 }
  0x14   :  { %p8360_p9 = pnand %p8359_p8, %p8353_p5 }
  0x16   :  { %8363 = shalt.err (!%p8360_p9)
}
  0x17   :  { %s8392_s25 = smov 768   ;;  %s8393_s26 = smov 48  }
  0x18   :  { %24 = dma.hbm_to_vmem [thread:$0]  %s9390_s1, 165888, %s19_s23, [#allocation3], %s8392_s25, %s8392_s25, %s8393_s26  }
  0x19   :  { %s8394_s29 = smov [#allocation6]  }
  0x1a   :  { %s42_s30 = sshll.u32 %s8394_s29, 4  ;;  %s43_s30 = int_to_ptr.vmem [resolvable:$true] %s42_s30 }
  0x1b   :  { %s8372_s2 = scalar_lea.vmem %s43_s30, 864  ;;  %p8377_p11 = scmp.lt.s32.totalorder %s43_s30, %s43_s30 }
  0x1c   :  { %p8373_p10 = scmp.ne.s32.totalorder %s43_s30, %s8372_s2  ;;  %p8378_p12 = scmp.lt.s32.totalorder %s8372_s2, %s8372_s2 }
  0x1e   :  { %p8379_p13 = por %p8378_p12, %p8377_p11 }
  0x20   :  { %p8380_p0 = pnand %p8379_p13, %p8373_p10 }
  0x22   :  { %8383 = shalt.err (!%p8380_p0)
}
  0x23   :  { %48 = dma.hbm_to_vmem [thread:$0]  %s9392_s3, 864, %s43_s30, [#allocation5], %s8389_s18, %s8389_s18, %s8390_s19  }
  0x24   :  { %8384 = dma.done.wait [#allocation3], 165888  }
  0x25   :  { %8385 = vsyncadd [#allocation3], 4294801408 }
  0x26   :  { %8386 = dma.done.wait [#allocation5], 1728  }
  0x27   :  { %8387 = vsyncadd [#allocation5], 4294965568  ;;  %v83_v0 = vld [vmem:[#allocation2 + $0x98] sm:$0xff]  ;;  %v82_v2 = vld [vmem:[#allocation2 + $0x90] sm:$0xff] }
  0x28   :  { %v131_v1 = vld [vmem:[#allocation2 + $0x218] sm:$0xff]  ;;  %v245_v3 = vunpack.c.l.s8.bf16 %v83_v0  ;;  %v251_v4 = vunpack.c.h.s8.bf16 %v83_v0  ;;  %v130_v7 = vld [vmem:[#allocation2 + $0x210] sm:$0xff]  ;;  %v250_v8 = vunpack.c.h.s8.bf16 %v82_v2  ;;  %v77_v10 = vld [vmem:[#allocation2 + $0x68] sm:$0xff]  ;;  %v244_v12 = vunpack.c.l.s8.bf16 %v82_v2 }
  0x29   :  { %v341_v5 = vunpack.c.l.s8.bf16 %v131_v1  ;;  %v347_v6 = vunpack.c.h.s8.bf16 %v131_v1  ;;  %v346_v9 = vunpack.c.h.s8.bf16 %v130_v7  ;;  %v125_v11 = vld [vmem:[#allocation2 + $0x1e8] sm:$0xff]  ;;  %v340_v13 = vunpack.c.l.s8.bf16 %v130_v7  ;;  %v76_v16 = vld [vmem:[#allocation2 + $0x60] sm:$0xff]  ;;  %v71_v22 = vld [vmem:[#allocation2 + $0x38] sm:$0xff] }
  0x2a   :  { %502 = vmatprep.subr.bf16.mxu0 %v251_v4  ;;  %v239_v14 = vunpack.c.h.s8.bf16 %v77_v10  ;;  %v335_v15 = vunpack.c.h.s8.bf16 %v125_v11  ;;  %v124_v17 = vld [vmem:[#allocation2 + $0x1e0] sm:$0xff]  ;;  %v238_v18 = vunpack.c.h.s8.bf16 %v76_v16  ;;  %v233_v20 = vunpack.c.l.s8.bf16 %v77_v10  ;;  %v119_v23 = vld [vmem:[#allocation2 + $0x1b8] sm:$0xff]  ;;  %v70_v28 = vld [vmem:[#allocation2 + $0x30] sm:$0xff] }
  0x2b   :  { %543 = vmatprep.subr.bf16.mxu1 %v347_v6  ;;  %503 = vmatpush1.bf16.msra.mxu0 %v250_v8  ;;  %v334_v19 = vunpack.c.h.s8.bf16 %v124_v17  ;;  %v329_v21 = vunpack.c.l.s8.bf16 %v125_v11  ;;  %v232_v24 = vunpack.c.l.s8.bf16 %v76_v16  ;;  %v328_v25 = vunpack.c.l.s8.bf16 %v124_v17  ;;  %v118_v29 = vld [vmem:[#allocation2 + $0x1b0] sm:$0xff]  ;;  %v59_v30 = vld [vmem:[%s9389_s0 + $0x8] sm:$0xff]  ;;  %v61_v31 = vld [vmem:[%s9389_s0 + $0x18] sm:$0xff] }
  0x2c   :  { %544 = vmatpush1.bf16.msra.mxu1 %v346_v9  ;;  %504 = vmatprep.subr.bf16.mxu0 %v245_v3  ;;  %v227_v26 = vunpack.c.h.s8.bf16 %v71_v22  ;;  %v323_v27 = vunpack.c.h.s8.bf16 %v119_v23  ;;  %v226_v32 = vunpack.c.h.s8.bf16 %v70_v28  ;;  %v322_v33 = vunpack.c.h.s8.bf16 %v118_v29  ;;  %v65_v38 = vld [vmem:[#allocation2 + $0x8] sm:$0xff]  ;;  %v64_v44 = vld [vmem:[#allocation2] sm:$0xff]  ;;  %v107_v50 = vld [vmem:[#allocation2 + $0x158] sm:$0xff] }
  0x2d   :  { %545 = vmatprep.subr.bf16.mxu1 %v341_v5  ;;  %v221_v34 = vunpack.c.l.s8.bf16 %v71_v22  ;;  %v317_v35 = vunpack.c.l.s8.bf16 %v119_v23  ;;  %v8435_v36 = vpack.c.bf16 %v59_v30, %v59_v30  ;;  %v8437_v37 = vpack.c.bf16 %v61_v31, %v61_v31  ;;  %v113_v39 = vld [vmem:[#allocation2 + $0x188] sm:$0xff]  ;;  %v112_v45 = vld [vmem:[#allocation2 + $0x180] sm:$0xff]  ;;  %v155_v51 = vld [vmem:[#allocation2 + $0x2d8] sm:$0xff] }
  0x2e   :  { %v220_v40 = vunpack.c.l.s8.bf16 %v70_v28  ;;  %v316_v41 = vunpack.c.l.s8.bf16 %v118_v29  ;;  %v215_v42 = vunpack.c.h.s8.bf16 %v65_v38  ;;  %v311_v43 = vunpack.c.h.s8.bf16 %v113_v39  ;;  %v106_v56 = vld [vmem:[#allocation2 + $0x150] sm:$0xff]  ;;  %v101_v62 = vld [vmem:[#allocation2 + $0x128] sm:$0xff]  ;;  %v100_v4 = vld [vmem:[#allocation2 + $0x120] sm:$0xff] }
  0x2f   :  { %505 = vmatpush1.bf16.msra.mxu0 %v244_v12  ;;  %534 = vmatprep.mubr.bf16.mxu0 %v8435_v36  ;;  %v214_v46 = vunpack.c.h.s8.bf16 %v64_v44  ;;  %v310_v47 = vunpack.c.h.s8.bf16 %v112_v45  ;;  %v209_v48 = vunpack.c.l.s8.bf16 %v65_v38  ;;  %v305_v49 = vunpack.c.l.s8.bf16 %v113_v39  ;;  %v154_v57 = vld [vmem:[#allocation2 + $0x2d0] sm:$0xff]  ;;  %v149_v63 = vld [vmem:[#allocation2 + $0x2a8] sm:$0xff]  ;;  %v148_v5 = vld [vmem:[#allocation2 + $0x2a0] sm:$0xff] }
  0x30   :  { %546 = vmatpush1.bf16.msra.mxu1 %v340_v13  ;;  %506 = vmatprep.subr.bf16.mxu0 %v239_v14  ;;  %v208_v52 = vunpack.c.l.s8.bf16 %v64_v44  ;;  %v304_v53 = vunpack.c.l.s8.bf16 %v112_v45  ;;  %v299_v54 = vunpack.c.h.s8.bf16 %v107_v50  ;;  %v395_v55 = vunpack.c.h.s8.bf16 %v155_v51  ;;  %v95_v10 = vld [vmem:[#allocation2 + $0xf8] sm:$0xff]  ;;  %v94_v16 = vld [vmem:[#allocation2 + $0xf0] sm:$0xff]  ;;  %v89_v22 = vld [vmem:[#allocation2 + $0xc8] sm:$0xff] }
  0x31   :  { %547 = vmatprep.subr.bf16.mxu1 %v335_v15  ;;  %575 = vmatprep.mubr.bf16.mxu1 %v8437_v37  ;;  %v298_v58 = vunpack.c.h.s8.bf16 %v106_v56  ;;  %v394_v59 = vunpack.c.h.s8.bf16 %v154_v57  ;;  %v293_v60 = vunpack.c.l.s8.bf16 %v107_v50  ;;  %v389_v61 = vunpack.c.l.s8.bf16 %v155_v51  ;;  %v143_v11 = vld [vmem:[#allocation2 + $0x278] sm:$0xff]  ;;  %v142_v17 = vld [vmem:[#allocation2 + $0x270] sm:$0xff]  ;;  %v137_v23 = vld [vmem:[#allocation2 + $0x248] sm:$0xff] }
  0x32   :  { %v292_v0 = vunpack.c.l.s8.bf16 %v106_v56  ;;  %v388_v1 = vunpack.c.l.s8.bf16 %v154_v57  ;;  %v287_v2 = vunpack.c.h.s8.bf16 %v101_v62  ;;  %v383_v3 = vunpack.c.h.s8.bf16 %v149_v63  ;;  %v88_v28 = vld [vmem:[#allocation2 + $0xc0] sm:$0xff]  ;;  %v178_v44 = vld [vmem:[#allocation2 + $0x390] sm:$0xff] }
  0x33   :  { %507 = vmatpush1.bf16.msra.mxu0 %v238_v18  ;;  %v286_v6 = vunpack.c.h.s8.bf16 %v100_v4  ;;  %v382_v7 = vunpack.c.h.s8.bf16 %v148_v5  ;;  %v281_v8 = vunpack.c.l.s8.bf16 %v101_v62  ;;  %v377_v9 = vunpack.c.l.s8.bf16 %v149_v63  ;;  %v136_v29 = vld [vmem:[#allocation2 + $0x240] sm:$0xff] }
  0x34   :  { %548 = vmatpush1.bf16.msra.mxu1 %v334_v19  ;;  %508 = vmatprep.subr.bf16.mxu0 %v233_v20  ;;  %v280_v12 = vunpack.c.l.s8.bf16 %v100_v4  ;;  %v376_v13 = vunpack.c.l.s8.bf16 %v148_v5  ;;  %v275_v14 = vunpack.c.h.s8.bf16 %v95_v10  ;;  %v371_v15 = vunpack.c.h.s8.bf16 %v143_v11  ;;  %v84_v45 = vld [vmem:[#allocation2 + $0xa0] sm:$0xff] }
  0x35   :  { %549 = vmatprep.subr.bf16.mxu1 %v329_v21  ;;  %v274_v18 = vunpack.c.h.s8.bf16 %v94_v16  ;;  %v370_v19 = vunpack.c.h.s8.bf16 %v142_v17  ;;  %v269_v20 = vunpack.c.l.s8.bf16 %v95_v10  ;;  %v365_v21 = vunpack.c.l.s8.bf16 %v143_v11 }
  0x36   :  { %v262_v30 = vunpack.c.h.s8.bf16 %v88_v28  ;;  %v358_v31 = vunpack.c.h.s8.bf16 %v136_v29  ;;  %v256_v38 = vunpack.c.l.s8.bf16 %v88_v28  ;;  %v352_v39 = vunpack.c.l.s8.bf16 %v136_v29 }
  0x37   :  { %509 = vmatpush1.bf16.msra.mxu0 %v232_v24  ;;  %v268_v24 = vunpack.c.l.s8.bf16 %v94_v16  ;;  %v252_v50 = vunpack.c.h.s8.bf16 %v84_v45  ;;  %v436_v56 = vunpack.c.l.s8.bf16 %v178_v44  ;;  %v246_v57 = vunpack.c.l.s8.bf16 %v84_v45 }
  0x38   :  { %550 = vmatpush1.bf16.msra.mxu1 %v328_v25  ;;  %510 = vmatprep.subr.bf16.mxu0 %v227_v26  ;;  %v364_v25 = vunpack.c.l.s8.bf16 %v142_v17  ;;  %v263_v26 = vunpack.c.h.s8.bf16 %v89_v22 }
  0x39   :  { %551 = vmatprep.subr.bf16.mxu1 %v323_v27  ;;  %v359_v27 = vunpack.c.h.s8.bf16 %v137_v23 }
  0x3b   :  { %511 = vmatpush1.bf16.msra.mxu0 %v226_v32  ;;  %v257_v32 = vunpack.c.l.s8.bf16 %v89_v22 }
  0x3c   :  { %552 = vmatpush1.bf16.msra.mxu1 %v322_v33  ;;  %512 = vmatprep.subr.bf16.mxu0 %v221_v34  ;;  %v353_v33 = vunpack.c.l.s8.bf16 %v137_v23  ;;  %v179_v34 = vld [vmem:[#allocation2 + $0x398] sm:$0xff] }
  0x3d   :  { %553 = vmatprep.subr.bf16.mxu1 %v317_v35  ;;  %v85_v35 = vld [vmem:[#allocation2 + $0xa8] sm:$0xff]  ;;  %v437_v51 = vunpack.c.l.s8.bf16 %v179_v34 }
  0x3f   :  { %513 = vmatpush1.bf16.msra.mxu0 %v220_v40  ;;  %v58_v40 = vld [vmem:[%s9389_s0] sm:$0xff] }
  0x40   :  { %554 = vmatpush1.bf16.msra.mxu1 %v316_v41  ;;  %514 = vmatprep.subr.bf16.mxu0 %v215_v42  ;;  %v60_v41 = vld [vmem:[%s9389_s0 + $0x10] sm:$0xff]  ;;  %v443_v42 = vunpack.c.h.s8.bf16 %v179_v34 }
  0x41   :  { %555 = vmatprep.subr.bf16.mxu1 %v311_v43  ;;  %v253_v43 = vunpack.c.h.s8.bf16 %v85_v35 }
  0x43   :  { %515 = vmatpush1.bf16.msra.mxu0 %v214_v46  ;;  %v8447_v46 = vpack.c.bf16 %v58_v40, %v58_v40  ;;  %v197_v40 = vld [vmem:[#allocation2 + $0x428] sm:$0xff] }
  0x44   :  { %556 = vmatpush1.bf16.msra.mxu1 %v310_v47  ;;  %516 = vmatprep.subr.bf16.mxu0 %v209_v48  ;;  %v8449_v47 = vpack.c.bf16 %v60_v41, %v60_v41  ;;  %v63_v48 = vld [vmem:[%s9389_s0 + $0x28] sm:$0xff]  ;;  %v103_v41 = vld [vmem:[#allocation2 + $0x138] sm:$0xff] }
  0x45   :  { %557 = vmatprep.subr.bf16.mxu1 %v305_v49  ;;  %v442_v49 = vunpack.c.h.s8.bf16 %v178_v44  ;;  %v479_v44 = vunpack.c.h.s8.bf16 %v197_v40  ;;  %v289_v45 = vunpack.c.h.s8.bf16 %v103_v41 }
  0x47   :  { %517 = vmatpush1.bf16.msra.mxu0 %v208_v52  ;;  %v247_v52 = vunpack.c.l.s8.bf16 %v85_v35 }
  0x48   :  { %558 = vmatpush1.bf16.msra.mxu1 %v304_v53  ;;  %518 = vmatprep.subr.bf16.mxu0 %v299_v54  ;;  %v173_v53 = vld [vmem:[#allocation2 + $0x368] sm:$0xff]  ;;  %v79_v54 = vld [vmem:[#allocation2 + $0x78] sm:$0xff] }
  0x49   :  { %559 = vmatprep.subr.bf16.mxu1 %v395_v55  ;;  %v8454_v55 = vpack.c.bf16 %v63_v48, %v63_v48  ;;  %v196_v48 = vld [vmem:[#allocation2 + $0x420] sm:$0xff] }
  0x4b   :  { %519 = vmatpush2.bf16.msra.mxu0 %v298_v58  ;;  %v431_v58 = vunpack.c.h.s8.bf16 %v173_v53 }
  0x4c   :  { %560 = vmatpush2.bf16.msra.mxu1 %v394_v59  ;;  %520 = vmatprep.subr.bf16.mxu0 %v293_v60  ;;  %v241_v59 = vunpack.c.h.s8.bf16 %v79_v54  ;;  %v172_v60 = vld [vmem:[#allocation2 + $0x360] sm:$0xff] }
  0x4d   :  { %561 = vmatprep.subr.bf16.mxu1 %v389_v61  ;;  %v78_v61 = vld [vmem:[#allocation2 + $0x70] sm:$0xff]  ;;  %v430_v62 = vunpack.c.h.s8.bf16 %v172_v60  ;;  %v424_v4 = vunpack.c.l.s8.bf16 %v172_v60 }
  0x4e   :  { %v240_v63 = vunpack.c.h.s8.bf16 %v78_v61  ;;  %v234_v5 = vunpack.c.l.s8.bf16 %v78_v61  ;;  %v190_v61 = vld [vmem:[#allocation2 + $0x3f0] sm:$0xff] }
  0x4f   :  { %521 = vmatpush2.bf16.msra.mxu0 %v292_v0  ;;  %v425_v0 = vunpack.c.l.s8.bf16 %v173_v53  ;;  %v283_v53 = vunpack.c.l.s8.bf16 %v103_v41 }
  0x50   :  { %562 = vmatpush2.bf16.msra.mxu1 %v388_v1  ;;  %522 = vmatprep.subr.bf16.mxu0 %v287_v2  ;;  %v235_v1 = vunpack.c.l.s8.bf16 %v79_v54  ;;  %v167_v2 = vld [vmem:[#allocation2 + $0x338] sm:$0xff] }
  0x51   :  { %563 = vmatprep.subr.bf16.mxu1 %v383_v3  ;;  %v73_v3 = vld [vmem:[#allocation2 + $0x48] sm:$0xff]  ;;  %v191_v54 = vld [vmem:[#allocation2 + $0x3f8] sm:$0xff] }
  0x53   :  { %523 = vmatpush2.bf16.msra.mxu0 %v286_v6  ;;  %v419_v6 = vunpack.c.h.s8.bf16 %v167_v2 }
  0x54   :  { %564 = vmatpush2.bf16.msra.mxu1 %v382_v7  ;;  %524 = vmatprep.subr.bf16.mxu0 %v281_v8  ;;  %v229_v7 = vunpack.c.h.s8.bf16 %v73_v3  ;;  %v166_v8 = vld [vmem:[#allocation2 + $0x330] sm:$0xff] }
  0x55   :  { %565 = vmatprep.subr.bf16.mxu1 %v377_v9  ;;  %v72_v9 = vld [vmem:[#allocation2 + $0x40] sm:$0xff]  ;;  %v418_v10 = vunpack.c.h.s8.bf16 %v166_v8  ;;  %v412_v16 = vunpack.c.l.s8.bf16 %v166_v8 }
  0x56   :  { %v228_v11 = vunpack.c.h.s8.bf16 %v72_v9  ;;  %v222_v17 = vunpack.c.l.s8.bf16 %v72_v9  ;;  %v184_v9 = vld [vmem:[#allocation2 + $0x3c0] sm:$0xff] }
  0x57   :  { %525 = vmatpush2.bf16.msra.mxu0 %v280_v12  ;;  %v413_v12 = vunpack.c.l.s8.bf16 %v167_v2 }
  0x58   :  { %566 = vmatpush2.bf16.msra.mxu1 %v376_v13  ;;  %526 = vmatprep.subr.bf16.mxu0 %v275_v14  ;;  %v223_v13 = vunpack.c.l.s8.bf16 %v73_v3  ;;  %v161_v14 = vld [vmem:[#allocation2 + $0x308] sm:$0xff] }
  0x59   :  { %567 = vmatprep.subr.bf16.mxu1 %v371_v15  ;;  %v67_v15 = vld [vmem:[#allocation2 + $0x18] sm:$0xff]  ;;  %v185_v3 = vld [vmem:[#allocation2 + $0x3c8] sm:$0xff] }
  0x5b   :  { %527 = vmatpush2.bf16.msra.mxu0 %v274_v18  ;;  %v407_v18 = vunpack.c.h.s8.bf16 %v161_v14 }
  0x5c   :  { %568 = vmatpush2.bf16.msra.mxu1 %v370_v19  ;;  %528 = vmatprep.subr.bf16.mxu0 %v269_v20  ;;  %v217_v19 = vunpack.c.h.s8.bf16 %v67_v15  ;;  %v160_v20 = vld [vmem:[#allocation2 + $0x300] sm:$0xff] }
  0x5d   :  { %569 = vmatprep.subr.bf16.mxu1 %v365_v21  ;;  %v66_v21 = vld [vmem:[#allocation2 + $0x10] sm:$0xff]  ;;  %v406_v22 = vunpack.c.h.s8.bf16 %v160_v20  ;;  %v400_v28 = vunpack.c.l.s8.bf16 %v160_v20 }
  0x5e   :  { %v216_v23 = vunpack.c.h.s8.bf16 %v66_v21  ;;  %v210_v29 = vunpack.c.l.s8.bf16 %v66_v21 }
  0x5f   :  { %529 = vmatpush2.bf16.msra.mxu0 %v268_v24  ;;  %v401_v24 = vunpack.c.l.s8.bf16 %v161_v14 }
  0x60   :  { %570 = vmatpush2.bf16.msra.mxu1 %v364_v25  ;;  %530 = vmatprep.subr.bf16.mxu0 %v263_v26  ;;  %v211_v25 = vunpack.c.l.s8.bf16 %v67_v15  ;;  %v203_v26 = vld [vmem:[#allocation2 + $0x458] sm:$0xff]  ;;  %v133_v15 = vld [vmem:[#allocation2 + $0x228] sm:$0xff] }
  0x61   :  { %571 = vmatprep.subr.bf16.mxu1 %v359_v27  ;;  %v109_v27 = vld [vmem:[#allocation2 + $0x168] sm:$0xff]  ;;  %v349_v20 = vunpack.c.h.s8.bf16 %v133_v15 }
  0x63   :  { %531 = vmatpush2.bf16.msra.mxu0 %v262_v30  ;;  %v491_v30 = vunpack.c.h.s8.bf16 %v203_v26 }
  0x64   :  { %572 = vmatpush2.bf16.msra.mxu1 %v358_v31  ;;  %532 = vmatprep.subr.bf16.mxu0 %v257_v32  ;;  %v301_v31 = vunpack.c.h.s8.bf16 %v109_v27  ;;  %v202_v32 = vld [vmem:[#allocation2 + $0x450] sm:$0xff] }
  0x65   :  { %573 = vmatprep.subr.bf16.mxu1 %v353_v33  ;;  %v108_v33 = vld [vmem:[#allocation2 + $0x160] sm:$0xff]  ;;  %v490_v34 = vunpack.c.h.s8.bf16 %v202_v32 }
  0x66   :  { %v300_v35 = vunpack.c.h.s8.bf16 %v108_v33 }
  0x67   :  { %533 = vmatpush2.bf16.msra.mxu0 %v256_v38  ;;  %v485_v38 = vunpack.c.l.s8.bf16 %v203_v26 }
  0x68   :  { %574 = vmatpush2.bf16.msra.mxu1 %v352_v39  ;;  %584 = vmatprep.subr.bf16.mxu0 %v443_v42  ;;  %v295_v39 = vunpack.c.l.s8.bf16 %v109_v27  ;;  %v484_v42 = vunpack.c.l.s8.bf16 %v202_v32  ;;  %v343_v27 = vunpack.c.l.s8.bf16 %v133_v15 }
  0x69   :  { %625 = vmatprep.subr.bf16.mxu1 %v253_v43  ;;  %v294_v43 = vunpack.c.l.s8.bf16 %v108_v33 }
  0x6a   :  { %535 = vmatmul.mubr.bf16.vlgmr.msra.gmra.mxu0 %v8447_v46 }
  0x6b   :  { %576 = vmatmul.mubr.bf16.vlgmr.msra.gmra.mxu1 %v8449_v47  ;;  %585 = vmatpush1.bf16.msra.mxu0 %v442_v49  ;;  %v102_v49 = vld [vmem:[#allocation2 + $0x130] sm:$0xff] }
  0x6c   :  { %626 = vmatpush1.bf16.msra.mxu1 %v252_v50  ;;  %586 = vmatprep.subr.bf16.mxu0 %v437_v51  ;;  %v478_v50 = vunpack.c.h.s8.bf16 %v196_v48  ;;  %v288_v51 = vunpack.c.h.s8.bf16 %v102_v49 }
  0x6d   :  { %627 = vmatprep.subr.bf16.mxu1 %v247_v52  ;;  %616 = vmatprep.mubr.bf16.mxu0 %v8454_v55  ;;  %v473_v52 = vunpack.c.l.s8.bf16 %v197_v40 }
  0x6e   :  { %657 = vmatprep.mubr.bf16.mxu1 %v8435_v36 }
  0x6f   :  { %587 = vmatpush1.bf16.msra.mxu0 %v436_v56  ;;  %v97_v56 = vld [vmem:[#allocation2 + $0x108] sm:$0xff] }
  0x70   :  { %628 = vmatpush1.bf16.msra.mxu1 %v246_v57  ;;  %588 = vmatprep.subr.bf16.mxu0 %v431_v58  ;;  %v472_v57 = vunpack.c.l.s8.bf16 %v196_v48  ;;  %v282_v58 = vunpack.c.l.s8.bf16 %v102_v49  ;;  %v277_v60 = vunpack.c.h.s8.bf16 %v97_v56  ;;  %v271_v2 = vunpack.c.l.s8.bf16 %v97_v56 }
  0x71   :  { %629 = vmatprep.subr.bf16.mxu1 %v241_v59  ;;  %v467_v59 = vunpack.c.h.s8.bf16 %v191_v54 }
  0x73   :  { %589 = vmatpush1.bf16.msra.mxu0 %v430_v62  ;;  %v96_v62 = vld [vmem:[#allocation2 + $0x100] sm:$0xff] }
  0x74   :  { %630 = vmatpush1.bf16.msra.mxu1 %v240_v63  ;;  %590 = vmatprep.subr.bf16.mxu0 %v425_v0  ;;  %v466_v63 = vunpack.c.h.s8.bf16 %v190_v61  ;;  %v276_v0 = vunpack.c.h.s8.bf16 %v96_v62 }
  0x75   :  { %631 = vmatprep.subr.bf16.mxu1 %v235_v1  ;;  %v461_v1 = vunpack.c.l.s8.bf16 %v191_v54 }
  0x77   :  { %591 = vmatpush1.bf16.msra.mxu0 %v424_v4  ;;  %v91_v4 = vld [vmem:[#allocation2 + $0xd8] sm:$0xff] }
  0x78   :  { %632 = vmatpush1.bf16.msra.mxu1 %v234_v5  ;;  %592 = vmatprep.subr.bf16.mxu0 %v419_v6  ;;  %v460_v5 = vunpack.c.l.s8.bf16 %v190_v61  ;;  %v270_v6 = vunpack.c.l.s8.bf16 %v96_v62  ;;  %v265_v8 = vunpack.c.h.s8.bf16 %v91_v4  ;;  %v259_v14 = vunpack.c.l.s8.bf16 %v91_v4 }
  0x79   :  { %633 = vmatprep.subr.bf16.mxu1 %v229_v7  ;;  %v455_v7 = vunpack.c.h.s8.bf16 %v185_v3 }
  0x7b   :  { %593 = vmatpush1.bf16.msra.mxu0 %v418_v10  ;;  %v90_v10 = vld [vmem:[#allocation2 + $0xd0] sm:$0xff] }
  0x7c   :  { %634 = vmatpush1.bf16.msra.mxu1 %v228_v11  ;;  %594 = vmatprep.subr.bf16.mxu0 %v413_v12  ;;  %v454_v11 = vunpack.c.h.s8.bf16 %v184_v9  ;;  %v264_v12 = vunpack.c.h.s8.bf16 %v90_v10 }
  0x7d   :  { %635 = vmatprep.subr.bf16.mxu1 %v223_v13  ;;  %v449_v13 = vunpack.c.l.s8.bf16 %v185_v3 }
  0x7f   :  { %595 = vmatpush1.bf16.msra.mxu0 %v412_v16  ;;  %v181_v16 = vld [vmem:[#allocation2 + $0x3a8] sm:$0xff] }
  0x80   :  { %636 = vmatpush1.bf16.msra.mxu1 %v222_v17  ;;  %596 = vmatprep.subr.bf16.mxu0 %v407_v18  ;;  %v448_v17 = vunpack.c.l.s8.bf16 %v184_v9  ;;  %v258_v18 = vunpack.c.l.s8.bf16 %v90_v10  ;;  %v445_v21 = vunpack.c.h.s8.bf16 %v181_v16 }
  0x81   :  { %637 = vmatprep.subr.bf16.mxu1 %v217_v19  ;;  %v62_v19 = vld [vmem:[%s9389_s0 + $0x20] sm:$0xff] }
  0x83   :  { %597 = vmatpush1.bf16.msra.mxu0 %v406_v22  ;;  %v132_v22 = vld [vmem:[#allocation2 + $0x220] sm:$0xff] }
  0x84   :  { %638 = vmatpush1.bf16.msra.mxu1 %v216_v23  ;;  %598 = vmatprep.subr.bf16.mxu0 %v401_v24  ;;  %v180_v23 = vld [vmem:[#allocation2 + $0x3a0] sm:$0xff]  ;;  %v8463_v24 = vpack.c.bf16 %v62_v19, %v62_v19  ;;  %v199_v19 = vld [vmem:[#allocation2 + $0x438] sm:$0xff] }
  0x85   :  { %639 = vmatprep.subr.bf16.mxu1 %v211_v25  ;;  %v348_v25 = vunpack.c.h.s8.bf16 %v132_v22  ;;  %v444_v26 = vunpack.c.h.s8.bf16 %v180_v23  ;;  %v438_v32 = vunpack.c.l.s8.bf16 %v180_v23  ;;  %v481_v23 = vunpack.c.h.s8.bf16 %v199_v19 }
  0x87   :  { %599 = vmatpush1.bf16.msra.mxu0 %v400_v28  ;;  %v439_v28 = vunpack.c.l.s8.bf16 %v181_v16 }
  0x88   :  { %640 = vmatpush1.bf16.msra.mxu1 %v210_v29  ;;  %600 = vmatprep.subr.bf16.mxu0 %v491_v30  ;;  %v127_v29 = vld [vmem:[#allocation2 + $0x1f8] sm:$0xff] }
  0x89   :  { %641 = vmatprep.subr.bf16.mxu1 %v301_v31  ;;  %v175_v30 = vld [vmem:[#allocation2 + $0x378] sm:$0xff]  ;;  %v342_v31 = vunpack.c.l.s8.bf16 %v132_v22  ;;  %v337_v33 = vunpack.c.h.s8.bf16 %v127_v29  ;;  %v331_v41 = vunpack.c.l.s8.bf16 %v127_v29 }
  0x8b   :  { %601 = vmatpush2.bf16.msra.mxu0 %v490_v34  ;;  %v433_v34 = vunpack.c.h.s8.bf16 %v175_v30 }
  0x8c   :  { %642 = vmatpush2.bf16.msra.mxu1 %v300_v35  ;;  %602 = vmatprep.subr.bf16.mxu0 %v485_v38  ;;  %v126_v35 = vld [vmem:[#allocation2 + $0x1f0] sm:$0xff] }
  0x8d   :  { %643 = vmatprep.subr.bf16.mxu1 %v295_v39  ;;  %v174_v38 = vld [vmem:[#allocation2 + $0x370] sm:$0xff]  ;;  %v336_v39 = vunpack.c.h.s8.bf16 %v126_v35 }
  0x8e   :  { %v432_v40 = vunpack.c.h.s8.bf16 %v174_v38  ;;  %v426_v48 = vunpack.c.l.s8.bf16 %v174_v38 }
  0x8f   :  { %603 = vmatpush2.bf16.msra.mxu0 %v484_v42  ;;  %v427_v42 = vunpack.c.l.s8.bf16 %v175_v30  ;;  %v475_v30 = vunpack.c.l.s8.bf16 %v199_v19 }
  0x90   :  { %644 = vmatpush2.bf16.msra.mxu1 %v294_v43  ;;  %604 = vmatprep.subr.bf16.mxu0 %v479_v44  ;;  %v121_v43 = vld [vmem:[#allocation2 + $0x1c8] sm:$0xff] }
  0x91   :  { %645 = vmatprep.subr.bf16.mxu1 %v289_v45  ;;  %v169_v44 = vld [vmem:[#allocation2 + $0x348] sm:$0xff]  ;;  %v330_v45 = vunpack.c.l.s8.bf16 %v126_v35  ;;  %v325_v49 = vunpack.c.h.s8.bf16 %v121_v43  ;;  %v319_v56 = vunpack.c.l.s8.bf16 %v121_v43 }
  0x93   :  { %605 = vmatpush2.bf16.msra.mxu0 %v478_v50  ;;  %v421_v50 = vunpack.c.h.s8.bf16 %v169_v44 }
  0x94   :  { %646 = vmatpush2.bf16.msra.mxu1 %v288_v51  ;;  %606 = vmatprep.subr.bf16.mxu0 %v473_v52  ;;  %v120_v51 = vld [vmem:[#allocation2 + $0x1c0] sm:$0xff] }
  0x95   :  { %647 = vmatprep.subr.bf16.mxu1 %v283_v53  ;;  %v168_v52 = vld [vmem:[#allocation2 + $0x340] sm:$0xff]  ;;  %v324_v53 = vunpack.c.h.s8.bf16 %v120_v51 }
  0x96   :  { %v420_v54 = vunpack.c.h.s8.bf16 %v168_v52  ;;  %v414_v61 = vunpack.c.l.s8.bf16 %v168_v52 }
  0x97   :  { %607 = vmatpush2.bf16.msra.mxu0 %v472_v57  ;;  %v415_v57 = vunpack.c.l.s8.bf16 %v169_v44 }
  0x98   :  { %648 = vmatpush2.bf16.msra.mxu1 %v282_v58  ;;  %608 = vmatprep.subr.bf16.mxu0 %v467_v59  ;;  %v115_v58 = vld [vmem:[#allocation2 + $0x198] sm:$0xff] }
  0x99   :  { %649 = vmatprep.subr.bf16.mxu1 %v277_v60  ;;  %v163_v59 = vld [vmem:[#allocation2 + $0x318] sm:$0xff]  ;;  %v318_v60 = vunpack.c.l.s8.bf16 %v120_v51  ;;  %v313_v62 = vunpack.c.h.s8.bf16 %v115_v58  ;;  %v307_v4 = vunpack.c.l.s8.bf16 %v115_v58 }
  0x9b   :  { %609 = vmatpush2.bf16.msra.mxu0 %v466_v63  ;;  %v409_v63 = vunpack.c.h.s8.bf16 %v163_v59 }
  0x9c   :  { %650 = vmatpush2.bf16.msra.mxu1 %v276_v0  ;;  %610 = vmatprep.subr.bf16.mxu0 %v461_v1  ;;  %v114_v0 = vld [vmem:[#allocation2 + $0x190] sm:$0xff] }
  0x9d   :  { %651 = vmatprep.subr.bf16.mxu1 %v271_v2  ;;  %v162_v1 = vld [vmem:[#allocation2 + $0x310] sm:$0xff]  ;;  %v312_v2 = vunpack.c.h.s8.bf16 %v114_v0 }
  0x9e   :  { %v408_v3 = vunpack.c.h.s8.bf16 %v162_v1  ;;  %v402_v9 = vunpack.c.l.s8.bf16 %v162_v1 }
  0x9f   :  { %611 = vmatpush2.bf16.msra.mxu0 %v460_v5  ;;  %v403_v5 = vunpack.c.l.s8.bf16 %v163_v59 }
  0xa0   :  { %652 = vmatpush2.bf16.msra.mxu1 %v270_v6  ;;  %612 = vmatprep.subr.bf16.mxu0 %v455_v7  ;;  %v157_v6 = vld [vmem:[#allocation2 + $0x2e8] sm:$0xff] }
  0xa1   :  { %653 = vmatprep.subr.bf16.mxu1 %v265_v8  ;;  %v205_v7 = vld [vmem:[#allocation2 + $0x468] sm:$0xff]  ;;  %v306_v8 = vunpack.c.l.s8.bf16 %v114_v0  ;;  %v397_v10 = vunpack.c.h.s8.bf16 %v157_v6  ;;  %v391_v16 = vunpack.c.l.s8.bf16 %v157_v6 }
  0xa3   :  { %613 = vmatpush2.bf16.msra.mxu0 %v454_v11  ;;  %v493_v11 = vunpack.c.h.s8.bf16 %v205_v7 }
  0xa4   :  { %654 = vmatpush2.bf16.msra.mxu1 %v264_v12  ;;  %614 = vmatprep.subr.bf16.mxu0 %v449_v13  ;;  %v156_v12 = vld [vmem:[#allocation2 + $0x2e0] sm:$0xff] }
  0xa5   :  { %655 = vmatprep.subr.bf16.mxu1 %v259_v14  ;;  %v204_v13 = vld [vmem:[#allocation2 + $0x460] sm:$0xff]  ;;  %v396_v14 = vunpack.c.h.s8.bf16 %v156_v12 }
  0xa6   :  { %v492_v15 = vunpack.c.h.s8.bf16 %v204_v13 }
  0xa7   :  { %615 = vmatpush2.bf16.msra.mxu0 %v448_v17  ;;  %v487_v17 = vunpack.c.l.s8.bf16 %v205_v7 }
  0xa8   :  { %656 = vmatpush2.bf16.msra.mxu1 %v258_v18  ;;  %666 = vmatprep.subr.bf16.mxu0 %v349_v20  ;;  %v151_v18 = vld [vmem:[#allocation2 + $0x2b8] sm:$0xff]  ;;  %v390_v20 = vunpack.c.l.s8.bf16 %v156_v12 }
  0xa9   :  { %707 = vmatprep.subr.bf16.mxu1 %v445_v21  ;;  %v486_v21 = vunpack.c.l.s8.bf16 %v204_v13  ;;  %v385_v22 = vunpack.c.h.s8.bf16 %v151_v18  ;;  %v379_v29 = vunpack.c.l.s8.bf16 %v151_v18 }
  0xaa   :  { %617 = vmatmul.mubr.bf16.vlgmr.msra.gmra.mxu0 %v8463_v24 }
  0xab   :  { %658 = vmatmul.mubr.bf16.vlgmr.msra.gmra.mxu1 %v8447_v46  ;;  %667 = vmatpush1.bf16.msra.mxu0 %v348_v25  ;;  %v150_v25 = vld [vmem:[#allocation2 + $0x2b0] sm:$0xff] }
  0xac   :  { %708 = vmatpush1.bf16.msra.mxu1 %v444_v26  ;;  %668 = vmatprep.subr.bf16.mxu0 %v343_v27  ;;  %v198_v26 = vld [vmem:[#allocation2 + $0x430] sm:$0xff]  ;;  %v384_v27 = vunpack.c.h.s8.bf16 %v150_v25 }
  0xad   :  { %709 = vmatprep.subr.bf16.mxu1 %v439_v28  ;;  %698 = vmatprep.mubr.bf16.mxu0 %v8437_v37  ;;  %v480_v28 = vunpack.c.h.s8.bf16 %v198_v26 }
  0xae   :  { %739 = vmatprep.mubr.bf16.mxu1 %v8454_v55 }
  0xaf   :  { %669 = vmatpush1.bf16.msra.mxu0 %v342_v31  ;;  %v145_v31 = vld [vmem:[#allocation2 + $0x288] sm:$0xff] }
  0xb0   :  { %710 = vmatpush1.bf16.msra.mxu1 %v438_v32  ;;  %670 = vmatprep.subr.bf16.mxu0 %v337_v33  ;;  %v193_v32 = vld [vmem:[#allocation2 + $0x408] sm:$0xff]  ;;  %v378_v33 = vunpack.c.l.s8.bf16 %v150_v25  ;;  %v373_v35 = vunpack.c.h.s8.bf16 %v145_v31  ;;  %v367_v43 = vunpack.c.l.s8.bf16 %v145_v31 }
  0xb1   :  { %711 = vmatprep.subr.bf16.mxu1 %v433_v34  ;;  %v474_v34 = vunpack.c.l.s8.bf16 %v198_v26  ;;  %v469_v38 = vunpack.c.h.s8.bf16 %v193_v32  ;;  %v463_v44 = vunpack.c.l.s8.bf16 %v193_v32 }
  0xb3   :  { %671 = vmatpush1.bf16.msra.mxu0 %v336_v39  ;;  %v144_v39 = vld [vmem:[#allocation2 + $0x280] sm:$0xff] }
  0xb4   :  { %712 = vmatpush1.bf16.msra.mxu1 %v432_v40  ;;  %672 = vmatprep.subr.bf16.mxu0 %v331_v41  ;;  %v192_v40 = vld [vmem:[#allocation2 + $0x400] sm:$0xff]  ;;  %v372_v41 = vunpack.c.h.s8.bf16 %v144_v39 }
  0xb5   :  { %713 = vmatprep.subr.bf16.mxu1 %v427_v42  ;;  %v468_v42 = vunpack.c.h.s8.bf16 %v192_v40 }
  0xb7   :  { %673 = vmatpush1.bf16.msra.mxu0 %v330_v45  ;;  %v139_v45 = vld [vmem:[#allocation2 + $0x258] sm:$0xff] }
  0xb8   :  { %714 = vmatpush1.bf16.msra.mxu1 %v426_v48  ;;  %674 = vmatprep.subr.bf16.mxu0 %v325_v49  ;;  %v187_v48 = vld [vmem:[#allocation2 + $0x3d8] sm:$0xff]  ;;  %v366_v49 = vunpack.c.l.s8.bf16 %v144_v39  ;;  %v361_v51 = vunpack.c.h.s8.bf16 %v139_v45  ;;  %v355_v58 = vunpack.c.l.s8.bf16 %v139_v45 }
  0xb9   :  { %715 = vmatprep.subr.bf16.mxu1 %v421_v50  ;;  %v462_v50 = vunpack.c.l.s8.bf16 %v192_v40  ;;  %v457_v52 = vunpack.c.h.s8.bf16 %v187_v48  ;;  %v451_v59 = vunpack.c.l.s8.bf16 %v187_v48 }
  0xbb   :  { %675 = vmatpush1.bf16.msra.mxu0 %v324_v53  ;;  %v138_v53 = vld [vmem:[#allocation2 + $0x250] sm:$0xff] }
  0xbc   :  { %716 = vmatpush1.bf16.msra.mxu1 %v420_v54  ;;  %676 = vmatprep.subr.bf16.mxu0 %v319_v56  ;;  %v186_v54 = vld [vmem:[#allocation2 + $0x3d0] sm:$0xff]  ;;  %v360_v56 = vunpack.c.h.s8.bf16 %v138_v53 }
  0xbd   :  { %717 = vmatprep.subr.bf16.mxu1 %v415_v57  ;;  %v456_v57 = vunpack.c.h.s8.bf16 %v186_v54 }
  0xbf   :  { %677 = vmatpush1.bf16.msra.mxu0 %v318_v60  ;;  %v87_v60 = vld [vmem:[#allocation2 + $0xb8] sm:$0xff] }
  0xc0   :  { %718 = vmatpush1.bf16.msra.mxu1 %v414_v61  ;;  %678 = vmatprep.subr.bf16.mxu0 %v313_v62  ;;  %v135_v61 = vld [vmem:[#allocation2 + $0x238] sm:$0xff]  ;;  %v354_v62 = vunpack.c.l.s8.bf16 %v138_v53  ;;  %v255_v0 = vunpack.c.h.s8.bf16 %v87_v60  ;;  %v249_v6 = vunpack.c.l.s8.bf16 %v87_v60 }
  0xc1   :  { %719 = vmatprep.subr.bf16.mxu1 %v409_v63  ;;  %v450_v63 = vunpack.c.l.s8.bf16 %v186_v54  ;;  %v351_v1 = vunpack.c.h.s8.bf16 %v135_v61  ;;  %v345_v7 = vunpack.c.l.s8.bf16 %v135_v61 }
  0xc3   :  { %679 = vmatpush1.bf16.msra.mxu0 %v312_v2  ;;  %v86_v2 = vld [vmem:[#allocation2 + $0xb0] sm:$0xff] }
  0xc4   :  { %720 = vmatpush1.bf16.msra.mxu1 %v408_v3  ;;  %680 = vmatprep.subr.bf16.mxu0 %v307_v4  ;;  %v134_v3 = vld [vmem:[#allocation2 + $0x230] sm:$0xff]  ;;  %v254_v4 = vunpack.c.h.s8.bf16 %v86_v2 }
  0xc5   :  { %721 = vmatprep.subr.bf16.mxu1 %v403_v5  ;;  %v350_v5 = vunpack.c.h.s8.bf16 %v134_v3 }
  0xc7   :  { %681 = vmatpush1.bf16.msra.mxu0 %v306_v8  ;;  %v81_v8 = vld [vmem:[#allocation2 + $0x88] sm:$0xff] }
  0xc8   :  { %722 = vmatpush1.bf16.msra.mxu1 %v402_v9  ;;  %682 = vmatprep.subr.bf16.mxu0 %v397_v10  ;;  %v129_v9 = vld [vmem:[#allocation2 + $0x208] sm:$0xff]  ;;  %v248_v10 = vunpack.c.l.s8.bf16 %v86_v2  ;;  %v243_v12 = vunpack.c.h.s8.bf16 %v81_v8  ;;  %v237_v18 = vunpack.c.l.s8.bf16 %v81_v8 }
  0xc9   :  { %723 = vmatprep.subr.bf16.mxu1 %v493_v11  ;;  %v344_v11 = vunpack.c.l.s8.bf16 %v134_v3  ;;  %v339_v13 = vunpack.c.h.s8.bf16 %v129_v9  ;;  %v333_v19 = vunpack.c.l.s8.bf16 %v129_v9 }
  0xcb   :  { %683 = vmatpush2.bf16.msra.mxu0 %v396_v14  ;;  %v80_v14 = vld [vmem:[#allocation2 + $0x80] sm:$0xff] }
  0xcc   :  { %724 = vmatpush2.bf16.msra.mxu1 %v492_v15  ;;  %684 = vmatprep.subr.bf16.mxu0 %v391_v16  ;;  %v128_v15 = vld [vmem:[#allocation2 + $0x200] sm:$0xff]  ;;  %v242_v16 = vunpack.c.h.s8.bf16 %v80_v14 }
  0xcd   :  { %725 = vmatprep.subr.bf16.mxu1 %v487_v17  ;;  %v338_v17 = vunpack.c.h.s8.bf16 %v128_v15 }
  0xcf   :  { %685 = vmatpush2.bf16.msra.mxu0 %v390_v20  ;;  %v75_v20 = vld [vmem:[#allocation2 + $0x58] sm:$0xff] }
  0xd0   :  { %726 = vmatpush2.bf16.msra.mxu1 %v486_v21  ;;  %686 = vmatprep.subr.bf16.mxu0 %v385_v22  ;;  %v123_v21 = vld [vmem:[#allocation2 + $0x1d8] sm:$0xff]  ;;  %v236_v22 = vunpack.c.l.s8.bf16 %v80_v14  ;;  %v231_v25 = vunpack.c.h.s8.bf16 %v75_v20  ;;  %v225_v31 = vunpack.c.l.s8.bf16 %v75_v20 }
  0xd1   :  { %727 = vmatprep.subr.bf16.mxu1 %v481_v23  ;;  %v332_v23 = vunpack.c.l.s8.bf16 %v128_v15  ;;  %v327_v26 = vunpack.c.h.s8.bf16 %v123_v21  ;;  %v321_v32 = vunpack.c.l.s8.bf16 %v123_v21 }
  0xd3   :  { %687 = vmatpush2.bf16.msra.mxu0 %v384_v27  ;;  %v74_v27 = vld [vmem:[#allocation2 + $0x50] sm:$0xff] }
  0xd4   :  { %728 = vmatpush2.bf16.msra.mxu1 %v480_v28  ;;  %688 = vmatprep.subr.bf16.mxu0 %v379_v29  ;;  %v122_v28 = vld [vmem:[#allocation2 + $0x1d0] sm:$0xff]  ;;  %v230_v29 = vunpack.c.h.s8.bf16 %v74_v27 }
  0xd5   :  { %729 = vmatprep.subr.bf16.mxu1 %v475_v30  ;;  %v326_v30 = vunpack.c.h.s8.bf16 %v122_v28 }
  0xd7   :  { %689 = vmatpush2.bf16.msra.mxu0 %v378_v33  ;;  %v69_v33 = vld [vmem:[#allocation2 + $0x28] sm:$0xff] }
  0xd8   :  { %730 = vmatpush2.bf16.msra.mxu1 %v474_v34  ;;  %690 = vmatprep.subr.bf16.mxu0 %v373_v35  ;;  %v117_v34 = vld [vmem:[#allocation2 + $0x1a8] sm:$0xff]  ;;  %v224_v35 = vunpack.c.l.s8.bf16 %v74_v27  ;;  %v219_v39 = vunpack.c.h.s8.bf16 %v69_v33  ;;  %v213_v45 = vunpack.c.l.s8.bf16 %v69_v33 }
  0xd9   :  { %731 = vmatprep.subr.bf16.mxu1 %v469_v38  ;;  %v320_v38 = vunpack.c.l.s8.bf16 %v122_v28  ;;  %v315_v40 = vunpack.c.h.s8.bf16 %v117_v34  ;;  %v309_v48 = vunpack.c.l.s8.bf16 %v117_v34 }
  0xdb   :  { %691 = vmatpush2.bf16.msra.mxu0 %v372_v41  ;;  %v68_v41 = vld [vmem:[#allocation2 + $0x20] sm:$0xff] }
  0xdc   :  { %732 = vmatpush2.bf16.msra.mxu1 %v468_v42  ;;  %692 = vmatprep.subr.bf16.mxu0 %v367_v43  ;;  %v116_v42 = vld [vmem:[#allocation2 + $0x1a0] sm:$0xff]  ;;  %v218_v43 = vunpack.c.h.s8.bf16 %v68_v41 }
  0xdd   :  { %733 = vmatprep.subr.bf16.mxu1 %v463_v44  ;;  %v314_v44 = vunpack.c.h.s8.bf16 %v116_v42 }
  0xdf   :  { %693 = vmatpush2.bf16.msra.mxu0 %v366_v49  ;;  %v111_v49 = vld [vmem:[#allocation2 + $0x178] sm:$0xff] }
  0xe0   :  { %734 = vmatpush2.bf16.msra.mxu1 %v462_v50  ;;  %694 = vmatprep.subr.bf16.mxu0 %v361_v51  ;;  %v159_v50 = vld [vmem:[#allocation2 + $0x2f8] sm:$0xff]  ;;  %v212_v51 = vunpack.c.l.s8.bf16 %v68_v41  ;;  %v303_v53 = vunpack.c.h.s8.bf16 %v111_v49  ;;  %v297_v60 = vunpack.c.l.s8.bf16 %v111_v49 }
  0xe1   :  { %735 = vmatprep.subr.bf16.mxu1 %v457_v52  ;;  %v308_v52 = vunpack.c.l.s8.bf16 %v116_v42  ;;  %v399_v54 = vunpack.c.h.s8.bf16 %v159_v50  ;;  %v393_v61 = vunpack.c.l.s8.bf16 %v159_v50  ;;  %v182_v42 = vld [vmem:[#allocation2 + $0x3b0] sm:$0xff] }
  0xe3   :  { %695 = vmatpush2.bf16.msra.mxu0 %v360_v56  ;;  %v110_v56 = vld [vmem:[#allocation2 + $0x170] sm:$0xff] }
  0xe4   :  { %736 = vmatpush2.bf16.msra.mxu1 %v456_v57  ;;  %696 = vmatprep.subr.bf16.mxu0 %v355_v58  ;;  %v158_v57 = vld [vmem:[#allocation2 + $0x2f0] sm:$0xff]  ;;  %v302_v58 = vunpack.c.h.s8.bf16 %v110_v56 }
  0xe5   :  { %737 = vmatprep.subr.bf16.mxu1 %v451_v59  ;;  %v398_v59 = vunpack.c.h.s8.bf16 %v158_v57 }
  0xe7   :  { %697 = vmatpush2.bf16.msra.mxu0 %v354_v62  ;;  %v105_v62 = vld [vmem:[#allocation2 + $0x148] sm:$0xff] }
  0xe8   :  { %738 = vmatpush2.bf16.msra.mxu1 %v450_v63  ;;  %748 = vmatprep.subr.bf16.mxu0 %v255_v0  ;;  %v153_v63 = vld [vmem:[#allocation2 + $0x2c8] sm:$0xff]  ;;  %v296_v0 = vunpack.c.l.s8.bf16 %v110_v56  ;;  %v291_v2 = vunpack.c.h.s8.bf16 %v105_v62  ;;  %v285_v8 = vunpack.c.l.s8.bf16 %v105_v62  ;;  %v176_v62 = vld [vmem:[#allocation2 + $0x380] sm:$0xff] }
  0xe9   :  { %789 = vmatprep.subr.bf16.mxu1 %v351_v1  ;;  %v392_v1 = vunpack.c.l.s8.bf16 %v158_v57  ;;  %v387_v3 = vunpack.c.h.s8.bf16 %v153_v63  ;;  %v381_v9 = vunpack.c.l.s8.bf16 %v153_v63  ;;  %v440_v57 = vunpack.c.l.s8.bf16 %v182_v42 }
  0xea   :  { %699 = vmatmul.mubr.bf16.vlgmr.msra.gmra.mxu0 %v8449_v47 }
  0xeb   :  { %740 = vmatmul.mubr.bf16.vlgmr.msra.gmra.mxu1 %v8463_v24  ;;  %749 = vmatpush1.bf16.msra.mxu0 %v254_v4  ;;  %v104_v4 = vld [vmem:[#allocation2 + $0x140] sm:$0xff] }
  0xec   :  { %790 = vmatpush1.bf16.msra.mxu1 %v350_v5  ;;  %750 = vmatprep.subr.bf16.mxu0 %v249_v6  ;;  %v152_v5 = vld [vmem:[#allocation2 + $0x2c0] sm:$0xff]  ;;  %v290_v6 = vunpack.c.h.s8.bf16 %v104_v4 }
  0xed   :  { %791 = vmatprep.subr.bf16.mxu1 %v345_v7  ;;  %780 = vmatprep.mubr.bf16.mxu0 %v8435_v36  ;;  %v386_v7 = vunpack.c.h.s8.bf16 %v152_v5 }
  0xee   :  { %821 = vmatprep.mubr.bf16.mxu1 %v8437_v37 }
  0xef   :  { %751 = vmatpush1.bf16.msra.mxu0 %v248_v10  ;;  %v99_v10 = vld [vmem:[#allocation2 + $0x118] sm:$0xff] }
  0xf0   :  { %792 = vmatpush1.bf16.msra.mxu1 %v344_v11  ;;  %752 = vmatprep.subr.bf16.mxu0 %v243_v12  ;;  %v147_v11 = vld [vmem:[#allocation2 + $0x298] sm:$0xff]  ;;  %v284_v12 = vunpack.c.l.s8.bf16 %v104_v4  ;;  %v279_v14 = vunpack.c.h.s8.bf16 %v99_v10  ;;  %v273_v20 = vunpack.c.l.s8.bf16 %v99_v10 }
  0xf1   :  { %793 = vmatprep.subr.bf16.mxu1 %v339_v13  ;;  %v380_v13 = vunpack.c.l.s8.bf16 %v152_v5  ;;  %v375_v15 = vunpack.c.h.s8.bf16 %v147_v11  ;;  %v369_v21 = vunpack.c.l.s8.bf16 %v147_v11  ;;  %v955_v10 = vld [vmem:[#allocation2 + $0x4b8] sm:$0xff]  ;;  %v428_v11 = vunpack.c.l.s8.bf16 %v176_v62 }
  0xf3   :  { %753 = vmatpush1.bf16.msra.mxu0 %v242_v16  ;;  %v98_v16 = vld [vmem:[#allocation2 + $0x110] sm:$0xff] }
  0xf4   :  { %794 = vmatpush1.bf16.msra.mxu1 %v338_v17  ;;  %754 = vmatprep.subr.bf16.mxu0 %v237_v18  ;;  %v146_v17 = vld [vmem:[#allocation2 + $0x290] sm:$0xff]  ;;  %v278_v18 = vunpack.c.h.s8.bf16 %v98_v16 }
  0xf5   :  { %795 = vmatprep.subr.bf16.mxu1 %v333_v19  ;;  %v374_v19 = vunpack.c.h.s8.bf16 %v146_v17 }
  0xf7   :  { %755 = vmatpush1.bf16.msra.mxu0 %v236_v22  ;;  %v93_v22 = vld [vmem:[#allocation2 + $0xe8] sm:$0xff] }
  0xf8   :  { %796 = vmatpush1.bf16.msra.mxu1 %v332_v23  ;;  %756 = vmatprep.subr.bf16.mxu0 %v231_v25  ;;  %v141_v23 = vld [vmem:[#allocation2 + $0x268] sm:$0xff]  ;;  %v272_v25 = vunpack.c.l.s8.bf16 %v98_v16  ;;  %v267_v27 = vunpack.c.h.s8.bf16 %v93_v22  ;;  %v261_v33 = vunpack.c.l.s8.bf16 %v93_v22  ;;  %v954_v16 = vld [vmem:[#allocation2 + $0x4b0] sm:$0xff] }
  0xf9   :  { %797 = vmatprep.subr.bf16.mxu1 %v327_v26  ;;  %v368_v26 = vunpack.c.l.s8.bf16 %v146_v17  ;;  %v363_v28 = vunpack.c.h.s8.bf16 %v141_v23  ;;  %v357_v34 = vunpack.c.l.s8.bf16 %v141_v23  ;;  %v949_v22 = vld [vmem:[#allocation2 + $0x488] sm:$0xff] }
  0xfb   :  { %757 = vmatpush1.bf16.msra.mxu0 %v230_v29  ;;  %v92_v29 = vld [vmem:[#allocation2 + $0xe0] sm:$0xff] }
  0xfc   :  { %798 = vmatpush1.bf16.msra.mxu1 %v326_v30  ;;  %758 = vmatprep.subr.bf16.mxu0 %v225_v31  ;;  %v140_v30 = vld [vmem:[#allocation2 + $0x260] sm:$0xff]  ;;  %v266_v31 = vunpack.c.h.s8.bf16 %v92_v29 }
  0xfd   :  { %799 = vmatprep.subr.bf16.mxu1 %v321_v32  ;;  %v362_v32 = vunpack.c.h.s8.bf16 %v140_v30 }
  0xff   :  { %759 = vmatpush1.bf16.msra.mxu0 %v224_v35  ;;  %v183_v35 = vld [vmem:[#allocation2 + $0x3b8] sm:$0xff] }
 0x100   :  { %800 = vmatpush1.bf16.msra.mxu1 %v320_v38  ;;  %760 = vmatprep.subr.bf16.mxu0 %v219_v39  ;;  %v967_v38 = vld [vmem:[#allocation2 + $0x518] sm:$0xff]  ;;  %v260_v39 = vunpack.c.l.s8.bf16 %v92_v29  ;;  %v447_v41 = vunpack.c.h.s8.bf16 %v183_v35  ;;  %v441_v49 = vunpack.c.l.s8.bf16 %v183_v35  ;;  %v948_v29 = vld [vmem:[#allocation2 + $0x480] sm:$0xff] }
 0x101   :  { %801 = vmatprep.subr.bf16.mxu1 %v315_v40  ;;  %v356_v40 = vunpack.c.l.s8.bf16 %v140_v30  ;;  %v1129_v50 = vunpack.c.l.s8.bf16 %v967_v38  ;;  %v991_v35 = vld [vmem:[#allocation2 + $0x5d8] sm:$0xff] }
 0x103   :  { %761 = vmatpush1.bf16.msra.mxu0 %v218_v43  ;;  %v1135_v43 = vunpack.c.h.s8.bf16 %v967_v38 }
 0x104   :  { %802 = vmatpush1.bf16.msra.mxu1 %v314_v44  ;;  %762 = vmatprep.subr.bf16.mxu0 %v213_v45  ;;  %v966_v44 = vld [vmem:[#allocation2 + $0x510] sm:$0xff]  ;;  %v446_v45 = vunpack.c.h.s8.bf16 %v182_v42  ;;  %v1183_v42 = vunpack.c.h.s8.bf16 %v991_v35 }
 0x105   :  { %803 = vmatprep.subr.bf16.mxu1 %v309_v48  ;;  %v1134_v48 = vunpack.c.h.s8.bf16 %v966_v44 }
 0x107   :  { %763 = vmatpush1.bf16.msra.mxu0 %v212_v51  ;;  %v177_v51 = vld [vmem:[#allocation2 + $0x388] sm:$0xff] }
 0x108   :  { %804 = vmatpush1.bf16.msra.mxu1 %v308_v52  ;;  %764 = vmatprep.subr.bf16.mxu0 %v303_v53  ;;  %v961_v52 = vld [vmem:[#allocation2 + $0x4e8] sm:$0xff] }
 0x109   :  { %805 = vmatprep.subr.bf16.mxu1 %v399_v54  ;;  %v1123_v63 = vunpack.c.h.s8.bf16 %v961_v52 }
 0x10b   :  { %765 = vmatpush2.bf16.msra.mxu0 %v302_v58  ;;  %v1128_v58 = vunpack.c.l.s8.bf16 %v966_v44 }
 0x10c   :  { %806 = vmatpush2.bf16.msra.mxu1 %v398_v59  ;;  %766 = vmatprep.subr.bf16.mxu0 %v297_v60 }
 0x10d   :  { %807 = vmatprep.subr.bf16.mxu1 %v393_v61  ;;  %v435_v61 = vunpack.c.h.s8.bf16 %v177_v51 }
 0x10f   :  { %767 = vmatpush2.bf16.msra.mxu0 %v296_v0  ;;  %v960_v0 = vld [vmem:[#allocation2 + $0x4e0] sm:$0xff] }
 0x110   :  { %808 = vmatpush2.bf16.msra.mxu1 %v392_v1  ;;  %768 = vmatprep.subr.bf16.mxu0 %v291_v2  ;;  %v1122_v4 = vunpack.c.h.s8.bf16 %v960_v0 }
 0x111   :  { %809 = vmatprep.subr.bf16.mxu1 %v387_v3  ;;  %v434_v3 = vunpack.c.h.s8.bf16 %v176_v62 }
 0x113   :  { %769 = vmatpush2.bf16.msra.mxu0 %v290_v6  ;;  %v429_v6 = vunpack.c.l.s8.bf16 %v177_v51  ;;  %v985_v51 = vld [vmem:[#allocation2 + $0x5a8] sm:$0xff] }
 0x114   :  { %810 = vmatpush2.bf16.msra.mxu1 %v386_v7  ;;  %770 = vmatprep.subr.bf16.mxu0 %v285_v8  ;;  %v1117_v7 = vunpack.c.l.s8.bf16 %v961_v52 }
 0x115   :  { %811 = vmatprep.subr.bf16.mxu1 %v381_v9  ;;  %v171_v9 = vld [vmem:[#allocation2 + $0x358] sm:$0xff] }
 0x117   :  { %771 = vmatpush2.bf16.msra.mxu0 %v284_v12  ;;  %v1116_v12 = vunpack.c.l.s8.bf16 %v960_v0 }
 0x118   :  { %812 = vmatpush2.bf16.msra.mxu1 %v380_v13  ;;  %772 = vmatprep.subr.bf16.mxu0 %v279_v14  ;;  %v423_v13 = vunpack.c.h.s8.bf16 %v171_v9  ;;  %v170_v14 = vld [vmem:[#allocation2 + $0x350] sm:$0xff] }
 0x119   :  { %813 = vmatprep.subr.bf16.mxu1 %v375_v15  ;;  %v1111_v15 = vunpack.c.h.s8.bf16 %v955_v10  ;;  %v422_v17 = vunpack.c.h.s8.bf16 %v170_v14  ;;  %v416_v23 = vunpack.c.l.s8.bf16 %v170_v14  ;;  %v189_v14 = vld [vmem:[#allocation2 + $0x3e8] sm:$0xff] }
 0x11b   :  { %773 = vmatpush2.bf16.msra.mxu0 %v278_v18  ;;  %v1110_v18 = vunpack.c.h.s8.bf16 %v954_v16 }
 0x11c   :  { %814 = vmatpush2.bf16.msra.mxu1 %v374_v19  ;;  %774 = vmatprep.subr.bf16.mxu0 %v273_v20  ;;  %v417_v19 = vunpack.c.l.s8.bf16 %v171_v9  ;;  %v1105_v20 = vunpack.c.l.s8.bf16 %v955_v10  ;;  %v978_v9 = vld [vmem:[#allocation2 + $0x570] sm:$0xff] }
 0x11d   :  { %815 = vmatprep.subr.bf16.mxu1 %v369_v21  ;;  %v165_v21 = vld [vmem:[#allocation2 + $0x328] sm:$0xff] }
 0x11f   :  { %775 = vmatpush2.bf16.msra.mxu0 %v272_v25  ;;  %v1104_v25 = vunpack.c.l.s8.bf16 %v954_v16 }
 0x120   :  { %816 = vmatpush2.bf16.msra.mxu1 %v368_v26  ;;  %776 = vmatprep.subr.bf16.mxu0 %v267_v27  ;;  %v411_v26 = vunpack.c.h.s8.bf16 %v165_v21  ;;  %v164_v27 = vld [vmem:[#allocation2 + $0x320] sm:$0xff] }
 0x121   :  { %817 = vmatprep.subr.bf16.mxu1 %v363_v28  ;;  %v1099_v28 = vunpack.c.h.s8.bf16 %v949_v22  ;;  %v410_v30 = vunpack.c.h.s8.bf16 %v164_v27  ;;  %v404_v38 = vunpack.c.l.s8.bf16 %v164_v27 }
 0x123   :  { %777 = vmatpush2.bf16.msra.mxu0 %v266_v31  ;;  %v1098_v31 = vunpack.c.h.s8.bf16 %v948_v29 }
 0x124   :  { %818 = vmatpush2.bf16.msra.mxu1 %v362_v32  ;;  %778 = vmatprep.subr.bf16.mxu0 %v261_v33  ;;  %v405_v32 = vunpack.c.l.s8.bf16 %v165_v21  ;;  %v1093_v33 = vunpack.c.l.s8.bf16 %v949_v22  ;;  %v972_v21 = vld [vmem:[#allocation2 + $0x540] sm:$0xff]  ;;  %v873_v22 = vlaneseq }
 0x125   :  { %819 = vmatprep.subr.bf16.mxu1 %v357_v34  ;;  %v207_v34 = vld [vmem:[#allocation2 + $0x478] sm:$0xff] }
 0x127   :  { %779 = vmatpush2.bf16.msra.mxu0 %v260_v39  ;;  %v1092_v39 = vunpack.c.l.s8.bf16 %v948_v29  ;;  %v1015_v29 = vld [vmem:[#allocation2 + $0x698] sm:$0xff] }
 0x128   :  { %820 = vmatpush2.bf16.msra.mxu1 %v356_v40  ;;  %830 = vmatprep.subr.bf16.mxu0 %v447_v41  ;;  %v495_v40 = vunpack.c.h.s8.bf16 %v207_v34  ;;  %v206_v41 = vld [vmem:[#allocation2 + $0x470] sm:$0xff] }
 0x129   :  { %1386 = vmatprep.subr.bf16.mxu1 %v1135_v43  ;;  %v990_v43 = vld [vmem:[#allocation2 + $0x5d0] sm:$0xff]  ;;  %v494_v44 = vunpack.c.h.s8.bf16 %v206_v41  ;;  %v488_v52 = vunpack.c.l.s8.bf16 %v206_v41 }
 0x12a   :  { %v536_v53 = vpop.f32.mrf.mxu0  ;;  %781 = vmatmul.mubr.bf16.vlgmr.msra.gmra.mxu0 %v8447_v46 }
 0x12b   :  { %v577_v54 = vpop.f32.mrf.mxu1  ;;  %822 = vmatmul.mubr.bf16.vlgmr.msra.gmra.mxu1 %v8449_v47  ;;  %831 = vmatpush1.bf16.msra.mxu0 %v446_v45  ;;  %v1182_v45 = vunpack.c.h.s8.bf16 %v990_v43 }
 0x12c   :  { %v8475_v56 = vadd.f32 %v577_v54, %v536_v53  ;;  %1387 = vmatpush1.bf16.msra.mxu1 %v1134_v48  ;;  %v8477_v59 = vpop.f32.mrf.mxu0  ;;  %832 = vmatprep.subr.bf16.mxu0 %v441_v49  ;;  %v489_v48 = vunpack.c.l.s8.bf16 %v207_v34  ;;  %v1177_v49 = vunpack.c.l.s8.bf16 %v991_v35  ;;  %v1176_v53 = vunpack.c.l.s8.bf16 %v990_v43  ;;  %v8487_v35 = vld [vmem:[#allocation4] sm:$0x3f]  ;;  %v1009_v43 = vld [vmem:[#allocation2 + $0x668] sm:$0xff] }
 0x12d   :  { %v8479_v60 = vpop.f32.mrf.mxu1  ;;  %1388 = vmatprep.subr.bf16.mxu1 %v1129_v50  ;;  %862 = vmatprep.mubr.bf16.mxu0 %v8454_v55  ;;  %v201_v50 = vld [vmem:[#allocation2 + $0x448] sm:$0xff] }
 0x12e   :  { %v540_v1 = vpop.f32.mrf.mxu0  ;;  %v483_v54 = vunpack.c.h.s8.bf16 %v201_v50  ;;  %v477_v0 = vunpack.c.l.s8.bf16 %v201_v50 }
 0x12f   :  { %v581_v2 = vpop.f32.mrf.mxu1  ;;  %833 = vmatpush1.bf16.msra.mxu0 %v440_v57  ;;  %v200_v57 = vld [vmem:[#allocation2 + $0x440] sm:$0xff]  ;;  %v1165_v1 = vunpack.c.l.s8.bf16 %v985_v51 }
 0x130   :  { %1389 = vmatpush1.bf16.msra.mxu1 %v1128_v58  ;;  %v541_v5 = vpop.f32.mrf.mxu0  ;;  %834 = vmatprep.subr.bf16.mxu0 %v435_v61  ;;  %v1171_v58 = vunpack.c.h.s8.bf16 %v985_v51  ;;  %v984_v61 = vld [vmem:[#allocation2 + $0x5a0] sm:$0xff]  ;;  %v482_v62 = vunpack.c.h.s8.bf16 %v200_v57  ;;  %v195_v2 = vld [vmem:[#allocation2 + $0x418] sm:$0xff] }
 0x131   :  { %1390 = vmatprep.subr.bf16.mxu1 %v1123_v63  ;;  %v582_v8 = vpop.f32.mrf.mxu1  ;;  %v1170_v63 = vunpack.c.h.s8.bf16 %v984_v61  ;;  %v1164_v5 = vunpack.c.l.s8.bf16 %v984_v61 }
 0x133   :  { %835 = vmatpush1.bf16.msra.mxu0 %v434_v3  ;;  %v979_v3 = vld [vmem:[#allocation2 + $0x578] sm:$0xff] }
 0x134   :  { %1391 = vmatpush1.bf16.msra.mxu1 %v1122_v4  ;;  %836 = vmatprep.subr.bf16.mxu0 %v429_v6  ;;  %v476_v4 = vunpack.c.l.s8.bf16 %v200_v57  ;;  %v471_v6 = vunpack.c.h.s8.bf16 %v195_v2  ;;  %v1159_v8 = vunpack.c.h.s8.bf16 %v979_v3  ;;  %v1008_v57 = vld [vmem:[#allocation2 + $0x660] sm:$0xff] }
 0x135   :  { %1392 = vmatprep.subr.bf16.mxu1 %v1117_v7  ;;  %v194_v7 = vld [vmem:[#allocation2 + $0x410] sm:$0xff] }
 0x136   :  { %v470_v10 = vunpack.c.h.s8.bf16 %v194_v7  ;;  %v464_v16 = vunpack.c.l.s8.bf16 %v194_v7 }
 0x137   :  { %837 = vmatpush1.bf16.msra.mxu0 %v428_v11  ;;  %v1158_v11 = vunpack.c.h.s8.bf16 %v978_v9 }
 0x138   :  { %1393 = vmatpush1.bf16.msra.mxu1 %v1116_v12  ;;  %838 = vmatprep.subr.bf16.mxu0 %v423_v13  ;;  %v465_v12 = vunpack.c.l.s8.bf16 %v195_v2  ;;  %v1153_v13 = vunpack.c.l.s8.bf16 %v979_v3  ;;  %v1213_v3 = vunpack.c.l.s8.bf16 %v1009_v43 }
 0x139   :  { %1394 = vmatprep.subr.bf16.mxu1 %v1111_v15  ;;  %v973_v15 = vld [vmem:[#allocation2 + $0x548] sm:$0xff] }
 0x13a   :  { %v1141_v27 = vunpack.c.l.s8.bf16 %v973_v15 }
 0x13b   :  { %839 = vmatpush1.bf16.msra.mxu0 %v422_v17  ;;  %v1152_v17 = vunpack.c.l.s8.bf16 %v978_v9  ;;  %v1063_v9 = vld [vmem:[#allocation2 + $0x818] sm:$0xff] }
 0x13c   :  { %1395 = vmatpush1.bf16.msra.mxu1 %v1110_v18  ;;  %840 = vmatprep.subr.bf16.mxu0 %v417_v19  ;;  %v459_v18 = vunpack.c.h.s8.bf16 %v189_v14  ;;  %v188_v19 = vld [vmem:[#allocation2 + $0x3e0] sm:$0xff] }
 0x13d   :  { %1396 = vmatprep.subr.bf16.mxu1 %v1105_v20  ;;  %v1147_v20 = vunpack.c.h.s8.bf16 %v973_v15 }
 0x13f   :  { %841 = vmatpush1.bf16.msra.mxu0 %v416_v23  ;;  %v458_v23 = vunpack.c.h.s8.bf16 %v188_v19 }
 0x140   :  { %1397 = vmatpush1.bf16.msra.mxu1 %v1104_v25  ;;  %842 = vmatprep.subr.bf16.mxu0 %v411_v26  ;;  %v1146_v25 = vunpack.c.h.s8.bf16 %v972_v21  ;;  %v453_v26 = vunpack.c.l.s8.bf16 %v189_v14  ;;  %v1062_v14 = vld [vmem:[#allocation2 + $0x810] sm:$0xff] }
 0x141   :  { %1398 = vmatprep.subr.bf16.mxu1 %v1099_v28  ;;  %v8482_v28 = vshrl.u32 %v873_v22, 7  ;;  %v1326_v15 = vunpack.c.h.s8.bf16 %v1062_v14  ;;  %v1057_v22 = vld [vmem:[#allocation2 + $0x7e8] sm:$0xff] }
 0x143   :  { %843 = vmatpush1.bf16.msra.mxu0 %v410_v30  ;;  %v452_v30 = vunpack.c.l.s8.bf16 %v188_v19  ;;  %v8485_v34 = vsub.s32 0, %v8482_v28  ;;  %v997_v19 = vld [vmem:[#allocation2 + $0x608] sm:$0xff] }
 0x144   :  { %1399 = vmatpush1.bf16.msra.mxu1 %v1098_v31  ;;  %844 = vmatprep.subr.bf16.mxu0 %v405_v32  ;;  %v1140_v31 = vunpack.c.l.s8.bf16 %v972_v21  ;;  %v1231_v32 = vunpack.c.h.s8.bf16 %v1015_v29 }
 0x145   :  { %1400 = vmatprep.subr.bf16.mxu1 %v1093_v33  ;;  %v1014_v33 = vld [vmem:[#allocation2 + $0x690] sm:$0xff]  ;;  %v876_v41 = vrot.slane %v8487_v35, %v8485_v34 }
 0x146   :  { %v1224_v51 = vunpack.c.l.s8.bf16 %v1014_v33 }
 0x147   :  { %845 = vmatpush1.bf16.msra.mxu0 %v404_v38  ;;  %v8490_v38 = vsub.s32 1, %v8482_v28 }
 0x148   :  { %1401 = vmatpush1.bf16.msra.mxu1 %v1092_v39  ;;  %846 = vmatprep.subr.bf16.mxu0 %v495_v40  ;;  %v1230_v39 = vunpack.c.h.s8.bf16 %v1014_v33  ;;  %v1225_v40 = vunpack.c.l.s8.bf16 %v1015_v29  ;;  %v1039_v33 = vld [vmem:[#allocation2 + $0x758] sm:$0xff] }
 0x149   :  { %1402 = vmatprep.subr.bf16.mxu1 %v1183_v42  ;;  %v8494_v42 = vld [vmem:[#allocation6] sm:$0x3f]  ;;  %v880_v50 = vrot.slane %v8487_v35, %v8490_v38 }
 0x14b   :  { %847 = vmatpush2.bf16.msra.mxu0 %v494_v44 }
 0x14c   :  { %1403 = vmatpush2.bf16.msra.mxu1 %v1182_v45  ;;  %848 = vmatprep.subr.bf16.mxu0 %v489_v48  ;;  %v580_v48 = vadd.f32 %v8479_v60, %v8477_v59  ;;  %v918_v59 = vrot.slane %v8494_v42, %v8490_v38 }
 0x14d   :  { %1404 = vmatprep.subr.bf16.mxu1 %v1177_v49 }
 0x14f   :  { %849 = vmatpush2.bf16.msra.mxu0 %v488_v52  ;;  %v914_v52 = vrot.slane %v8494_v42, %v8485_v34 }
 0x150   :  { %1405 = vmatpush2.bf16.msra.mxu1 %v1176_v53  ;;  %850 = vmatprep.subr.bf16.mxu0 %v483_v54  ;;  %v1219_v54 = vunpack.c.h.s8.bf16 %v1009_v43  ;;  %v1279_v43 = vunpack.c.h.s8.bf16 %v1039_v33 }
 0x151   :  { %1406 = vmatprep.subr.bf16.mxu1 %v1171_v58 }
 0x153   :  { %851 = vmatpush2.bf16.msra.mxu0 %v482_v62 }
 0x154   :  { %1407 = vmatpush2.bf16.msra.mxu1 %v1170_v63  ;;  %852 = vmatprep.subr.bf16.mxu0 %v477_v0  ;;  %v1218_v0 = vunpack.c.h.s8.bf16 %v1008_v57 }
 0x155   :  { %1408 = vmatprep.subr.bf16.mxu1 %v1165_v1 }
 0x157   :  { %853 = vmatpush2.bf16.msra.mxu0 %v476_v4 }
 0x158   :  { %1409 = vmatpush2.bf16.msra.mxu1 %v1164_v5  ;;  %854 = vmatprep.subr.bf16.mxu0 %v471_v6  ;;  %v1003_v6 = vld [vmem:[#allocation2 + $0x638] sm:$0xff] }
 0x159   :  { %1410 = vmatprep.subr.bf16.mxu1 %v1159_v8  ;;  %v1212_v8 = vunpack.c.l.s8.bf16 %v1008_v57 }
 0x15b   :  { %855 = vmatpush2.bf16.msra.mxu0 %v470_v10 }
 0x15c   :  { %1411 = vmatpush2.bf16.msra.mxu1 %v1158_v11  ;;  %856 = vmatprep.subr.bf16.mxu0 %v465_v12  ;;  %v1207_v11 = vunpack.c.h.s8.bf16 %v1003_v6  ;;  %v1002_v12 = vld [vmem:[#allocation2 + $0x630] sm:$0xff] }
 0x15d   :  { %1412 = vmatprep.subr.bf16.mxu1 %v1153_v13  ;;  %v1327_v13 = vunpack.c.h.s8.bf16 %v1063_v9  ;;  %v1200_v21 = vunpack.c.l.s8.bf16 %v1002_v12 }
 0x15f   :  { %857 = vmatpush2.bf16.msra.mxu0 %v464_v16  ;;  %v1206_v16 = vunpack.c.h.s8.bf16 %v1002_v12 }
 0x160   :  { %1413 = vmatpush2.bf16.msra.mxu1 %v1152_v17  ;;  %858 = vmatprep.subr.bf16.mxu0 %v459_v18  ;;  %v1201_v17 = vunpack.c.l.s8.bf16 %v1003_v6  ;;  %v1321_v18 = vunpack.c.l.s8.bf16 %v1063_v9 }
 0x161   :  { %1414 = vmatprep.subr.bf16.mxu1 %v1147_v20  ;;  %v1320_v20 = vunpack.c.l.s8.bf16 %v1062_v14 }
 0x163   :  { %859 = vmatpush2.bf16.msra.mxu0 %v458_v23  ;;  %v1195_v23 = vunpack.c.h.s8.bf16 %v997_v19 }
 0x164   :  { %1415 = vmatpush2.bf16.msra.mxu1 %v1146_v25  ;;  %860 = vmatprep.subr.bf16.mxu0 %v453_v26  ;;  %v996_v25 = vld [vmem:[#allocation2 + $0x600] sm:$0xff]  ;;  %v1315_v26 = vunpack.c.h.s8.bf16 %v1057_v22 }
 0x165   :  { %1416 = vmatprep.subr.bf16.mxu1 %v1141_v27  ;;  %v1056_v27 = vld [vmem:[#allocation2 + $0x7e0] sm:$0xff] }
 0x166   :  { %v1314_v29 = vunpack.c.h.s8.bf16 %v1056_v27 }
 0x167   :  { %861 = vmatpush2.bf16.msra.mxu0 %v452_v30  ;;  %v1194_v30 = vunpack.c.h.s8.bf16 %v996_v25 }
 0x168   :  { %1417 = vmatpush2.bf16.msra.mxu1 %v1140_v31  ;;  %1427 = vmatprep.subr.bf16.mxu0 %v1231_v32  ;;  %v1189_v31 = vunpack.c.l.s8.bf16 %v997_v19  ;;  %v1309_v32 = vunpack.c.l.s8.bf16 %v1057_v22 }
 0x169   :  { %1468 = vmatprep.subr.bf16.mxu1 %v1327_v13  ;;  %v1086_v13 = vld [vmem:[#allocation2 + $0x8d0] sm:$0xff] }
 0x16a   :  { %v618_v44 = vpop.f32.mrf.mxu0  ;;  %863 = vmatmul.mubr.bf16.vlgmr.msra.gmra.mxu0 %v8463_v24  ;;  %v1374_v14 = vunpack.c.h.s8.bf16 %v1086_v13  ;;  %v1368_v19 = vunpack.c.l.s8.bf16 %v1086_v13 }
 0x16b   :  { %v8497_v45 = vpop.f32.mrf.mxu1  ;;  %v619_v49 = vadd.f32 %v618_v44, %v8475_v56  ;;  %1428 = vmatpush1.bf16.msra.mxu0 %v1230_v39  ;;  %v1308_v39 = vunpack.c.l.s8.bf16 %v1056_v27  ;;  %v1038_v44 = vld [vmem:[#allocation2 + $0x750] sm:$0xff] }
 0x16c   :  { %v620_v53 = vpop.f32.mrf.mxu0  ;;  %1429 = vmatprep.subr.bf16.mxu0 %v1225_v40  ;;  %v1188_v40 = vunpack.c.l.s8.bf16 %v996_v25 }
 0x16d   :  { %v8506_v58 = vpop.f32.mrf.mxu1  ;;  %v903_v61 = vmul.f32 %v876_v41, %v619_v49  ;;  %v621_v62 = vadd.f32 %v620_v53, %v580_v48  ;;  %v1051_v41 = vld [vmem:[#allocation2 + $0x7b8] sm:$0xff]  ;;  %v1050_v49 = vld [vmem:[#allocation2 + $0x7b0] sm:$0xff] }
 0x16e   :  { %v622_v56 = vpop.f32.mrf.mxu0  ;;  %v1303_v48 = vunpack.c.h.s8.bf16 %v1051_v41  ;;  %v1297_v53 = vunpack.c.l.s8.bf16 %v1051_v41  ;;  %v1296_v57 = vunpack.c.l.s8.bf16 %v1050_v49 }
 0x16f   :  { %v663_v60 = vpop.f32.mrf.mxu1  ;;  %v904_v63 = vmul.f32 %v880_v50, %v621_v62  ;;  %1430 = vmatpush1.bf16.msra.mxu0 %v1224_v51  ;;  %v941_v1 = vadd.f32 %v914_v52, %v903_v61  ;;  %v1302_v50 = vunpack.c.h.s8.bf16 %v1050_v49  ;;  %v1278_v51 = vunpack.c.h.s8.bf16 %v1038_v44  ;;  %v1045_v62 = vld [vmem:[#allocation2 + $0x788] sm:$0xff]  ;;  %v1032_v56 = vld [vmem:[#allocation2 + $0x720] sm:$0xff] }
 0x170   :  { %v623_v2 = vpop.f32.mrf.mxu0  ;;  %1431 = vmatprep.subr.bf16.mxu0 %v1219_v54  ;;  %v1273_v52 = vunpack.c.l.s8.bf16 %v1039_v33  ;;  %v1033_v54 = vld [vmem:[#allocation2 + $0x728] sm:$0xff]  ;;  %v1272_v61 = vunpack.c.l.s8.bf16 %v1038_v44  ;;  %v1291_v60 = vunpack.c.h.s8.bf16 %v1045_v62  ;;  %v1260_v6 = vunpack.c.l.s8.bf16 %v1032_v56  ;;  %v1074_v44 = vld [vmem:[#allocation2 + $0x870] sm:$0xff] }
 0x171   :  { %v664_v4 = vpop.f32.mrf.mxu1  ;;  %v942_v5 = vadd.f32 %v918_v59, %v904_v63  ;;  %v8512_v10 = vpack.c.bf16 %v941_v1, %v941_v1  ;;  %v1267_v59 = vunpack.c.h.s8.bf16 %v1033_v54  ;;  %v1044_v63 = vld [vmem:[#allocation2 + $0x780] sm:$0xff]  ;;  %v1266_v1 = vunpack.c.h.s8.bf16 %v1032_v56 }
 0x172   :  { %v1261_v2 = vunpack.c.l.s8.bf16 %v1033_v54  ;;  %v1027_v4 = vld [vmem:[#allocation2 + $0x6f8] sm:$0xff]  ;;  %v8520_v49 = vsub.s32 2, %v8482_v28 }
 0x173   :  { %v8510_v7 = vpack.c.bf16 %v942_v5, %v942_v5  ;;  %1432 = vmatpush1.bf16.msra.mxu0 %v1218_v0  ;;  %v1290_v0 = vunpack.c.h.s8.bf16 %v1044_v63  ;;  %v1284_v5 = vunpack.c.l.s8.bf16 %v1044_v63  ;;  %v1255_v9 = vunpack.c.h.s8.bf16 %v1027_v4  ;;  %v1068_v63 = vld [vmem:[#allocation2 + $0x840] sm:$0xff] }
 0x174   :  { %1433 = vmatprep.subr.bf16.mxu0 %v1213_v3  ;;  %v1285_v3 = vunpack.c.l.s8.bf16 %v1045_v62  ;;  %v1069_v62 = vld [vmem:[#allocation2 + $0x848] sm:$0xff] }
 0x175   :  { %1418 = vmatprep.mubr.bf16.mxu1 %v8510_v7 }
 0x176   :  { %1419 = vmatmul.mubr.bf16.vlgmr.msra.gmra.mxu1 %v8512_v10 }
 0x177   :  { %1434 = vmatpush1.bf16.msra.mxu0 %v1212_v8  ;;  %1469 = vmatpush1.bf16.msra.mxu1 %v1326_v15  ;;  %v1087_v8 = vld [vmem:[#allocation2 + $0x8d8] sm:$0xff] }
 0x178   :  { %1435 = vmatprep.subr.bf16.mxu0 %v1207_v11  ;;  %1470 = vmatprep.subr.bf16.mxu1 %v1321_v18  ;;  %v1026_v11 = vld [vmem:[#allocation2 + $0x6f0] sm:$0xff]  ;;  %v1375_v12 = vunpack.c.h.s8.bf16 %v1087_v8  ;;  %v1021_v18 = vld [vmem:[#allocation2 + $0x6c8] sm:$0xff] }
 0x179   :  { %v1254_v15 = vunpack.c.h.s8.bf16 %v1026_v11  ;;  %v1243_v22 = vunpack.c.h.s8.bf16 %v1021_v18 }
 0x17b   :  { %1436 = vmatpush1.bf16.msra.mxu0 %v1206_v16  ;;  %1471 = vmatpush1.bf16.msra.mxu1 %v1320_v20  ;;  %v1249_v16 = vunpack.c.l.s8.bf16 %v1027_v4  ;;  %v1248_v20 = vunpack.c.l.s8.bf16 %v1026_v11  ;;  %v922_v4 = vrot.slane %v8494_v42, %v8520_v49 }
 0x17c   :  { %1437 = vmatprep.subr.bf16.mxu0 %v1201_v17  ;;  %1472 = vmatprep.subr.bf16.mxu1 %v1315_v26  ;;  %v1369_v17 = vunpack.c.l.s8.bf16 %v1087_v8  ;;  %v1080_v26 = vld [vmem:[#allocation2 + $0x8a0] sm:$0xff] }
 0x17d   :  { %v1362_v27 = vunpack.c.h.s8.bf16 %v1080_v26  ;;  %v1356_v33 = vunpack.c.l.s8.bf16 %v1080_v26 }
 0x17f   :  { %1438 = vmatpush1.bf16.msra.mxu0 %v1200_v21  ;;  %1473 = vmatpush1.bf16.msra.mxu1 %v1314_v29  ;;  %v1081_v21 = vld [vmem:[#allocation2 + $0x8a8] sm:$0xff] }
 0x180   :  { %1439 = vmatprep.subr.bf16.mxu0 %v1195_v23  ;;  %1474 = vmatprep.subr.bf16.mxu1 %v1309_v32  ;;  %v1020_v23 = vld [vmem:[#allocation2 + $0x6c0] sm:$0xff]  ;;  %v1363_v25 = vunpack.c.h.s8.bf16 %v1081_v21  ;;  %v8516_v32 = vld [vmem:[#allocation2 + $0x528] sm:$0xff] }
 0x181   :  { %v1242_v29 = vunpack.c.h.s8.bf16 %v1020_v23  ;;  %v1137_v41 = vunpack.c.h.s8.bf16 %v8516_v32 }
 0x183   :  { %1440 = vmatpush1.bf16.msra.mxu0 %v1194_v30  ;;  %1475 = vmatpush1.bf16.msra.mxu1 %v1308_v39  ;;  %v1237_v30 = vunpack.c.l.s8.bf16 %v1021_v18  ;;  %v1236_v39 = vunpack.c.l.s8.bf16 %v1020_v23  ;;  %v8535_v18 = vld [vmem:[#allocation2 + $0x6a8] sm:$0xff]  ;;  %v1131_v23 = vunpack.c.l.s8.bf16 %v8516_v32 }
 0x184   :  { %1441 = vmatprep.subr.bf16.mxu0 %v1189_v31  ;;  %1476 = vmatprep.subr.bf16.mxu1 %v1303_v48  ;;  %v1357_v31 = vunpack.c.l.s8.bf16 %v1081_v21  ;;  %v1350_v48 = vunpack.c.h.s8.bf16 %v1074_v44 }
 0x187   :  { %1442 = vmatpush1.bf16.msra.mxu0 %v1188_v40  ;;  %1477 = vmatpush1.bf16.msra.mxu1 %v1302_v50  ;;  %v1075_v40 = vld [vmem:[#allocation2 + $0x878] sm:$0xff] }
 0x188   :  { %1443 = vmatprep.subr.bf16.mxu0 %v1279_v43  ;;  %1478 = vmatprep.subr.bf16.mxu1 %v1297_v53  ;;  %v1351_v43 = vunpack.c.h.s8.bf16 %v1075_v40  ;;  %v1345_v50 = vunpack.c.l.s8.bf16 %v1075_v40  ;;  %v956_v40 = vld [vmem:[#allocation2 + $0x4c0] sm:$0xff] }
 0x18b   :  { %1444 = vmatpush2.bf16.msra.mxu0 %v1278_v51  ;;  %1479 = vmatpush1.bf16.msra.mxu1 %v1296_v57  ;;  %v8523_v51 = vsub.s32 3, %v8482_v28 }
 0x18c   :  { %1445 = vmatprep.subr.bf16.mxu0 %v1273_v52  ;;  %1480 = vmatprep.subr.bf16.mxu1 %v1291_v60  ;;  %v1344_v52 = vunpack.c.l.s8.bf16 %v1074_v44  ;;  %v1339_v60 = vunpack.c.h.s8.bf16 %v1069_v62  ;;  %v951_v44 = vld [vmem:[#allocation2 + $0x498] sm:$0xff] }
 0x18f   :  { %1446 = vmatpush2.bf16.msra.mxu0 %v1272_v61  ;;  %1481 = vmatpush1.bf16.msra.mxu1 %v1290_v0  ;;  %v884_v61 = vrot.slane %v8487_v35, %v8520_v49 }
 0x190   :  { %1447 = vmatprep.subr.bf16.mxu0 %v1267_v59  ;;  %1482 = vmatprep.subr.bf16.mxu1 %v1285_v3  ;;  %v1338_v3 = vunpack.c.h.s8.bf16 %v1068_v63 }
 0x193   :  { %1448 = vmatpush2.bf16.msra.mxu0 %v1266_v1  ;;  %1483 = vmatpush1.bf16.msra.mxu1 %v1284_v5 }
 0x194   :  { %1449 = vmatprep.subr.bf16.mxu0 %v1261_v2  ;;  %1484 = vmatprep.subr.bf16.mxu1 %v1375_v12  ;;  %v888_v2 = vrot.slane %v8487_v35, %v8523_v51 }
 0x197   :  { %1450 = vmatpush2.bf16.msra.mxu0 %v1260_v6  ;;  %1485 = vmatpush2.bf16.msra.mxu1 %v1374_v14  ;;  %v1332_v14 = vunpack.c.l.s8.bf16 %v1068_v63  ;;  %v987_v63 = vld [vmem:[#allocation2 + $0x5b8] sm:$0xff] }
 0x198   :  { %1451 = vmatprep.subr.bf16.mxu0 %v1255_v9  ;;  %1486 = vmatprep.subr.bf16.mxu1 %v1369_v17  ;;  %v926_v9 = vrot.slane %v8494_v42, %v8523_v51 }
 0x19b   :  { %1452 = vmatpush2.bf16.msra.mxu0 %v1254_v15  ;;  %1487 = vmatpush2.bf16.msra.mxu1 %v1368_v19  ;;  %v1233_v19 = vunpack.c.h.s8.bf16 %v8535_v18 }
 0x19c   :  { %1453 = vmatprep.subr.bf16.mxu0 %v1249_v16  ;;  %1488 = vmatprep.subr.bf16.mxu1 %v1363_v25  ;;  %v968_v16 = vld [vmem:[#allocation2 + $0x520] sm:$0xff]  ;;  %v963_v25 = vld [vmem:[#allocation2 + $0x4f8] sm:$0xff] }
 0x19d   :  { %v1136_v21 = vunpack.c.h.s8.bf16 %v968_v16  ;;  %v1130_v26 = vunpack.c.l.s8.bf16 %v968_v16  ;;  %v974_v16 = vld [vmem:[#allocation2 + $0x550] sm:$0xff] }
 0x19f   :  { %1454 = vmatpush2.bf16.msra.mxu0 %v1248_v20  ;;  %1489 = vmatpush2.bf16.msra.mxu1 %v1362_v27  ;;  %v1125_v27 = vunpack.c.h.s8.bf16 %v963_v25 }
 0x1a0   :  { %1455 = vmatprep.subr.bf16.mxu0 %v1243_v22  ;;  %1490 = vmatprep.subr.bf16.mxu1 %v1357_v31  ;;  %v1119_v31 = vunpack.c.l.s8.bf16 %v963_v25 }
 0x1a3   :  { %1456 = vmatpush2.bf16.msra.mxu0 %v1242_v29  ;;  %1491 = vmatpush2.bf16.msra.mxu1 %v1356_v33  ;;  %v962_v29 = vld [vmem:[#allocation2 + $0x4f0] sm:$0xff]  ;;  %v957_v33 = vld [vmem:[#allocation2 + $0x4c8] sm:$0xff] }
 0x1a4   :  { %1457 = vmatprep.subr.bf16.mxu0 %v1237_v30  ;;  %1492 = vmatprep.subr.bf16.mxu1 %v1351_v43  ;;  %v1124_v30 = vunpack.c.h.s8.bf16 %v962_v29  ;;  %v1118_v32 = vunpack.c.l.s8.bf16 %v962_v29  ;;  %v1107_v43 = vunpack.c.l.s8.bf16 %v957_v33  ;;  %v1065_v29 = vld [vmem:[#allocation2 + $0x828] sm:$0xff] }
 0x1a7   :  { %1458 = vmatpush2.bf16.msra.mxu0 %v1236_v39  ;;  %1493 = vmatpush2.bf16.msra.mxu1 %v1350_v48  ;;  %v1113_v39 = vunpack.c.h.s8.bf16 %v957_v33  ;;  %v1106_v48 = vunpack.c.l.s8.bf16 %v956_v40  ;;  %v1142_v33 = vunpack.c.l.s8.bf16 %v974_v16 }
 0x1a8   :  { %1509 = vmatprep.subr.bf16.mxu0 %v1137_v41  ;;  %1494 = vmatprep.subr.bf16.mxu1 %v1345_v50  ;;  %v1112_v41 = vunpack.c.h.s8.bf16 %v956_v40  ;;  %v1101_v50 = vunpack.c.h.s8.bf16 %v951_v44 }
 0x1aa   :  { %v700_v53 = vpop.f32.mrf.mxu0 }
 0x1ab   :  { %v741_v54 = vpop.f32.mrf.mxu1  ;;  %v701_v57 = vadd.f32 %v700_v53, %v8497_v45  ;;  %1495 = vmatpush2.bf16.msra.mxu1 %v1344_v52  ;;  %v950_v52 = vld [vmem:[#allocation2 + $0x490] sm:$0xff] }
 0x1ac   :  { %v702_v59 = vpop.f32.mrf.mxu0  ;;  %1496 = vmatprep.subr.bf16.mxu1 %v1339_v60  ;;  %v1100_v53 = vunpack.c.h.s8.bf16 %v950_v52 }
 0x1ad   :  { %v743_v56 = vpop.f32.mrf.mxu1  ;;  %v703_v0 = vadd.f32 %v702_v59, %v8506_v58  ;;  %v742_v1 = vadd.f32 %v741_v54, %v701_v57  ;;  %v1333_v58 = vunpack.c.l.s8.bf16 %v1069_v62  ;;  %v1095_v54 = vunpack.c.l.s8.bf16 %v951_v44  ;;  %v993_v57 = vld [vmem:[#allocation2 + $0x5e8] sm:$0xff]  ;;  %v992_v59 = vld [vmem:[#allocation2 + $0x5e0] sm:$0xff] }
 0x1ae   :  { %v704_v45 = vpop.f32.mrf.mxu0  ;;  %v1185_v62 = vunpack.c.h.s8.bf16 %v993_v57  ;;  %v1179_v60 = vunpack.c.l.s8.bf16 %v993_v57 }
 0x1af   :  { %v745_v5 = vpop.f32.mrf.mxu1  ;;  %v905_v6 = vmul.f32 %v884_v61, %v742_v1  ;;  %v744_v8 = vadd.f32 %v743_v56, %v703_v0  ;;  %1497 = vmatpush2.bf16.msra.mxu1 %v1338_v3  ;;  %v1094_v61 = vunpack.c.l.s8.bf16 %v950_v52  ;;  %v1184_v56 = vunpack.c.h.s8.bf16 %v992_v59  ;;  %v981_v45 = vld [vmem:[#allocation2 + $0x588] sm:$0xff] }
 0x1b0   :  { %v705_v11 = vpop.f32.mrf.mxu0  ;;  %1498 = vmatprep.subr.bf16.mxu1 %v1333_v58  ;;  %v1178_v0 = vunpack.c.l.s8.bf16 %v992_v59  ;;  %v1173_v1 = vunpack.c.h.s8.bf16 %v987_v63 }
 0x1b1   :  { %v746_v12 = vpop.f32.mrf.mxu1  ;;  %v906_v13 = vmul.f32 %v888_v2, %v744_v8  ;;  %v943_v15 = vadd.f32 %v922_v4, %v905_v6  ;;  %v986_v2 = vld [vmem:[#allocation2 + $0x5b0] sm:$0xff]  ;;  %v1167_v4 = vunpack.c.l.s8.bf16 %v987_v63  ;;  %v1161_v6 = vunpack.c.h.s8.bf16 %v981_v45  ;;  %v980_v8 = vld [vmem:[#allocation2 + $0x580] sm:$0xff] }
 0x1b2   :  { %v1172_v3 = vunpack.c.h.s8.bf16 %v986_v2  ;;  %v1166_v5 = vunpack.c.l.s8.bf16 %v986_v2  ;;  %v1155_v11 = vunpack.c.l.s8.bf16 %v981_v45  ;;  %v975_v12 = vld [vmem:[#allocation2 + $0x558] sm:$0xff]  ;;  %v1154_v58 = vunpack.c.l.s8.bf16 %v980_v8 }
 0x1b3   :  { %v944_v17 = vadd.f32 %v926_v9, %v906_v13  ;;  %1499 = vmatpush2.bf16.msra.mxu1 %v1332_v14  ;;  %v8540_v22 = vpack.c.bf16 %v943_v15, %v943_v15  ;;  %v1160_v9 = vunpack.c.h.s8.bf16 %v980_v8  ;;  %v1149_v15 = vunpack.c.h.s8.bf16 %v975_v12 }
 0x1b4   :  { %1550 = vmatprep.subr.bf16.mxu1 %v1233_v19 }
 0x1b5   :  { %v8538_v20 = vpack.c.bf16 %v944_v17, %v944_v17 }
 0x1b7   :  { %1459 = vmatprep.mubr.bf16.mxu0 %v8538_v20 }
 0x1b8   :  { %1460 = vmatmul.mubr.bf16.vlgmr.msra.gmra.mxu0 %v8540_v22 }
 0x1b9   :  { %1510 = vmatpush1.bf16.msra.mxu0 %v1136_v21  ;;  %1541 = vmatprep.mubr.bf16.mxu0 %v8510_v7 }
 0x1ba   :  { %1511 = vmatprep.subr.bf16.mxu0 %v1131_v23  ;;  %v1148_v23 = vunpack.c.h.s8.bf16 %v974_v16  ;;  %v1077_v16 = vld [vmem:[#allocation2 + $0x888] sm:$0xff] }
 0x1bd   :  { %1512 = vmatpush1.bf16.msra.mxu0 %v1130_v26  ;;  %v1143_v26 = vunpack.c.l.s8.bf16 %v975_v12 }
 0x1be   :  { %1513 = vmatprep.subr.bf16.mxu0 %v1125_v27 }
 0x1c1   :  { %1514 = vmatpush1.bf16.msra.mxu0 %v1124_v30 }
 0x1c2   :  { %1515 = vmatprep.subr.bf16.mxu0 %v1119_v31 }
 0x1c5   :  { %1516 = vmatpush1.bf16.msra.mxu0 %v1118_v32  ;;  %v1329_v32 = vunpack.c.h.s8.bf16 %v1065_v29 }
 0x1c6   :  { %1517 = vmatprep.subr.bf16.mxu0 %v1113_v39  ;;  %v1064_v39 = vld [vmem:[#allocation2 + $0x820] sm:$0xff] }
 0x1c7   :  { %v1328_v40 = vunpack.c.h.s8.bf16 %v1064_v39  ;;  %v1322_v44 = vunpack.c.l.s8.bf16 %v1064_v39 }
 0x1c9   :  { %1518 = vmatpush1.bf16.msra.mxu0 %v1112_v41  ;;  %v1323_v41 = vunpack.c.l.s8.bf16 %v1065_v29  ;;  %v8554_v29 = vsub.s32 4, %v8482_v28 }
 0x1ca   :  { %1519 = vmatprep.subr.bf16.mxu0 %v1107_v43  ;;  %v1059_v43 = vld [vmem:[#allocation2 + $0x7f8] sm:$0xff] }
 0x1cd   :  { %1520 = vmatpush1.bf16.msra.mxu0 %v1106_v48  ;;  %v1317_v48 = vunpack.c.h.s8.bf16 %v1059_v43 }
 0x1ce   :  { %1521 = vmatprep.subr.bf16.mxu0 %v1101_v50  ;;  %v1058_v50 = vld [vmem:[#allocation2 + $0x7f0] sm:$0xff] }
 0x1cf   :  { %v1316_v52 = vunpack.c.h.s8.bf16 %v1058_v50  ;;  %v1310_v57 = vunpack.c.l.s8.bf16 %v1058_v50 }
 0x1d1   :  { %1522 = vmatpush1.bf16.msra.mxu0 %v1100_v53  ;;  %v1311_v53 = vunpack.c.l.s8.bf16 %v1059_v43  ;;  %v1070_v43 = vld [vmem:[#allocation2 + $0x850] sm:$0xff] }
 0x1d2   :  { %1523 = vmatprep.subr.bf16.mxu0 %v1095_v54  ;;  %v1053_v54 = vld [vmem:[#allocation2 + $0x7c8] sm:$0xff] }
 0x1d5   :  { %1524 = vmatpush1.bf16.msra.mxu0 %v1094_v61  ;;  %v1305_v61 = vunpack.c.h.s8.bf16 %v1053_v54 }
 0x1d6   :  { %1525 = vmatprep.subr.bf16.mxu0 %v1185_v62  ;;  %v1052_v62 = vld [vmem:[#allocation2 + $0x7c0] sm:$0xff] }
 0x1d7   :  { %v1304_v59 = vunpack.c.h.s8.bf16 %v1052_v62  ;;  %v1298_v63 = vunpack.c.l.s8.bf16 %v1052_v62 }
 0x1d9   :  { %1526 = vmatpush2.bf16.msra.mxu0 %v1184_v56  ;;  %v1299_v56 = vunpack.c.l.s8.bf16 %v1053_v54 }
 0x1da   :  { %1527 = vmatprep.subr.bf16.mxu0 %v1179_v60  ;;  %v1047_v60 = vld [vmem:[#allocation2 + $0x798] sm:$0xff] }
 0x1dd   :  { %1528 = vmatpush2.bf16.msra.mxu0 %v1178_v0  ;;  %v1293_v0 = vunpack.c.h.s8.bf16 %v1047_v60 }
 0x1de   :  { %1529 = vmatprep.subr.bf16.mxu0 %v1173_v1  ;;  %v1046_v1 = vld [vmem:[#allocation2 + $0x790] sm:$0xff] }
 0x1df   :  { %v1292_v2 = vunpack.c.h.s8.bf16 %v1046_v1  ;;  %v1286_v45 = vunpack.c.l.s8.bf16 %v1046_v1 }
 0x1e1   :  { %1530 = vmatpush2.bf16.msra.mxu0 %v1172_v3  ;;  %v1287_v3 = vunpack.c.l.s8.bf16 %v1047_v60 }
 0x1e2   :  { %1531 = vmatprep.subr.bf16.mxu0 %v1167_v4  ;;  %v1089_v4 = vld [vmem:[#allocation2 + $0x8e8] sm:$0xff] }
 0x1e5   :  { %1532 = vmatpush2.bf16.msra.mxu0 %v1166_v5  ;;  %v1377_v5 = vunpack.c.h.s8.bf16 %v1089_v4 }
 0x1e6   :  { %1533 = vmatprep.subr.bf16.mxu0 %v1161_v6  ;;  %v1088_v6 = vld [vmem:[#allocation2 + $0x8e0] sm:$0xff] }
 0x1e7   :  { %v1376_v8 = vunpack.c.h.s8.bf16 %v1088_v6  ;;  %v1370_v12 = vunpack.c.l.s8.bf16 %v1088_v6  ;;  %v1227_v6 = vunpack.c.l.s8.bf16 %v8535_v18 }
 0x1e9   :  { %1534 = vmatpush2.bf16.msra.mxu0 %v1160_v9  ;;  %v1371_v9 = vunpack.c.l.s8.bf16 %v1089_v4 }
 0x1ea   :  { %v782_v13 = vpop.f32.mrf.mxu0  ;;  %1535 = vmatprep.subr.bf16.mxu0 %v1155_v11  ;;  %v1083_v11 = vld [vmem:[#allocation2 + $0x8b8] sm:$0xff] }
 0x1eb   :  { %v823_v14 = vpop.f32.mrf.mxu1 }
 0x1ec   :  { %v8546_v17 = vadd.f32 %v823_v14, %v782_v13  ;;  %v8548_v19 = vpop.f32.mrf.mxu0  ;;  %v1082_v13 = vld [vmem:[#allocation2 + $0x8b0] sm:$0xff] }
 0x1ed   :  { %v8550_v21 = vpop.f32.mrf.mxu1  ;;  %1536 = vmatpush2.bf16.msra.mxu0 %v1154_v58  ;;  %v1365_v58 = vunpack.c.h.s8.bf16 %v1083_v11  ;;  %v1364_v14 = vunpack.c.h.s8.bf16 %v1082_v13 }
 0x1ee   :  { %v786_v25 = vpop.f32.mrf.mxu0  ;;  %1537 = vmatprep.subr.bf16.mxu0 %v1149_v15  ;;  %v1359_v15 = vunpack.c.l.s8.bf16 %v1083_v11  ;;  %v1013_v11 = vld [vmem:[#allocation2 + $0x688] sm:$0xff] }
 0x1ef   :  { %v827_v27 = vpop.f32.mrf.mxu1  ;;  %v1353_v25 = vunpack.c.h.s8.bf16 %v1077_v16  ;;  %v1223_v18 = vunpack.c.h.s8.bf16 %v1013_v11 }
 0x1f0   :  { %v787_v30 = vpop.f32.mrf.mxu0 }
 0x1f1   :  { %v828_v31 = vpop.f32.mrf.mxu1  ;;  %1538 = vmatpush2.bf16.msra.mxu0 %v1148_v23  ;;  %v1358_v23 = vunpack.c.l.s8.bf16 %v1082_v13  ;;  %v1347_v30 = vunpack.c.l.s8.bf16 %v1077_v16  ;;  %v1010_v13 = vld [vmem:[#allocation2 + $0x670] sm:$0xff]  ;;  %v1012_v16 = vld [vmem:[#allocation2 + $0x680] sm:$0xff] }
 0x1f2   :  { %1539 = vmatprep.subr.bf16.mxu0 %v1143_v26  ;;  %v1076_v26 = vld [vmem:[#allocation2 + $0x880] sm:$0xff]  ;;  %v8557_v31 = vsub.s32 5, %v8482_v28  ;;  %v930_v28 = vrot.slane %v8494_v42, %v8554_v29 }
 0x1f3   :  { %v1352_v27 = vunpack.c.h.s8.bf16 %v1076_v26  ;;  %v1346_v39 = vunpack.c.l.s8.bf16 %v1076_v26 }
 0x1f4   :  { %v896_v50 = vrot.slane %v8487_v35, %v8557_v31 }
 0x1f5   :  { %1540 = vmatpush2.bf16.msra.mxu0 %v1142_v33  ;;  %v1071_v33 = vld [vmem:[#allocation2 + $0x858] sm:$0xff] }
 0x1f6   :  { %1591 = vmatprep.subr.bf16.mxu0 %v1329_v32  ;;  %v892_v32 = vrot.slane %v8487_v35, %v8554_v29  ;;  %v1334_v35 = vunpack.c.l.s8.bf16 %v1070_v43 }
 0x1f8   :  { %1542 = vmatmul.mubr.bf16.vlgmr.msra.gmra.mxu0 %v8512_v10 }
 0x1f9   :  { %1592 = vmatpush1.bf16.msra.mxu0 %v1328_v40 }
 0x1fa   :  { %1593 = vmatprep.subr.bf16.mxu0 %v1323_v41  ;;  %v1341_v41 = vunpack.c.h.s8.bf16 %v1071_v33 }
 0x1fd   :  { %1594 = vmatpush1.bf16.msra.mxu0 %v1322_v44  ;;  %v826_v44 = vadd.f32 %v8550_v21, %v8548_v19 }
 0x1fe   :  { %1595 = vmatprep.subr.bf16.mxu0 %v1317_v48 }
 0x201   :  { %1596 = vmatpush1.bf16.msra.mxu0 %v1316_v52 }
 0x202   :  { %1597 = vmatprep.subr.bf16.mxu0 %v1311_v53 }
 0x205   :  { %1598 = vmatpush1.bf16.msra.mxu0 %v1310_v57  ;;  %v1340_v57 = vunpack.c.h.s8.bf16 %v1070_v43 }
 0x206   :  { %1599 = vmatprep.subr.bf16.mxu0 %v1305_v61  ;;  %v934_v61 = vrot.slane %v8494_v42, %v8557_v31 }
 0x209   :  { %1600 = vmatpush1.bf16.msra.mxu0 %v1304_v59  ;;  %v1335_v59 = vunpack.c.l.s8.bf16 %v1071_v33  ;;  %v1217_v33 = vunpack.c.l.s8.bf16 %v1013_v11 }
 0x20a   :  { %1601 = vmatprep.subr.bf16.mxu0 %v1299_v56  ;;  %v1016_v56 = vld [vmem:[#allocation2 + $0x6a0] sm:$0xff] }
 0x20d   :  { %1602 = vmatpush1.bf16.msra.mxu0 %v1298_v63  ;;  %v1019_v63 = vld [vmem:[#allocation2 + $0x6b8] sm:$0xff] }
 0x20e   :  { %1603 = vmatprep.subr.bf16.mxu0 %v1293_v0  ;;  %v1018_v0 = vld [vmem:[#allocation2 + $0x6b0] sm:$0xff]  ;;  %v1235_v4 = vunpack.c.h.s8.bf16 %v1019_v63 }
 0x20f   :  { %v1234_v42 = vunpack.c.h.s8.bf16 %v1018_v0 }
 0x211   :  { %1604 = vmatpush1.bf16.msra.mxu0 %v1292_v2  ;;  %v1232_v2 = vunpack.c.h.s8.bf16 %v1016_v56 }
 0x212   :  { %1605 = vmatprep.subr.bf16.mxu0 %v1287_v3 }
 0x215   :  { %1606 = vmatpush1.bf16.msra.mxu0 %v1286_v45  ;;  %v1011_v45 = vld [vmem:[#allocation2 + $0x678] sm:$0xff] }
 0x216   :  { %1607 = vmatprep.subr.bf16.mxu0 %v1377_v5  ;;  %v1215_v26 = vunpack.c.l.s8.bf16 %v1011_v45 }
 0x219   :  { %1608 = vmatpush2.bf16.msra.mxu0 %v1376_v8  ;;  %v1229_v8 = vunpack.c.l.s8.bf16 %v1019_v63 }
 0x21a   :  { %1609 = vmatprep.subr.bf16.mxu0 %v1371_v9  ;;  %v1226_v9 = vunpack.c.l.s8.bf16 %v1016_v56 }
 0x21d   :  { %1610 = vmatpush2.bf16.msra.mxu0 %v1370_v12 }
 0x21e   :  { %1611 = vmatprep.subr.bf16.mxu0 %v1365_v58  ;;  %v1221_v58 = vunpack.c.h.s8.bf16 %v1011_v45 }
 0x221   :  { %1612 = vmatpush2.bf16.msra.mxu0 %v1364_v14  ;;  %v1228_v14 = vunpack.c.l.s8.bf16 %v1018_v0 }
 0x222   :  { %1613 = vmatprep.subr.bf16.mxu0 %v1359_v15 }
 0x225   :  { %1614 = vmatpush2.bf16.msra.mxu0 %v1358_v23  ;;  %v1220_v23 = vunpack.c.h.s8.bf16 %v1010_v13 }
 0x226   :  { %1615 = vmatprep.subr.bf16.mxu0 %v1353_v25 }
 0x229   :  { %1616 = vmatpush2.bf16.msra.mxu0 %v1352_v27  ;;  %v1222_v27 = vunpack.c.h.s8.bf16 %v1012_v16 }
 0x22a   :  { %v864_v40 = vpop.f32.mrf.mxu0  ;;  %1617 = vmatprep.subr.bf16.mxu0 %v1347_v30  ;;  %v1005_v30 = vld [vmem:[#allocation2 + $0x648] sm:$0xff] }
 0x22b   :  { %v865_v48 = vadd.f32 %v864_v40, %v8546_v17  ;;  %v1004_v40 = vld [vmem:[#allocation2 + $0x640] sm:$0xff] }
 0x22c   :  { %v866_v52 = vpop.f32.mrf.mxu0 }
 0x22d   :  { %v907_v53 = vmul.f32 %v892_v32, %v865_v48  ;;  %v867_v54 = vadd.f32 %v866_v52, %v826_v44  ;;  %1618 = vmatpush2.bf16.msra.mxu0 %v1346_v39  ;;  %v1214_v32 = vunpack.c.l.s8.bf16 %v1010_v13  ;;  %v1007_v39 = vld [vmem:[#allocation2 + $0x658] sm:$0xff]  ;;  %v1006_v44 = vld [vmem:[#allocation2 + $0x650] sm:$0xff]  ;;  %v1208_v48 = vunpack.c.h.s8.bf16 %v1004_v40 }
 0x22e   :  { %v868_v62 = vpop.f32.mrf.mxu0  ;;  %1619 = vmatprep.subr.bf16.mxu0 %v1341_v41  ;;  %v1216_v41 = vunpack.c.l.s8.bf16 %v1012_v16  ;;  %v1211_v43 = vunpack.c.h.s8.bf16 %v1007_v39  ;;  %v999_v52 = vld [vmem:[#allocation2 + $0x618] sm:$0xff] }
 0x22f   :  { %v908_v19 = vmul.f32 %v896_v50, %v867_v54  ;;  %v945_v21 = vadd.f32 %v930_v28, %v907_v53  ;;  %v1203_v50 = vunpack.c.l.s8.bf16 %v1005_v30  ;;  %v1210_v28 = vunpack.c.h.s8.bf16 %v1006_v44  ;;  %v998_v62 = vld [vmem:[#allocation2 + $0x610] sm:$0xff]  ;;  %v1035_v13 = vld [vmem:[#allocation2 + $0x738] sm:$0xff] }
 0x230   :  { %v869_v17 = vpop.f32.mrf.mxu0  ;;  %v1205_v53 = vunpack.c.l.s8.bf16 %v1007_v39  ;;  %v1202_v54 = vunpack.c.l.s8.bf16 %v1004_v40  ;;  %v1191_v56 = vunpack.c.l.s8.bf16 %v999_v52  ;;  %v1190_v0 = vunpack.c.l.s8.bf16 %v998_v62  ;;  %v1029_v39 = vld [vmem:[#allocation2 + $0x708] sm:$0xff] }
 0x231   :  { %1620 = vmatpush2.bf16.msra.mxu0 %v1340_v57  ;;  %v946_v60 = vadd.f32 %v934_v61, %v908_v19  ;;  %v8572_v3 = vpack.c.bf16 %v945_v21, %v945_v21  ;;  %v1001_v57 = vld [vmem:[#allocation2 + $0x628] sm:$0xff]  ;;  %v1197_v61 = vunpack.c.h.s8.bf16 %v999_v52  ;;  %v1000_v21 = vld [vmem:[#allocation2 + $0x620] sm:$0xff]  ;;  %v1196_v17 = vunpack.c.h.s8.bf16 %v998_v62 }
 0x232   :  { %1621 = vmatprep.subr.bf16.mxu0 %v1335_v59  ;;  %v1204_v59 = vunpack.c.l.s8.bf16 %v1006_v44  ;;  %v1199_v19 = vunpack.c.h.s8.bf16 %v1001_v57  ;;  %v1193_v63 = vunpack.c.l.s8.bf16 %v1001_v57  ;;  %v1192_v45 = vunpack.c.l.s8.bf16 %v1000_v21  ;;  %v1028_v44 = vld [vmem:[#allocation2 + $0x700] sm:$0xff]  ;;  %v1023_v57 = vld [vmem:[#allocation2 + $0x6d8] sm:$0xff] }
 0x233   :  { %v8570_v1 = vpack.c.bf16 %v946_v60, %v946_v60  ;;  %v1041_v60 = vld [vmem:[#allocation2 + $0x768] sm:$0xff]  ;;  %v1269_v16 = vunpack.c.h.s8.bf16 %v1035_v13  ;;  %v1256_v52 = vunpack.c.h.s8.bf16 %v1028_v44  ;;  %v1250_v62 = vunpack.c.l.s8.bf16 %v1028_v44 }
 0x234   :  { %v1275_v11 = vunpack.c.l.s8.bf16 %v1041_v60 }
 0x235   :  { %1622 = vmatpush2.bf16.msra.mxu0 %v1334_v35  ;;  %1500 = vmatprep.mubr.bf16.mxu1 %v8570_v1  ;;  %v1198_v35 = vunpack.c.h.s8.bf16 %v1000_v21  ;;  %v1022_v21 = vld [vmem:[#allocation2 + $0x6d0] sm:$0xff] }
 0x236   :  { %1623 = vmatprep.mubr.bf16.mxu0 %v8570_v1  ;;  %v8576_v5 = vpop.f32.mrf.mxu1  ;;  %1501 = vmatmul.mubr.bf16.vlgmr.msra.gmra.mxu1 %v8572_v3 }
 0x237   :  { %1551 = vmatpush1.bf16.msra.mxu1 %v1232_v2  ;;  %1582 = vmatprep.mubr.bf16.mxu1 %v8538_v20  ;;  %v1043_v2 = vld [vmem:[#allocation2 + $0x778] sm:$0xff] }
 0x238   :  { %1624 = vmatmul.mubr.bf16.vlgmr.msra.gmra.mxu0 %v8572_v3  ;;  %1673 = vmatprep.subr.bf16.mxu0 %v1235_v4  ;;  %v8582_v12 = vpop.f32.mrf.mxu1  ;;  %v1281_v4 = vunpack.c.h.s8.bf16 %v1041_v60  ;;  %v1244_v60 = vunpack.c.h.s8.bf16 %v1022_v21 }
 0x239   :  { %1674 = vmatpush1.bf16.msra.mxu0 %v1234_v42  ;;  %1705 = vmatprep.mubr.bf16.mxu0 %v8538_v20  ;;  %v1209_v20 = vunpack.c.h.s8.bf16 %v1005_v30  ;;  %v1040_v42 = vld [vmem:[#allocation2 + $0x760] sm:$0xff] }
 0x23a   :  { %1552 = vmatprep.subr.bf16.mxu1 %v1227_v6  ;;  %v1424_v15 = vpop.f32.mrf.mxu1  ;;  %1675 = vmatprep.subr.bf16.mxu0 %v1229_v8  ;;  %v1283_v6 = vunpack.c.h.s8.bf16 %v1043_v2  ;;  %v1042_v8 = vld [vmem:[#allocation2 + $0x770] sm:$0xff] }
 0x23b   :  { %1553 = vmatpush1.bf16.msra.mxu1 %v1226_v9  ;;  %v1280_v9 = vunpack.c.h.s8.bf16 %v1040_v42  ;;  %v1274_v15 = vunpack.c.l.s8.bf16 %v1040_v42  ;;  %v1238_v42 = vunpack.c.l.s8.bf16 %v1022_v21 }
 0x23c   :  { %v1425_v25 = vpop.f32.mrf.mxu1  ;;  %1554 = vmatprep.subr.bf16.mxu1 %v1221_v58  ;;  %v1282_v58 = vunpack.c.h.s8.bf16 %v1042_v8 }
 0x23d   :  { %1676 = vmatpush1.bf16.msra.mxu0 %v1228_v14  ;;  %v1277_v14 = vunpack.c.l.s8.bf16 %v1043_v2  ;;  %v1276_v25 = vunpack.c.l.s8.bf16 %v1042_v8  ;;  %v971_v2 = vld [vmem:[#allocation2 + $0x538] sm:$0xff]  ;;  %v970_v8 = vld [vmem:[#allocation2 + $0x530] sm:$0xff] }
 0x23e   :  { %1677 = vmatprep.subr.bf16.mxu0 %v1223_v18  ;;  %v1037_v18 = vld [vmem:[#allocation2 + $0x748] sm:$0xff] }
 0x23f   :  { %1555 = vmatpush1.bf16.msra.mxu1 %v1220_v23  ;;  %v1034_v23 = vld [vmem:[#allocation2 + $0x730] sm:$0xff] }
 0x240   :  { %1556 = vmatprep.subr.bf16.mxu1 %v1215_v26  ;;  %v1271_v26 = vunpack.c.h.s8.bf16 %v1037_v18  ;;  %v1268_v30 = vunpack.c.h.s8.bf16 %v1034_v23  ;;  %v1262_v40 = vunpack.c.l.s8.bf16 %v1034_v23  ;;  %v1132_v23 = vunpack.c.l.s8.bf16 %v970_v8 }
 0x241   :  { %1678 = vmatpush1.bf16.msra.mxu0 %v1222_v27  ;;  %v1036_v27 = vld [vmem:[#allocation2 + $0x740] sm:$0xff] }
 0x242   :  { %1679 = vmatprep.subr.bf16.mxu0 %v1217_v33  ;;  %v1263_v33 = vunpack.c.l.s8.bf16 %v1035_v13  ;;  %v1138_v13 = vunpack.c.h.s8.bf16 %v970_v8 }
 0x243   :  { %1557 = vmatpush1.bf16.msra.mxu1 %v1214_v32  ;;  %v1270_v32 = vunpack.c.h.s8.bf16 %v1036_v27 }
 0x244   :  { %1558 = vmatprep.subr.bf16.mxu1 %v1209_v20  ;;  %v1265_v20 = vunpack.c.l.s8.bf16 %v1037_v18 }
 0x245   :  { %1680 = vmatpush1.bf16.msra.mxu0 %v1216_v41  ;;  %v1031_v41 = vld [vmem:[#allocation2 + $0x718] sm:$0xff] }
 0x246   :  { %1681 = vmatprep.subr.bf16.mxu0 %v1211_v43  ;;  %v1257_v43 = vunpack.c.h.s8.bf16 %v1029_v39 }
 0x247   :  { %1559 = vmatpush1.bf16.msra.mxu1 %v1208_v48  ;;  %v1264_v48 = vunpack.c.l.s8.bf16 %v1036_v27 }
 0x248   :  { %1560 = vmatprep.subr.bf16.mxu1 %v1203_v50  ;;  %v1259_v50 = vunpack.c.h.s8.bf16 %v1031_v41 }
 0x249   :  { %1682 = vmatpush1.bf16.msra.mxu0 %v1210_v28  ;;  %v1030_v28 = vld [vmem:[#allocation2 + $0x710] sm:$0xff] }
 0x24a   :  { %1683 = vmatprep.subr.bf16.mxu0 %v1205_v53  ;;  %v1251_v53 = vunpack.c.l.s8.bf16 %v1029_v39 }
 0x24b   :  { %1561 = vmatpush1.bf16.msra.mxu1 %v1202_v54  ;;  %v1258_v54 = vunpack.c.h.s8.bf16 %v1030_v28 }
 0x24c   :  { %1562 = vmatprep.subr.bf16.mxu1 %v1197_v61  ;;  %v1253_v61 = vunpack.c.l.s8.bf16 %v1031_v41 }
 0x24d   :  { %1684 = vmatpush1.bf16.msra.mxu0 %v1204_v59  ;;  %v1025_v59 = vld [vmem:[#allocation2 + $0x6e8] sm:$0xff] }
 0x24e   :  { %1685 = vmatprep.subr.bf16.mxu0 %v1199_v19  ;;  %v1245_v19 = vunpack.c.h.s8.bf16 %v1023_v57 }
 0x24f   :  { %1563 = vmatpush1.bf16.msra.mxu1 %v1196_v17  ;;  %v1252_v17 = vunpack.c.l.s8.bf16 %v1030_v28  ;;  %v1841_v28 = vld [vmem:[#allocation2 + $0x938] sm:$0xff] }
 0x250   :  { %1564 = vmatprep.subr.bf16.mxu1 %v1191_v56  ;;  %v1247_v56 = vunpack.c.h.s8.bf16 %v1025_v59 }
 0x251   :  { %1686 = vmatpush1.bf16.msra.mxu0 %v1198_v35  ;;  %v1024_v35 = vld [vmem:[#allocation2 + $0x6e0] sm:$0xff] }
 0x252   :  { %1687 = vmatprep.subr.bf16.mxu0 %v1193_v63  ;;  %v1239_v63 = vunpack.c.l.s8.bf16 %v1023_v57  ;;  %v1997_v57 = vunpack.c.h.s8.bf16 %v1841_v28 }
 0x253   :  { %1565 = vmatpush1.bf16.msra.mxu1 %v1190_v0  ;;  %v1246_v0 = vunpack.c.h.s8.bf16 %v1024_v35 }
 0x254   :  { %1566 = vmatprep.subr.bf16.mxu1 %v1281_v4  ;;  %v1241_v4 = vunpack.c.l.s8.bf16 %v1025_v59 }
 0x255   :  { %1688 = vmatpush1.bf16.msra.mxu0 %v1192_v45  ;;  %v1853_v45 = vld [vmem:[#allocation2 + $0x998] sm:$0xff] }
 0x256   :  { %1689 = vmatprep.subr.bf16.mxu0 %v1283_v6  ;;  %v1139_v6 = vunpack.c.h.s8.bf16 %v971_v2 }
 0x257   :  { %1567 = vmatpush2.bf16.msra.mxu1 %v1280_v9  ;;  %v1240_v9 = vunpack.c.l.s8.bf16 %v1024_v35  ;;  %v1835_v35 = vld [vmem:[#allocation2 + $0x908] sm:$0xff] }
 0x258   :  { %1568 = vmatprep.subr.bf16.mxu1 %v1275_v11  ;;  %v2021_v11 = vunpack.c.h.s8.bf16 %v1853_v45 }
 0x259   :  { %1690 = vmatpush2.bf16.msra.mxu0 %v1282_v58  ;;  %v1852_v58 = vld [vmem:[#allocation2 + $0x990] sm:$0xff] }
 0x25a   :  { %1691 = vmatprep.subr.bf16.mxu0 %v1277_v14  ;;  %v1133_v14 = vunpack.c.l.s8.bf16 %v971_v2  ;;  %v2020_v18 = vunpack.c.h.s8.bf16 %v1852_v58  ;;  %v1985_v2 = vunpack.c.h.s8.bf16 %v1835_v35 }
 0x25b   :  { %1569 = vmatpush2.bf16.msra.mxu1 %v1274_v15  ;;  %v965_v15 = vld [vmem:[#allocation2 + $0x508] sm:$0xff] }
 0x25c   :  { %1570 = vmatprep.subr.bf16.mxu1 %v1269_v16  ;;  %v2015_v16 = vunpack.c.l.s8.bf16 %v1853_v45  ;;  %v1127_v27 = vunpack.c.h.s8.bf16 %v965_v15 }
 0x25d   :  { %1692 = vmatpush2.bf16.msra.mxu0 %v1276_v25  ;;  %v1847_v25 = vld [vmem:[#allocation2 + $0x968] sm:$0xff] }
 0x25e   :  { %1693 = vmatprep.subr.bf16.mxu0 %v1271_v26  ;;  %v2009_v39 = vunpack.c.h.s8.bf16 %v1847_v25 }
 0x25f   :  { %1571 = vmatpush2.bf16.msra.mxu1 %v1268_v30  ;;  %v964_v30 = vld [vmem:[#allocation2 + $0x500] sm:$0xff] }
 0x260   :  { %1572 = vmatprep.subr.bf16.mxu1 %v1263_v33  ;;  %v2014_v33 = vunpack.c.l.s8.bf16 %v1852_v58  ;;  %v1877_v58 = vld [vmem:[#allocation2 + $0xa58] sm:$0xff] }
 0x261   :  { %1694 = vmatpush2.bf16.msra.mxu0 %v1270_v32 }
 0x262   :  { %1695 = vmatprep.subr.bf16.mxu0 %v1265_v20  ;;  %v1846_v20 = vld [vmem:[#allocation2 + $0x960] sm:$0xff] }
 0x263   :  { %1573 = vmatpush2.bf16.msra.mxu1 %v1262_v40  ;;  %v1126_v40 = vunpack.c.h.s8.bf16 %v964_v30 }
 0x264   :  { %1574 = vmatprep.subr.bf16.mxu1 %v1257_v43  ;;  %v959_v43 = vld [vmem:[#allocation2 + $0x4d8] sm:$0xff] }
 0x265   :  { %1696 = vmatpush2.bf16.msra.mxu0 %v1264_v48  ;;  %v2003_v48 = vunpack.c.l.s8.bf16 %v1847_v25  ;;  %v1109_v59 = vunpack.c.l.s8.bf16 %v959_v43 }
 0x266   :  { %1697 = vmatprep.subr.bf16.mxu0 %v1259_v50  ;;  %v1120_v50 = vunpack.c.l.s8.bf16 %v964_v30 }
 0x267   :  { %1575 = vmatpush2.bf16.msra.mxu1 %v1256_v52  ;;  %v1115_v52 = vunpack.c.h.s8.bf16 %v959_v43 }
 0x268   :  { %1576 = vmatprep.subr.bf16.mxu1 %v1251_v53  ;;  %v958_v53 = vld [vmem:[#allocation2 + $0x4d0] sm:$0xff] }
 0x269   :  { %1698 = vmatpush2.bf16.msra.mxu0 %v1258_v54  ;;  %v2002_v54 = vunpack.c.l.s8.bf16 %v1846_v20 }
 0x26a   :  { %1699 = vmatprep.subr.bf16.mxu0 %v1253_v61  ;;  %v1840_v61 = vld [vmem:[#allocation2 + $0x930] sm:$0xff] }
 0x26b   :  { %1577 = vmatpush2.bf16.msra.mxu1 %v1250_v62  ;;  %v1114_v62 = vunpack.c.h.s8.bf16 %v958_v53  ;;  %v1996_v21 = vunpack.c.h.s8.bf16 %v1840_v61 }
 0x26c   :  { %1578 = vmatprep.subr.bf16.mxu1 %v1245_v19  ;;  %v953_v19 = vld [vmem:[#allocation2 + $0x4a8] sm:$0xff] }
 0x26d   :  { %1700 = vmatpush2.bf16.msra.mxu0 %v1252_v17  ;;  %v1991_v17 = vunpack.c.l.s8.bf16 %v1841_v28  ;;  %v1097_v45 = vunpack.c.l.s8.bf16 %v953_v19 }
 0x26e   :  { %1701 = vmatprep.subr.bf16.mxu0 %v1247_v56  ;;  %v1108_v56 = vunpack.c.l.s8.bf16 %v958_v53 }
 0x26f   :  { %1579 = vmatpush2.bf16.msra.mxu1 %v1244_v60  ;;  %v1103_v60 = vunpack.c.h.s8.bf16 %v953_v19  ;;  %v1864_v19 = vld [vmem:[#allocation2 + $0x9f0] sm:$0xff] }
 0x270   :  { %1580 = vmatprep.subr.bf16.mxu1 %v1239_v63  ;;  %v952_v63 = vld [vmem:[#allocation2 + $0x4a0] sm:$0xff] }
 0x271   :  { %1702 = vmatpush2.bf16.msra.mxu0 %v1246_v0  ;;  %v1990_v0 = vunpack.c.l.s8.bf16 %v1840_v61  ;;  %v982_v61 = vld [vmem:[#allocation2 + $0x590] sm:$0xff] }
 0x272   :  { %1703 = vmatprep.subr.bf16.mxu0 %v1241_v4  ;;  %v1834_v4 = vld [vmem:[#allocation2 + $0x900] sm:$0xff] }
 0x273   :  { %1581 = vmatpush2.bf16.msra.mxu1 %v1238_v42  ;;  %v1102_v42 = vunpack.c.h.s8.bf16 %v952_v63  ;;  %v1984_v8 = vunpack.c.h.s8.bf16 %v1834_v4 }
 0x274   :  { %1632 = vmatprep.subr.bf16.mxu1 %v1139_v6  ;;  %v995_v6 = vld [vmem:[#allocation2 + $0x5f8] sm:$0xff] }
 0x275   :  { %1704 = vmatpush2.bf16.msra.mxu0 %v1240_v9  ;;  %v1979_v9 = vunpack.c.l.s8.bf16 %v1835_v35  ;;  %v1181_v25 = vunpack.c.l.s8.bf16 %v995_v6  ;;  %v2044_v35 = vunpack.c.h.s8.bf16 %v1864_v19 }
 0x276   :  { %1583 = vmatmul.mubr.bf16.vlgmr.msra.gmra.mxu1 %v8540_v22  ;;  %2272 = vmatprep.subr.bf16.mxu0 %v2021_v11  ;;  %v1096_v11 = vunpack.c.l.s8.bf16 %v952_v63  ;;  %v1156_v63 = vunpack.c.l.s8.bf16 %v982_v61 }
 0x277   :  { %1633 = vmatpush1.bf16.msra.mxu1 %v1138_v13  ;;  %1664 = vmatprep.mubr.bf16.mxu1 %v8510_v7  ;;  %v1121_v7 = vunpack.c.l.s8.bf16 %v965_v15  ;;  %v1187_v13 = vunpack.c.h.s8.bf16 %v995_v6  ;;  %v1978_v15 = vunpack.c.l.s8.bf16 %v1834_v4  ;;  %v976_v4 = vld [vmem:[#allocation2 + $0x560] sm:$0xff] }
 0x278   :  { %1706 = vmatmul.mubr.bf16.vlgmr.msra.gmra.mxu0 %v8540_v22  ;;  %v8588_v26 = vpop.f32.mrf.mxu0  ;;  %1634 = vmatprep.subr.bf16.mxu1 %v1133_v14  ;;  %v2008_v22 = vunpack.c.h.s8.bf16 %v1846_v20  ;;  %v994_v14 = vld [vmem:[#allocation2 + $0x5f0] sm:$0xff]  ;;  %v1871_v20 = vld [vmem:[#allocation2 + $0xa28] sm:$0xff]  ;;  %v1858_v6 = vld [vmem:[#allocation2 + $0x9c0] sm:$0xff] }
 0x279   :  { %2273 = vmatpush1.bf16.msra.mxu0 %v2020_v18  ;;  %v2069_v18 = vunpack.c.h.s8.bf16 %v1877_v58  ;;  %v2057_v43 = vunpack.c.h.s8.bf16 %v1871_v20 }
 0x27a   :  { %v8590_v32 = vpop.f32.mrf.mxu0  ;;  %2274 = vmatprep.subr.bf16.mxu0 %v2015_v16  ;;  %v1876_v16 = vld [vmem:[#allocation2 + $0xa50] sm:$0xff] }
 0x27b   :  { %1635 = vmatpush1.bf16.msra.mxu1 %v1132_v23  ;;  %v1186_v23 = vunpack.c.h.s8.bf16 %v994_v14  ;;  %v2068_v30 = vunpack.c.h.s8.bf16 %v1876_v16 }
 0x27c   :  { %v1465_v41 = vpop.f32.mrf.mxu0  ;;  %1636 = vmatprep.subr.bf16.mxu1 %v1127_v27  ;;  %v989_v27 = vld [vmem:[#allocation2 + $0x5c8] sm:$0xff] }
 0x27d   :  { %2275 = vmatpush1.bf16.msra.mxu0 %v2014_v33  ;;  %v2063_v33 = vunpack.c.l.s8.bf16 %v1877_v58  ;;  %v988_v41 = vld [vmem:[#allocation2 + $0x5c0] sm:$0xff]  ;;  %v2032_v58 = vunpack.c.h.s8.bf16 %v1858_v6 }
 0x27e   :  { %v1466_v44 = vpop.f32.mrf.mxu0  ;;  %2276 = vmatprep.subr.bf16.mxu0 %v2009_v39  ;;  %v1180_v39 = vunpack.c.l.s8.bf16 %v994_v14  ;;  %v1168_v53 = vunpack.c.l.s8.bf16 %v988_v41  ;;  %v1144_v14 = vunpack.c.l.s8.bf16 %v976_v4 }
 0x27f   :  { %1637 = vmatpush1.bf16.msra.mxu1 %v1126_v40  ;;  %v1175_v40 = vunpack.c.h.s8.bf16 %v989_v27  ;;  %v1174_v44 = vunpack.c.h.s8.bf16 %v988_v41 }
 0x280   :  { %1638 = vmatprep.subr.bf16.mxu1 %v1121_v7  ;;  %v2062_v7 = vunpack.c.l.s8.bf16 %v1876_v16  ;;  %v2026_v16 = vunpack.c.l.s8.bf16 %v1858_v6 }
 0x281   :  { %2277 = vmatpush1.bf16.msra.mxu0 %v2008_v22  ;;  %v1870_v22 = vld [vmem:[#allocation2 + $0xa20] sm:$0xff] }
 0x282   :  { %2278 = vmatprep.subr.bf16.mxu0 %v2003_v48  ;;  %v1169_v48 = vunpack.c.l.s8.bf16 %v989_v27  ;;  %v2056_v28 = vunpack.c.h.s8.bf16 %v1870_v22  ;;  %v1061_v27 = vld [vmem:[#allocation2 + $0x808] sm:$0xff] }
 0x283   :  { %1639 = vmatpush1.bf16.msra.mxu1 %v1120_v50  ;;  %v983_v50 = vld [vmem:[#allocation2 + $0x598] sm:$0xff] }
 0x284   :  { %1640 = vmatprep.subr.bf16.mxu1 %v1115_v52  ;;  %v2051_v52 = vunpack.c.l.s8.bf16 %v1871_v20  ;;  %v1060_v20 = vld [vmem:[#allocation2 + $0x800] sm:$0xff] }
 0x285   :  { %2279 = vmatpush1.bf16.msra.mxu0 %v2002_v54  ;;  %v1865_v54 = vld [vmem:[#allocation2 + $0x9f8] sm:$0xff]  ;;  %v1318_v41 = vunpack.c.h.s8.bf16 %v1060_v20 }
 0x286   :  { %2280 = vmatprep.subr.bf16.mxu0 %v1997_v57  ;;  %v1163_v57 = vunpack.c.h.s8.bf16 %v983_v50 }
 0x287   :  { %1641 = vmatpush1.bf16.msra.mxu1 %v1114_v62  ;;  %v2050_v62 = vunpack.c.l.s8.bf16 %v1870_v22  ;;  %v1055_v22 = vld [vmem:[#allocation2 + $0x7d8] sm:$0xff] }
 0x288   :  { %1642 = vmatprep.subr.bf16.mxu1 %v1109_v59  ;;  %v2045_v59 = vunpack.c.h.s8.bf16 %v1865_v54 }
 0x289   :  { %2281 = vmatpush1.bf16.msra.mxu0 %v1996_v21  ;;  %v1162_v21 = vunpack.c.h.s8.bf16 %v982_v61 }
 0x28a   :  { %2282 = vmatprep.subr.bf16.mxu0 %v1991_v17  ;;  %v1157_v17 = vunpack.c.l.s8.bf16 %v983_v50 }
 0x28b   :  { %1643 = vmatpush1.bf16.msra.mxu1 %v1108_v56  ;;  %v977_v56 = vld [vmem:[#allocation2 + $0x568] sm:$0xff] }
 0x28c   :  { %1644 = vmatprep.subr.bf16.mxu1 %v1103_v60  ;;  %v2039_v60 = vunpack.c.l.s8.bf16 %v1865_v54 }
 0x28d   :  { %2283 = vmatpush1.bf16.msra.mxu0 %v1990_v0  ;;  %v1859_v0 = vld [vmem:[#allocation2 + $0x9c8] sm:$0xff] }
 0x28e   :  { %2284 = vmatprep.subr.bf16.mxu0 %v1985_v2  ;;  %v1151_v2 = vunpack.c.h.s8.bf16 %v977_v56 }
 0x28f   :  { %1645 = vmatpush1.bf16.msra.mxu1 %v1102_v42  ;;  %v2038_v42 = vunpack.c.l.s8.bf16 %v1864_v19 }
 0x290   :  { %1646 = vmatprep.subr.bf16.mxu1 %v1097_v45  ;;  %v2033_v45 = vunpack.c.h.s8.bf16 %v1859_v0 }
 0x291   :  { %2285 = vmatpush1.bf16.msra.mxu0 %v1984_v8  ;;  %v1150_v8 = vunpack.c.h.s8.bf16 %v976_v4 }
 0x292   :  { %2286 = vmatprep.subr.bf16.mxu0 %v1979_v9  ;;  %v1145_v9 = vunpack.c.l.s8.bf16 %v977_v56 }
 0x293   :  { %1647 = vmatpush1.bf16.msra.mxu1 %v1096_v11  ;;  %v1067_v11 = vld [vmem:[#allocation2 + $0x838] sm:$0xff] }
 0x294   :  { %1648 = vmatprep.subr.bf16.mxu1 %v1187_v13  ;;  %v2027_v13 = vunpack.c.l.s8.bf16 %v1859_v0 }
 0x295   :  { %2287 = vmatpush1.bf16.msra.mxu0 %v1978_v15  ;;  %v1331_v15 = vunpack.c.h.s8.bf16 %v1067_v11 }
 0x296   :  { %2288 = vmatprep.subr.bf16.mxu0 %v2069_v18  ;;  %v1066_v18 = vld [vmem:[#allocation2 + $0x830] sm:$0xff] }
 0x297   :  { %1649 = vmatpush2.bf16.msra.mxu1 %v1186_v23  ;;  %v1330_v23 = vunpack.c.h.s8.bf16 %v1066_v18 }
 0x298   :  { %1650 = vmatprep.subr.bf16.mxu1 %v1181_v25  ;;  %v1325_v25 = vunpack.c.l.s8.bf16 %v1067_v11 }
 0x299   :  { %2289 = vmatpush2.bf16.msra.mxu0 %v2068_v30  ;;  %v1324_v30 = vunpack.c.l.s8.bf16 %v1066_v18  ;;  %v1072_v18 = vld [vmem:[#allocation2 + $0x860] sm:$0xff] }
 0x29a   :  { %2290 = vmatprep.subr.bf16.mxu0 %v2063_v33 }
 0x29b   :  { %1651 = vmatpush2.bf16.msra.mxu1 %v1180_v39  ;;  %v1319_v39 = vunpack.c.h.s8.bf16 %v1061_v27 }
 0x29c   :  { %1652 = vmatprep.subr.bf16.mxu1 %v1175_v40 }
 0x29d   :  { %2291 = vmatpush2.bf16.msra.mxu0 %v2062_v7 }
 0x29e   :  { %2292 = vmatprep.subr.bf16.mxu0 %v2057_v43  ;;  %v1313_v43 = vunpack.c.l.s8.bf16 %v1061_v27  ;;  %v1336_v27 = vunpack.c.l.s8.bf16 %v1072_v18 }
 0x29f   :  { %1653 = vmatpush2.bf16.msra.mxu1 %v1174_v44 }
 0x2a0   :  { %1654 = vmatprep.subr.bf16.mxu1 %v1169_v48  ;;  %v1307_v48 = vunpack.c.h.s8.bf16 %v1055_v22 }
 0x2a1   :  { %2293 = vmatpush2.bf16.msra.mxu0 %v2056_v28  ;;  %v1301_v28 = vunpack.c.l.s8.bf16 %v1055_v22 }
 0x2a2   :  { %2294 = vmatprep.subr.bf16.mxu0 %v2051_v52  ;;  %v1049_v52 = vld [vmem:[#allocation2 + $0x7a8] sm:$0xff] }
 0x2a3   :  { %1655 = vmatpush2.bf16.msra.mxu1 %v1168_v53  ;;  %v1295_v54 = vunpack.c.h.s8.bf16 %v1049_v52 }
 0x2a4   :  { %1656 = vmatprep.subr.bf16.mxu1 %v1163_v57  ;;  %v1048_v57 = vld [vmem:[#allocation2 + $0x7a0] sm:$0xff] }
 0x2a5   :  { %2295 = vmatpush2.bf16.msra.mxu0 %v2050_v62  ;;  %v1294_v61 = vunpack.c.h.s8.bf16 %v1048_v57  ;;  %v1289_v62 = vunpack.c.l.s8.bf16 %v1049_v52  ;;  %v1288_v19 = vunpack.c.l.s8.bf16 %v1048_v57  ;;  %v1894_v57 = vld [vmem:[#allocation2 + $0xae0] sm:$0xff] }
 0x2a6   :  { %2296 = vmatprep.subr.bf16.mxu0 %v2045_v59  ;;  %v1091_v59 = vld [vmem:[#allocation2 + $0x8f8] sm:$0xff] }
 0x2a7   :  { %1657 = vmatpush2.bf16.msra.mxu1 %v1162_v21  ;;  %v1379_v21 = vunpack.c.h.s8.bf16 %v1091_v59 }
 0x2a8   :  { %1658 = vmatprep.subr.bf16.mxu1 %v1157_v17  ;;  %v1090_v17 = vld [vmem:[#allocation2 + $0x8f0] sm:$0xff] }
 0x2a9   :  { %2297 = vmatpush2.bf16.msra.mxu0 %v2044_v35  ;;  %v1378_v56 = vunpack.c.h.s8.bf16 %v1090_v17  ;;  %v1373_v35 = vunpack.c.l.s8.bf16 %v1091_v59 }
 0x2aa   :  { %2298 = vmatprep.subr.bf16.mxu0 %v2039_v60  ;;  %v1085_v60 = vld [vmem:[#allocation2 + $0x8c8] sm:$0xff] }
 0x2ab   :  { %1659 = vmatpush2.bf16.msra.mxu1 %v1156_v63  ;;  %v1372_v63 = vunpack.c.l.s8.bf16 %v1090_v17  ;;  %v1367_v0 = vunpack.c.h.s8.bf16 %v1085_v60 }
 0x2ac   :  { %1660 = vmatprep.subr.bf16.mxu1 %v1151_v2  ;;  %v1084_v2 = vld [vmem:[#allocation2 + $0x8c0] sm:$0xff] }
 0x2ad   :  { %2299 = vmatpush2.bf16.msra.mxu0 %v2038_v42  ;;  %v1366_v4 = vunpack.c.h.s8.bf16 %v1084_v2  ;;  %v1361_v42 = vunpack.c.l.s8.bf16 %v1085_v60  ;;  %v1360_v6 = vunpack.c.l.s8.bf16 %v1084_v2 }
 0x2ae   :  { %2300 = vmatprep.subr.bf16.mxu0 %v2033_v45  ;;  %v1079_v45 = vld [vmem:[#allocation2 + $0x898] sm:$0xff] }
 0x2af   :  { %1661 = vmatpush2.bf16.msra.mxu1 %v1150_v8  ;;  %v1355_v8 = vunpack.c.h.s8.bf16 %v1079_v45 }
 0x2b0   :  { %1662 = vmatprep.subr.bf16.mxu1 %v1145_v9  ;;  %v1078_v9 = vld [vmem:[#allocation2 + $0x890] sm:$0xff] }
 0x2b1   :  { %2301 = vmatpush2.bf16.msra.mxu0 %v2032_v58  ;;  %v1354_v11 = vunpack.c.h.s8.bf16 %v1078_v9  ;;  %v1349_v58 = vunpack.c.l.s8.bf16 %v1079_v45 }
 0x2b2   :  { %2302 = vmatprep.subr.bf16.mxu0 %v2027_v13  ;;  %v1073_v13 = vld [vmem:[#allocation2 + $0x868] sm:$0xff] }
 0x2b3   :  { %1663 = vmatpush2.bf16.msra.mxu1 %v1144_v14  ;;  %v1348_v14 = vunpack.c.l.s8.bf16 %v1078_v9 }
 0x2b4   :  { %1714 = vmatprep.subr.bf16.mxu1 %v1331_v15  ;;  %v1343_v15 = vunpack.c.h.s8.bf16 %v1073_v13 }
 0x2b5   :  { %2303 = vmatpush2.bf16.msra.mxu0 %v2026_v16  ;;  %v1342_v16 = vunpack.c.h.s8.bf16 %v1072_v18  ;;  %v1883_v18 = vld [vmem:[#allocation2 + $0xa88] sm:$0xff] }
 0x2b6   :  { %1665 = vmatmul.mubr.bf16.vlgmr.msra.gmra.mxu1 %v8512_v10  ;;  %v1312_v10 = vunpack.c.l.s8.bf16 %v1060_v20  ;;  %v8598_v20 = vld [vmem:[#allocation4 + $0x6] sm:$0x3f] }
 0x2b7   :  { %1715 = vmatpush1.bf16.msra.mxu1 %v1330_v23  ;;  %1746 = vmatprep.mubr.bf16.mxu1 %v8570_v1  ;;  %v1054_v1 = vld [vmem:[#allocation2 + $0x7d0] sm:$0xff]  ;;  %v1337_v23 = vunpack.c.l.s8.bf16 %v1073_v13  ;;  %v1761_v22 = vrot.slane %v8598_v20, %v8485_v34 }
 0x2b8   :  { %v8594_v33 = vpop.f32.mrf.mxu0  ;;  %1716 = vmatprep.subr.bf16.mxu1 %v1325_v25  ;;  %v1306_v50 = vunpack.c.h.s8.bf16 %v1054_v1  ;;  %v1300_v53 = vunpack.c.l.s8.bf16 %v1054_v1  ;;  %v1901_v25 = vld [vmem:[#allocation2 + $0xb18] sm:$0xff]  ;;  %v1464_v1 = vadd.f32 %v8590_v32, %v8582_v12 }
 0x2ba   :  { %v8596_v40 = vpop.f32.mrf.mxu0 }
 0x2bb   :  { %1717 = vmatpush1.bf16.msra.mxu1 %v1324_v30  ;;  %v2117_v30 = vunpack.c.h.s8.bf16 %v1901_v25 }
 0x2bc   :  { %v1547_v7 = vpop.f32.mrf.mxu0  ;;  %1718 = vmatprep.subr.bf16.mxu1 %v1319_v39  ;;  %v1900_v39 = vld [vmem:[#allocation2 + $0xb10] sm:$0xff] }
 0x2bd   :  { %v2111_v7 = vunpack.c.l.s8.bf16 %v1901_v25  ;;  %v2110_v52 = vunpack.c.l.s8.bf16 %v1900_v39  ;;  %v1943_v25 = vld [vmem:[#allocation2 + $0xc68] sm:$0xff] }
 0x2be   :  { %v1548_v44 = vpop.f32.mrf.mxu0 }
 0x2bf   :  { %1719 = vmatpush1.bf16.msra.mxu1 %v1318_v41  ;;  %v2116_v41 = vunpack.c.h.s8.bf16 %v1900_v39  ;;  %v8604_v44 = vld [vmem:[#allocation6 + $0x6] sm:$0x3f]  ;;  %v2201_v39 = vunpack.c.h.s8.bf16 %v1943_v25 }
 0x2c0   :  { %1720 = vmatprep.subr.bf16.mxu1 %v1313_v43  ;;  %v1462_v43 = vadd.f32 %v8588_v26, %v8576_v5  ;;  %v1800_v5 = vrot.slane %v8604_v44, %v8485_v34  ;;  %v1804_v12 = vrot.slane %v8604_v44, %v8490_v38 }
 0x2c3   :  { %1721 = vmatpush1.bf16.msra.mxu1 %v1312_v10  ;;  %v1895_v10 = vld [vmem:[#allocation2 + $0xae8] sm:$0xff] }
 0x2c4   :  { %1722 = vmatprep.subr.bf16.mxu1 %v1307_v48 }
 0x2c7   :  { %1723 = vmatpush1.bf16.msra.mxu1 %v1306_v50 }
 0x2c8   :  { %1724 = vmatprep.subr.bf16.mxu1 %v1301_v28  ;;  %v1765_v28 = vrot.slane %v8598_v20, %v8490_v38 }
 0x2cb   :  { %1725 = vmatpush1.bf16.msra.mxu1 %v1300_v53 }
 0x2cc   :  { %1726 = vmatprep.subr.bf16.mxu1 %v1295_v54  ;;  %v2105_v54 = vunpack.c.h.s8.bf16 %v1895_v10 }
 0x2cf   :  { %1727 = vmatpush1.bf16.msra.mxu1 %v1294_v61 }
 0x2d0   :  { %1728 = vmatprep.subr.bf16.mxu1 %v1289_v62 }
 0x2d3   :  { %1729 = vmatpush1.bf16.msra.mxu1 %v1288_v19  ;;  %v2104_v19 = vunpack.c.h.s8.bf16 %v1894_v57 }
 0x2d4   :  { %1730 = vmatprep.subr.bf16.mxu1 %v1379_v21 }
 0x2d7   :  { %1731 = vmatpush2.bf16.msra.mxu1 %v1378_v56 }
 0x2d8   :  { %1732 = vmatprep.subr.bf16.mxu1 %v1373_v35  ;;  %v2099_v35 = vunpack.c.l.s8.bf16 %v1895_v10  ;;  %v2195_v10 = vunpack.c.l.s8.bf16 %v1943_v25 }
 0x2db   :  { %1733 = vmatpush2.bf16.msra.mxu1 %v1372_v63  ;;  %v1889_v63 = vld [vmem:[#allocation2 + $0xab8] sm:$0xff] }
 0x2dc   :  { %1734 = vmatprep.subr.bf16.mxu1 %v1367_v0 }
 0x2df   :  { %1735 = vmatpush2.bf16.msra.mxu1 %v1366_v4  ;;  %v2098_v4 = vunpack.c.l.s8.bf16 %v1894_v57 }
 0x2e0   :  { %1736 = vmatprep.subr.bf16.mxu1 %v1361_v42  ;;  %v1949_v42 = vld [vmem:[#allocation2 + $0xc98] sm:$0xff] }
 0x2e1   :  { %v2213_v9 = vunpack.c.h.s8.bf16 %v1949_v42 }
 0x2e3   :  { %1737 = vmatpush2.bf16.msra.mxu1 %v1360_v6  ;;  %v2093_v6 = vunpack.c.h.s8.bf16 %v1889_v63  ;;  %2354 = vmatprep.subr.bf16.mxu0 %v2213_v9 }
 0x2e4   :  { %1738 = vmatprep.subr.bf16.mxu1 %v1355_v8  ;;  %v1888_v8 = vld [vmem:[#allocation2 + $0xab0] sm:$0xff] }
 0x2e5   :  { %v2092_v13 = vunpack.c.h.s8.bf16 %v1888_v8 }
 0x2e7   :  { %1739 = vmatpush2.bf16.msra.mxu1 %v1354_v11  ;;  %v1948_v11 = vld [vmem:[#allocation2 + $0xc90] sm:$0xff] }
 0x2e8   :  { %1740 = vmatprep.subr.bf16.mxu1 %v1349_v58  ;;  %v2212_v58 = vunpack.c.h.s8.bf16 %v1948_v11 }
 0x2eb   :  { %1741 = vmatpush2.bf16.msra.mxu1 %v1348_v14  ;;  %v2087_v14 = vunpack.c.l.s8.bf16 %v1889_v63 }
 0x2ec   :  { %1742 = vmatprep.subr.bf16.mxu1 %v1343_v15  ;;  %v2207_v15 = vunpack.c.l.s8.bf16 %v1949_v42 }
 0x2ef   :  { %1743 = vmatpush2.bf16.msra.mxu1 %v1342_v16  ;;  %v2206_v16 = vunpack.c.l.s8.bf16 %v1948_v11  ;;  %v1973_v11 = vld [vmem:[#allocation2 + $0xd58] sm:$0xff] }
 0x2f0   :  { %1744 = vmatprep.subr.bf16.mxu1 %v1337_v23  ;;  %v2086_v23 = vunpack.c.l.s8.bf16 %v1888_v8  ;;  %v2255_v25 = vunpack.c.l.s8.bf16 %v1973_v11 }
 0x2f3   :  { %1745 = vmatpush2.bf16.msra.mxu1 %v1336_v27  ;;  %v2081_v27 = vunpack.c.h.s8.bf16 %v1883_v18 }
 0x2f4   :  { %2313 = vmatprep.subr.bf16.mxu1 %v2117_v30  ;;  %v1882_v30 = vld [vmem:[#allocation2 + $0xa80] sm:$0xff] }
 0x2f6   :  { %1747 = vmatmul.mubr.bf16.vlgmr.msra.gmra.mxu1 %v8572_v3  ;;  %v1502_v48 = vpop.f32.mrf.mxu1 }
 0x2f7   :  { %v1503_v50 = vadd.f32 %v1502_v48, %v1462_v43  ;;  %2314 = vmatpush1.bf16.msra.mxu1 %v2116_v41  ;;  %v1942_v41 = vld [vmem:[#allocation2 + $0xc60] sm:$0xff]  ;;  %v2080_v43 = vunpack.c.h.s8.bf16 %v1882_v30  ;;  %v1925_v48 = vld [vmem:[#allocation2 + $0xbd8] sm:$0xff] }
 0x2f8   :  { %v8613_v26 = vpop.f32.mrf.mxu0  ;;  %v1504_v53 = vpop.f32.mrf.mxu1  ;;  %2315 = vmatprep.subr.bf16.mxu1 %v2111_v7  ;;  %v2200_v7 = vunpack.c.h.s8.bf16 %v1942_v41 }
 0x2f9   :  { %v1788_v3 = vmul.f32 %v1761_v22, %v1503_v50  ;;  %v1505_v61 = vadd.f32 %v1504_v53, %v1464_v1  ;;  %v2075_v22 = vunpack.c.l.s8.bf16 %v1883_v18  ;;  %v2194_v1 = vunpack.c.l.s8.bf16 %v1942_v41  ;;  %v1967_v41 = vld [vmem:[#allocation2 + $0xd28] sm:$0xff] }
 0x2fa   :  { %v8617_v32 = vpop.f32.mrf.mxu0  ;;  %v1506_v62 = vpop.f32.mrf.mxu1  ;;  %v2074_v50 = vunpack.c.l.s8.bf16 %v1882_v30 }
 0x2fb   :  { %v1789_v59 = vmul.f32 %v1765_v28, %v1505_v61  ;;  %2316 = vmatpush1.bf16.msra.mxu1 %v2110_v52  ;;  %v1827_v21 = vadd.f32 %v1800_v5, %v1788_v3  ;;  %v1937_v28 = vld [vmem:[#allocation2 + $0xc38] sm:$0xff]  ;;  %v2165_v52 = vunpack.c.h.s8.bf16 %v1925_v48  ;;  %v1924_v5 = vld [vmem:[#allocation2 + $0xbd0] sm:$0xff]  ;;  %v2159_v61 = vunpack.c.l.s8.bf16 %v1925_v48  ;;  %v1919_v62 = vld [vmem:[#allocation2 + $0xba8] sm:$0xff] }
 0x2fc   :  { %v1629_v17 = vpop.f32.mrf.mxu0  ;;  %v1507_v56 = vpop.f32.mrf.mxu1  ;;  %2317 = vmatprep.subr.bf16.mxu1 %v2105_v54  ;;  %v2189_v53 = vunpack.c.h.s8.bf16 %v1937_v28  ;;  %v1936_v54 = vld [vmem:[#allocation2 + $0xc30] sm:$0xff]  ;;  %v2164_v3 = vunpack.c.h.s8.bf16 %v1924_v5 }
 0x2fd   :  { %v1828_v60 = vadd.f32 %v1804_v12, %v1789_v59  ;;  %v8621_v45 = vpack.c.bf16 %v1827_v21, %v1827_v21  ;;  %v2188_v57 = vunpack.c.h.s8.bf16 %v1936_v54  ;;  %v2183_v12 = vunpack.c.l.s8.bf16 %v1937_v28  ;;  %v1931_v21 = vld [vmem:[#allocation2 + $0xc08] sm:$0xff]  ;;  %v1918_v56 = vld [vmem:[#allocation2 + $0xba0] sm:$0xff] }
 0x2fe   :  { %v1630_v0 = vpop.f32.mrf.mxu0  ;;  %v2182_v59 = vunpack.c.l.s8.bf16 %v1936_v54  ;;  %v2153_v17 = vunpack.c.h.s8.bf16 %v1919_v62  ;;  %v2171_v42 = vunpack.c.l.s8.bf16 %v1931_v21  ;;  %v2146_v9 = vunpack.c.l.s8.bf16 %v1918_v56  ;;  %v1961_v54 = vld [vmem:[#allocation2 + $0xcf8] sm:$0xff] }
 0x2ff   :  { %v8619_v2 = vpack.c.bf16 %v1828_v60, %v1828_v60  ;;  %2318 = vmatpush1.bf16.msra.mxu1 %v2104_v19  ;;  %v2158_v19 = vunpack.c.l.s8.bf16 %v1924_v5  ;;  %v1930_v60 = vld [vmem:[#allocation2 + $0xc00] sm:$0xff]  ;;  %v2152_v0 = vunpack.c.h.s8.bf16 %v1918_v56  ;;  %v2243_v28 = vunpack.c.l.s8.bf16 %v1967_v41  ;;  %v1955_v56 = vld [vmem:[#allocation2 + $0xcc8] sm:$0xff] }
 0x300   :  { %2319 = vmatprep.subr.bf16.mxu1 %v2099_v35  ;;  %v2177_v35 = vunpack.c.h.s8.bf16 %v1931_v21  ;;  %v2176_v63 = vunpack.c.h.s8.bf16 %v1930_v60  ;;  %v2170_v8 = vunpack.c.l.s8.bf16 %v1930_v60 }
 0x301   :  { %2304 = vmatprep.mubr.bf16.mxu0 %v8619_v2 }
 0x302   :  { %2305 = vmatmul.mubr.bf16.vlgmr.msra.gmra.mxu0 %v8621_v45 }
 0x303   :  { %2320 = vmatpush1.bf16.msra.mxu1 %v2098_v4  ;;  %2355 = vmatpush1.bf16.msra.mxu0 %v2212_v58  ;;  %v2147_v4 = vunpack.c.l.s8.bf16 %v1919_v62  ;;  %v2231_v62 = vunpack.c.l.s8.bf16 %v1961_v54 }
 0x304   :  { %2321 = vmatprep.subr.bf16.mxu1 %v2093_v6  ;;  %2356 = vmatprep.subr.bf16.mxu0 %v2207_v15  ;;  %v1913_v6 = vld [vmem:[#allocation2 + $0xb78] sm:$0xff]  ;;  %v1972_v15 = vld [vmem:[#allocation2 + $0xd50] sm:$0xff] }
 0x305   :  { %v2141_v58 = vunpack.c.h.s8.bf16 %v1913_v6  ;;  %v2260_v18 = vunpack.c.h.s8.bf16 %v1972_v15  ;;  %v2254_v30 = vunpack.c.l.s8.bf16 %v1972_v15  ;;  %v2219_v15 = vunpack.c.l.s8.bf16 %v1955_v56 }
 0x307   :  { %2322 = vmatpush1.bf16.msra.mxu1 %v2092_v13  ;;  %2357 = vmatpush1.bf16.msra.mxu0 %v2206_v16  ;;  %v1912_v13 = vld [vmem:[#allocation2 + $0xb70] sm:$0xff] }
 0x308   :  { %2323 = vmatprep.subr.bf16.mxu1 %v2087_v14  ;;  %2358 = vmatprep.subr.bf16.mxu0 %v2201_v39  ;;  %v2261_v14 = vunpack.c.h.s8.bf16 %v1973_v11  ;;  %v2140_v16 = vunpack.c.h.s8.bf16 %v1912_v13  ;;  %v2134_v39 = vunpack.c.l.s8.bf16 %v1912_v13 }
 0x30b   :  { %2324 = vmatpush1.bf16.msra.mxu1 %v2086_v23  ;;  %2359 = vmatpush1.bf16.msra.mxu0 %v2200_v7  ;;  %v2135_v23 = vunpack.c.l.s8.bf16 %v1913_v6  ;;  %v1773_v6 = vrot.slane %v8598_v20, %v8523_v51 }
 0x30c   :  { %2325 = vmatprep.subr.bf16.mxu1 %v2081_v27  ;;  %2360 = vmatprep.subr.bf16.mxu0 %v2195_v10  ;;  %v1907_v27 = vld [vmem:[#allocation2 + $0xb48] sm:$0xff]  ;;  %v1966_v10 = vld [vmem:[#allocation2 + $0xd20] sm:$0xff] }
 0x30d   :  { %v2129_v7 = vunpack.c.h.s8.bf16 %v1907_v27  ;;  %v2248_v48 = vunpack.c.h.s8.bf16 %v1966_v10  ;;  %v2242_v5 = vunpack.c.l.s8.bf16 %v1966_v10  ;;  %v1849_v10 = vld [vmem:[#allocation2 + $0x978] sm:$0xff] }
 0x30f   :  { %2326 = vmatpush1.bf16.msra.mxu1 %v2080_v43  ;;  %2361 = vmatpush1.bf16.msra.mxu0 %v2194_v1  ;;  %v1906_v43 = vld [vmem:[#allocation2 + $0xb40] sm:$0xff] }
 0x310   :  { %2327 = vmatprep.subr.bf16.mxu1 %v2075_v22  ;;  %2362 = vmatprep.subr.bf16.mxu0 %v2189_v53  ;;  %v2249_v22 = vunpack.c.h.s8.bf16 %v1967_v41  ;;  %v2128_v1 = vunpack.c.h.s8.bf16 %v1906_v43  ;;  %v2122_v53 = vunpack.c.l.s8.bf16 %v1906_v43 }
 0x313   :  { %2328 = vmatpush1.bf16.msra.mxu1 %v2074_v50  ;;  %2363 = vmatpush1.bf16.msra.mxu0 %v2188_v57  ;;  %v2123_v50 = vunpack.c.l.s8.bf16 %v1907_v27  ;;  %v1854_v27 = vld [vmem:[#allocation2 + $0x9a0] sm:$0xff] }
 0x314   :  { %2329 = vmatprep.subr.bf16.mxu1 %v2165_v52  ;;  %2364 = vmatprep.subr.bf16.mxu0 %v2183_v12  ;;  %v8625_v52 = vld [vmem:[#allocation2 + $0x9a8] sm:$0xff] }
 0x315   :  { %v2023_v57 = vunpack.c.h.s8.bf16 %v8625_v52 }
 0x317   :  { %2330 = vmatpush2.bf16.msra.mxu1 %v2164_v3  ;;  %2365 = vmatpush1.bf16.msra.mxu0 %v2182_v59  ;;  %v2237_v3 = vunpack.c.h.s8.bf16 %v1961_v54 }
 0x318   :  { %2331 = vmatprep.subr.bf16.mxu1 %v2159_v61  ;;  %2366 = vmatprep.subr.bf16.mxu0 %v2177_v35  ;;  %v1960_v61 = vld [vmem:[#allocation2 + $0xcf0] sm:$0xff] }
 0x319   :  { %v2236_v12 = vunpack.c.h.s8.bf16 %v1960_v61  ;;  %v2230_v59 = vunpack.c.l.s8.bf16 %v1960_v61 }
 0x31b   :  { %2332 = vmatpush2.bf16.msra.mxu1 %v2158_v19  ;;  %2367 = vmatpush1.bf16.msra.mxu0 %v2176_v63  ;;  %v2225_v63 = vunpack.c.h.s8.bf16 %v1955_v56  ;;  %v1879_v56 = vld [vmem:[#allocation2 + $0xa68] sm:$0xff] }
 0x31c   :  { %2333 = vmatprep.subr.bf16.mxu1 %v2153_v17  ;;  %2368 = vmatprep.subr.bf16.mxu0 %v2171_v42  ;;  %v1769_v17 = vrot.slane %v8598_v20, %v8520_v49 }
 0x31f   :  { %2334 = vmatpush2.bf16.msra.mxu1 %v2152_v0  ;;  %2369 = vmatpush1.bf16.msra.mxu0 %v2170_v8  ;;  %v1954_v0 = vld [vmem:[#allocation2 + $0xcc0] sm:$0xff] }
 0x320   :  { %2335 = vmatprep.subr.bf16.mxu1 %v2147_v4  ;;  %2370 = vmatprep.subr.bf16.mxu0 %v2261_v14  ;;  %v2224_v8 = vunpack.c.h.s8.bf16 %v1954_v0  ;;  %v1812_v14 = vrot.slane %v8604_v44, %v8523_v51 }
 0x323   :  { %2336 = vmatpush2.bf16.msra.mxu1 %v2146_v9  ;;  %2371 = vmatpush2.bf16.msra.mxu0 %v2260_v18 }
 0x324   :  { %2337 = vmatprep.subr.bf16.mxu1 %v2141_v58  ;;  %2372 = vmatprep.subr.bf16.mxu0 %v2255_v25 }
 0x327   :  { %2338 = vmatpush2.bf16.msra.mxu1 %v2140_v16  ;;  %2373 = vmatpush2.bf16.msra.mxu0 %v2254_v30  ;;  %v2218_v16 = vunpack.c.l.s8.bf16 %v1954_v0  ;;  %v1878_v0 = vld [vmem:[#allocation2 + $0xa60] sm:$0xff] }
 0x328   :  { %2339 = vmatprep.subr.bf16.mxu1 %v2135_v23  ;;  %2374 = vmatprep.subr.bf16.mxu0 %v2249_v22  ;;  %v2017_v22 = vunpack.c.l.s8.bf16 %v8625_v52 }
 0x32b   :  { %2340 = vmatpush2.bf16.msra.mxu1 %v2134_v39  ;;  %2375 = vmatpush2.bf16.msra.mxu0 %v2248_v48  ;;  %v8644_v39 = vld [vmem:[#allocation2 + $0xb28] sm:$0xff]  ;;  %v2016_v48 = vunpack.c.l.s8.bf16 %v1854_v27 }
 0x32c   :  { %2341 = vmatprep.subr.bf16.mxu1 %v2129_v7  ;;  %2376 = vmatprep.subr.bf16.mxu0 %v2243_v28  ;;  %v2119_v41 = vunpack.c.h.s8.bf16 %v8644_v39  ;;  %v2022_v7 = vunpack.c.h.s8.bf16 %v1854_v27 }
 0x32f   :  { %2342 = vmatpush2.bf16.msra.mxu1 %v2128_v1  ;;  %2377 = vmatpush2.bf16.msra.mxu0 %v2242_v5  ;;  %v2011_v1 = vunpack.c.h.s8.bf16 %v1849_v10  ;;  %v2005_v5 = vunpack.c.l.s8.bf16 %v1849_v10 }
 0x330   :  { %2343 = vmatprep.subr.bf16.mxu1 %v2123_v50  ;;  %2378 = vmatprep.subr.bf16.mxu0 %v2237_v3  ;;  %v1848_v50 = vld [vmem:[#allocation2 + $0x970] sm:$0xff] }
 0x331   :  { %v2010_v28 = vunpack.c.h.s8.bf16 %v1848_v50  ;;  %v2004_v52 = vunpack.c.l.s8.bf16 %v1848_v50  ;;  %v1951_v50 = vld [vmem:[#allocation2 + $0xca8] sm:$0xff] }
 0x333   :  { %2344 = vmatpush2.bf16.msra.mxu1 %v2122_v53  ;;  %2379 = vmatpush2.bf16.msra.mxu0 %v2236_v12  ;;  %v1843_v53 = vld [vmem:[#allocation2 + $0x948] sm:$0xff]  ;;  %v1837_v12 = vld [vmem:[#allocation2 + $0x918] sm:$0xff] }
 0x334   :  { %2395 = vmatprep.subr.bf16.mxu1 %v2023_v57  ;;  %2380 = vmatprep.subr.bf16.mxu0 %v2231_v62  ;;  %v1999_v54 = vunpack.c.h.s8.bf16 %v1843_v53  ;;  %v1842_v57 = vld [vmem:[#allocation2 + $0x940] sm:$0xff]  ;;  %v1993_v61 = vunpack.c.l.s8.bf16 %v1843_v53  ;;  %v2215_v53 = vunpack.c.h.s8.bf16 %v1951_v50 }
 0x335   :  { %v1998_v3 = vunpack.c.h.s8.bf16 %v1842_v57  ;;  %v1992_v62 = vunpack.c.l.s8.bf16 %v1842_v57  ;;  %v2209_v57 = vunpack.c.l.s8.bf16 %v1951_v50 }
 0x336   :  { %v1584_v19 = vpop.f32.mrf.mxu1 }
 0x337   :  { %v1585_v21 = vadd.f32 %v1584_v19, %v8594_v33  ;;  %2381 = vmatpush2.bf16.msra.mxu0 %v2230_v59  ;;  %v1808_v33 = vrot.slane %v8604_v44, %v8520_v49  ;;  %v1987_v59 = vunpack.c.h.s8.bf16 %v1837_v12  ;;  %v1836_v19 = vld [vmem:[#allocation2 + $0x910] sm:$0xff] }
 0x338   :  { %v1586_v35 = vpop.f32.mrf.mxu1  ;;  %v8631_v60 = vpop.f32.mrf.mxu0  ;;  %2382 = vmatprep.subr.bf16.mxu0 %v2225_v63  ;;  %v2071_v63 = vunpack.c.h.s8.bf16 %v1879_v56 }
 0x339   :  { %v1626_v4 = vadd.f32 %v8613_v26, %v1585_v21  ;;  %v1587_v42 = vadd.f32 %v1586_v35, %v8596_v40  ;;  %v1986_v21 = vunpack.c.h.s8.bf16 %v1836_v19  ;;  %v1980_v35 = vunpack.c.l.s8.bf16 %v1836_v19  ;;  %v1939_v19 = vld [vmem:[#allocation2 + $0xc48] sm:$0xff] }
 0x33a   :  { %v1588_v9 = vpop.f32.mrf.mxu1  ;;  %v8639_v11 = vpop.f32.mrf.mxu0 }
 0x33b   :  { %v1790_v58 = vmul.f32 %v1769_v17, %v1626_v4  ;;  %v1628_v13 = vadd.f32 %v8617_v32, %v1587_v42  ;;  %2383 = vmatpush2.bf16.msra.mxu0 %v2224_v8  ;;  %v1981_v17 = vunpack.c.l.s8.bf16 %v1837_v12  ;;  %v2070_v4 = vunpack.c.h.s8.bf16 %v1878_v0  ;;  %v1872_v9 = vld [vmem:[#allocation2 + $0xa30] sm:$0xff] }
 0x33c   :  { %v1589_v26 = vpop.f32.mrf.mxu1  ;;  %v1711_v40 = vpop.f32.mrf.mxu0  ;;  %2384 = vmatprep.subr.bf16.mxu0 %v2219_v15  ;;  %v2065_v42 = vunpack.c.l.s8.bf16 %v1879_v56  ;;  %v2064_v8 = vunpack.c.l.s8.bf16 %v1878_v0  ;;  %v1866_v15 = vld [vmem:[#allocation2 + $0xa00] sm:$0xff]  ;;  %v1944_v12 = vld [vmem:[#allocation2 + $0xc70] sm:$0xff]  ;;  %v1933_v0 = vld [vmem:[#allocation2 + $0xc18] sm:$0xff] }
 0x33d   :  { %v1791_v18 = vmul.f32 %v1773_v6, %v1628_v13  ;;  %v1829_v23 = vadd.f32 %v1808_v33, %v1790_v58  ;;  %v1873_v6 = vld [vmem:[#allocation2 + $0xa38] sm:$0xff]  ;;  %v2058_v58 = vunpack.c.h.s8.bf16 %v1872_v9  ;;  %v2052_v26 = vunpack.c.l.s8.bf16 %v1872_v9  ;;  %v1938_v56 = vld [vmem:[#allocation2 + $0xc40] sm:$0xff]  ;;  %v1975_v9 = vld [vmem:[#allocation2 + $0xd68] sm:$0xff] }
 0x33e   :  { %v1712_v25 = vpop.f32.mrf.mxu0  ;;  %v2059_v33 = vunpack.c.h.s8.bf16 %v1873_v6  ;;  %v2053_v13 = vunpack.c.l.s8.bf16 %v1873_v6  ;;  %v1932_v6 = vld [vmem:[#allocation2 + $0xc10] sm:$0xff] }
 0x33f   :  { %v1830_v30 = vadd.f32 %v1812_v14, %v1791_v18  ;;  %2385 = vmatpush2.bf16.msra.mxu0 %v2218_v16  ;;  %v8649_v43 = vpack.c.bf16 %v1829_v23, %v1829_v23  ;;  %v1867_v14 = vld [vmem:[#allocation2 + $0xa08] sm:$0xff]  ;;  %v2046_v18 = vunpack.c.h.s8.bf16 %v1866_v15  ;;  %v1861_v23 = vld [vmem:[#allocation2 + $0x9d8] sm:$0xff]  ;;  %v2040_v25 = vunpack.c.l.s8.bf16 %v1866_v15 }
 0x340   :  { %2436 = vmatprep.subr.bf16.mxu0 %v2119_v41  ;;  %v2047_v40 = vunpack.c.h.s8.bf16 %v1867_v14  ;;  %v2041_v16 = vunpack.c.l.s8.bf16 %v1867_v14  ;;  %v1860_v41 = vld [vmem:[#allocation2 + $0x9d0] sm:$0xff]  ;;  %v1974_v14 = vld [vmem:[#allocation2 + $0xd60] sm:$0xff]  ;;  %v1969_v15 = vld [vmem:[#allocation2 + $0xd38] sm:$0xff] }
 0x341   :  { %v8647_v32 = vpack.c.bf16 %v1830_v30, %v1830_v30  ;;  %v2035_v30 = vunpack.c.h.s8.bf16 %v1861_v23  ;;  %v2034_v10 = vunpack.c.h.s8.bf16 %v1860_v41 }
 0x343   :  { %2345 = vmatprep.mubr.bf16.mxu1 %v8647_v32 }
 0x344   :  { %2346 = vmatmul.mubr.bf16.vlgmr.msra.gmra.mxu1 %v8649_v43 }
 0x345   :  { %2396 = vmatpush1.bf16.msra.mxu1 %v2022_v7  ;;  %2427 = vmatprep.mubr.bf16.mxu1 %v8619_v2 }
 0x346   :  { %2397 = vmatprep.subr.bf16.mxu1 %v2017_v22 }
 0x349   :  { %2398 = vmatpush1.bf16.msra.mxu1 %v2016_v48 }
 0x34a   :  { %2399 = vmatprep.subr.bf16.mxu1 %v2011_v1  ;;  %v2029_v1 = vunpack.c.l.s8.bf16 %v1861_v23  ;;  %v1968_v23 = vld [vmem:[#allocation2 + $0xd30] sm:$0xff] }
 0x34d   :  { %2400 = vmatpush1.bf16.msra.mxu1 %v2010_v28 }
 0x34e   :  { %2401 = vmatprep.subr.bf16.mxu1 %v2005_v5  ;;  %v2028_v5 = vunpack.c.l.s8.bf16 %v1860_v41  ;;  %v2244_v41 = vunpack.c.l.s8.bf16 %v1968_v23 }
 0x351   :  { %2402 = vmatpush1.bf16.msra.mxu1 %v2004_v52  ;;  %v1950_v52 = vld [vmem:[#allocation2 + $0xca0] sm:$0xff] }
 0x352   :  { %2403 = vmatprep.subr.bf16.mxu1 %v1999_v54  ;;  %v2214_v54 = vunpack.c.h.s8.bf16 %v1950_v52 }
 0x355   :  { %2404 = vmatpush1.bf16.msra.mxu1 %v1998_v3  ;;  %v2208_v3 = vunpack.c.l.s8.bf16 %v1950_v52 }
 0x356   :  { %2405 = vmatprep.subr.bf16.mxu1 %v1993_v61 }
 0x359   :  { %2406 = vmatpush1.bf16.msra.mxu1 %v1992_v62  ;;  %v2202_v62 = vunpack.c.h.s8.bf16 %v1944_v12 }
 0x35a   :  { %2407 = vmatprep.subr.bf16.mxu1 %v1987_v59 }
 0x35d   :  { %2408 = vmatpush1.bf16.msra.mxu1 %v1986_v21  ;;  %v2196_v21 = vunpack.c.l.s8.bf16 %v1944_v12  ;;  %v1816_v12 = vrot.slane %v8604_v44, %v8554_v29 }
 0x35e   :  { %2409 = vmatprep.subr.bf16.mxu1 %v1981_v17  ;;  %v2191_v17 = vunpack.c.h.s8.bf16 %v1939_v19 }
 0x361   :  { %2410 = vmatpush1.bf16.msra.mxu1 %v1980_v35  ;;  %v2190_v35 = vunpack.c.h.s8.bf16 %v1938_v56 }
 0x362   :  { %2411 = vmatprep.subr.bf16.mxu1 %v2071_v63  ;;  %v2185_v63 = vunpack.c.l.s8.bf16 %v1939_v19 }
 0x365   :  { %2412 = vmatpush2.bf16.msra.mxu1 %v2070_v4  ;;  %v2184_v4 = vunpack.c.l.s8.bf16 %v1938_v56 }
 0x366   :  { %2413 = vmatprep.subr.bf16.mxu1 %v2065_v42  ;;  %v2179_v42 = vunpack.c.h.s8.bf16 %v1933_v0 }
 0x369   :  { %2414 = vmatpush2.bf16.msra.mxu1 %v2064_v8  ;;  %v2178_v8 = vunpack.c.h.s8.bf16 %v1932_v6 }
 0x36a   :  { %2415 = vmatprep.subr.bf16.mxu1 %v2059_v33  ;;  %v2173_v33 = vunpack.c.l.s8.bf16 %v1933_v0 }
 0x36d   :  { %2416 = vmatpush2.bf16.msra.mxu1 %v2058_v58  ;;  %v2172_v58 = vunpack.c.l.s8.bf16 %v1932_v6 }
 0x36e   :  { %2417 = vmatprep.subr.bf16.mxu1 %v2053_v13  ;;  %v2263_v13 = vunpack.c.h.s8.bf16 %v1975_v9 }
 0x371   :  { %2418 = vmatpush2.bf16.msra.mxu1 %v2052_v26  ;;  %v2262_v26 = vunpack.c.h.s8.bf16 %v1974_v14 }
 0x372   :  { %2419 = vmatprep.subr.bf16.mxu1 %v2047_v40  ;;  %v2257_v40 = vunpack.c.l.s8.bf16 %v1975_v9 }
 0x375   :  { %2420 = vmatpush2.bf16.msra.mxu1 %v2046_v18  ;;  %v2256_v18 = vunpack.c.l.s8.bf16 %v1974_v14  ;;  %v2113_v14 = vunpack.c.l.s8.bf16 %v8644_v39 }
 0x376   :  { %v1666_v27 = vpop.f32.mrf.mxu1  ;;  %2421 = vmatprep.subr.bf16.mxu1 %v2041_v16  ;;  %v2251_v16 = vunpack.c.h.s8.bf16 %v1969_v15 }
 0x377   :  { %v8656_v7 = vadd.f32 %v8631_v60, %v1666_v27  ;;  %v1945_v60 = vld [vmem:[#allocation2 + $0xc78] sm:$0xff]  ;;  %v2245_v27 = vunpack.c.l.s8.bf16 %v1969_v15  ;;  %v1899_v15 = vld [vmem:[#allocation2 + $0xb08] sm:$0xff] }
 0x378   :  { %v8658_v22 = vpop.f32.mrf.mxu1  ;;  %v2203_v61 = vunpack.c.h.s8.bf16 %v1945_v60  ;;  %v2197_v59 = vunpack.c.l.s8.bf16 %v1945_v60  ;;  %v2109_v39 = vunpack.c.h.s8.bf16 %v1899_v15 }
 0x379   :  { %2422 = vmatpush2.bf16.msra.mxu1 %v2040_v25  ;;  %v2250_v25 = vunpack.c.h.s8.bf16 %v1968_v23  ;;  %v1710_v60 = vadd.f32 %v8639_v11, %v8658_v22  ;;  %v1896_v23 = vld [vmem:[#allocation2 + $0xaf0] sm:$0xff] }
 0x37a   :  { %v1670_v48 = vpop.f32.mrf.mxu1  ;;  %2423 = vmatprep.subr.bf16.mxu1 %v2035_v30  ;;  %v1963_v30 = vld [vmem:[#allocation2 + $0xd08] sm:$0xff] }
 0x37b   :  { %v1962_v48 = vld [vmem:[#allocation2 + $0xd00] sm:$0xff]  ;;  %v2233_v50 = vunpack.c.l.s8.bf16 %v1963_v30 }
 0x37c   :  { %v1671_v28 = vpop.f32.mrf.mxu1 }
 0x37d   :  { %2424 = vmatpush2.bf16.msra.mxu1 %v2034_v10  ;;  %v2239_v10 = vunpack.c.h.s8.bf16 %v1963_v30  ;;  %v1957_v28 = vld [vmem:[#allocation2 + $0xcd8] sm:$0xff]  ;;  %v1898_v30 = vld [vmem:[#allocation2 + $0xb00] sm:$0xff] }
 0x37e   :  { %2425 = vmatprep.subr.bf16.mxu1 %v2029_v1  ;;  %v2238_v1 = vunpack.c.h.s8.bf16 %v1962_v48 }
 0x381   :  { %2426 = vmatpush2.bf16.msra.mxu1 %v2028_v5  ;;  %v1777_v5 = vrot.slane %v8598_v20, %v8554_v29 }
 0x382   :  { %2477 = vmatprep.subr.bf16.mxu1 %v2215_v53  ;;  %v2232_v53 = vunpack.c.l.s8.bf16 %v1962_v48 }
 0x384   :  { %2428 = vmatmul.mubr.bf16.vlgmr.msra.gmra.mxu1 %v8621_v45 }
 0x385   :  { %2478 = vmatpush1.bf16.msra.mxu1 %v2214_v54  ;;  %v2227_v54 = vunpack.c.h.s8.bf16 %v1957_v28 }
 0x386   :  { %2479 = vmatprep.subr.bf16.mxu1 %v2209_v57  ;;  %v1956_v57 = vld [vmem:[#allocation2 + $0xcd0] sm:$0xff] }
 0x389   :  { %2480 = vmatpush1.bf16.msra.mxu1 %v2208_v3 }
 0x38a   :  { %2481 = vmatprep.subr.bf16.mxu1 %v2203_v61  ;;  %v1781_v61 = vrot.slane %v8598_v20, %v8557_v31  ;;  %v2220_v20 = vunpack.c.l.s8.bf16 %v1956_v57 }
 0x38d   :  { %2482 = vmatpush1.bf16.msra.mxu1 %v2202_v62 }
 0x38e   :  { %2483 = vmatprep.subr.bf16.mxu1 %v2197_v59 }
 0x391   :  { %2484 = vmatpush1.bf16.msra.mxu1 %v2196_v21  ;;  %v2226_v21 = vunpack.c.h.s8.bf16 %v1956_v57 }
 0x392   :  { %2485 = vmatprep.subr.bf16.mxu1 %v2191_v17  ;;  %v1820_v17 = vrot.slane %v8604_v44, %v8557_v31 }
 0x395   :  { %2486 = vmatpush1.bf16.msra.mxu1 %v2190_v35  ;;  %v2221_v35 = vunpack.c.l.s8.bf16 %v1957_v28  ;;  %v2103_v28 = vunpack.c.l.s8.bf16 %v1899_v15 }
 0x396   :  { %2487 = vmatprep.subr.bf16.mxu1 %v2185_v63  ;;  %v1902_v63 = vld [vmem:[#allocation2 + $0xb20] sm:$0xff] }
 0x399   :  { %2488 = vmatpush1.bf16.msra.mxu1 %v2184_v4  ;;  %v1905_v4 = vld [vmem:[#allocation2 + $0xb38] sm:$0xff] }
 0x39a   :  { %2489 = vmatprep.subr.bf16.mxu1 %v2179_v42  ;;  %v1904_v42 = vld [vmem:[#allocation2 + $0xb30] sm:$0xff]  ;;  %v2121_v9 = vunpack.c.h.s8.bf16 %v1905_v4 }
 0x39b   :  { %v2120_v44 = vunpack.c.h.s8.bf16 %v1904_v42 }
 0x39d   :  { %2490 = vmatpush1.bf16.msra.mxu1 %v2178_v8  ;;  %v2118_v8 = vunpack.c.h.s8.bf16 %v1902_v63 }
 0x39e   :  { %2491 = vmatprep.subr.bf16.mxu1 %v2173_v33 }
 0x3a1   :  { %2492 = vmatpush1.bf16.msra.mxu1 %v2172_v58  ;;  %v1897_v58 = vld [vmem:[#allocation2 + $0xaf8] sm:$0xff] }
 0x3a2   :  { %2493 = vmatprep.subr.bf16.mxu1 %v2263_v13  ;;  %v2101_v48 = vunpack.c.l.s8.bf16 %v1897_v58 }
 0x3a5   :  { %2494 = vmatpush2.bf16.msra.mxu1 %v2262_v26  ;;  %v2115_v26 = vunpack.c.l.s8.bf16 %v1905_v4 }
 0x3a6   :  { %2495 = vmatprep.subr.bf16.mxu1 %v2257_v40  ;;  %v2112_v40 = vunpack.c.l.s8.bf16 %v1902_v63 }
 0x3a9   :  { %2496 = vmatpush2.bf16.msra.mxu1 %v2256_v18 }
 0x3aa   :  { %2497 = vmatprep.subr.bf16.mxu1 %v2251_v16  ;;  %v2107_v16 = vunpack.c.h.s8.bf16 %v1897_v58 }
 0x3ad   :  { %2498 = vmatpush2.bf16.msra.mxu1 %v2250_v25  ;;  %v2114_v25 = vunpack.c.l.s8.bf16 %v1904_v42 }
 0x3ae   :  { %2499 = vmatprep.subr.bf16.mxu1 %v2245_v27 }
 0x3b1   :  { %2500 = vmatpush2.bf16.msra.mxu1 %v2244_v41  ;;  %v2106_v41 = vunpack.c.h.s8.bf16 %v1896_v23 }
 0x3b2   :  { %2501 = vmatprep.subr.bf16.mxu1 %v2239_v10 }
 0x3b5   :  { %2502 = vmatpush2.bf16.msra.mxu1 %v2238_v1  ;;  %v2108_v1 = vunpack.c.h.s8.bf16 %v1898_v30 }
 0x3b6   :  { %v1748_v52 = vpop.f32.mrf.mxu1  ;;  %2503 = vmatprep.subr.bf16.mxu1 %v2233_v50  ;;  %v1891_v50 = vld [vmem:[#allocation2 + $0xac8] sm:$0xff] }
 0x3b7   :  { %v1749_v3 = vadd.f32 %v1748_v52, %v8656_v7  ;;  %v1890_v52 = vld [vmem:[#allocation2 + $0xac0] sm:$0xff] }
 0x3b8   :  { %v1750_v62 = vpop.f32.mrf.mxu1 }
 0x3b9   :  { %v1792_v59 = vmul.f32 %v1777_v5, %v1749_v3  ;;  %v1751_v19 = vadd.f32 %v1750_v62, %v1710_v60  ;;  %2504 = vmatpush2.bf16.msra.mxu1 %v2232_v53  ;;  %v2100_v5 = vunpack.c.l.s8.bf16 %v1896_v23  ;;  %v1893_v53 = vld [vmem:[#allocation2 + $0xad8] sm:$0xff]  ;;  %v1892_v60 = vld [vmem:[#allocation2 + $0xad0] sm:$0xff]  ;;  %v2094_v3 = vunpack.c.h.s8.bf16 %v1890_v52 }
 0x3ba   :  { %v1752_v56 = vpop.f32.mrf.mxu1  ;;  %2505 = vmatprep.subr.bf16.mxu1 %v2227_v54  ;;  %v2102_v54 = vunpack.c.l.s8.bf16 %v1898_v30  ;;  %v2097_v57 = vunpack.c.h.s8.bf16 %v1893_v53  ;;  %v1885_v62 = vld [vmem:[#allocation2 + $0xa98] sm:$0xff] }
 0x3bb   :  { %v1793_v11 = vmul.f32 %v1781_v61, %v1751_v19  ;;  %v1831_v22 = vadd.f32 %v1816_v12, %v1792_v59  ;;  %v2089_v61 = vunpack.c.l.s8.bf16 %v1891_v50  ;;  %v2096_v12 = vunpack.c.h.s8.bf16 %v1892_v60  ;;  %v1884_v56 = vld [vmem:[#allocation2 + $0xa90] sm:$0xff]  ;;  %v1921_v23 = vld [vmem:[#allocation2 + $0xbb8] sm:$0xff] }
 0x3bc   :  { %v1753_v7 = vpop.f32.mrf.mxu1  ;;  %v2091_v59 = vunpack.c.l.s8.bf16 %v1893_v53  ;;  %v2088_v19 = vunpack.c.l.s8.bf16 %v1890_v52  ;;  %v2077_v63 = vunpack.c.l.s8.bf16 %v1885_v62  ;;  %v2076_v42 = vunpack.c.l.s8.bf16 %v1884_v56  ;;  %v1915_v53 = vld [vmem:[#allocation2 + $0xb88] sm:$0xff] }
 0x3bd   :  { %2506 = vmatpush2.bf16.msra.mxu1 %v2226_v21  ;;  %v1832_v0 = vadd.f32 %v1820_v17, %v1793_v11  ;;  %v8674_v33 = vpack.c.bf16 %v1831_v22, %v1831_v22  ;;  %v1887_v21 = vld [vmem:[#allocation2 + $0xaa8] sm:$0xff]  ;;  %v2083_v17 = vunpack.c.h.s8.bf16 %v1885_v62  ;;  %v1886_v22 = vld [vmem:[#allocation2 + $0xaa0] sm:$0xff]  ;;  %v2082_v7 = vunpack.c.h.s8.bf16 %v1884_v56 }
 0x3be   :  { %2507 = vmatprep.subr.bf16.mxu1 %v2221_v35  ;;  %v2090_v35 = vunpack.c.l.s8.bf16 %v1892_v60  ;;  %v2085_v11 = vunpack.c.h.s8.bf16 %v1887_v21  ;;  %v2079_v4 = vunpack.c.l.s8.bf16 %v1887_v21  ;;  %v2078_v58 = vunpack.c.l.s8.bf16 %v1886_v22  ;;  %v1914_v60 = vld [vmem:[#allocation2 + $0xb80] sm:$0xff]  ;;  %v1909_v21 = vld [vmem:[#allocation2 + $0xb58] sm:$0xff] }
 0x3bf   :  { %v8672_v6 = vpack.c.bf16 %v1832_v0, %v1832_v0  ;;  %v1927_v0 = vld [vmem:[#allocation2 + $0xbe8] sm:$0xff]  ;;  %v2155_v30 = vunpack.c.h.s8.bf16 %v1921_v23  ;;  %v2142_v62 = vunpack.c.h.s8.bf16 %v1914_v60  ;;  %v2136_v56 = vunpack.c.l.s8.bf16 %v1914_v60 }
 0x3c0   :  { %v2161_v15 = vunpack.c.l.s8.bf16 %v1927_v0 }
 0x3c1   :  { %2508 = vmatpush2.bf16.msra.mxu1 %v2220_v20  ;;  %2386 = vmatprep.mubr.bf16.mxu0 %v8672_v6  ;;  %v2084_v20 = vunpack.c.h.s8.bf16 %v1886_v22  ;;  %v1908_v22 = vld [vmem:[#allocation2 + $0xb50] sm:$0xff] }
 0x3c2   :  { %2509 = vmatprep.mubr.bf16.mxu1 %v8672_v6  ;;  %2387 = vmatmul.mubr.bf16.vlgmr.msra.gmra.mxu0 %v8674_v33  ;;  %v8679_v13 = vpop.f32.mrf.mxu0 }
 0x3c3   :  { %2437 = vmatpush1.bf16.msra.mxu0 %v2118_v8  ;;  %2468 = vmatprep.mubr.bf16.mxu0 %v8647_v32  ;;  %v1929_v8 = vld [vmem:[#allocation2 + $0xbf8] sm:$0xff] }
 0x3c4   :  { %2510 = vmatmul.mubr.bf16.vlgmr.msra.gmra.mxu1 %v8674_v33  ;;  %2559 = vmatprep.subr.bf16.mxu1 %v2121_v9  ;;  %v8684_v18 = vpop.f32.mrf.mxu0  ;;  %v2167_v9 = vunpack.c.h.s8.bf16 %v1927_v0  ;;  %v2130_v0 = vunpack.c.h.s8.bf16 %v1908_v22 }
 0x3c5   :  { %2560 = vmatpush1.bf16.msra.mxu1 %v2120_v44  ;;  %2591 = vmatprep.mubr.bf16.mxu1 %v8647_v32  ;;  %v2095_v32 = vunpack.c.h.s8.bf16 %v1891_v50  ;;  %v1926_v44 = vld [vmem:[#allocation2 + $0xbe0] sm:$0xff] }
 0x3c6   :  { %2438 = vmatprep.subr.bf16.mxu0 %v2113_v14  ;;  %v2310_v27 = vpop.f32.mrf.mxu0  ;;  %2561 = vmatprep.subr.bf16.mxu1 %v2115_v26  ;;  %v2169_v14 = vunpack.c.h.s8.bf16 %v1929_v8  ;;  %v1928_v26 = vld [vmem:[#allocation2 + $0xbf0] sm:$0xff] }
 0x3c7   :  { %2439 = vmatpush1.bf16.msra.mxu0 %v2112_v40  ;;  %v2166_v40 = vunpack.c.h.s8.bf16 %v1926_v44  ;;  %v2160_v27 = vunpack.c.l.s8.bf16 %v1926_v44  ;;  %v2124_v44 = vunpack.c.l.s8.bf16 %v1908_v22 }
 0x3c8   :  { %v2311_v10 = vpop.f32.mrf.mxu0  ;;  %2440 = vmatprep.subr.bf16.mxu0 %v2107_v16  ;;  %v2168_v16 = vunpack.c.h.s8.bf16 %v1928_v26 }
 0x3c9   :  { %2562 = vmatpush1.bf16.msra.mxu1 %v2114_v25  ;;  %v2163_v25 = vunpack.c.l.s8.bf16 %v1929_v8  ;;  %v2162_v10 = vunpack.c.l.s8.bf16 %v1928_v26  ;;  %v1857_v8 = vld [vmem:[#allocation2 + $0x9b8] sm:$0xff]  ;;  %v1856_v26 = vld [vmem:[#allocation2 + $0x9b0] sm:$0xff] }
 0x3ca   :  { %2563 = vmatprep.subr.bf16.mxu1 %v2109_v39  ;;  %v1923_v39 = vld [vmem:[#allocation2 + $0xbc8] sm:$0xff] }
 0x3cb   :  { %2441 = vmatpush1.bf16.msra.mxu0 %v2106_v41  ;;  %v1920_v41 = vld [vmem:[#allocation2 + $0xbb0] sm:$0xff] }
 0x3cc   :  { %2442 = vmatprep.subr.bf16.mxu0 %v2101_v48  ;;  %v2157_v48 = vunpack.c.h.s8.bf16 %v1923_v39  ;;  %v2154_v50 = vunpack.c.h.s8.bf16 %v1920_v41  ;;  %v2148_v52 = vunpack.c.l.s8.bf16 %v1920_v41  ;;  %v2018_v41 = vunpack.c.l.s8.bf16 %v1856_v26 }
 0x3cd   :  { %2564 = vmatpush1.bf16.msra.mxu1 %v2108_v1  ;;  %v1922_v1 = vld [vmem:[#allocation2 + $0xbc0] sm:$0xff] }
 0x3ce   :  { %2565 = vmatprep.subr.bf16.mxu1 %v2103_v28  ;;  %v2149_v28 = vunpack.c.l.s8.bf16 %v1921_v23  ;;  %v2024_v23 = vunpack.c.h.s8.bf16 %v1856_v26 }
 0x3cf   :  { %2443 = vmatpush1.bf16.msra.mxu0 %v2100_v5  ;;  %v2156_v5 = vunpack.c.h.s8.bf16 %v1922_v1 }
 0x3d0   :  { %2444 = vmatprep.subr.bf16.mxu0 %v2095_v32  ;;  %v2151_v32 = vunpack.c.l.s8.bf16 %v1923_v39 }
 0x3d1   :  { %2566 = vmatpush1.bf16.msra.mxu1 %v2102_v54  ;;  %v1917_v54 = vld [vmem:[#allocation2 + $0xb98] sm:$0xff] }
 0x3d2   :  { %2567 = vmatprep.subr.bf16.mxu1 %v2097_v57  ;;  %v2143_v57 = vunpack.c.h.s8.bf16 %v1915_v53 }
 0x3d3   :  { %2445 = vmatpush1.bf16.msra.mxu0 %v2094_v3  ;;  %v2150_v3 = vunpack.c.l.s8.bf16 %v1922_v1 }
 0x3d4   :  { %2446 = vmatprep.subr.bf16.mxu0 %v2089_v61  ;;  %v2145_v61 = vunpack.c.h.s8.bf16 %v1917_v54 }
 0x3d5   :  { %2568 = vmatpush1.bf16.msra.mxu1 %v2096_v12  ;;  %v1916_v12 = vld [vmem:[#allocation2 + $0xb90] sm:$0xff] }
 0x3d6   :  { %2569 = vmatprep.subr.bf16.mxu1 %v2091_v59  ;;  %v2137_v59 = vunpack.c.l.s8.bf16 %v1915_v53 }
 0x3d7   :  { %2447 = vmatpush1.bf16.msra.mxu0 %v2088_v19  ;;  %v2144_v19 = vunpack.c.h.s8.bf16 %v1916_v12 }
 0x3d8   :  { %2448 = vmatprep.subr.bf16.mxu0 %v2083_v17  ;;  %v2139_v17 = vunpack.c.l.s8.bf16 %v1917_v54 }
 0x3d9   :  { %2570 = vmatpush1.bf16.msra.mxu1 %v2090_v35  ;;  %v1911_v35 = vld [vmem:[#allocation2 + $0xb68] sm:$0xff] }
 0x3da   :  { %2571 = vmatprep.subr.bf16.mxu1 %v2085_v11  ;;  %v2131_v11 = vunpack.c.h.s8.bf16 %v1909_v21 }
 0x3db   :  { %2449 = vmatpush1.bf16.msra.mxu0 %v2082_v7  ;;  %v2138_v7 = vunpack.c.l.s8.bf16 %v1916_v12  ;;  %v2793_v12 = vld [vmem:[#allocation2 + $0xdb8] sm:$0xff] }
 0x3dc   :  { %2450 = vmatprep.subr.bf16.mxu0 %v2077_v63  ;;  %v2133_v63 = vunpack.c.h.s8.bf16 %v1911_v35 }
 0x3dd   :  { %2572 = vmatpush1.bf16.msra.mxu1 %v2084_v20  ;;  %v1910_v20 = vld [vmem:[#allocation2 + $0xb60] sm:$0xff] }
 0x3de   :  { %2573 = vmatprep.subr.bf16.mxu1 %v2079_v4  ;;  %v2125_v4 = vunpack.c.l.s8.bf16 %v1909_v21  ;;  %v2949_v21 = vunpack.c.h.s8.bf16 %v2793_v12 }
 0x3df   :  { %2451 = vmatpush1.bf16.msra.mxu0 %v2076_v42  ;;  %v2132_v42 = vunpack.c.h.s8.bf16 %v1910_v20 }
 0x3e0   :  { %2452 = vmatprep.subr.bf16.mxu0 %v2167_v9  ;;  %v2127_v9 = vunpack.c.l.s8.bf16 %v1911_v35 }
 0x3e1   :  { %2574 = vmatpush1.bf16.msra.mxu1 %v2078_v58  ;;  %v2805_v58 = vld [vmem:[#allocation2 + $0xe18] sm:$0xff] }
 0x3e2   :  { %2575 = vmatprep.subr.bf16.mxu1 %v2169_v14  ;;  %v2025_v14 = vunpack.c.h.s8.bf16 %v1857_v8 }
 0x3e3   :  { %2453 = vmatpush2.bf16.msra.mxu0 %v2166_v40  ;;  %v2126_v40 = vunpack.c.l.s8.bf16 %v1910_v20  ;;  %v2787_v20 = vld [vmem:[#allocation2 + $0xd88] sm:$0xff] }
 0x3e4   :  { %2454 = vmatprep.subr.bf16.mxu0 %v2161_v15  ;;  %v2973_v15 = vunpack.c.h.s8.bf16 %v2805_v58 }
 0x3e5   :  { %2576 = vmatpush2.bf16.msra.mxu1 %v2168_v16  ;;  %v2804_v16 = vld [vmem:[#allocation2 + $0xe10] sm:$0xff] }
 0x3e6   :  { %2577 = vmatprep.subr.bf16.mxu1 %v2163_v25  ;;  %v2019_v25 = vunpack.c.l.s8.bf16 %v1857_v8  ;;  %v2972_v39 = vunpack.c.h.s8.bf16 %v2804_v16  ;;  %v2937_v8 = vunpack.c.h.s8.bf16 %v2787_v20 }
 0x3e7   :  { %2455 = vmatpush2.bf16.msra.mxu0 %v2160_v27  ;;  %v1851_v27 = vld [vmem:[#allocation2 + $0x988] sm:$0xff] }
 0x3e8   :  { %2456 = vmatprep.subr.bf16.mxu0 %v2155_v30  ;;  %v2967_v30 = vunpack.c.l.s8.bf16 %v2805_v58  ;;  %v2013_v1 = vunpack.c.h.s8.bf16 %v1851_v27  ;;  %v2007_v54 = vunpack.c.l.s8.bf16 %v1851_v27 }
 0x3e9   :  { %2578 = vmatpush2.bf16.msra.mxu1 %v2162_v10  ;;  %v2799_v10 = vld [vmem:[#allocation2 + $0xde8] sm:$0xff] }
 0x3ea   :  { %2579 = vmatprep.subr.bf16.mxu1 %v2157_v48  ;;  %v2961_v53 = vunpack.c.h.s8.bf16 %v2799_v10 }
 0x3eb   :  { %2457 = vmatpush2.bf16.msra.mxu0 %v2154_v50  ;;  %v1850_v50 = vld [vmem:[#allocation2 + $0x980] sm:$0xff] }
 0x3ec   :  { %2458 = vmatprep.subr.bf16.mxu0 %v2149_v28  ;;  %v2966_v28 = vunpack.c.l.s8.bf16 %v2804_v16  ;;  %v2829_v16 = vld [vmem:[#allocation2 + $0xed8] sm:$0xff] }
 0x3ed   :  { %2580 = vmatpush2.bf16.msra.mxu1 %v2156_v5 }
 0x3ee   :  { %2581 = vmatprep.subr.bf16.mxu1 %v2151_v32  ;;  %v2798_v32 = vld [vmem:[#allocation2 + $0xde0] sm:$0xff] }
 0x3ef   :  { %2459 = vmatpush2.bf16.msra.mxu0 %v2148_v52 }
 0x3f0   :  { %2460 = vmatprep.subr.bf16.mxu0 %v2143_v57  ;;  %v2960_v57 = vunpack.c.h.s8.bf16 %v2798_v32 }
 0x3f1   :  { %2582 = vmatpush2.bf16.msra.mxu1 %v2150_v3  ;;  %v2955_v3 = vunpack.c.l.s8.bf16 %v2799_v10 }
 0x3f2   :  { %2583 = vmatprep.subr.bf16.mxu1 %v2145_v61  ;;  %v2006_v61 = vunpack.c.l.s8.bf16 %v1850_v50 }
 0x3f3   :  { %2461 = vmatpush2.bf16.msra.mxu0 %v2142_v62 }
 0x3f4   :  { %2462 = vmatprep.subr.bf16.mxu0 %v2137_v59  ;;  %v1844_v59 = vld [vmem:[#allocation2 + $0x950] sm:$0xff] }
 0x3f5   :  { %2584 = vmatpush2.bf16.msra.mxu1 %v2144_v19  ;;  %v2954_v19 = vunpack.c.l.s8.bf16 %v2798_v32  ;;  %v2823_v32 = vld [vmem:[#allocation2 + $0xea8] sm:$0xff] }
 0x3f6   :  { %2585 = vmatprep.subr.bf16.mxu1 %v2139_v17  ;;  %v2792_v17 = vld [vmem:[#allocation2 + $0xdb0] sm:$0xff] }
 0x3f7   :  { %2463 = vmatpush2.bf16.msra.mxu0 %v2136_v56  ;;  %v2000_v56 = vunpack.c.h.s8.bf16 %v1844_v59  ;;  %v2948_v22 = vunpack.c.h.s8.bf16 %v2792_v17 }
 0x3f8   :  { %2464 = vmatprep.subr.bf16.mxu0 %v2131_v11  ;;  %v1839_v11 = vld [vmem:[#allocation2 + $0x928] sm:$0xff] }
 0x3f9   :  { %2586 = vmatpush2.bf16.msra.mxu1 %v2138_v7  ;;  %v2943_v7 = vunpack.c.l.s8.bf16 %v2793_v12  ;;  %v1983_v58 = vunpack.c.l.s8.bf16 %v1839_v11 }
 0x3fa   :  { %2587 = vmatprep.subr.bf16.mxu1 %v2133_v63  ;;  %v1994_v63 = vunpack.c.l.s8.bf16 %v1844_v59 }
 0x3fb   :  { %2465 = vmatpush2.bf16.msra.mxu0 %v2130_v0  ;;  %v1989_v0 = vunpack.c.h.s8.bf16 %v1839_v11  ;;  %v2816_v11 = vld [vmem:[#allocation2 + $0xe70] sm:$0xff] }
 0x3fc   :  { %2466 = vmatprep.subr.bf16.mxu0 %v2125_v4  ;;  %v1838_v4 = vld [vmem:[#allocation2 + $0x920] sm:$0xff] }
 0x3fd   :  { %2588 = vmatpush2.bf16.msra.mxu1 %v2132_v42  ;;  %v2942_v42 = vunpack.c.l.s8.bf16 %v2792_v17  ;;  %v1868_v17 = vld [vmem:[#allocation2 + $0xa10] sm:$0xff] }
 0x3fe   :  { %2589 = vmatprep.subr.bf16.mxu1 %v2127_v9  ;;  %v2786_v9 = vld [vmem:[#allocation2 + $0xd80] sm:$0xff] }
 0x3ff   :  { %2467 = vmatpush2.bf16.msra.mxu0 %v2124_v44  ;;  %v1988_v44 = vunpack.c.h.s8.bf16 %v1838_v4  ;;  %v2936_v26 = vunpack.c.h.s8.bf16 %v2786_v9  ;;  %v2930_v27 = vunpack.c.l.s8.bf16 %v2786_v9  ;;  %v1862_v9 = vld [vmem:[#allocation2 + $0x9e0] sm:$0xff] }
 0x400   :  { %2518 = vmatprep.subr.bf16.mxu0 %v2025_v14  ;;  %v1881_v14 = vld [vmem:[#allocation2 + $0xa78] sm:$0xff] }
 0x401   :  { %2590 = vmatpush2.bf16.msra.mxu1 %v2126_v40  ;;  %v2931_v40 = vunpack.c.l.s8.bf16 %v2787_v20  ;;  %v2067_v10 = vunpack.c.l.s8.bf16 %v1881_v14  ;;  %v2996_v20 = vunpack.c.h.s8.bf16 %v2816_v11 }
 0x402   :  { %2469 = vmatmul.mubr.bf16.vlgmr.msra.gmra.mxu0 %v8649_v43  ;;  %3218 = vmatprep.subr.bf16.mxu1 %v2973_v15  ;;  %v1982_v15 = vunpack.c.l.s8.bf16 %v1838_v4  ;;  %v2042_v4 = vunpack.c.l.s8.bf16 %v1868_v17 }
 0x403   :  { %2519 = vmatpush1.bf16.msra.mxu0 %v2024_v23  ;;  %2550 = vmatprep.mubr.bf16.mxu0 %v8619_v2  ;;  %v2012_v2 = vunpack.c.h.s8.bf16 %v1850_v50  ;;  %v2073_v23 = vunpack.c.h.s8.bf16 %v1881_v14  ;;  %v2810_v14 = vld [vmem:[#allocation2 + $0xe40] sm:$0xff] }
 0x404   :  { %2592 = vmatmul.mubr.bf16.vlgmr.msra.gmra.mxu1 %v8649_v43  ;;  %v8690_v48 = vpop.f32.mrf.mxu1  ;;  %2520 = vmatprep.subr.bf16.mxu0 %v2019_v25  ;;  %v1845_v43 = vld [vmem:[#allocation2 + $0x958] sm:$0xff]  ;;  %v1880_v25 = vld [vmem:[#allocation2 + $0xa70] sm:$0xff] }
 0x405   :  { %3219 = vmatpush1.bf16.msra.mxu1 %v2972_v39  ;;  %3250 = vmatprep.mubr.bf16.mxu1 %v8435_v36  ;;  %v2001_v62 = vunpack.c.h.s8.bf16 %v1845_v43  ;;  %v1995_v35 = vunpack.c.l.s8.bf16 %v1845_v43  ;;  %v3021_v39 = vunpack.c.h.s8.bf16 %v2829_v16  ;;  %v3009_v43 = vunpack.c.h.s8.bf16 %v2823_v32 }
 0x406   :  { %v8693_v5 = vpop.f32.mrf.mxu1  ;;  %3220 = vmatprep.subr.bf16.mxu1 %v2967_v30  ;;  %v2828_v30 = vld [vmem:[#allocation2 + $0xed0] sm:$0xff] }
 0x407   :  { %2521 = vmatpush1.bf16.msra.mxu0 %v2018_v41  ;;  %v2072_v41 = vunpack.c.h.s8.bf16 %v1880_v25  ;;  %v3020_v50 = vunpack.c.h.s8.bf16 %v2828_v30 }
 0x408   :  { %v2351_v52 = vpop.f32.mrf.mxu1  ;;  %2522 = vmatprep.subr.bf16.mxu0 %v2013_v1  ;;  %v1875_v1 = vld [vmem:[#allocation2 + $0xa48] sm:$0xff] }
 0x409   :  { %3221 = vmatpush1.bf16.msra.mxu1 %v2966_v28  ;;  %v3015_v28 = vunpack.c.l.s8.bf16 %v2829_v16  ;;  %v1874_v52 = vld [vmem:[#allocation2 + $0xa40] sm:$0xff]  ;;  %v2984_v16 = vunpack.c.h.s8.bf16 %v2810_v14 }
 0x40a   :  { %v2352_v60 = vpop.f32.mrf.mxu1  ;;  %3222 = vmatprep.subr.bf16.mxu1 %v2961_v53  ;;  %v2066_v53 = vunpack.c.l.s8.bf16 %v1880_v25  ;;  %v2054_v59 = vunpack.c.l.s8.bf16 %v1874_v52  ;;  %v2030_v25 = vunpack.c.l.s8.bf16 %v1862_v9 }
 0x40b   :  { %2523 = vmatpush1.bf16.msra.mxu0 %v2012_v2  ;;  %v2061_v2 = vunpack.c.h.s8.bf16 %v1875_v1  ;;  %v2060_v60 = vunpack.c.h.s8.bf16 %v1874_v52 }
 0x40c   :  { %2524 = vmatprep.subr.bf16.mxu0 %v2007_v54  ;;  %v3014_v54 = vunpack.c.l.s8.bf16 %v2828_v30  ;;  %v1952_v30 = vld [vmem:[#allocation2 + $0xcb0] sm:$0xff] }
 0x40d   :  { %3223 = vmatpush1.bf16.msra.mxu1 %v2960_v57  ;;  %v2822_v57 = vld [vmem:[#allocation2 + $0xea0] sm:$0xff]  ;;  %v2210_v52 = vunpack.c.l.s8.bf16 %v1952_v30 }
 0x40e   :  { %3224 = vmatprep.subr.bf16.mxu1 %v2955_v3  ;;  %v2055_v3 = vunpack.c.l.s8.bf16 %v1875_v1  ;;  %v3008_v12 = vunpack.c.h.s8.bf16 %v2822_v57  ;;  %v2900_v1 = vld [vmem:[#allocation2 + $0x1110] sm:$0xff] }
 0x40f   :  { %2525 = vmatpush1.bf16.msra.mxu0 %v2006_v61  ;;  %v1869_v61 = vld [vmem:[#allocation2 + $0xa18] sm:$0xff] }
 0x410   :  { %2526 = vmatprep.subr.bf16.mxu0 %v2001_v62  ;;  %v3003_v62 = vunpack.c.l.s8.bf16 %v2823_v32  ;;  %v3164_v32 = vunpack.c.h.s8.bf16 %v2900_v1 }
 0x411   :  { %3225 = vmatpush1.bf16.msra.mxu1 %v2954_v19  ;;  %v2817_v19 = vld [vmem:[#allocation2 + $0xe78] sm:$0xff] }
 0x412   :  { %3226 = vmatprep.subr.bf16.mxu1 %v2949_v21  ;;  %v2049_v21 = vunpack.c.h.s8.bf16 %v1869_v61 }
 0x413   :  { %2527 = vmatpush1.bf16.msra.mxu0 %v2000_v56  ;;  %v3002_v56 = vunpack.c.l.s8.bf16 %v2822_v57 }
 0x414   :  { %2528 = vmatprep.subr.bf16.mxu0 %v1995_v35  ;;  %v2997_v35 = vunpack.c.h.s8.bf16 %v2817_v19 }
 0x415   :  { %3227 = vmatpush1.bf16.msra.mxu1 %v2948_v22  ;;  %v2048_v22 = vunpack.c.h.s8.bf16 %v1868_v17 }
 0x416   :  { %3228 = vmatprep.subr.bf16.mxu1 %v2943_v7  ;;  %v2043_v7 = vunpack.c.l.s8.bf16 %v1869_v61 }
 0x417   :  { %2529 = vmatpush1.bf16.msra.mxu0 %v1994_v63  ;;  %v1863_v63 = vld [vmem:[#allocation2 + $0x9e8] sm:$0xff] }
 0x418   :  { %2530 = vmatprep.subr.bf16.mxu0 %v1989_v0  ;;  %v2991_v0 = vunpack.c.l.s8.bf16 %v2817_v19  ;;  %v1941_v19 = vld [vmem:[#allocation2 + $0xc58] sm:$0xff] }
 0x419   :  { %3229 = vmatpush1.bf16.msra.mxu1 %v2942_v42  ;;  %v2811_v42 = vld [vmem:[#allocation2 + $0xe48] sm:$0xff] }
 0x41a   :  { %3230 = vmatprep.subr.bf16.mxu1 %v2937_v8  ;;  %v2037_v8 = vunpack.c.h.s8.bf16 %v1863_v63 }
 0x41b   :  { %2531 = vmatpush1.bf16.msra.mxu0 %v1988_v44  ;;  %v2990_v44 = vunpack.c.l.s8.bf16 %v2816_v11  ;;  %v2889_v11 = vld [vmem:[#allocation2 + $0x10b8] sm:$0xff] }
 0x41c   :  { %2532 = vmatprep.subr.bf16.mxu0 %v1983_v58  ;;  %v2985_v58 = vunpack.c.h.s8.bf16 %v2811_v42 }
 0x41d   :  { %3231 = vmatpush1.bf16.msra.mxu1 %v2936_v26  ;;  %v2036_v26 = vunpack.c.h.s8.bf16 %v1862_v9 }
 0x41e   :  { %3232 = vmatprep.subr.bf16.mxu1 %v2931_v40  ;;  %v2031_v40 = vunpack.c.l.s8.bf16 %v1863_v63 }
 0x41f   :  { %2533 = vmatpush1.bf16.msra.mxu0 %v1982_v15  ;;  %v1953_v15 = vld [vmem:[#allocation2 + $0xcb8] sm:$0xff] }
 0x420   :  { %2534 = vmatprep.subr.bf16.mxu0 %v2073_v23  ;;  %v2979_v23 = vunpack.c.l.s8.bf16 %v2811_v42  ;;  %v2187_v42 = vunpack.c.l.s8.bf16 %v1941_v19 }
 0x421   :  { %3233 = vmatpush1.bf16.msra.mxu1 %v2930_v27  ;;  %v2901_v27 = vld [vmem:[#allocation2 + $0x1118] sm:$0xff] }
 0x422   :  { %3234 = vmatprep.subr.bf16.mxu1 %v3021_v39  ;;  %v2217_v39 = vunpack.c.h.s8.bf16 %v1953_v15 }
 0x423   :  { %2535 = vmatpush2.bf16.msra.mxu0 %v2072_v41  ;;  %v2978_v41 = vunpack.c.l.s8.bf16 %v2810_v14  ;;  %v2883_v14 = vld [vmem:[#allocation2 + $0x1088] sm:$0xff] }
 0x424   :  { %2536 = vmatprep.subr.bf16.mxu0 %v2067_v10  ;;  %v3165_v10 = vunpack.c.h.s8.bf16 %v2901_v27 }
 0x425   :  { %3235 = vmatpush2.bf16.msra.mxu1 %v3020_v50  ;;  %v2216_v50 = vunpack.c.h.s8.bf16 %v1952_v30 }
 0x426   :  { %3236 = vmatprep.subr.bf16.mxu1 %v3015_v28  ;;  %v2211_v28 = vunpack.c.l.s8.bf16 %v1953_v15 }
 0x427   :  { %2537 = vmatpush2.bf16.msra.mxu0 %v2066_v53  ;;  %v1947_v53 = vld [vmem:[#allocation2 + $0xc88] sm:$0xff] }
 0x428   :  { %2538 = vmatprep.subr.bf16.mxu0 %v2061_v2  ;;  %v3159_v2 = vunpack.c.l.s8.bf16 %v2901_v27  ;;  %v2205_v57 = vunpack.c.h.s8.bf16 %v1947_v53 }
 0x429   :  { %3237 = vmatpush2.bf16.msra.mxu1 %v3014_v54  ;;  %v2895_v54 = vld [vmem:[#allocation2 + $0x10e8] sm:$0xff] }
 0x42a   :  { %3238 = vmatprep.subr.bf16.mxu1 %v3009_v43 }
 0x42b   :  { %2539 = vmatpush2.bf16.msra.mxu0 %v2060_v60  ;;  %v1946_v60 = vld [vmem:[#allocation2 + $0xc80] sm:$0xff] }
 0x42c   :  { %2540 = vmatprep.subr.bf16.mxu0 %v2055_v3  ;;  %v3158_v3 = vunpack.c.l.s8.bf16 %v2900_v1  ;;  %v2925_v1 = vld [vmem:[#allocation2 + $0x11d8] sm:$0xff] }
 0x42d   :  { %3239 = vmatpush2.bf16.msra.mxu1 %v3008_v12  ;;  %v2894_v12 = vld [vmem:[#allocation2 + $0x10e0] sm:$0xff] }
 0x42e   :  { %3240 = vmatprep.subr.bf16.mxu1 %v3003_v62  ;;  %v3146_v63 = vunpack.c.l.s8.bf16 %v2894_v12 }
 0x42f   :  { %2541 = vmatpush2.bf16.msra.mxu0 %v2054_v59  ;;  %v2199_v59 = vunpack.c.l.s8.bf16 %v1947_v53 }
 0x430   :  { %2542 = vmatprep.subr.bf16.mxu0 %v2049_v21  ;;  %v3152_v21 = vunpack.c.h.s8.bf16 %v2894_v12  ;;  %v2919_v12 = vld [vmem:[#allocation2 + $0x11a8] sm:$0xff] }
 0x431   :  { %3241 = vmatpush2.bf16.msra.mxu1 %v3002_v56  ;;  %v3147_v56 = vunpack.c.l.s8.bf16 %v2895_v54 }
 0x432   :  { %3242 = vmatprep.subr.bf16.mxu1 %v2997_v35  ;;  %v2198_v35 = vunpack.c.l.s8.bf16 %v1946_v60 }
 0x433   :  { %2543 = vmatpush2.bf16.msra.mxu0 %v2048_v22  ;;  %v2193_v22 = vunpack.c.h.s8.bf16 %v1941_v19  ;;  %v3201_v19 = vunpack.c.h.s8.bf16 %v2919_v12 }
 0x434   :  { %2544 = vmatprep.subr.bf16.mxu0 %v2043_v7  ;;  %v1940_v7 = vld [vmem:[#allocation2 + $0xc50] sm:$0xff] }
 0x435   :  { %3243 = vmatpush2.bf16.msra.mxu1 %v2996_v20  ;;  %v3141_v20 = vunpack.c.h.s8.bf16 %v2889_v11 }
 0x436   :  { %3244 = vmatprep.subr.bf16.mxu1 %v2991_v0  ;;  %v2888_v0 = vld [vmem:[#allocation2 + $0x10b0] sm:$0xff] }
 0x437   :  { %2545 = vmatpush2.bf16.msra.mxu0 %v2042_v4  ;;  %v2192_v4 = vunpack.c.h.s8.bf16 %v1940_v7  ;;  %v3140_v9 = vunpack.c.h.s8.bf16 %v2888_v0  ;;  %v3134_v15 = vunpack.c.l.s8.bf16 %v2888_v0  ;;  %v1964_v0 = vld [vmem:[#allocation2 + $0xd10] sm:$0xff] }
 0x438   :  { %2546 = vmatprep.subr.bf16.mxu0 %v2037_v8  ;;  %v1935_v8 = vld [vmem:[#allocation2 + $0xc28] sm:$0xff] }
 0x439   :  { %3245 = vmatpush2.bf16.msra.mxu1 %v2990_v44  ;;  %v3135_v44 = vunpack.c.l.s8.bf16 %v2889_v11  ;;  %v2175_v27 = vunpack.c.l.s8.bf16 %v1935_v8 }
 0x43a   :  { %3246 = vmatprep.subr.bf16.mxu1 %v2985_v58  ;;  %v2186_v58 = vunpack.c.l.s8.bf16 %v1940_v7 }
 0x43b   :  { %2547 = vmatpush2.bf16.msra.mxu0 %v2036_v26  ;;  %v2181_v26 = vunpack.c.h.s8.bf16 %v1935_v8  ;;  %v2912_v8 = vld [vmem:[#allocation2 + $0x1170] sm:$0xff] }
 0x43c   :  { %2548 = vmatprep.subr.bf16.mxu0 %v2031_v40  ;;  %v1934_v40 = vld [vmem:[#allocation2 + $0xc20] sm:$0xff] }
 0x43d   :  { %3247 = vmatpush2.bf16.msra.mxu1 %v2984_v16  ;;  %v3129_v16 = vunpack.c.h.s8.bf16 %v2883_v14 }
 0x43e   :  { %3248 = vmatprep.subr.bf16.mxu1 %v2979_v23  ;;  %v2882_v23 = vld [vmem:[#allocation2 + $0x1080] sm:$0xff] }
 0x43f   :  { %2549 = vmatpush2.bf16.msra.mxu0 %v2030_v25  ;;  %v2180_v25 = vunpack.c.h.s8.bf16 %v1934_v40  ;;  %v3128_v30 = vunpack.c.h.s8.bf16 %v2882_v23  ;;  %v3122_v53 = vunpack.c.l.s8.bf16 %v2882_v23  ;;  %v1958_v23 = vld [vmem:[#allocation2 + $0xce0] sm:$0xff] }
 0x440   :  { %2600 = vmatprep.subr.bf16.mxu0 %v2217_v39  ;;  %v1977_v39 = vld [vmem:[#allocation2 + $0xd78] sm:$0xff] }
 0x441   :  { %3249 = vmatpush2.bf16.msra.mxu1 %v2978_v41  ;;  %v3123_v41 = vunpack.c.l.s8.bf16 %v2883_v14  ;;  %v3188_v14 = vunpack.c.h.s8.bf16 %v2912_v8 }
 0x442   :  { %2551 = vmatmul.mubr.bf16.vlgmr.msra.gmra.mxu0 %v8621_v45  ;;  %3300 = vmatprep.subr.bf16.mxu1 %v3165_v10  ;;  %v3153_v45 = vunpack.c.h.s8.bf16 %v2895_v54  ;;  %v2174_v10 = vunpack.c.l.s8.bf16 %v1934_v40  ;;  %v2259_v54 = vunpack.c.l.s8.bf16 %v1977_v39  ;;  %v2234_v40 = vunpack.c.l.s8.bf16 %v1964_v0 }
 0x443   :  { %2601 = vmatpush1.bf16.msra.mxu0 %v2216_v50  ;;  %2632 = vmatprep.mubr.bf16.mxu0 %v8672_v6  ;;  %v2204_v6 = vunpack.c.h.s8.bf16 %v1946_v60  ;;  %v2265_v50 = vunpack.c.h.s8.bf16 %v1977_v39  ;;  %v2906_v39 = vld [vmem:[#allocation2 + $0x1140] sm:$0xff] }
 0x444   :  { %v8697_v43 = vpop.f32.mrf.mxu1  ;;  %2602 = vmatprep.subr.bf16.mxu0 %v2211_v28  ;;  %3251 = vmatmul.mubr.bf16.vlgmr.msra.gmra.mxu1 %v8447_v46  ;;  %v1976_v28 = vld [vmem:[#allocation2 + $0xd70] sm:$0xff] }
 0x445   :  { %3301 = vmatpush1.bf16.msra.mxu1 %v3164_v32  ;;  %3332 = vmatprep.mubr.bf16.mxu1 %v8454_v55  ;;  %v3213_v32 = vunpack.c.h.s8.bf16 %v2925_v1 }
 0x446   :  { %v8701_v61 = vpop.f32.mrf.mxu1  ;;  %3302 = vmatprep.subr.bf16.mxu1 %v3159_v2  ;;  %v2924_v2 = vld [vmem:[#allocation2 + $0x11d0] sm:$0xff] }
 0x447   :  { %2603 = vmatpush1.bf16.msra.mxu0 %v2210_v52  ;;  %v2264_v52 = vunpack.c.h.s8.bf16 %v1976_v28  ;;  %v3212_v60 = vunpack.c.h.s8.bf16 %v2924_v2 }
 0x448   :  { %v2433_v62 = vpop.f32.mrf.mxu1  ;;  %2604 = vmatprep.subr.bf16.mxu0 %v2205_v57  ;;  %v1971_v57 = vld [vmem:[#allocation2 + $0xd48] sm:$0xff] }
 0x449   :  { %3303 = vmatpush1.bf16.msra.mxu1 %v3158_v3  ;;  %v3207_v3 = vunpack.c.l.s8.bf16 %v2925_v1  ;;  %v1970_v62 = vld [vmem:[#allocation2 + $0xd40] sm:$0xff]  ;;  %v3176_v1 = vunpack.c.h.s8.bf16 %v2906_v39 }
 0x44a   :  { %v2434_v17 = vpop.f32.mrf.mxu1  ;;  %3304 = vmatprep.subr.bf16.mxu1 %v3153_v45  ;;  %v2258_v45 = vunpack.c.l.s8.bf16 %v1976_v28  ;;  %v2246_v7 = vunpack.c.l.s8.bf16 %v1970_v62  ;;  %v2222_v28 = vunpack.c.l.s8.bf16 %v1958_v23 }
 0x44b   :  { %2605 = vmatpush1.bf16.msra.mxu0 %v2204_v6  ;;  %v2253_v6 = vunpack.c.h.s8.bf16 %v1971_v57  ;;  %v2252_v17 = vunpack.c.h.s8.bf16 %v1970_v62 }
 0x44c   :  { %2606 = vmatprep.subr.bf16.mxu0 %v2199_v59  ;;  %v3206_v59 = vunpack.c.l.s8.bf16 %v2924_v2  ;;  %v2852_v2 = vld [vmem:[#allocation2 + $0xf90] sm:$0xff] }
 0x44d   :  { %3305 = vmatpush1.bf16.msra.mxu1 %v3152_v21  ;;  %v2918_v21 = vld [vmem:[#allocation2 + $0x11a0] sm:$0xff] }
 0x44e   :  { %3306 = vmatprep.subr.bf16.mxu1 %v3147_v56  ;;  %v2247_v56 = vunpack.c.l.s8.bf16 %v1971_v57  ;;  %v3200_v11 = vunpack.c.h.s8.bf16 %v2918_v21 }
 0x44f   :  { %2607 = vmatpush1.bf16.msra.mxu0 %v2198_v35  ;;  %v1965_v35 = vld [vmem:[#allocation2 + $0xd18] sm:$0xff] }
 0x450   :  { %2608 = vmatprep.subr.bf16.mxu0 %v2193_v22  ;;  %v3195_v22 = vunpack.c.l.s8.bf16 %v2919_v12 }
 0x451   :  { %3307 = vmatpush1.bf16.msra.mxu1 %v3146_v63  ;;  %v2913_v63 = vld [vmem:[#allocation2 + $0x1178] sm:$0xff] }
 0x452   :  { %3308 = vmatprep.subr.bf16.mxu1 %v3141_v20  ;;  %v2241_v20 = vunpack.c.h.s8.bf16 %v1965_v35 }
 0x453   :  { %2609 = vmatpush1.bf16.msra.mxu0 %v2192_v4  ;;  %v3194_v4 = vunpack.c.l.s8.bf16 %v2918_v21 }
 0x454   :  { %2610 = vmatprep.subr.bf16.mxu0 %v2187_v42  ;;  %v3189_v42 = vunpack.c.h.s8.bf16 %v2913_v63 }
 0x455   :  { %3309 = vmatpush1.bf16.msra.mxu1 %v3140_v9  ;;  %v2240_v9 = vunpack.c.h.s8.bf16 %v1964_v0 }
 0x456   :  { %3310 = vmatprep.subr.bf16.mxu1 %v3135_v44  ;;  %v2235_v44 = vunpack.c.l.s8.bf16 %v1965_v35  ;;  %v2350_v35 = vadd.f32 %v8693_v5, %v8684_v18 }
 0x457   :  { %2611 = vmatpush1.bf16.msra.mxu0 %v2186_v58  ;;  %v1959_v58 = vld [vmem:[#allocation2 + $0xce8] sm:$0xff] }
 0x458   :  { %2612 = vmatprep.subr.bf16.mxu0 %v2181_v26  ;;  %v3183_v26 = vunpack.c.l.s8.bf16 %v2913_v63 }
 0x459   :  { %3311 = vmatpush1.bf16.msra.mxu1 %v3134_v15  ;;  %v2907_v15 = vld [vmem:[#allocation2 + $0x1148] sm:$0xff] }
 0x45a   :  { %3312 = vmatprep.subr.bf16.mxu1 %v3129_v16  ;;  %v2229_v16 = vunpack.c.h.s8.bf16 %v1959_v58 }
 0x45b   :  { %2613 = vmatpush1.bf16.msra.mxu0 %v2180_v25  ;;  %v3182_v25 = vunpack.c.l.s8.bf16 %v2912_v8 }
 0x45c   :  { %2614 = vmatprep.subr.bf16.mxu0 %v2175_v27  ;;  %v3177_v27 = vunpack.c.h.s8.bf16 %v2907_v15 }
 0x45d   :  { %3313 = vmatpush1.bf16.msra.mxu1 %v3128_v30  ;;  %v2228_v30 = vunpack.c.h.s8.bf16 %v1958_v23 }
 0x45e   :  { %3314 = vmatprep.subr.bf16.mxu1 %v3123_v41  ;;  %v2223_v41 = vunpack.c.l.s8.bf16 %v1959_v58 }
 0x45f   :  { %2615 = vmatpush1.bf16.msra.mxu0 %v2174_v10  ;;  %v2853_v10 = vld [vmem:[#allocation2 + $0xf98] sm:$0xff] }
 0x460   :  { %2616 = vmatprep.subr.bf16.mxu0 %v2265_v50  ;;  %v3171_v50 = vunpack.c.l.s8.bf16 %v2907_v15  ;;  %v3063_v12 = vunpack.c.l.s8.bf16 %v2853_v10 }
 0x461   :  { %3315 = vmatpush1.bf16.msra.mxu1 %v3122_v53  ;;  %v2855_v53 = vld [vmem:[#allocation2 + $0xfa8] sm:$0xff] }
 0x462   :  { %3316 = vmatprep.subr.bf16.mxu1 %v3213_v32  ;;  %v3069_v32 = vunpack.c.h.s8.bf16 %v2853_v10  ;;  %v3071_v57 = vunpack.c.h.s8.bf16 %v2855_v53 }
 0x463   :  { %2617 = vmatpush2.bf16.msra.mxu0 %v2264_v52  ;;  %v3170_v52 = vunpack.c.l.s8.bf16 %v2906_v39 }
 0x464   :  { %2618 = vmatprep.subr.bf16.mxu0 %v2259_v54  ;;  %v8703_v54 = vld [vmem:[#allocation4 + $0xc] sm:$0x3f] }
 0x465   :  { %3317 = vmatpush2.bf16.msra.mxu1 %v3212_v60  ;;  %v2854_v60 = vld [vmem:[#allocation2 + $0xfa0] sm:$0xff]  ;;  %v2647_v62 = vrot.slane %v8703_v54, %v8485_v34 }
 0x466   :  { %3318 = vmatprep.subr.bf16.mxu1 %v3207_v3  ;;  %v8705_v3 = vld [vmem:[#allocation6 + $0xc] sm:$0x3f]  ;;  %v3064_v5 = vunpack.c.l.s8.bf16 %v2854_v60 }
 0x467   :  { %2619 = vmatpush2.bf16.msra.mxu0 %v2258_v45  ;;  %v3068_v45 = vunpack.c.h.s8.bf16 %v2852_v2  ;;  %v2690_v18 = vrot.slane %v8705_v3, %v8490_v38 }
 0x468   :  { %2620 = vmatprep.subr.bf16.mxu0 %v2253_v6  ;;  %v2348_v6 = vadd.f32 %v8690_v48, %v8679_v13  ;;  %v2651_v13 = vrot.slane %v8703_v54, %v8490_v38  ;;  %v3062_v48 = vunpack.c.l.s8.bf16 %v2852_v2 }
 0x469   :  { %3319 = vmatpush2.bf16.msra.mxu1 %v3206_v59  ;;  %v2847_v59 = vld [vmem:[#allocation2 + $0xf68] sm:$0xff] }
 0x46a   :  { %3320 = vmatprep.subr.bf16.mxu1 %v3201_v19  ;;  %v3070_v19 = vunpack.c.h.s8.bf16 %v2854_v60  ;;  %v3057_v63 = vunpack.c.h.s8.bf16 %v2847_v59 }
 0x46b   :  { %2621 = vmatpush2.bf16.msra.mxu0 %v2252_v17  ;;  %v2686_v17 = vrot.slane %v8705_v3, %v8485_v34 }
 0x46c   :  { %2622 = vmatprep.subr.bf16.mxu0 %v2247_v56  ;;  %v3065_v56 = vunpack.c.l.s8.bf16 %v2855_v53 }
 0x46d   :  { %3321 = vmatpush2.bf16.msra.mxu1 %v3200_v11 }
 0x46e   :  { %3322 = vmatprep.subr.bf16.mxu1 %v3195_v22  ;;  %v2849_v22 = vld [vmem:[#allocation2 + $0xf78] sm:$0xff] }
 0x46f   :  { %2623 = vmatpush2.bf16.msra.mxu0 %v2246_v7 }
 0x470   :  { %2624 = vmatprep.subr.bf16.mxu0 %v2241_v20  ;;  %v2846_v20 = vld [vmem:[#allocation2 + $0xf60] sm:$0xff] }
 0x471   :  { %3323 = vmatpush2.bf16.msra.mxu1 %v3194_v4 }
 0x472   :  { %3324 = vmatprep.subr.bf16.mxu1 %v3189_v42 }
 0x473   :  { %2625 = vmatpush2.bf16.msra.mxu0 %v2240_v9  ;;  %v3059_v9 = vunpack.c.h.s8.bf16 %v2849_v22 }
 0x474   :  { %2626 = vmatprep.subr.bf16.mxu0 %v2235_v44  ;;  %v2848_v44 = vld [vmem:[#allocation2 + $0xf70] sm:$0xff] }
 0x475   :  { %3325 = vmatpush2.bf16.msra.mxu1 %v3188_v14  ;;  %v3058_v39 = vunpack.c.h.s8.bf16 %v2848_v44 }
 0x476   :  { %3326 = vmatprep.subr.bf16.mxu1 %v3183_v26  ;;  %v3056_v26 = vunpack.c.h.s8.bf16 %v2846_v20 }
 0x477   :  { %2627 = vmatpush2.bf16.msra.mxu0 %v2234_v40 }
 0x478   :  { %2628 = vmatprep.subr.bf16.mxu0 %v2229_v16  ;;  %v3051_v16 = vunpack.c.l.s8.bf16 %v2847_v59  ;;  %v2835_v59 = vld [vmem:[#allocation2 + $0xf08] sm:$0xff] }
 0x479   :  { %3327 = vmatpush2.bf16.msra.mxu1 %v3182_v25 }
 0x47a   :  { %3328 = vmatprep.subr.bf16.mxu1 %v3177_v27  ;;  %v2841_v27 = vld [vmem:[#allocation2 + $0xf38] sm:$0xff] }
 0x47b   :  { %2629 = vmatpush2.bf16.msra.mxu0 %v2228_v30  ;;  %v3045_v53 = vunpack.c.h.s8.bf16 %v2841_v27 }
 0x47c   :  { %2630 = vmatprep.subr.bf16.mxu0 %v2223_v41  ;;  %v3053_v41 = vunpack.c.l.s8.bf16 %v2849_v22  ;;  %v2836_v22 = vld [vmem:[#allocation2 + $0xf10] sm:$0xff] }
 0x47d   :  { %3329 = vmatpush2.bf16.msra.mxu1 %v3176_v1 }
 0x47e   :  { %3330 = vmatprep.subr.bf16.mxu1 %v3171_v50  ;;  %v3050_v50 = vunpack.c.l.s8.bf16 %v2846_v20  ;;  %v2877_v20 = vld [vmem:[#allocation2 + $0x1058] sm:$0xff] }
 0x47f   :  { %2631 = vmatpush2.bf16.msra.mxu0 %v2222_v28  ;;  %v2843_v28 = vld [vmem:[#allocation2 + $0xf48] sm:$0xff] }
 0x480   :  { %3259 = vmatprep.subr.bf16.mxu0 %v3069_v32  ;;  %v2840_v32 = vld [vmem:[#allocation2 + $0xf30] sm:$0xff]  ;;  %v3047_v60 = vunpack.c.h.s8.bf16 %v2843_v28 }
 0x481   :  { %3331 = vmatpush2.bf16.msra.mxu1 %v3170_v52 }
 0x482   :  { %2633 = vmatmul.mubr.bf16.vlgmr.msra.gmra.mxu0 %v8674_v33  ;;  %v2388_v21 = vpop.f32.mrf.mxu0  ;;  %3382 = vmatprep.subr.bf16.mxu1 %v3071_v57  ;;  %v3052_v57 = vunpack.c.l.s8.bf16 %v2848_v44  ;;  %v2876_v44 = vld [vmem:[#allocation2 + $0x1050] sm:$0xff] }
 0x483   :  { %v2389_v11 = vadd.f32 %v2388_v21, %v2348_v6  ;;  %3260 = vmatpush1.bf16.msra.mxu0 %v3068_v45  ;;  %3291 = vmatprep.mubr.bf16.mxu0 %v8437_v37  ;;  %v2842_v45 = vld [vmem:[#allocation2 + $0xf40] sm:$0xff]  ;;  %v3044_v6 = vunpack.c.h.s8.bf16 %v2840_v32  ;;  %v3041_v21 = vunpack.c.l.s8.bf16 %v2843_v28 }
 0x484   :  { %v8719_v7 = vpop.f32.mrf.mxu1  ;;  %v2390_v33 = vpop.f32.mrf.mxu0  ;;  %3261 = vmatprep.subr.bf16.mxu0 %v3063_v12  ;;  %3333 = vmatmul.mubr.bf16.vlgmr.msra.gmra.mxu1 %v8463_v24 }
 0x485   :  { %v2674_v0 = vmul.f32 %v2647_v62, %v2389_v11  ;;  %v2391_v4 = vadd.f32 %v2390_v33, %v2350_v35  ;;  %3383 = vmatpush1.bf16.msra.mxu1 %v3070_v19  ;;  %3414 = vmatprep.mubr.bf16.mxu1 %v8437_v37  ;;  %v3039_v62 = vunpack.c.l.s8.bf16 %v2841_v27  ;;  %v3046_v19 = vunpack.c.h.s8.bf16 %v2842_v45  ;;  %v2834_v11 = vld [vmem:[#allocation2 + $0xf00] sm:$0xff] }
 0x486   :  { %v8725_v42 = vpop.f32.mrf.mxu1  ;;  %v2392_v8 = vpop.f32.mrf.mxu0  ;;  %3384 = vmatprep.subr.bf16.mxu1 %v3065_v56  ;;  %v2837_v56 = vld [vmem:[#allocation2 + $0xf18] sm:$0xff]  ;;  %v3033_v35 = vunpack.c.h.s8.bf16 %v2835_v59  ;;  %v3032_v33 = vunpack.c.h.s8.bf16 %v2834_v11  ;;  %v3116_v27 = vunpack.c.h.s8.bf16 %v2876_v44 }
 0x487   :  { %v8727_v58 = vadd.f32 %v2686_v17, %v2674_v0  ;;  %v2675_v14 = vmul.f32 %v2651_v13, %v2391_v4  ;;  %3262 = vmatpush1.bf16.msra.mxu0 %v3062_v48  ;;  %v3038_v17 = vunpack.c.l.s8.bf16 %v2840_v32  ;;  %v3040_v13 = vunpack.c.l.s8.bf16 %v2842_v45  ;;  %v2865_v45 = vld [vmem:[#allocation2 + $0xff8] sm:$0xff] }
 0x488   :  { %v2515_v40 = vpop.f32.mrf.mxu1  ;;  %v2393_v15 = vpop.f32.mrf.mxu0  ;;  %3263 = vmatprep.subr.bf16.mxu0 %v3057_v63  ;;  %v3035_v48 = vunpack.c.h.s8.bf16 %v2837_v56  ;;  %v3027_v63 = vunpack.c.l.s8.bf16 %v2835_v59  ;;  %v3034_v0 = vunpack.c.h.s8.bf16 %v2836_v22  ;;  %v3029_v4 = vunpack.c.l.s8.bf16 %v2837_v56  ;;  %v2867_v59 = vld [vmem:[#allocation2 + $0x1008] sm:$0xff] }
 0x489   :  { %v2719_v23 = vand.u32 2147483647, %v8727_v58  ;;  %v8730_v25 = vadd.f32 %v2690_v18, %v2675_v14  ;;  %3385 = vmatpush1.bf16.msra.mxu1 %v3064_v5  ;;  %v3026_v18 = vunpack.c.l.s8.bf16 %v2834_v11  ;;  %v2879_v5 = vld [vmem:[#allocation2 + $0x1068] sm:$0xff]  ;;  %vm2743_vm0 = vcmp.ge.f32.partialorder %v8727_v58, 0.0 }
 0x48a   :  { %v2516_v30 = vpop.f32.mrf.mxu1  ;;  %3386 = vmatprep.subr.bf16.mxu1 %v3059_v9  ;;  %v3117_v9 = vunpack.c.h.s8.bf16 %v2877_v20  ;;  %v3119_v15 = vunpack.c.h.s8.bf16 %v2879_v5  ;;  %v3089_v58 = vunpack.c.l.s8.bf16 %v2867_v59 }
 0x48b   :  { %v2725_v10 = vsub.f32 0.0, %v2719_v23  ;;  %v2720_v1 = vand.u32 2147483647, %v8730_v25  ;;  %3264 = vmatpush1.bf16.msra.mxu0 %v3056_v26  ;;  %v3028_v26 = vunpack.c.l.s8.bf16 %v2836_v22  ;;  %v2871_v30 = vld [vmem:[#allocation2 + $0x1028] sm:$0xff]  ;;  %vm2744_vm1 = vcmp.ge.f32.partialorder %v8730_v25, 0.0 }
 0x48c   :  { %3265 = vmatprep.subr.bf16.mxu0 %v3051_v16  ;;  %v2878_v16 = vld [vmem:[#allocation2 + $0x1060] sm:$0xff]  ;;  %v3105_v28 = vunpack.c.h.s8.bf16 %v2871_v30 }
 0x48d   :  { %v2731_v2 = vmul.f32 1.442695, %v2725_v10  ;;  %v2726_v52 = vsub.f32 0.0, %v2720_v1  ;;  %3387 = vmatpush1.bf16.msra.mxu1 %v3058_v39  ;;  %v3111_v39 = vunpack.c.l.s8.bf16 %v2877_v20  ;;  %v3113_v10 = vunpack.c.l.s8.bf16 %v2879_v5 }
 0x48e   :  { %3388 = vmatprep.subr.bf16.mxu1 %v3053_v41  ;;  %v3118_v41 = vunpack.c.h.s8.bf16 %v2878_v16  ;;  %v3110_v1 = vunpack.c.l.s8.bf16 %v2876_v44  ;;  %v3112_v32 = vunpack.c.l.s8.bf16 %v2878_v16  ;;  %v3087_v20 = vunpack.c.l.s8.bf16 %v2865_v45  ;;  %v2858_v44 = vld [vmem:[#allocation2 + $0xfc0] sm:$0xff]  ;;  %v2807_v16 = vld [vmem:[#allocation2 + $0xe28] sm:$0xff] }
 0x48f   :  { %8248 = vpow2.f32 %v2731_v2  ;;  %v2733_v12 = vmul.f32 1.442695, %v2726_v52  ;;  %3266 = vmatpush1.bf16.msra.mxu0 %v3050_v50  ;;  %v2873_v50 = vld [vmem:[#allocation2 + $0x1038] sm:$0xff]  ;;  %v2872_v52 = vld [vmem:[#allocation2 + $0x1030] sm:$0xff] }
 0x490   :  { %3267 = vmatprep.subr.bf16.mxu0 %v3045_v53  ;;  %v2870_v53 = vld [vmem:[#allocation2 + $0x1020] sm:$0xff]  ;;  %v3107_v2 = vunpack.c.h.s8.bf16 %v2873_v50 }
 0x491   :  { %8250 = vpow2.f32 %v2733_v12  ;;  %3389 = vmatpush1.bf16.msra.mxu1 %v3052_v57  ;;  %v3104_v57 = vunpack.c.h.s8.bf16 %v2870_v53  ;;  %v3106_v12 = vunpack.c.h.s8.bf16 %v2872_v52 }
 0x492   :  { %3390 = vmatprep.subr.bf16.mxu1 %v3047_v60  ;;  %v3099_v60 = vunpack.c.l.s8.bf16 %v2871_v30  ;;  %v2809_v30 = vld [vmem:[#allocation2 + $0xe38] sm:$0xff] }
 0x493   :  { %3268 = vmatpush1.bf16.msra.mxu0 %v3044_v6  ;;  %v3101_v6 = vunpack.c.l.s8.bf16 %v2873_v50  ;;  %v2977_v50 = vunpack.c.h.s8.bf16 %v2809_v30 }
 0x494   :  { %3269 = vmatprep.subr.bf16.mxu0 %v3039_v62  ;;  %v3098_v62 = vunpack.c.l.s8.bf16 %v2870_v53 }
 0x495   :  { %3391 = vmatpush1.bf16.msra.mxu1 %v3046_v19 }
 0x496   :  { %3392 = vmatprep.subr.bf16.mxu1 %v3041_v21  ;;  %v3093_v21 = vunpack.c.h.s8.bf16 %v2865_v45 }
 0x497   :  { %3270 = vmatpush1.bf16.msra.mxu0 %v3038_v17  ;;  %v2864_v17 = vld [vmem:[#allocation2 + $0xff0] sm:$0xff] }
 0x498   :  { %3271 = vmatprep.subr.bf16.mxu0 %v3033_v35  ;;  %v3100_v35 = vunpack.c.l.s8.bf16 %v2872_v52  ;;  %v3086_v5 = vunpack.c.l.s8.bf16 %v2864_v17 }
 0x499   :  { %3393 = vmatpush1.bf16.msra.mxu1 %v3040_v13  ;;  %v3095_v13 = vunpack.c.h.s8.bf16 %v2867_v59  ;;  %v2694_v59 = vrot.slane %v8705_v3, %v8520_v49 }
 0x49a   :  { %3394 = vmatprep.subr.bf16.mxu1 %v3035_v48  ;;  %v2866_v48 = vld [vmem:[#allocation2 + $0x1000] sm:$0xff] }
 0x49b   :  { %3272 = vmatpush1.bf16.msra.mxu0 %v3032_v33  ;;  %v3088_v25 = vunpack.c.l.s8.bf16 %v2866_v48 }
 0x49c   :  { %v8249_v8 = vpop.eup %8248  ;;  %3273 = vmatprep.subr.bf16.mxu0 %v3027_v63  ;;  %v3092_v63 = vunpack.c.h.s8.bf16 %v2864_v17 }
 0x49d   :  { %v2749_v14 = vadd.f32 1.0, %v8249_v8  ;;  %3395 = vmatpush1.bf16.msra.mxu1 %v3034_v0 }
 0x49e   :  { %v8251_v40 = vpop.eup %8250  ;;  %3396 = vmatprep.subr.bf16.mxu1 %v3029_v4  ;;  %v2859_v4 = vld [vmem:[#allocation2 + $0xfc8] sm:$0xff] }
 0x49f   :  { %8252 = vrcp.f32 %v2749_v14  ;;  %v2750_v23 = vadd.f32 1.0, %v8251_v40  ;;  %3274 = vmatpush1.bf16.msra.mxu0 %v3026_v18  ;;  %v3094_v18 = vunpack.c.h.s8.bf16 %v2866_v48 }
 0x4a0   :  { %3275 = vmatprep.subr.bf16.mxu0 %v3117_v9  ;;  %v3081_v9 = vunpack.c.h.s8.bf16 %v2859_v4 }
 0x4a1   :  { %8254 = vrcp.f32 %v2750_v23  ;;  %3397 = vmatpush1.bf16.msra.mxu1 %v3028_v26  ;;  %v2860_v26 = vld [vmem:[#allocation2 + $0xfd0] sm:$0xff] }
 0x4a2   :  { %3398 = vmatprep.subr.bf16.mxu1 %v3119_v15  ;;  %v3075_v15 = vunpack.c.l.s8.bf16 %v2859_v4  ;;  %v3082_v23 = vunpack.c.h.s8.bf16 %v2860_v26 }
 0x4a3   :  { %3276 = vmatpush2.bf16.msra.mxu0 %v3116_v27 }
 0x4a4   :  { %3277 = vmatprep.subr.bf16.mxu0 %v3111_v39  ;;  %v3074_v39 = vunpack.c.l.s8.bf16 %v2858_v44 }
 0x4a5   :  { %3399 = vmatpush2.bf16.msra.mxu1 %v3118_v41  ;;  %v2975_v41 = vunpack.c.h.s8.bf16 %v2807_v16 }
 0x4a6   :  { %3400 = vmatprep.subr.bf16.mxu1 %v3113_v10  ;;  %v2806_v10 = vld [vmem:[#allocation2 + $0xe20] sm:$0xff] }
 0x4a7   :  { %3278 = vmatpush2.bf16.msra.mxu0 %v3110_v1  ;;  %v3076_v1 = vunpack.c.l.s8.bf16 %v2860_v26  ;;  %v2974_v53 = vunpack.c.h.s8.bf16 %v2806_v10  ;;  %v2797_v26 = vld [vmem:[#allocation2 + $0xdd8] sm:$0xff] }
 0x4a8   :  { %3279 = vmatprep.subr.bf16.mxu0 %v3105_v28  ;;  %v2808_v28 = vld [vmem:[#allocation2 + $0xe30] sm:$0xff] }
 0x4a9   :  { %3401 = vmatpush2.bf16.msra.mxu1 %v3112_v32  ;;  %v2969_v32 = vunpack.c.l.s8.bf16 %v2807_v16  ;;  %v2976_v52 = vunpack.c.h.s8.bf16 %v2808_v28 }
 0x4aa   :  { %3402 = vmatprep.subr.bf16.mxu1 %v3107_v2  ;;  %v2801_v2 = vld [vmem:[#allocation2 + $0xdf8] sm:$0xff] }
 0x4ab   :  { %3280 = vmatpush2.bf16.msra.mxu0 %v3104_v57  ;;  %v2963_v17 = vunpack.c.h.s8.bf16 %v2801_v2 }
 0x4ac   :  { %v8253_v19 = vpop.eup %8252  ;;  %3281 = vmatprep.subr.bf16.mxu0 %v3099_v60  ;;  %v2971_v60 = vunpack.c.l.s8.bf16 %v2809_v30  ;;  %v2796_v30 = vld [vmem:[#allocation2 + $0xdd0] sm:$0xff] }
 0x4ad   :  { %v2767_v56 = vmul.f32 %v8253_v19, %v8249_v8  ;;  %3403 = vmatpush2.bf16.msra.mxu1 %v3106_v12  ;;  %v2861_v8 = vld [vmem:[#allocation2 + $0xfd8] sm:$0xff]  ;;  %v2655_v12 = vrot.slane %v8703_v54, %v8520_v49 }
 0x4ae   :  { %v8255_v11 = vpop.eup %8254  ;;  %3404 = vmatprep.subr.bf16.mxu1 %v3101_v6  ;;  %v3083_v14 = vunpack.c.h.s8.bf16 %v2861_v8  ;;  %v3077_v27 = vunpack.c.l.s8.bf16 %v2861_v8  ;;  %v2968_v6 = vunpack.c.l.s8.bf16 %v2806_v10  ;;  %v2795_v8 = vld [vmem:[#allocation2 + $0xdc8] sm:$0xff] }
 0x4af   :  { %v2773_v22 = vsel %vm2743_vm0, %v8253_v19, %v2767_v56  ;;  %v2768_v33 = vmul.f32 %v8255_v11, %v8251_v40  ;;  %3282 = vmatpush2.bf16.msra.mxu0 %v3098_v62  ;;  %v3080_v40 = vunpack.c.h.s8.bf16 %v2858_v44  ;;  %v2803_v62 = vld [vmem:[#allocation2 + $0xe08] sm:$0xff]  ;;  %v2800_v56 = vld [vmem:[#allocation2 + $0xdf0] sm:$0xff] }
 0x4b0   :  { %2779 = vst [vmem:[%s9393_s4] sm:$0xff] %v2773_v22  ;;  %3283 = vmatprep.subr.bf16.mxu0 %v3093_v21 }
 0x4b1   :  { %v2774_v0 = vsel %vm2744_vm1, %v8255_v11, %v2768_v33  ;;  %3405 = vmatpush2.bf16.msra.mxu1 %v3100_v35  ;;  %v2659_v11 = vrot.slane %v8703_v54, %v8523_v51  ;;  %v2965_v33 = vunpack.c.h.s8.bf16 %v2803_v62 }
 0x4b2   :  { %2780 = vst [vmem:[%s9393_s4 + $0x8] sm:$0xff] %v2774_v0  ;;  %3406 = vmatprep.subr.bf16.mxu1 %v3095_v13  ;;  %v2970_v13 = vunpack.c.l.s8.bf16 %v2808_v28 }
 0x4b3   :  { %3284 = vmatpush2.bf16.msra.mxu0 %v3092_v63  ;;  %v2802_v63 = vld [vmem:[#allocation2 + $0xe00] sm:$0xff] }
 0x4b4   :  { %3285 = vmatprep.subr.bf16.mxu0 %v3087_v20 }
 0x4b5   :  { %3407 = vmatpush2.bf16.msra.mxu1 %v3094_v18  ;;  %v2957_v18 = vunpack.c.l.s8.bf16 %v2801_v2  ;;  %v2947_v2 = vunpack.c.l.s8.bf16 %v2797_v26 }
 0x4b6   :  { %3408 = vmatprep.subr.bf16.mxu1 %v3089_v58 }
 0x4b7   :  { %3286 = vmatpush2.bf16.msra.mxu0 %v3086_v5 }
 0x4b8   :  { %3287 = vmatprep.subr.bf16.mxu0 %v3081_v9  ;;  %v2964_v9 = vunpack.c.h.s8.bf16 %v2802_v63 }
 0x4b9   :  { %3409 = vmatpush2.bf16.msra.mxu1 %v3088_v25  ;;  %v2959_v25 = vunpack.c.l.s8.bf16 %v2803_v62  ;;  %v2790_v62 = vld [vmem:[#allocation2 + $0xda0] sm:$0xff] }
 0x4ba   :  { %3410 = vmatprep.subr.bf16.mxu1 %v3083_v14 }
 0x4bb   :  { %3288 = vmatpush2.bf16.msra.mxu0 %v3080_v40  ;;  %v2951_v40 = vunpack.c.h.s8.bf16 %v2795_v8 }
 0x4bc   :  { %3289 = vmatprep.subr.bf16.mxu0 %v3075_v15  ;;  %v2794_v15 = vld [vmem:[#allocation2 + $0xdc0] sm:$0xff] }
 0x4bd   :  { %3411 = vmatpush2.bf16.msra.mxu1 %v3082_v23 }
 0x4be   :  { %3412 = vmatprep.subr.bf16.mxu1 %v3077_v27  ;;  %v2958_v27 = vunpack.c.l.s8.bf16 %v2802_v63 }
 0x4bf   :  { %3290 = vmatpush2.bf16.msra.mxu0 %v3074_v39  ;;  %v2953_v39 = vunpack.c.h.s8.bf16 %v2797_v26 }
 0x4c0   :  { %3341 = vmatprep.subr.bf16.mxu0 %v2975_v41 }
 0x4c1   :  { %3413 = vmatpush2.bf16.msra.mxu1 %v3076_v1  ;;  %v2950_v1 = vunpack.c.h.s8.bf16 %v2794_v15 }
 0x4c2   :  { %v2470_v57 = vpop.f32.mrf.mxu0  ;;  %3292 = vmatmul.mubr.bf16.vlgmr.msra.gmra.mxu0 %v8449_v47  ;;  %3464 = vmatprep.subr.bf16.mxu1 %v2977_v50  ;;  %v2945_v50 = vunpack.c.l.s8.bf16 %v2795_v8 }
 0x4c3   :  { %v2471_v45 = vadd.f32 %v2470_v57, %v8697_v43  ;;  %3342 = vmatpush1.bf16.msra.mxu0 %v2974_v53  ;;  %3373 = vmatprep.mubr.bf16.mxu0 %v8435_v36  ;;  %v2789_v53 = vld [vmem:[#allocation2 + $0xd98] sm:$0xff]  ;;  %v2791_v57 = vld [vmem:[#allocation2 + $0xda8] sm:$0xff] }
 0x4c4   :  { %v2472_v19 = vpop.f32.mrf.mxu0  ;;  %v8748_v21 = vpop.f32.mrf.mxu1  ;;  %3343 = vmatprep.subr.bf16.mxu0 %v2969_v32  ;;  %3415 = vmatmul.mubr.bf16.vlgmr.msra.gmra.mxu1 %v8449_v47  ;;  %v2952_v32 = vunpack.c.h.s8.bf16 %v2796_v30 }
 0x4c5   :  { %v2512_v43 = vadd.f32 %v8719_v7, %v2471_v45  ;;  %v2473_v35 = vadd.f32 %v2472_v19, %v8701_v61  ;;  %3465 = vmatpush1.bf16.msra.mxu1 %v2976_v52  ;;  %3496 = vmatprep.mubr.bf16.mxu1 %v8435_v36  ;;  %v2698_v7 = vrot.slane %v8705_v3, %v8523_v51  ;;  %v2962_v61 = vunpack.c.h.s8.bf16 %v2800_v56  ;;  %v2788_v45 = vld [vmem:[#allocation2 + $0xd90] sm:$0xff] }
 0x4c6   :  { %v2474_v48 = vpop.f32.mrf.mxu0  ;;  %v8756_v22 = vpop.f32.mrf.mxu1  ;;  %3466 = vmatprep.subr.bf16.mxu1 %v2971_v60  ;;  %v2956_v3 = vunpack.c.l.s8.bf16 %v2800_v56  ;;  %v2944_v52 = vunpack.c.l.s8.bf16 %v2794_v15  ;;  %v2939_v60 = vunpack.c.h.s8.bf16 %v2789_v53  ;;  %v2933_v19 = vunpack.c.l.s8.bf16 %v2789_v53  ;;  %v2826_v15 = vld [vmem:[#allocation2 + $0xec0] sm:$0xff] }
 0x4c7   :  { %v2676_v20 = vmul.f32 %v2655_v12, %v2512_v43  ;;  %v2514_v0 = vadd.f32 %v8725_v42, %v2473_v35  ;;  %3344 = vmatpush1.bf16.msra.mxu0 %v2968_v6  ;;  %v2946_v12 = vunpack.c.l.s8.bf16 %v2796_v30  ;;  %v2941_v6 = vunpack.c.h.s8.bf16 %v2791_v57  ;;  %v2830_v48 = vld [vmem:[#allocation2 + $0xee0] sm:$0xff] }
 0x4c8   :  { %v2475_v4 = vpop.f32.mrf.mxu0  ;;  %v2597_v54 = vpop.f32.mrf.mxu1  ;;  %3345 = vmatprep.subr.bf16.mxu0 %v2963_v17  ;;  %v2831_v17 = vld [vmem:[#allocation2 + $0xee8] sm:$0xff]  ;;  %v2940_v56 = vunpack.c.h.s8.bf16 %v2790_v62  ;;  %v2935_v43 = vunpack.c.l.s8.bf16 %v2791_v57  ;;  %v2932_v35 = vunpack.c.l.s8.bf16 %v2788_v45 }
 0x4c9   :  { %v8761_v58 = vadd.f32 %v2694_v59, %v2676_v20  ;;  %v2677_v5 = vmul.f32 %v2659_v11, %v2514_v0  ;;  %3467 = vmatpush1.bf16.msra.mxu1 %v2970_v13  ;;  %v2938_v59 = vunpack.c.h.s8.bf16 %v2788_v45  ;;  %v2833_v11 = vld [vmem:[#allocation2 + $0xef8] sm:$0xff]  ;;  %v3023_v13 = vunpack.c.h.s8.bf16 %v2831_v17  ;;  %v2832_v0 = vld [vmem:[#allocation2 + $0xef0] sm:$0xff] }
 0x4ca   :  { %v2598_v44 = vpop.f32.mrf.mxu1  ;;  %3468 = vmatprep.subr.bf16.mxu1 %v2965_v33  ;;  %v2934_v33 = vunpack.c.l.s8.bf16 %v2790_v62  ;;  %v3025_v20 = vunpack.c.h.s8.bf16 %v2833_v11  ;;  %v3017_v54 = vunpack.c.l.s8.bf16 %v2831_v17  ;;  %v3024_v8 = vunpack.c.h.s8.bf16 %v2832_v0  ;;  %v2813_v62 = vld [vmem:[#allocation2 + $0xe58] sm:$0xff] }
 0x4cb   :  { %v2721_v42 = vand.u32 2147483647, %v8761_v58  ;;  %v8764_v14 = vadd.f32 %v2698_v7, %v2677_v5  ;;  %3346 = vmatpush1.bf16.msra.mxu0 %v2962_v61  ;;  %v3022_v61 = vunpack.c.h.s8.bf16 %v2830_v48  ;;  %v2825_v5 = vld [vmem:[#allocation2 + $0xeb8] sm:$0xff]  ;;  %v3016_v44 = vunpack.c.l.s8.bf16 %v2830_v48  ;;  %v2814_v48 = vld [vmem:[#allocation2 + $0xe60] sm:$0xff] }
 0x4cc   :  { %3347 = vmatprep.subr.bf16.mxu0 %v2957_v18  ;;  %v3018_v26 = vunpack.c.l.s8.bf16 %v2832_v0  ;;  %vm2745_vm2 = vcmp.ge.f32.partialorder %v8761_v58, 0.0  ;;  %v2987_v58 = vunpack.c.h.s8.bf16 %v2813_v62 }
 0x4cd   :  { %v2727_v16 = vsub.f32 0.0, %v2721_v42  ;;  %v2722_v23 = vand.u32 2147483647, %v8764_v14  ;;  %3469 = vmatpush1.bf16.msra.mxu1 %v2964_v9  ;;  %v3019_v9 = vunpack.c.l.s8.bf16 %v2833_v11  ;;  %v3011_v42 = vunpack.c.h.s8.bf16 %v2825_v5 }
 0x4ce   :  { %3470 = vmatprep.subr.bf16.mxu1 %v2959_v25  ;;  %v2827_v25 = vld [vmem:[#allocation2 + $0xec8] sm:$0xff]  ;;  %vm2746_vm3 = vcmp.ge.f32.partialorder %v8764_v14, 0.0 }
 0x4cf   :  { %v2735_v41 = vmul.f32 1.442695, %v2727_v16  ;;  %v2728_v10 = vsub.f32 0.0, %v2722_v23  ;;  %3348 = vmatpush1.bf16.msra.mxu0 %v2956_v3  ;;  %v2824_v3 = vld [vmem:[#allocation2 + $0xeb0] sm:$0xff]  ;;  %v3005_v23 = vunpack.c.l.s8.bf16 %v2825_v5  ;;  %v3007_v30 = vunpack.c.l.s8.bf16 %v2827_v25 }
 0x4d0   :  { %3349 = vmatprep.subr.bf16.mxu0 %v2951_v40  ;;  %v3013_v40 = vunpack.c.h.s8.bf16 %v2827_v25  ;;  %v3010_v16 = vunpack.c.h.s8.bf16 %v2824_v3  ;;  %v2897_v25 = vld [vmem:[#allocation2 + $0x10f8] sm:$0xff] }
 0x4d1   :  { %8256 = vpow2.f32 %v2735_v41  ;;  %v2737_v28 = vmul.f32 1.442695, %v2728_v10  ;;  %3471 = vmatpush1.bf16.msra.mxu1 %v2958_v27  ;;  %v2819_v27 = vld [vmem:[#allocation2 + $0xe88] sm:$0xff]  ;;  %v3004_v41 = vunpack.c.l.s8.bf16 %v2824_v3  ;;  %v2821_v10 = vld [vmem:[#allocation2 + $0xe98] sm:$0xff] }
 0x4d2   :  { %3472 = vmatprep.subr.bf16.mxu1 %v2953_v39  ;;  %v3012_v39 = vunpack.c.h.s8.bf16 %v2826_v15  ;;  %v2993_v45 = vunpack.c.l.s8.bf16 %v2819_v27 }
 0x4d3   :  { %8258 = vpow2.f32 %v2737_v28  ;;  %3350 = vmatpush1.bf16.msra.mxu0 %v2950_v1  ;;  %v2999_v1 = vunpack.c.h.s8.bf16 %v2819_v27  ;;  %v3006_v28 = vunpack.c.l.s8.bf16 %v2826_v15  ;;  %v2899_v15 = vld [vmem:[#allocation2 + $0x1108] sm:$0xff]  ;;  %v2896_v27 = vld [vmem:[#allocation2 + $0x10f0] sm:$0xff] }
 0x4d4   :  { %3351 = vmatprep.subr.bf16.mxu0 %v2945_v50  ;;  %v2818_v50 = vld [vmem:[#allocation2 + $0xe80] sm:$0xff] }
 0x4d5   :  { %3473 = vmatpush1.bf16.msra.mxu1 %v2952_v32  ;;  %v3001_v32 = vunpack.c.h.s8.bf16 %v2821_v10  ;;  %v2998_v57 = vunpack.c.h.s8.bf16 %v2818_v50 }
 0x4d6   :  { %3474 = vmatprep.subr.bf16.mxu1 %v2947_v2  ;;  %v2820_v2 = vld [vmem:[#allocation2 + $0xe90] sm:$0xff] }
 0x4d7   :  { %3352 = vmatpush1.bf16.msra.mxu0 %v2944_v52  ;;  %v2994_v11 = vunpack.c.l.s8.bf16 %v2820_v2 }
 0x4d8   :  { %3353 = vmatprep.subr.bf16.mxu0 %v2939_v60 }
 0x4d9   :  { %3475 = vmatpush1.bf16.msra.mxu1 %v2946_v12 }
 0x4da   :  { %3476 = vmatprep.subr.bf16.mxu1 %v2941_v6 }
 0x4db   :  { %3354 = vmatpush1.bf16.msra.mxu0 %v2938_v59  ;;  %v3000_v59 = vunpack.c.h.s8.bf16 %v2820_v2 }
 0x4dc   :  { %3355 = vmatprep.subr.bf16.mxu0 %v2933_v19  ;;  %v2995_v19 = vunpack.c.l.s8.bf16 %v2821_v10 }
 0x4dd   :  { %3477 = vmatpush1.bf16.msra.mxu1 %v2940_v56  ;;  %v2992_v56 = vunpack.c.l.s8.bf16 %v2818_v50  ;;  %v2898_v50 = vld [vmem:[#allocation2 + $0x1100] sm:$0xff] }
 0x4de   :  { %v8257_v63 = vpop.eup %8256  ;;  %3478 = vmatprep.subr.bf16.mxu1 %v2935_v43  ;;  %v2815_v43 = vld [vmem:[#allocation2 + $0xe68] sm:$0xff] }
 0x4df   :  { %v2751_v7 = vadd.f32 1.0, %v8257_v63  ;;  %3356 = vmatpush1.bf16.msra.mxu0 %v2932_v35  ;;  %v2812_v35 = vld [vmem:[#allocation2 + $0xe50] sm:$0xff]  ;;  %v2983_v0 = vunpack.c.l.s8.bf16 %v2815_v43 }
 0x4e0   :  { %v8259_v4 = vpop.eup %8258  ;;  %3357 = vmatprep.subr.bf16.mxu0 %v3023_v13  ;;  %v2989_v13 = vunpack.c.h.s8.bf16 %v2815_v43  ;;  %v2986_v14 = vunpack.c.h.s8.bf16 %v2812_v35 }
 0x4e1   :  { %8260 = vrcp.f32 %v2751_v7  ;;  %v2752_v18 = vadd.f32 1.0, %v8259_v4  ;;  %3479 = vmatpush1.bf16.msra.mxu1 %v2934_v33  ;;  %v2981_v33 = vunpack.c.l.s8.bf16 %v2813_v62  ;;  %v2980_v7 = vunpack.c.l.s8.bf16 %v2812_v35  ;;  %v2885_v35 = vld [vmem:[#allocation2 + $0x1098] sm:$0xff] }
 0x4e2   :  { %3480 = vmatprep.subr.bf16.mxu1 %v3025_v20  ;;  %v2988_v20 = vunpack.c.h.s8.bf16 %v2814_v48 }
 0x4e3   :  { %8262 = vrcp.f32 %v2752_v18  ;;  %3358 = vmatpush2.bf16.msra.mxu0 %v3022_v61  ;;  %v2905_v61 = vld [vmem:[#allocation2 + $0x1138] sm:$0xff]  ;;  %v2982_v18 = vunpack.c.l.s8.bf16 %v2814_v48 }
 0x4e4   :  { %3359 = vmatprep.subr.bf16.mxu0 %v3017_v54  ;;  %v2902_v54 = vld [vmem:[#allocation2 + $0x1120] sm:$0xff]  ;;  %v3169_v5 = vunpack.c.h.s8.bf16 %v2905_v61 }
 0x4e5   :  { %3481 = vmatpush2.bf16.msra.mxu1 %v3024_v8  ;;  %v2904_v8 = vld [vmem:[#allocation2 + $0x1130] sm:$0xff] }
 0x4e6   :  { %3482 = vmatprep.subr.bf16.mxu1 %v3019_v9  ;;  %v3166_v9 = vunpack.c.h.s8.bf16 %v2902_v54 }
 0x4e7   :  { %3360 = vmatpush2.bf16.msra.mxu0 %v3016_v44 }
 0x4e8   :  { %3361 = vmatprep.subr.bf16.mxu0 %v3011_v42  ;;  %v3168_v42 = vunpack.c.h.s8.bf16 %v2904_v8 }
 0x4e9   :  { %3483 = vmatpush2.bf16.msra.mxu1 %v3018_v26  ;;  %v3163_v26 = vunpack.c.l.s8.bf16 %v2905_v61 }
 0x4ea   :  { %3484 = vmatprep.subr.bf16.mxu1 %v3013_v40  ;;  %v3160_v40 = vunpack.c.l.s8.bf16 %v2902_v54  ;;  %v2927_v54 = vld [vmem:[#allocation2 + $0x11e8] sm:$0xff] }
 0x4eb   :  { %3362 = vmatpush2.bf16.msra.mxu0 %v3010_v16 }
 0x4ec   :  { %3363 = vmatprep.subr.bf16.mxu0 %v3005_v23  ;;  %v3155_v23 = vunpack.c.h.s8.bf16 %v2897_v25 }
 0x4ed   :  { %3485 = vmatpush2.bf16.msra.mxu1 %v3012_v39 }
 0x4ee   :  { %v8261_v53 = vpop.eup %8260  ;;  %3486 = vmatprep.subr.bf16.mxu1 %v3007_v30  ;;  %v3162_v30 = vunpack.c.l.s8.bf16 %v2904_v8 }
 0x4ef   :  { %v2769_v52 = vmul.f32 %v8261_v53, %v8257_v63  ;;  %3364 = vmatpush2.bf16.msra.mxu0 %v3004_v41  ;;  %v2903_v63 = vld [vmem:[#allocation2 + $0x1128] sm:$0xff] }
 0x4f0   :  { %v8263_v60 = vpop.eup %8262  ;;  %3365 = vmatprep.subr.bf16.mxu0 %v2999_v1  ;;  %v3161_v44 = vunpack.c.l.s8.bf16 %v2903_v63  ;;  %v3157_v1 = vunpack.c.h.s8.bf16 %v2899_v15 }
 0x4f1   :  { %v2775_v12 = vsel %vm2745_vm2, %v8261_v53, %v2769_v52  ;;  %v2770_v6 = vmul.f32 %v8263_v60, %v8259_v4  ;;  %3487 = vmatpush2.bf16.msra.mxu1 %v3006_v28  ;;  %v3167_v4 = vunpack.c.h.s8.bf16 %v2903_v63  ;;  %v3154_v28 = vunpack.c.h.s8.bf16 %v2896_v27  ;;  %v2891_v52 = vld [vmem:[#allocation2 + $0x10c8] sm:$0xff]  ;;  %v2884_v63 = vld [vmem:[#allocation2 + $0x1090] sm:$0xff] }
 0x4f2   :  { %2781 = vst [vmem:[%s9393_s4 + $0x10] sm:$0xff] %v2775_v12  ;;  %3488 = vmatprep.subr.bf16.mxu1 %v3001_v32  ;;  %v3149_v32 = vunpack.c.l.s8.bf16 %v2897_v25  ;;  %v3148_v12 = vunpack.c.l.s8.bf16 %v2896_v27  ;;  %v3143_v62 = vunpack.c.h.s8.bf16 %v2891_v52  ;;  %v3130_v61 = vunpack.c.h.s8.bf16 %v2884_v63  ;;  %v2926_v25 = vld [vmem:[#allocation2 + $0x11e0] sm:$0xff]  ;;  %v2921_v27 = vld [vmem:[#allocation2 + $0x11b8] sm:$0xff] }
 0x4f3   :  { %v2776_v17 = vsel %vm2746_vm3, %v8263_v60, %v2770_v6  ;;  %3366 = vmatpush2.bf16.msra.mxu0 %v2998_v57  ;;  %v3156_v57 = vunpack.c.h.s8.bf16 %v2898_v50  ;;  %v2893_v6 = vld [vmem:[#allocation2 + $0x10d8] sm:$0xff]  ;;  %v3124_v8 = vunpack.c.l.s8.bf16 %v2884_v63  ;;  %v2911_v63 = vld [vmem:[#allocation2 + $0x1168] sm:$0xff] }
 0x4f4   :  { %2782 = vst [vmem:[%s9393_s4 + $0x18] sm:$0xff] %v2776_v17  ;;  %3367 = vmatprep.subr.bf16.mxu0 %v2993_v45  ;;  %v3151_v45 = vunpack.c.l.s8.bf16 %v2899_v15  ;;  %v3145_v17 = vunpack.c.h.s8.bf16 %v2893_v6  ;;  %v3214_v15 = vunpack.c.h.s8.bf16 %v2926_v25 }
 0x4f5   :  { %3489 = vmatpush2.bf16.msra.mxu1 %v3000_v59  ;;  %v2890_v59 = vld [vmem:[#allocation2 + $0x10c0] sm:$0xff] }
 0x4f6   :  { %3490 = vmatprep.subr.bf16.mxu1 %v2995_v19  ;;  %v3150_v19 = vunpack.c.l.s8.bf16 %v2898_v50  ;;  %v3142_v43 = vunpack.c.h.s8.bf16 %v2890_v59  ;;  %v3136_v48 = vunpack.c.l.s8.bf16 %v2890_v59  ;;  %v2923_v50 = vld [vmem:[#allocation2 + $0x11c8] sm:$0xff]  ;;  %v2917_v59 = vld [vmem:[#allocation2 + $0x1198] sm:$0xff] }
 0x4f7   :  { %3368 = vmatpush2.bf16.msra.mxu0 %v2992_v56  ;;  %v2892_v56 = vld [vmem:[#allocation2 + $0x10d0] sm:$0xff] }
 0x4f8   :  { %3369 = vmatprep.subr.bf16.mxu0 %v2987_v58  ;;  %v3137_v58 = vunpack.c.l.s8.bf16 %v2891_v52  ;;  %v2922_v52 = vld [vmem:[#allocation2 + $0x11c0] sm:$0xff] }
 0x4f9   :  { %3491 = vmatpush2.bf16.msra.mxu1 %v2994_v11  ;;  %v3144_v11 = vunpack.c.h.s8.bf16 %v2892_v56 }
 0x4fa   :  { %3492 = vmatprep.subr.bf16.mxu1 %v2989_v13  ;;  %v3139_v13 = vunpack.c.l.s8.bf16 %v2893_v6  ;;  %v3199_v6 = vunpack.c.l.s8.bf16 %v2923_v50 }
 0x4fb   :  { %3370 = vmatpush2.bf16.msra.mxu0 %v2986_v14  ;;  %v2887_v14 = vld [vmem:[#allocation2 + $0x10a8] sm:$0xff] }
 0x4fc   :  { %3371 = vmatprep.subr.bf16.mxu0 %v2981_v33  ;;  %v3131_v33 = vunpack.c.h.s8.bf16 %v2885_v35 }
 0x4fd   :  { %3493 = vmatpush2.bf16.msra.mxu1 %v2988_v20  ;;  %v3138_v20 = vunpack.c.l.s8.bf16 %v2892_v56  ;;  %v3198_v56 = vunpack.c.l.s8.bf16 %v2922_v52 }
 0x4fe   :  { %3494 = vmatprep.subr.bf16.mxu1 %v2983_v0  ;;  %v3133_v0 = vunpack.c.h.s8.bf16 %v2887_v14 }
 0x4ff   :  { %3372 = vmatpush2.bf16.msra.mxu0 %v2980_v7  ;;  %v2886_v7 = vld [vmem:[#allocation2 + $0x10a0] sm:$0xff] }
 0x500   :  { %3423 = vmatprep.subr.bf16.mxu0 %v3167_v4  ;;  %v3125_v4 = vunpack.c.l.s8.bf16 %v2885_v35 }
 0x501   :  { %3495 = vmatpush2.bf16.msra.mxu1 %v2982_v18  ;;  %v3132_v18 = vunpack.c.h.s8.bf16 %v2886_v7 }
 0x502   :  { %v8775_v3 = vpop.f32.mrf.mxu0  ;;  %3374 = vmatmul.mubr.bf16.vlgmr.msra.gmra.mxu0 %v8447_v46  ;;  %3546 = vmatprep.subr.bf16.mxu1 %v3169_v5  ;;  %v3127_v5 = vunpack.c.l.s8.bf16 %v2887_v14  ;;  %v3187_v14 = vunpack.c.l.s8.bf16 %v2917_v59 }
 0x503   :  { %3424 = vmatpush1.bf16.msra.mxu0 %v3166_v9  ;;  %3455 = vmatprep.mubr.bf16.mxu0 %v8454_v55  ;;  %v2929_v9 = vld [vmem:[#allocation2 + $0x11f8] sm:$0xff] }
 0x504   :  { %v8779_v16 = vpop.f32.mrf.mxu0  ;;  %3425 = vmatprep.subr.bf16.mxu0 %v3161_v44  ;;  %v8781_v39 = vpop.f32.mrf.mxu1  ;;  %3497 = vmatmul.mubr.bf16.vlgmr.msra.gmra.mxu1 %v8447_v46  ;;  %v3215_v44 = vunpack.c.h.s8.bf16 %v2927_v54 }
 0x505   :  { %3547 = vmatpush1.bf16.msra.mxu1 %v3168_v42  ;;  %3578 = vmatprep.mubr.bf16.mxu1 %v8454_v55  ;;  %v3126_v42 = vunpack.c.l.s8.bf16 %v2886_v7 }
 0x506   :  { %v2556_v41 = vpop.f32.mrf.mxu0  ;;  %v8785_v10 = vpop.f32.mrf.mxu1  ;;  %3548 = vmatprep.subr.bf16.mxu1 %v3163_v26  ;;  %v3217_v26 = vunpack.c.h.s8.bf16 %v2929_v9 }
 0x507   :  { %3426 = vmatpush1.bf16.msra.mxu0 %v3160_v40  ;;  %v2928_v40 = vld [vmem:[#allocation2 + $0x11f0] sm:$0xff]  ;;  %v3211_v41 = vunpack.c.l.s8.bf16 %v2929_v9  ;;  %v3175_v9 = vunpack.c.l.s8.bf16 %v2911_v63 }
 0x508   :  { %v2557_v53 = vpop.f32.mrf.mxu0  ;;  %3427 = vmatprep.subr.bf16.mxu0 %v3155_v23  ;;  %v3256_v2 = vpop.f32.mrf.mxu1  ;;  %v3209_v23 = vunpack.c.l.s8.bf16 %v2927_v54 }
 0x509   :  { %3549 = vmatpush1.bf16.msra.mxu1 %v3162_v30  ;;  %v3216_v30 = vunpack.c.h.s8.bf16 %v2928_v40  ;;  %v2920_v53 = vld [vmem:[#allocation2 + $0x11b0] sm:$0xff]  ;;  %v3205_v2 = vunpack.c.h.s8.bf16 %v2923_v50  ;;  %v8321_v50 = vld [vmem:[#allocation6 + $0xc] sm:$0x3f] }
 0x50a   :  { %v3257_v60 = vpop.f32.mrf.mxu1  ;;  %3550 = vmatprep.subr.bf16.mxu1 %v3157_v1  ;;  %v3208_v1 = vunpack.c.l.s8.bf16 %v2926_v25 }
 0x50b   :  { %3428 = vmatpush1.bf16.msra.mxu0 %v3154_v28  ;;  %v3203_v28 = vunpack.c.h.s8.bf16 %v2921_v27  ;;  %v3197_v60 = vunpack.c.l.s8.bf16 %v2921_v27  ;;  %v8320_v27 = vld [vmem:[#allocation4 + $0xc] sm:$0x3f] }
 0x50c   :  { %3429 = vmatprep.subr.bf16.mxu0 %v3149_v32  ;;  %v3210_v32 = vunpack.c.l.s8.bf16 %v2928_v40 }
 0x50d   :  { %3551 = vmatpush1.bf16.msra.mxu1 %v3156_v57  ;;  %v3202_v57 = vunpack.c.h.s8.bf16 %v2920_v53 }
 0x50e   :  { %3552 = vmatprep.subr.bf16.mxu1 %v3151_v45  ;;  %v2915_v45 = vld [vmem:[#allocation2 + $0x1188] sm:$0xff] }
 0x50f   :  { %3430 = vmatpush1.bf16.msra.mxu0 %v3148_v12  ;;  %v3204_v12 = vunpack.c.h.s8.bf16 %v2922_v52 }
 0x510   :  { %3431 = vmatprep.subr.bf16.mxu0 %v3143_v62  ;;  %v3196_v62 = vunpack.c.l.s8.bf16 %v2920_v53  ;;  %v2596_v53 = vadd.f32 %v8756_v22, %v8779_v16 }
 0x511   :  { %3553 = vmatpush1.bf16.msra.mxu1 %v3150_v19  ;;  %v3191_v19 = vunpack.c.h.s8.bf16 %v2915_v45 }
 0x512   :  { %3554 = vmatprep.subr.bf16.mxu1 %v3145_v17  ;;  %v2914_v17 = vld [vmem:[#allocation2 + $0x1180] sm:$0xff] }
 0x513   :  { %3432 = vmatpush1.bf16.msra.mxu0 %v3142_v43  ;;  %v3193_v43 = vunpack.c.h.s8.bf16 %v2917_v59  ;;  %v3190_v35 = vunpack.c.h.s8.bf16 %v2914_v17 }
 0x514   :  { %3433 = vmatprep.subr.bf16.mxu0 %v3137_v58  ;;  %v2916_v58 = vld [vmem:[#allocation2 + $0x1190] sm:$0xff] }
 0x515   :  { %3555 = vmatpush1.bf16.msra.mxu1 %v3144_v11  ;;  %v3185_v11 = vunpack.c.l.s8.bf16 %v2915_v45  ;;  %v3186_v7 = vunpack.c.l.s8.bf16 %v2916_v58 }
 0x516   :  { %3556 = vmatprep.subr.bf16.mxu1 %v3139_v13  ;;  %v2909_v13 = vld [vmem:[#allocation2 + $0x1158] sm:$0xff] }
 0x517   :  { %3434 = vmatpush1.bf16.msra.mxu0 %v3136_v48  ;;  %v3192_v48 = vunpack.c.h.s8.bf16 %v2916_v58  ;;  %v3733_v58 = vld [vmem:[#allocation2 + $0x1418] sm:$0xff] }
 0x518   :  { %3435 = vmatprep.subr.bf16.mxu0 %v3131_v33  ;;  %v3184_v33 = vunpack.c.l.s8.bf16 %v2914_v17 }
 0x519   :  { %3557 = vmatpush1.bf16.msra.mxu1 %v3138_v20  ;;  %v3179_v20 = vunpack.c.h.s8.bf16 %v2909_v13 }
 0x51a   :  { %3558 = vmatprep.subr.bf16.mxu1 %v3133_v0  ;;  %v2908_v0 = vld [vmem:[#allocation2 + $0x1150] sm:$0xff] }
 0x51b   :  { %3436 = vmatpush1.bf16.msra.mxu0 %v3130_v61  ;;  %v3181_v61 = vunpack.c.h.s8.bf16 %v2911_v63  ;;  %v3178_v54 = vunpack.c.h.s8.bf16 %v2908_v0 }
 0x51c   :  { %3437 = vmatprep.subr.bf16.mxu0 %v3125_v4  ;;  %v2910_v4 = vld [vmem:[#allocation2 + $0x1160] sm:$0xff] }
 0x51d   :  { %3559 = vmatpush1.bf16.msra.mxu1 %v3132_v18  ;;  %v3173_v18 = vunpack.c.l.s8.bf16 %v2909_v13 }
 0x51e   :  { %3560 = vmatprep.subr.bf16.mxu1 %v3127_v5  ;;  %v2857_v5 = vld [vmem:[#allocation2 + $0xfb8] sm:$0xff] }
 0x51f   :  { %3438 = vmatpush1.bf16.msra.mxu0 %v3124_v8  ;;  %v3180_v8 = vunpack.c.h.s8.bf16 %v2910_v4  ;;  %v3073_v25 = vunpack.c.h.s8.bf16 %v2857_v5 }
 0x520   :  { %3439 = vmatprep.subr.bf16.mxu0 %v3215_v44  ;;  %v3172_v44 = vunpack.c.l.s8.bf16 %v2908_v0  ;;  %v3727_v0 = vld [vmem:[#allocation2 + $0x13e8] sm:$0xff] }
 0x521   :  { %3561 = vmatpush1.bf16.msra.mxu1 %v3126_v42  ;;  %v2856_v42 = vld [vmem:[#allocation2 + $0xfb0] sm:$0xff] }
 0x522   :  { %3562 = vmatprep.subr.bf16.mxu1 %v3217_v26  ;;  %v3174_v26 = vunpack.c.l.s8.bf16 %v2910_v4  ;;  %v3072_v40 = vunpack.c.h.s8.bf16 %v2856_v42  ;;  %v3066_v52 = vunpack.c.l.s8.bf16 %v2856_v42 }
 0x523   :  { %3440 = vmatpush2.bf16.msra.mxu0 %v3214_v15  ;;  %v3067_v15 = vunpack.c.l.s8.bf16 %v2857_v5 }
 0x524   :  { %3441 = vmatprep.subr.bf16.mxu0 %v3209_v23  ;;  %v2594_v23 = vadd.f32 %v8748_v21, %v8775_v3 }
 0x525   :  { %3563 = vmatpush2.bf16.msra.mxu1 %v3216_v30  ;;  %v2663_v30 = vrot.slane %v8320_v27, %v8554_v29 }
 0x526   :  { %3564 = vmatprep.subr.bf16.mxu1 %v3211_v41  ;;  %v2851_v41 = vld [vmem:[#allocation2 + $0xf88] sm:$0xff] }
 0x527   :  { %3442 = vmatpush2.bf16.msra.mxu0 %v3208_v1  ;;  %v3061_v3 = vunpack.c.h.s8.bf16 %v2851_v41 }
 0x528   :  { %3443 = vmatprep.subr.bf16.mxu0 %v3203_v28  ;;  %v2702_v28 = vrot.slane %v8321_v50, %v8554_v29 }
 0x529   :  { %3565 = vmatpush2.bf16.msra.mxu1 %v3210_v32 }
 0x52a   :  { %3566 = vmatprep.subr.bf16.mxu1 %v3205_v2  ;;  %v2667_v2 = vrot.slane %v8320_v27, %v8557_v31  ;;  %v3931_v27 = vunpack.c.l.s8.bf16 %v3727_v0 }
 0x52b   :  { %3444 = vmatpush2.bf16.msra.mxu0 %v3202_v57  ;;  %v2850_v57 = vld [vmem:[#allocation2 + $0xf80] sm:$0xff] }
 0x52c   :  { %3445 = vmatprep.subr.bf16.mxu0 %v3197_v60  ;;  %v3054_v4 = vunpack.c.l.s8.bf16 %v2850_v57 }
 0x52d   :  { %3567 = vmatpush2.bf16.msra.mxu1 %v3204_v12 }
 0x52e   :  { %3568 = vmatprep.subr.bf16.mxu1 %v3199_v6  ;;  %v2706_v6 = vrot.slane %v8321_v50, %v8557_v31  ;;  %v2838_v50 = vld [vmem:[#allocation2 + $0xf20] sm:$0xff] }
 0x52f   :  { %3446 = vmatpush2.bf16.msra.mxu0 %v3196_v62 }
 0x530   :  { %3447 = vmatprep.subr.bf16.mxu0 %v3191_v19  ;;  %v3060_v19 = vunpack.c.h.s8.bf16 %v2850_v57 }
 0x531   :  { %3569 = vmatpush2.bf16.msra.mxu1 %v3198_v56  ;;  %v3055_v56 = vunpack.c.l.s8.bf16 %v2851_v41 }
 0x532   :  { %3570 = vmatprep.subr.bf16.mxu1 %v3193_v43 }
 0x533   :  { %3448 = vmatpush2.bf16.msra.mxu0 %v3190_v35  ;;  %v3732_v35 = vld [vmem:[#allocation2 + $0x1410] sm:$0xff] }
 0x534   :  { %3449 = vmatprep.subr.bf16.mxu0 %v3185_v11  ;;  %v3948_v63 = vunpack.c.h.s8.bf16 %v3732_v35  ;;  %v3942_v5 = vunpack.c.l.s8.bf16 %v3732_v35 }
 0x535   :  { %3571 = vmatpush2.bf16.msra.mxu1 %v3192_v48  ;;  %v2845_v48 = vld [vmem:[#allocation2 + $0xf58] sm:$0xff] }
 0x536   :  { %3572 = vmatprep.subr.bf16.mxu1 %v3187_v14  ;;  %v3949_v14 = vunpack.c.h.s8.bf16 %v3733_v58 }
 0x537   :  { %3450 = vmatpush2.bf16.msra.mxu0 %v3184_v33 }
 0x538   :  { %3451 = vmatprep.subr.bf16.mxu0 %v3179_v20  ;;  %v3943_v20 = vunpack.c.l.s8.bf16 %v3733_v58 }
 0x539   :  { %3573 = vmatpush2.bf16.msra.mxu1 %v3186_v7 }
 0x53a   :  { %3574 = vmatprep.subr.bf16.mxu1 %v3181_v61 }
 0x53b   :  { %3452 = vmatpush2.bf16.msra.mxu0 %v3178_v54  ;;  %v3049_v54 = vunpack.c.h.s8.bf16 %v2845_v48 }
 0x53c   :  { %3453 = vmatprep.subr.bf16.mxu0 %v3173_v18  ;;  %v2844_v18 = vld [vmem:[#allocation2 + $0xf50] sm:$0xff] }
 0x53d   :  { %3575 = vmatpush2.bf16.msra.mxu1 %v3180_v8  ;;  %v3042_v41 = vunpack.c.l.s8.bf16 %v2844_v18 }
 0x53e   :  { %3576 = vmatprep.subr.bf16.mxu1 %v3175_v9 }
 0x53f   :  { %3454 = vmatpush2.bf16.msra.mxu0 %v3172_v44  ;;  %v3937_v44 = vunpack.c.h.s8.bf16 %v3727_v0 }
 0x540   :  { %3505 = vmatprep.subr.bf16.mxu0 %v3073_v25  ;;  %v3726_v25 = vld [vmem:[#allocation2 + $0x13e0] sm:$0xff] }
 0x541   :  { %3577 = vmatpush2.bf16.msra.mxu1 %v3174_v26  ;;  %v3048_v26 = vunpack.c.h.s8.bf16 %v2844_v18  ;;  %v3756_v18 = vld [vmem:[#allocation2 + $0x14d0] sm:$0xff] }
 0x542   :  { %v2634_v1 = vpop.f32.mrf.mxu0  ;;  %3456 = vmatmul.mubr.bf16.vlgmr.msra.gmra.mxu0 %v8463_v24  ;;  %4145 = vmatprep.subr.bf16.mxu1 %v3949_v14 }
 0x543   :  { %v2635_v32 = vadd.f32 %v2634_v1, %v2594_v23  ;;  %3506 = vmatpush1.bf16.msra.mxu0 %v3072_v40  ;;  %3537 = vmatprep.mubr.bf16.mxu0 %v8437_v37  ;;  %v3043_v40 = vunpack.c.l.s8.bf16 %v2845_v48  ;;  %v2839_v23 = vld [vmem:[#allocation2 + $0xf28] sm:$0xff] }
 0x544   :  { %v2636_v21 = vpop.f32.mrf.mxu0  ;;  %3507 = vmatprep.subr.bf16.mxu0 %v3067_v15  ;;  %3579 = vmatmul.mubr.bf16.vlgmr.msra.gmra.mxu1 %v8463_v24  ;;  %v8797_v60 = vpop.f32.mrf.mxu1  ;;  %v3936_v15 = vunpack.c.h.s8.bf16 %v3726_v25  ;;  %v3037_v1 = vunpack.c.h.s8.bf16 %v2839_v23 }
 0x545   :  { %v2678_v45 = vmul.f32 %v2663_v30, %v2635_v32  ;;  %v2637_v12 = vadd.f32 %v2636_v21, %v2596_v53  ;;  %4146 = vmatpush1.bf16.msra.mxu1 %v3948_v63  ;;  %v3721_v30 = vld [vmem:[#allocation2 + $0x13b8] sm:$0xff]  ;;  %v3720_v32 = vld [vmem:[#allocation2 + $0x13b0] sm:$0xff] }
 0x546   :  { %v2638_v22 = vpop.f32.mrf.mxu0  ;;  %v8800_v16 = vpop.f32.mrf.mxu1  ;;  %4147 = vmatprep.subr.bf16.mxu1 %v3943_v20  ;;  %v3925_v53 = vunpack.c.h.s8.bf16 %v3721_v30  ;;  %v3924_v21 = vunpack.c.h.s8.bf16 %v3720_v32  ;;  %v3919_v57 = vunpack.c.l.s8.bf16 %v3721_v30  ;;  %v3757_v20 = vld [vmem:[#allocation2 + $0x14d8] sm:$0xff] }
 0x547   :  { %v8802_v62 = vadd.f32 %v2702_v28, %v2678_v45  ;;  %v2679_v59 = vmul.f32 %v2667_v2, %v2637_v12  ;;  %3508 = vmatpush1.bf16.msra.mxu0 %v3066_v52  ;;  %v3930_v28 = vunpack.c.l.s8.bf16 %v3726_v25  ;;  %v3036_v2 = vunpack.c.h.s8.bf16 %v2838_v50  ;;  %v3715_v45 = vld [vmem:[#allocation2 + $0x1388] sm:$0xff] }
 0x548   :  { %v2639_v17 = vpop.f32.mrf.mxu0  ;;  %3509 = vmatprep.subr.bf16.mxu0 %v3061_v3  ;;  %v3338_v43 = vpop.f32.mrf.mxu1  ;;  %v3031_v52 = vunpack.c.l.s8.bf16 %v2839_v23  ;;  %v2881_v3 = vld [vmem:[#allocation2 + $0x1078] sm:$0xff]  ;;  %v3030_v12 = vunpack.c.l.s8.bf16 %v2838_v50  ;;  %v3907_v63 = vunpack.c.l.s8.bf16 %v3715_v45  ;;  %v3991_v25 = vunpack.c.l.s8.bf16 %v3757_v20  ;;  %v2868_v23 = vld [vmem:[#allocation2 + $0x1010] sm:$0xff] }
 0x549   :  { %v2723_v11 = vand.u32 2147483647, %v8802_v62  ;;  %v8805_v13 = vadd.f32 %v2706_v6, %v2679_v59  ;;  %4148 = vmatpush1.bf16.msra.mxu1 %v3942_v5  ;;  %v3121_v22 = vunpack.c.h.s8.bf16 %v2881_v3  ;;  %v2880_v59 = vld [vmem:[#allocation2 + $0x1070] sm:$0xff]  ;;  %v3714_v43 = vld [vmem:[#allocation2 + $0x1380] sm:$0xff]  ;;  %v3115_v48 = vunpack.c.l.s8.bf16 %v2881_v3  ;;  %v2863_v3 = vld [vmem:[#allocation2 + $0xfe8] sm:$0xff] }
 0x54a   :  { %v3339_v33 = vpop.f32.mrf.mxu1  ;;  %4149 = vmatprep.subr.bf16.mxu1 %v3937_v44  ;;  %v3912_v14 = vunpack.c.h.s8.bf16 %v3714_v43  ;;  %v3114_v0 = vunpack.c.l.s8.bf16 %v2880_v59  ;;  %v2869_v44 = vld [vmem:[#allocation2 + $0x1018] sm:$0xff]  ;;  %vm2747_vm4 = vcmp.ge.f32.partialorder %v8802_v62, 0.0 }
 0x54b   :  { %v2729_v7 = vsub.f32 0.0, %v2723_v11  ;;  %v2724_v61 = vand.u32 2147483647, %v8805_v13  ;;  %3510 = vmatpush1.bf16.msra.mxu0 %v3060_v19  ;;  %v3918_v19 = vunpack.c.l.s8.bf16 %v3720_v32  ;;  %v3120_v11 = vunpack.c.h.s8.bf16 %v2880_v59  ;;  %v2875_v33 = vld [vmem:[#allocation2 + $0x1048] sm:$0xff]  ;;  %v3745_v62 = vld [vmem:[#allocation2 + $0x1478] sm:$0xff]  ;;  %v3744_v59 = vld [vmem:[#allocation2 + $0x1470] sm:$0xff] }
 0x54c   :  { %3511 = vmatprep.subr.bf16.mxu0 %v3055_v56  ;;  %v3913_v56 = vunpack.c.h.s8.bf16 %v3715_v45  ;;  %v3096_v32 = vunpack.c.h.s8.bf16 %v2868_v23  ;;  %vm2748_vm5 = vcmp.ge.f32.partialorder %v8805_v13, 0.0  ;;  %v3090_v45 = vunpack.c.l.s8.bf16 %v2868_v23 }
 0x54d   :  { %v2739_v8 = vmul.f32 1.442695, %v2729_v7  ;;  %v2730_v9 = vsub.f32 0.0, %v2724_v61  ;;  %4150 = vmatpush1.bf16.msra.mxu1 %v3936_v15  ;;  %v3109_v7 = vunpack.c.h.s8.bf16 %v2875_v33  ;;  %v2874_v61 = vld [vmem:[#allocation2 + $0x1040] sm:$0xff]  ;;  %v3097_v15 = vunpack.c.h.s8.bf16 %v2869_v44 }
 0x54e   :  { %4151 = vmatprep.subr.bf16.mxu1 %v3931_v27  ;;  %v3108_v5 = vunpack.c.h.s8.bf16 %v2874_v61  ;;  %v3990_v27 = vunpack.c.l.s8.bf16 %v3756_v18 }
 0x54f   :  { %8264 = vpow2.f32 %v2739_v8  ;;  %v2741_v42 = vmul.f32 1.442695, %v2730_v9  ;;  %3512 = vmatpush1.bf16.msra.mxu0 %v3054_v4  ;;  %v3906_v4 = vunpack.c.l.s8.bf16 %v3714_v43  ;;  %v3103_v8 = vunpack.c.l.s8.bf16 %v2875_v33  ;;  %v3685_v43 = vld [vmem:[#allocation2 + $0x1298] sm:$0xff] }
 0x550   :  { %3513 = vmatprep.subr.bf16.mxu0 %v3049_v54  ;;  %v3997_v54 = vunpack.c.h.s8.bf16 %v3757_v20  ;;  %v3996_v9 = vunpack.c.h.s8.bf16 %v3756_v18  ;;  %v3847_v33 = vunpack.c.l.s8.bf16 %v3685_v43  ;;  %v3679_v20 = vld [vmem:[#allocation2 + $0x1268] sm:$0xff]  ;;  %v8819_v18 = vld [vmem:[#allocation4 + $0x12] sm:$0x3f] }
 0x551   :  { %8266 = vpow2.f32 %v2741_v42  ;;  %4152 = vmatpush1.bf16.msra.mxu1 %v3930_v28  ;;  %v3751_v42 = vld [vmem:[#allocation2 + $0x14a8] sm:$0xff] }
 0x552   :  { %4153 = vmatprep.subr.bf16.mxu1 %v3925_v53 }
 0x553   :  { %3514 = vmatpush1.bf16.msra.mxu0 %v3048_v26  ;;  %v3102_v26 = vunpack.c.l.s8.bf16 %v2874_v61 }
 0x554   :  { %3515 = vmatprep.subr.bf16.mxu0 %v3043_v40 }
 0x555   :  { %4154 = vmatpush1.bf16.msra.mxu1 %v3924_v21 }
 0x556   :  { %4155 = vmatprep.subr.bf16.mxu1 %v3919_v57  ;;  %v3979_v57 = vunpack.c.l.s8.bf16 %v3751_v42 }
 0x557   :  { %3516 = vmatpush1.bf16.msra.mxu0 %v3042_v41  ;;  %v3985_v41 = vunpack.c.h.s8.bf16 %v3751_v42 }
 0x558   :  { %3517 = vmatprep.subr.bf16.mxu0 %v3037_v1  ;;  %v3750_v1 = vld [vmem:[#allocation2 + $0x14a0] sm:$0xff] }
 0x559   :  { %4156 = vmatpush1.bf16.msra.mxu1 %v3918_v19  ;;  %v3978_v13 = vunpack.c.l.s8.bf16 %v3750_v1 }
 0x55a   :  { %4157 = vmatprep.subr.bf16.mxu1 %v3913_v56  ;;  %v3972_v56 = vunpack.c.h.s8.bf16 %v3744_v59 }
 0x55b   :  { %3518 = vmatpush1.bf16.msra.mxu0 %v3036_v2  ;;  %v3091_v2 = vunpack.c.l.s8.bf16 %v2869_v44 }
 0x55c   :  { %v8265_v6 = vpop.eup %8264  ;;  %3519 = vmatprep.subr.bf16.mxu0 %v3031_v52  ;;  %v3984_v52 = vunpack.c.h.s8.bf16 %v3750_v1 }
 0x55d   :  { %v2753_v17 = vadd.f32 1.0, %v8265_v6  ;;  %4158 = vmatpush1.bf16.msra.mxu1 %v3912_v14 }
 0x55e   :  { %v8267_v58 = vpop.eup %8266  ;;  %4159 = vmatprep.subr.bf16.mxu1 %v3907_v63  ;;  %v3966_v63 = vunpack.c.l.s8.bf16 %v3744_v59 }
 0x55f   :  { %8268 = vrcp.f32 %v2753_v17  ;;  %v2754_v35 = vadd.f32 1.0, %v8267_v58  ;;  %3520 = vmatpush1.bf16.msra.mxu0 %v3030_v12  ;;  %v3085_v12 = vunpack.c.h.s8.bf16 %v2863_v3  ;;  %v3079_v17 = vunpack.c.l.s8.bf16 %v2863_v3 }
 0x560   :  { %3521 = vmatprep.subr.bf16.mxu0 %v3121_v22  ;;  %v3973_v22 = vunpack.c.h.s8.bf16 %v3745_v62 }
 0x561   :  { %8270 = vrcp.f32 %v2754_v35  ;;  %4160 = vmatpush1.bf16.msra.mxu1 %v3906_v4 }
 0x562   :  { %4161 = vmatprep.subr.bf16.mxu1 %v3997_v54  ;;  %v3738_v54 = vld [vmem:[#allocation2 + $0x1440] sm:$0xff] }
 0x563   :  { %3522 = vmatpush2.bf16.msra.mxu0 %v3120_v11  ;;  %v3853_v11 = vunpack.c.h.s8.bf16 %v3685_v43 }
 0x564   :  { %3523 = vmatprep.subr.bf16.mxu0 %v3115_v48  ;;  %v3684_v48 = vld [vmem:[#allocation2 + $0x1290] sm:$0xff] }
 0x565   :  { %4162 = vmatpush2.bf16.msra.mxu1 %v3996_v9  ;;  %v3852_v14 = vunpack.c.h.s8.bf16 %v3684_v48  ;;  %v3846_v61 = vunpack.c.l.s8.bf16 %v3684_v48  ;;  %v3678_v9 = vld [vmem:[#allocation2 + $0x1260] sm:$0xff]  ;;  %v3708_v48 = vld [vmem:[#allocation2 + $0x1350] sm:$0xff] }
 0x566   :  { %4163 = vmatprep.subr.bf16.mxu1 %v3991_v25  ;;  %v3960_v25 = vunpack.c.h.s8.bf16 %v3738_v54 }
 0x567   :  { %3524 = vmatpush2.bf16.msra.mxu0 %v3114_v0 }
 0x568   :  { %3525 = vmatprep.subr.bf16.mxu0 %v3109_v7  ;;  %v3739_v7 = vld [vmem:[#allocation2 + $0x1448] sm:$0xff] }
 0x569   :  { %4164 = vmatpush2.bf16.msra.mxu1 %v3990_v27  ;;  %v3961_v4 = vunpack.c.h.s8.bf16 %v3739_v7  ;;  %v3955_v1 = vunpack.c.l.s8.bf16 %v3739_v7 }
 0x56a   :  { %4165 = vmatprep.subr.bf16.mxu1 %v3985_v41 }
 0x56b   :  { %3526 = vmatpush2.bf16.msra.mxu0 %v3108_v5 }
 0x56c   :  { %v8269_v40 = vpop.eup %8268  ;;  %3527 = vmatprep.subr.bf16.mxu0 %v3103_v8  ;;  %v3841_v8 = vunpack.c.h.s8.bf16 %v3679_v20 }
 0x56d   :  { %v2771_v30 = vmul.f32 %v8269_v40, %v8265_v6  ;;  %v2862_v6 = vld [vmem:[#allocation2 + $0xfe0] sm:$0xff]  ;;  %4166 = vmatpush2.bf16.msra.mxu1 %v3984_v52 }
 0x56e   :  { %v8271_v50 = vpop.eup %8270  ;;  %4167 = vmatprep.subr.bf16.mxu1 %v3979_v57  ;;  %v3084_v19 = vunpack.c.h.s8.bf16 %v2862_v6  ;;  %v3078_v35 = vunpack.c.l.s8.bf16 %v2862_v6 }
 0x56f   :  { %v2777_v28 = vsel %vm2747_vm4, %v8269_v40, %v2771_v30  ;;  %v2772_v53 = vmul.f32 %v8271_v50, %v8267_v58  ;;  %3528 = vmatpush2.bf16.msra.mxu0 %v3102_v26  ;;  %v3967_v58 = vunpack.c.l.s8.bf16 %v3745_v62  ;;  %v3597_v26 = vrot.slane %v8819_v18, %v8490_v38  ;;  %v8826_v40 = vld [vmem:[#allocation6 + $0x12] sm:$0x3f] }
 0x570   :  { %2783 = vst [vmem:[%s9393_s4 + $0x20] sm:$0xff] %v2777_v28  ;;  %3529 = vmatprep.subr.bf16.mxu0 %v3097_v15  ;;  %v3840_v30 = vunpack.c.h.s8.bf16 %v3678_v9  ;;  %v3636_v41 = vrot.slane %v8826_v40, %v8490_v38 }
 0x571   :  { %v2778_v21 = vsel %vm2748_vm5, %v8271_v50, %v2772_v53  ;;  %4168 = vmatpush2.bf16.msra.mxu1 %v3978_v13  ;;  %v3954_v53 = vunpack.c.l.s8.bf16 %v3738_v54 }
 0x572   :  { %2784 = vst [vmem:[%s9393_s4 + $0x28] sm:$0xff] %v2778_v21  ;;  %4169 = vmatprep.subr.bf16.mxu1 %v3973_v22  ;;  %v8833_v21 = vld [vmem:[#allocation2 + $0x12a8] sm:$0xff] }
 0x573   :  { %3530 = vmatpush2.bf16.msra.mxu0 %v3096_v32  ;;  %v3855_v57 = vunpack.c.h.s8.bf16 %v8833_v21  ;;  %v3667_v22 = vld [vmem:[#allocation2 + $0x1208] sm:$0xff] }
 0x574   :  { %3531 = vmatprep.subr.bf16.mxu0 %v3091_v2  ;;  %v3673_v2 = vld [vmem:[#allocation2 + $0x1238] sm:$0xff]  ;;  %v3811_v43 = vunpack.c.l.s8.bf16 %v3667_v22 }
 0x575   :  { %4170 = vmatpush2.bf16.msra.mxu1 %v3972_v56  ;;  %v3829_v62 = vunpack.c.h.s8.bf16 %v3673_v2  ;;  %v3823_v13 = vunpack.c.l.s8.bf16 %v3673_v2 }
 0x576   :  { %4171 = vmatprep.subr.bf16.mxu1 %v3967_v58  ;;  %v3709_v58 = vld [vmem:[#allocation2 + $0x1358] sm:$0xff] }
 0x577   :  { %3532 = vmatpush2.bf16.msra.mxu0 %v3090_v45  ;;  %v3672_v45 = vld [vmem:[#allocation2 + $0x1230] sm:$0xff] }
 0x578   :  { %3533 = vmatprep.subr.bf16.mxu0 %v3085_v12  ;;  %v3828_v6 = vunpack.c.h.s8.bf16 %v3672_v45  ;;  %v3822_v59 = vunpack.c.l.s8.bf16 %v3672_v45  ;;  %v3775_v45 = vld [vmem:[#allocation2 + $0x1568] sm:$0xff] }
 0x579   :  { %4172 = vmatpush2.bf16.msra.mxu1 %v3966_v63  ;;  %v3703_v63 = vld [vmem:[#allocation2 + $0x1328] sm:$0xff] }
 0x57a   :  { %4173 = vmatprep.subr.bf16.mxu1 %v3961_v4  ;;  %v3889_v7 = vunpack.c.h.s8.bf16 %v3703_v63  ;;  %v3883_v54 = vunpack.c.l.s8.bf16 %v3703_v63 }
 0x57b   :  { %3534 = vmatpush2.bf16.msra.mxu0 %v3084_v19  ;;  %v3817_v19 = vunpack.c.h.s8.bf16 %v3667_v22 }
 0x57c   :  { %3535 = vmatprep.subr.bf16.mxu0 %v3079_v17  ;;  %v3666_v17 = vld [vmem:[#allocation2 + $0x1200] sm:$0xff] }
 0x57d   :  { %4174 = vmatpush2.bf16.msra.mxu1 %v3960_v25  ;;  %v3816_v56 = vunpack.c.h.s8.bf16 %v3666_v17  ;;  %v3696_v25 = vld [vmem:[#allocation2 + $0x12f0] sm:$0xff] }
 0x57e   :  { %4175 = vmatprep.subr.bf16.mxu1 %v3955_v1  ;;  %v3593_v1 = vrot.slane %v8819_v18, %v8485_v34 }
 0x57f   :  { %3536 = vmatpush2.bf16.msra.mxu0 %v3078_v35  ;;  %v3810_v35 = vunpack.c.l.s8.bf16 %v3666_v17  ;;  %v4033_v17 = vunpack.c.h.s8.bf16 %v3775_v45 }
 0x580   :  { %4104 = vmatprep.subr.bf16.mxu0 %v3853_v11  ;;  %v3901_v11 = vunpack.c.h.s8.bf16 %v3709_v58 }
 0x581   :  { %4176 = vmatpush2.bf16.msra.mxu1 %v3954_v53 }
 0x582   :  { %v8816_v0 = vpop.f32.mrf.mxu0  ;;  %3538 = vmatmul.mubr.bf16.vlgmr.msra.gmra.mxu0 %v8449_v47  ;;  %4227 = vmatprep.subr.bf16.mxu1 %v3855_v57 }
 0x583   :  { %4105 = vmatpush1.bf16.msra.mxu0 %v3852_v14  ;;  %v3900_v14 = vunpack.c.h.s8.bf16 %v3708_v48 }
 0x584   :  { %v3295_v5 = vpop.f32.mrf.mxu0  ;;  %4106 = vmatprep.subr.bf16.mxu0 %v3847_v33  ;;  %v8821_v44 = vpop.f32.mrf.mxu1  ;;  %v3895_v33 = vunpack.c.l.s8.bf16 %v3709_v58 }
 0x585   :  { %v3296_v42 = vadd.f32 %v3295_v5, %v8785_v10  ;;  %v3835_v10 = vunpack.c.l.s8.bf16 %v3679_v20  ;;  %v3894_v20 = vunpack.c.l.s8.bf16 %v3708_v48  ;;  %v3697_v5 = vld [vmem:[#allocation2 + $0x12f8] sm:$0xff] }
 0x586   :  { %v3297_v15 = vpop.f32.mrf.mxu0  ;;  %v8828_v23 = vpop.f32.mrf.mxu1 }
 0x587   :  { %v3337_v27 = vadd.f32 %v8800_v16, %v3296_v42  ;;  %4107 = vmatpush1.bf16.msra.mxu0 %v3846_v61  ;;  %v3834_v16 = vunpack.c.l.s8.bf16 %v3678_v9  ;;  %v3702_v61 = vld [vmem:[#allocation2 + $0x1320] sm:$0xff]  ;;  %v3877_v9 = vunpack.c.h.s8.bf16 %v3697_v5  ;;  %v3876_v42 = vunpack.c.h.s8.bf16 %v3696_v25 }
 0x588   :  { %v3298_v50 = vpop.f32.mrf.mxu0  ;;  %4108 = vmatprep.subr.bf16.mxu0 %v3841_v8  ;;  %v3420_v28 = vpop.f32.mrf.mxu1  ;;  %v3888_v4 = vunpack.c.h.s8.bf16 %v3702_v61  ;;  %v3882_v8 = vunpack.c.l.s8.bf16 %v3702_v61  ;;  %v3871_v15 = vunpack.c.l.s8.bf16 %v3697_v5 }
 0x589   :  { %v3621_v32 = vmul.f32 %v3597_v26, %v3337_v27  ;;  %v3294_v26 = vadd.f32 %v8816_v0, %v8781_v39  ;;  %v3691_v27 = vld [vmem:[#allocation2 + $0x12c8] sm:$0xff]  ;;  %v3781_v0 = vld [vmem:[#allocation2 + $0x1598] sm:$0xff] }
 0x58a   :  { %v3421_v52 = vpop.f32.mrf.mxu1  ;;  %v3865_v50 = vunpack.c.h.s8.bf16 %v3691_v27  ;;  %v3859_v39 = vunpack.c.l.s8.bf16 %v3691_v27 }
 0x58b   :  { %4109 = vmatpush1.bf16.msra.mxu0 %v3840_v30  ;;  %v3660_v3 = vadd.f32 %v3636_v41, %v3621_v32  ;;  %v3870_v30 = vunpack.c.l.s8.bf16 %v3696_v25  ;;  %v3335_v41 = vadd.f32 %v8797_v60, %v3294_v26  ;;  %v3632_v32 = vrot.slane %v8826_v40, %v8485_v34  ;;  %v3805_v26 = vld [vmem:[#allocation2 + $0x1658] sm:$0xff] }
 0x58c   :  { %4110 = vmatprep.subr.bf16.mxu0 %v3835_v10  ;;  %v3690_v10 = vld [vmem:[#allocation2 + $0x12c0] sm:$0xff]  ;;  %v4045_v60 = vunpack.c.h.s8.bf16 %v3781_v0  ;;  %v4093_v27 = vunpack.c.h.s8.bf16 %v3805_v26 }
 0x58d   :  { %v8836_v12 = vpack.c.bf16 %v3660_v3, %v3660_v3  ;;  %v3864_v28 = vunpack.c.h.s8.bf16 %v3690_v10  ;;  %v3620_v53 = vmul.f32 %v3593_v1, %v3335_v41  ;;  %v3858_v2 = vunpack.c.l.s8.bf16 %v3690_v10 }
 0x58e   :  { %v4087_v1 = vunpack.c.l.s8.bf16 %v3805_v26 }
 0x58f   :  { %4111 = vmatpush1.bf16.msra.mxu0 %v3834_v16  ;;  %4136 = vmatprep.mubr.bf16.mxu0 %v8836_v12  ;;  %v3659_v52 = vadd.f32 %v3632_v32, %v3620_v53  ;;  %v3780_v16 = vld [vmem:[#allocation2 + $0x1590] sm:$0xff]  ;;  %v3798_v53 = vld [vmem:[#allocation2 + $0x1620] sm:$0xff] }
 0x590   :  { %4112 = vmatprep.subr.bf16.mxu0 %v3829_v62  ;;  %v4044_v3 = vunpack.c.h.s8.bf16 %v3780_v16  ;;  %v4039_v62 = vunpack.c.l.s8.bf16 %v3781_v0  ;;  %v4038_v22 = vunpack.c.l.s8.bf16 %v3780_v16  ;;  %v4080_v32 = vunpack.c.h.s8.bf16 %v3798_v53  ;;  %v3793_v0 = vld [vmem:[#allocation2 + $0x15f8] sm:$0xff] }
 0x591   :  { %v8846_v57 = vpack.c.bf16 %v3659_v52, %v3659_v52  ;;  %v4069_v52 = vunpack.c.h.s8.bf16 %v3793_v0 }
 0x593   :  { %4113 = vmatpush1.bf16.msra.mxu0 %v3828_v6 }
 0x594   :  { %4114 = vmatprep.subr.bf16.mxu0 %v3823_v13 }
 0x597   :  { %4115 = vmatpush1.bf16.msra.mxu0 %v3822_v59 }
 0x598   :  { %4116 = vmatprep.subr.bf16.mxu0 %v3817_v19 }
 0x59b   :  { %4117 = vmatpush1.bf16.msra.mxu0 %v3816_v56  ;;  %v3774_v56 = vld [vmem:[#allocation2 + $0x1560] sm:$0xff] }
 0x59c   :  { %4118 = vmatprep.subr.bf16.mxu0 %v3811_v43  ;;  %v4026_v63 = vunpack.c.l.s8.bf16 %v3774_v56 }
 0x59f   :  { %4119 = vmatpush1.bf16.msra.mxu0 %v3810_v35  ;;  %v4032_v35 = vunpack.c.h.s8.bf16 %v3774_v56 }
 0x5a0   :  { %4120 = vmatprep.subr.bf16.mxu0 %v3901_v11 }
 0x5a3   :  { %4121 = vmatpush2.bf16.msra.mxu0 %v3900_v14  ;;  %v4027_v14 = vunpack.c.l.s8.bf16 %v3775_v45 }
 0x5a4   :  { %4122 = vmatprep.subr.bf16.mxu0 %v3895_v33 }
 0x5a7   :  { %4123 = vmatpush2.bf16.msra.mxu0 %v3894_v20 }
 0x5a8   :  { %4124 = vmatprep.subr.bf16.mxu0 %v3889_v7  ;;  %v3768_v7 = vld [vmem:[#allocation2 + $0x1530] sm:$0xff] }
 0x5a9   :  { %v4020_v61 = vunpack.c.h.s8.bf16 %v3768_v7  ;;  %v4014_v5 = vunpack.c.l.s8.bf16 %v3768_v7 }
 0x5ab   :  { %4125 = vmatpush2.bf16.msra.mxu0 %v3888_v4 }
 0x5ac   :  { %4126 = vmatprep.subr.bf16.mxu0 %v3883_v54  ;;  %v3763_v54 = vld [vmem:[#allocation2 + $0x1508] sm:$0xff] }
 0x5af   :  { %4127 = vmatpush2.bf16.msra.mxu0 %v3882_v8  ;;  %v4009_v8 = vunpack.c.h.s8.bf16 %v3763_v54 }
 0x5b0   :  { %4128 = vmatprep.subr.bf16.mxu0 %v3877_v9  ;;  %v3762_v9 = vld [vmem:[#allocation2 + $0x1500] sm:$0xff] }
 0x5b1   :  { %v4008_v25 = vunpack.c.h.s8.bf16 %v3762_v9 }
 0x5b3   :  { %4129 = vmatpush2.bf16.msra.mxu0 %v3876_v42  ;;  %v4003_v42 = vunpack.c.l.s8.bf16 %v3763_v54 }
 0x5b4   :  { %4130 = vmatprep.subr.bf16.mxu0 %v3871_v15  ;;  %v4002_v15 = vunpack.c.l.s8.bf16 %v3762_v9 }
 0x5b7   :  { %4131 = vmatpush2.bf16.msra.mxu0 %v3870_v30  ;;  %v3804_v30 = vld [vmem:[#allocation2 + $0x1650] sm:$0xff] }
 0x5b8   :  { %4132 = vmatprep.subr.bf16.mxu0 %v3865_v50  ;;  %v4092_v41 = vunpack.c.h.s8.bf16 %v3804_v30  ;;  %v3799_v50 = vld [vmem:[#allocation2 + $0x1628] sm:$0xff]  ;;  %v4086_v10 = vunpack.c.l.s8.bf16 %v3804_v30 }
 0x5bb   :  { %4133 = vmatpush2.bf16.msra.mxu0 %v3864_v28  ;;  %v4081_v28 = vunpack.c.h.s8.bf16 %v3799_v50 }
 0x5bc   :  { %4134 = vmatprep.subr.bf16.mxu0 %v3859_v39  ;;  %v4075_v39 = vunpack.c.l.s8.bf16 %v3799_v50  ;;  %v3681_v50 = vld [vmem:[#allocation2 + $0x1278] sm:$0xff] }
 0x5bf   :  { %4135 = vmatpush2.bf16.msra.mxu0 %v3858_v2  ;;  %v4074_v2 = vunpack.c.l.s8.bf16 %v3798_v53  ;;  %v3680_v53 = vld [vmem:[#allocation2 + $0x1270] sm:$0xff] }
 0x5c0   :  { %4186 = vmatprep.subr.bf16.mxu0 %v4045_v60  ;;  %v3792_v60 = vld [vmem:[#allocation2 + $0x15f0] sm:$0xff] }
 0x5c1   :  { %v4068_v16 = vunpack.c.h.s8.bf16 %v3792_v60  ;;  %v4062_v45 = vunpack.c.l.s8.bf16 %v3792_v60 }
 0x5c2   :  { %v3375_v6 = vpop.f32.mrf.mxu0  ;;  %4137 = vmatmul.mubr.bf16.vlgmr.msra.gmra.mxu0 %v8846_v57 }
 0x5c3   :  { %v8850_v13 = vadd.f32 %v8821_v44, %v3375_v6  ;;  %4187 = vmatpush1.bf16.msra.mxu0 %v4044_v3  ;;  %v3769_v44 = vld [vmem:[#allocation2 + $0x1538] sm:$0xff]  ;;  %v4063_v3 = vunpack.c.l.s8.bf16 %v3793_v0  ;;  %v3675_v0 = vld [vmem:[#allocation2 + $0x1248] sm:$0xff] }
 0x5c4   :  { %v8852_v59 = vpop.f32.mrf.mxu0  ;;  %v8854_v19 = vpop.f32.mrf.mxu1  ;;  %4188 = vmatprep.subr.bf16.mxu0 %v4039_v62  ;;  %v4021_v20 = vunpack.c.h.s8.bf16 %v3769_v44  ;;  %v4015_v4 = vunpack.c.l.s8.bf16 %v3769_v44  ;;  %v3787_v62 = vld [vmem:[#allocation2 + $0x15c8] sm:$0xff] }
 0x5c5   :  { %v4057_v6 = vunpack.c.h.s8.bf16 %v3787_v62  ;;  %v4051_v56 = vunpack.c.l.s8.bf16 %v3787_v62  ;;  %v3419_v44 = vadd.f32 %v8828_v23, %v8852_v59 }
 0x5c6   :  { %v3379_v43 = vpop.f32.mrf.mxu0  ;;  %v8856_v58 = vpop.f32.mrf.mxu1 }
 0x5c7   :  { %4189 = vmatpush1.bf16.msra.mxu0 %v4038_v22  ;;  %v3786_v22 = vld [vmem:[#allocation2 + $0x15c0] sm:$0xff]  ;;  %v8858_v43 = vld [vmem:[#allocation2 + $0x1428] sm:$0xff] }
 0x5c8   :  { %v3380_v11 = vpop.f32.mrf.mxu0  ;;  %v3502_v48 = vpop.f32.mrf.mxu1  ;;  %4190 = vmatprep.subr.bf16.mxu0 %v4033_v17  ;;  %v4056_v17 = vunpack.c.h.s8.bf16 %v3786_v22 }
 0x5c9   :  { %v3951_v11 = vunpack.c.h.s8.bf16 %v8858_v43  ;;  %v3601_v48 = vrot.slane %v8819_v18, %v8520_v49 }
 0x5ca   :  { %v3503_v33 = vpop.f32.mrf.mxu1 }
 0x5cb   :  { %4191 = vmatpush1.bf16.msra.mxu0 %v4032_v35  ;;  %v4050_v35 = vunpack.c.l.s8.bf16 %v3786_v22 }
 0x5cc   :  { %4192 = vmatprep.subr.bf16.mxu0 %v4027_v14 }
 0x5cf   :  { %4193 = vmatpush1.bf16.msra.mxu0 %v4026_v63  ;;  %v3605_v63 = vrot.slane %v8819_v18, %v8523_v51 }
 0x5d0   :  { %4194 = vmatprep.subr.bf16.mxu0 %v4021_v20  ;;  %v3640_v20 = vrot.slane %v8826_v40, %v8520_v49 }
 0x5d3   :  { %4195 = vmatpush1.bf16.msra.mxu0 %v4020_v61 }
 0x5d4   :  { %4196 = vmatprep.subr.bf16.mxu0 %v4015_v4 }
 0x5d7   :  { %4197 = vmatpush1.bf16.msra.mxu0 %v4014_v5  ;;  %v3644_v5 = vrot.slane %v8826_v40, %v8523_v51 }
 0x5d8   :  { %4198 = vmatprep.subr.bf16.mxu0 %v4009_v8 }
 0x5db   :  { %4199 = vmatpush1.bf16.msra.mxu0 %v4008_v25  ;;  %v3686_v25 = vld [vmem:[#allocation2 + $0x12a0] sm:$0xff] }
 0x5dc   :  { %4200 = vmatprep.subr.bf16.mxu0 %v4003_v42  ;;  %v3854_v30 = vunpack.c.h.s8.bf16 %v3686_v25 }
 0x5df   :  { %4201 = vmatpush1.bf16.msra.mxu0 %v4002_v15 }
 0x5e0   :  { %4202 = vmatprep.subr.bf16.mxu0 %v4093_v27 }
 0x5e3   :  { %4203 = vmatpush2.bf16.msra.mxu0 %v4092_v41 }
 0x5e4   :  { %4204 = vmatprep.subr.bf16.mxu0 %v4087_v1  ;;  %v3849_v1 = vunpack.c.l.s8.bf16 %v8833_v21  ;;  %v3831_v21 = vunpack.c.h.s8.bf16 %v3675_v0 }
 0x5e7   :  { %4205 = vmatpush2.bf16.msra.mxu0 %v4086_v10  ;;  %v3848_v10 = vunpack.c.l.s8.bf16 %v3686_v25 }
 0x5e8   :  { %4206 = vmatprep.subr.bf16.mxu0 %v4081_v28  ;;  %v3843_v28 = vunpack.c.h.s8.bf16 %v3681_v50 }
 0x5eb   :  { %4207 = vmatpush2.bf16.msra.mxu0 %v4080_v32  ;;  %v3842_v32 = vunpack.c.h.s8.bf16 %v3680_v53 }
 0x5ec   :  { %4208 = vmatprep.subr.bf16.mxu0 %v4075_v39  ;;  %v3837_v39 = vunpack.c.l.s8.bf16 %v3681_v50 }
 0x5ef   :  { %4209 = vmatpush2.bf16.msra.mxu0 %v4074_v2  ;;  %v3836_v2 = vunpack.c.l.s8.bf16 %v3680_v53 }
 0x5f0   :  { %4210 = vmatprep.subr.bf16.mxu0 %v4069_v52  ;;  %v3674_v52 = vld [vmem:[#allocation2 + $0x1240] sm:$0xff] }
 0x5f1   :  { %v3830_v60 = vunpack.c.h.s8.bf16 %v3674_v52  ;;  %v3824_v62 = vunpack.c.l.s8.bf16 %v3674_v52  ;;  %v3648_v52 = vrot.slane %v8826_v40, %v8554_v29 }
 0x5f3   :  { %4211 = vmatpush2.bf16.msra.mxu0 %v4068_v16  ;;  %v3825_v16 = vunpack.c.l.s8.bf16 %v3675_v0 }
 0x5f4   :  { %4212 = vmatprep.subr.bf16.mxu0 %v4063_v3  ;;  %v3669_v3 = vld [vmem:[#allocation2 + $0x1218] sm:$0xff] }
 0x5f7   :  { %4213 = vmatpush2.bf16.msra.mxu0 %v4062_v45  ;;  %v3819_v45 = vunpack.c.h.s8.bf16 %v3669_v3 }
 0x5f8   :  { %4214 = vmatprep.subr.bf16.mxu0 %v4057_v6  ;;  %v3668_v6 = vld [vmem:[#allocation2 + $0x1210] sm:$0xff] }
 0x5f9   :  { %v3818_v22 = vunpack.c.h.s8.bf16 %v3668_v6 }
 0x5fb   :  { %4215 = vmatpush2.bf16.msra.mxu0 %v4056_v17  ;;  %v3813_v17 = vunpack.c.l.s8.bf16 %v3669_v3 }
 0x5fc   :  { %4216 = vmatprep.subr.bf16.mxu0 %v4051_v56  ;;  %v3711_v56 = vld [vmem:[#allocation2 + $0x1368] sm:$0xff] }
 0x5ff   :  { %4217 = vmatpush2.bf16.msra.mxu0 %v4050_v35  ;;  %v3812_v35 = vunpack.c.l.s8.bf16 %v3668_v6 }
 0x600   :  { %4268 = vmatprep.subr.bf16.mxu0 %v3951_v11  ;;  %v3903_v11 = vunpack.c.h.s8.bf16 %v3711_v56 }
 0x602   :  { %v3457_v14 = vpop.f32.mrf.mxu0 }
 0x603   :  { %v3458_v33 = vadd.f32 %v3457_v14, %v8850_v13 }
 0x604   :  { %v3459_v7 = vpop.f32.mrf.mxu0  ;;  %v8870_v61 = vpop.f32.mrf.mxu1 }
 0x605   :  { %v3622_v4 = vmul.f32 %v3601_v48, %v3458_v33  ;;  %v3460_v54 = vadd.f32 %v3459_v7, %v3419_v44  ;;  %v3710_v48 = vld [vmem:[#allocation2 + $0x1360] sm:$0xff]  ;;  %v3897_v44 = vunpack.c.l.s8.bf16 %v3711_v56  ;;  %v3705_v33 = vld [vmem:[#allocation2 + $0x1338] sm:$0xff]  ;;  %v3704_v7 = vld [vmem:[#allocation2 + $0x1330] sm:$0xff] }
 0x606   :  { %v3461_v8 = vpop.f32.mrf.mxu0  ;;  %v8874_v9 = vpop.f32.mrf.mxu1  ;;  %v3902_v14 = vunpack.c.h.s8.bf16 %v3710_v48 }
 0x607   :  { %v3623_v23 = vmul.f32 %v3605_v63, %v3460_v54  ;;  %v3661_v59 = vadd.f32 %v3640_v20, %v3622_v4  ;;  %v3896_v63 = vunpack.c.l.s8.bf16 %v3710_v48  ;;  %v3891_v20 = vunpack.c.h.s8.bf16 %v3705_v33 }
 0x608   :  { %v3462_v13 = vpop.f32.mrf.mxu0  ;;  %v3584_v42 = vpop.f32.mrf.mxu1  ;;  %v3890_v4 = vunpack.c.h.s8.bf16 %v3704_v7  ;;  %v3885_v54 = vunpack.c.l.s8.bf16 %v3705_v33  ;;  %v3884_v8 = vunpack.c.l.s8.bf16 %v3704_v7  ;;  %v3729_v33 = vld [vmem:[#allocation2 + $0x13f8] sm:$0xff] }
 0x609   :  { %v3662_v26 = vadd.f32 %v3644_v5, %v3623_v23  ;;  %v8878_v41 = vpack.c.bf16 %v3661_v59, %v3661_v59  ;;  %v3699_v5 = vld [vmem:[#allocation2 + $0x1308] sm:$0xff]  ;;  %v3698_v59 = vld [vmem:[#allocation2 + $0x1300] sm:$0xff]  ;;  %v3693_v42 = vld [vmem:[#allocation2 + $0x12d8] sm:$0xff] }
 0x60a   :  { %v3585_v15 = vpop.f32.mrf.mxu1  ;;  %v3879_v23 = vunpack.c.h.s8.bf16 %v3699_v5  ;;  %v3878_v13 = vunpack.c.h.s8.bf16 %v3698_v59  ;;  %v3873_v25 = vunpack.c.l.s8.bf16 %v3699_v5 }
 0x60b   :  { %v8876_v27 = vpack.c.bf16 %v3662_v26, %v3662_v26  ;;  %v3872_v26 = vunpack.c.l.s8.bf16 %v3698_v59  ;;  %v3867_v15 = vunpack.c.h.s8.bf16 %v3693_v42  ;;  %v3933_v59 = vunpack.c.l.s8.bf16 %v3729_v33 }
 0x60d   :  { %4177 = vmatprep.mubr.bf16.mxu1 %v8876_v27 }
 0x60e   :  { %4178 = vmatmul.mubr.bf16.vlgmr.msra.gmra.mxu1 %v8878_v41 }
 0x60f   :  { %4228 = vmatpush1.bf16.msra.mxu1 %v3854_v30  ;;  %4259 = vmatprep.mubr.bf16.mxu1 %v8836_v12  ;;  %v3692_v30 = vld [vmem:[#allocation2 + $0x12d0] sm:$0xff] }
 0x610   :  { %4229 = vmatprep.subr.bf16.mxu1 %v3849_v1  ;;  %v3860_v3 = vunpack.c.l.s8.bf16 %v3692_v30 }
 0x613   :  { %4230 = vmatpush1.bf16.msra.mxu1 %v3848_v10  ;;  %v3609_v10 = vrot.slane %v8819_v18, %v8554_v29 }
 0x614   :  { %4231 = vmatprep.subr.bf16.mxu1 %v3843_v28  ;;  %v3866_v28 = vunpack.c.h.s8.bf16 %v3692_v30 }
 0x617   :  { %4232 = vmatpush1.bf16.msra.mxu1 %v3842_v32  ;;  %v3861_v32 = vunpack.c.l.s8.bf16 %v3693_v42 }
 0x618   :  { %4233 = vmatprep.subr.bf16.mxu1 %v3837_v39 }
 0x61b   :  { %4234 = vmatpush1.bf16.msra.mxu1 %v3836_v2  ;;  %v3613_v2 = vrot.slane %v8819_v18, %v8557_v31  ;;  %v3734_v18 = vld [vmem:[#allocation2 + $0x1420] sm:$0xff] }
 0x61c   :  { %4235 = vmatprep.subr.bf16.mxu1 %v3831_v21  ;;  %v3783_v21 = vld [vmem:[#allocation2 + $0x15a8] sm:$0xff]  ;;  %v3944_v7 = vunpack.c.l.s8.bf16 %v3734_v18 }
 0x61f   :  { %4236 = vmatpush1.bf16.msra.mxu1 %v3830_v60 }
 0x620   :  { %4237 = vmatprep.subr.bf16.mxu1 %v3825_v16 }
 0x623   :  { %4238 = vmatpush1.bf16.msra.mxu1 %v3824_v62  ;;  %v3652_v62 = vrot.slane %v8826_v40, %v8557_v31  ;;  %v4041_v40 = vunpack.c.l.s8.bf16 %v3783_v21 }
 0x624   :  { %4239 = vmatprep.subr.bf16.mxu1 %v3819_v45 }
 0x627   :  { %4240 = vmatpush1.bf16.msra.mxu1 %v3818_v22 }
 0x628   :  { %4241 = vmatprep.subr.bf16.mxu1 %v3813_v17 }
 0x62b   :  { %4242 = vmatpush1.bf16.msra.mxu1 %v3812_v35 }
 0x62c   :  { %4243 = vmatprep.subr.bf16.mxu1 %v3903_v11  ;;  %v3950_v11 = vunpack.c.h.s8.bf16 %v3734_v18  ;;  %v3806_v18 = vld [vmem:[#allocation2 + $0x1660] sm:$0xff] }
 0x62f   :  { %4244 = vmatpush2.bf16.msra.mxu1 %v3902_v14  ;;  %v3945_v14 = vunpack.c.l.s8.bf16 %v8858_v43 }
 0x630   :  { %4245 = vmatprep.subr.bf16.mxu1 %v3897_v44 }
 0x633   :  { %4246 = vmatpush2.bf16.msra.mxu1 %v3896_v63 }
 0x634   :  { %4247 = vmatprep.subr.bf16.mxu1 %v3891_v20  ;;  %v3776_v20 = vld [vmem:[#allocation2 + $0x1570] sm:$0xff] }
 0x635   :  { %v4034_v43 = vunpack.c.h.s8.bf16 %v3776_v20 }
 0x637   :  { %4248 = vmatpush2.bf16.msra.mxu1 %v3890_v4  ;;  %v3939_v4 = vunpack.c.h.s8.bf16 %v3729_v33 }
 0x638   :  { %4249 = vmatprep.subr.bf16.mxu1 %v3885_v54  ;;  %v3728_v54 = vld [vmem:[#allocation2 + $0x13f0] sm:$0xff] }
 0x63b   :  { %4250 = vmatpush2.bf16.msra.mxu1 %v3884_v8  ;;  %v3938_v8 = vunpack.c.h.s8.bf16 %v3728_v54 }
 0x63c   :  { %4251 = vmatprep.subr.bf16.mxu1 %v3879_v23  ;;  %v3771_v23 = vld [vmem:[#allocation2 + $0x1548] sm:$0xff] }
 0x63d   :  { %v4023_v42 = vunpack.c.h.s8.bf16 %v3771_v23 }
 0x63f   :  { %4252 = vmatpush2.bf16.msra.mxu1 %v3878_v13  ;;  %v4028_v13 = vunpack.c.l.s8.bf16 %v3776_v20  ;;  %v3753_v20 = vld [vmem:[#allocation2 + $0x14b8] sm:$0xff] }
 0x640   :  { %4253 = vmatprep.subr.bf16.mxu1 %v3873_v25  ;;  %v3723_v25 = vld [vmem:[#allocation2 + $0x13c8] sm:$0xff] }
 0x641   :  { %v3927_v30 = vunpack.c.h.s8.bf16 %v3723_v25 }
 0x642   :  { %v3539_v1 = vpop.f32.mrf.mxu0 }
 0x643   :  { %v3540_v50 = vadd.f32 %v3539_v1, %v8854_v19  ;;  %4254 = vmatpush2.bf16.msra.mxu1 %v3872_v26  ;;  %v3770_v26 = vld [vmem:[#allocation2 + $0x1540] sm:$0xff] }
 0x644   :  { %v3541_v53 = vpop.f32.mrf.mxu0  ;;  %4255 = vmatprep.subr.bf16.mxu1 %v3867_v15  ;;  %v3932_v15 = vunpack.c.l.s8.bf16 %v3728_v54  ;;  %v3722_v1 = vld [vmem:[#allocation2 + $0x13c0] sm:$0xff] }
 0x645   :  { %v3581_v39 = vadd.f32 %v8870_v61, %v3540_v50  ;;  %v3542_v0 = vadd.f32 %v3541_v53, %v8856_v58  ;;  %v4047_v61 = vunpack.c.h.s8.bf16 %v3783_v21  ;;  %v3782_v58 = vld [vmem:[#allocation2 + $0x15a0] sm:$0xff]  ;;  %v4022_v50 = vunpack.c.h.s8.bf16 %v3770_v26  ;;  %v3765_v53 = vld [vmem:[#allocation2 + $0x1518] sm:$0xff]  ;;  %v3764_v21 = vld [vmem:[#allocation2 + $0x1510] sm:$0xff] }
 0x646   :  { %v3543_v19 = vpop.f32.mrf.mxu0  ;;  %v4046_v17 = vunpack.c.h.s8.bf16 %v3782_v58  ;;  %v4040_v44 = vunpack.c.l.s8.bf16 %v3782_v58  ;;  %v4004_v58 = vunpack.c.l.s8.bf16 %v3764_v21 }
 0x647   :  { %v3624_v60 = vmul.f32 %v3609_v10, %v3581_v39  ;;  %v3583_v16 = vadd.f32 %v8874_v9, %v3542_v0  ;;  %4256 = vmatpush2.bf16.msra.mxu1 %v3866_v28  ;;  %v3777_v9 = vld [vmem:[#allocation2 + $0x1578] sm:$0xff]  ;;  %v4017_v10 = vunpack.c.l.s8.bf16 %v3771_v23  ;;  %v3926_v28 = vunpack.c.h.s8.bf16 %v3722_v1 }
 0x648   :  { %v3544_v45 = vpop.f32.mrf.mxu0  ;;  %4257 = vmatprep.subr.bf16.mxu1 %v3861_v32  ;;  %v4035_v63 = vunpack.c.h.s8.bf16 %v3777_v9  ;;  %v4029_v5 = vunpack.c.l.s8.bf16 %v3777_v9  ;;  %v3921_v32 = vunpack.c.l.s8.bf16 %v3723_v25  ;;  %v4016_v39 = vunpack.c.l.s8.bf16 %v3770_v26  ;;  %v3717_v0 = vld [vmem:[#allocation2 + $0x1398] sm:$0xff]  ;;  %v3747_v26 = vld [vmem:[#allocation2 + $0x1488] sm:$0xff] }
 0x649   :  { %v3625_v6 = vmul.f32 %v3613_v2, %v3583_v16  ;;  %v3663_v22 = vadd.f32 %v3648_v52, %v3624_v60  ;;  %v4011_v2 = vunpack.c.h.s8.bf16 %v3765_v53  ;;  %v3920_v52 = vunpack.c.l.s8.bf16 %v3722_v1  ;;  %v3716_v60 = vld [vmem:[#allocation2 + $0x1390] sm:$0xff]  ;;  %v3807_v45 = vld [vmem:[#allocation2 + $0x1668] sm:$0xff] }
 0x64a   :  { %v3915_v19 = vunpack.c.h.s8.bf16 %v3717_v0  ;;  %v4010_v16 = vunpack.c.h.s8.bf16 %v3764_v21  ;;  %v4094_v9 = vunpack.c.h.s8.bf16 %v3806_v18  ;;  %v3981_v25 = vunpack.c.l.s8.bf16 %v3753_v20  ;;  %v3741_v21 = vld [vmem:[#allocation2 + $0x1458] sm:$0xff] }
 0x64b   :  { %4258 = vmatpush2.bf16.msra.mxu1 %v3860_v3  ;;  %v3664_v56 = vadd.f32 %v3652_v62, %v3625_v6  ;;  %v8898_v48 = vpack.c.bf16 %v3663_v22, %v3663_v22  ;;  %v4005_v3 = vunpack.c.l.s8.bf16 %v3765_v53  ;;  %v3914_v62 = vunpack.c.h.s8.bf16 %v3716_v60  ;;  %v3759_v6 = vld [vmem:[#allocation2 + $0x14e8] sm:$0xff] }
 0x64c   :  { %4309 = vmatprep.subr.bf16.mxu1 %v4047_v61  ;;  %v3909_v61 = vunpack.c.l.s8.bf16 %v3717_v0  ;;  %v4095_v22 = vunpack.c.h.s8.bf16 %v3807_v45  ;;  %v3993_v33 = vunpack.c.l.s8.bf16 %v3759_v6  ;;  %v3969_v0 = vunpack.c.l.s8.bf16 %v3747_v26 }
 0x64d   :  { %v8896_v35 = vpack.c.bf16 %v3664_v56, %v3664_v56  ;;  %v3999_v56 = vunpack.c.h.s8.bf16 %v3759_v6 }
 0x64e   :  { %4260 = vmatmul.mubr.bf16.vlgmr.msra.gmra.mxu1 %v8846_v57 }
 0x64f   :  { %4310 = vmatpush1.bf16.msra.mxu1 %v4046_v17  ;;  %4218 = vmatprep.mubr.bf16.mxu0 %v8896_v35  ;;  %v3908_v17 = vunpack.c.l.s8.bf16 %v3716_v60 }
 0x650   :  { %4341 = vmatprep.mubr.bf16.mxu1 %v8896_v35  ;;  %4219 = vmatmul.mubr.bf16.vlgmr.msra.gmra.mxu0 %v8898_v48 }
 0x651   :  { %4269 = vmatpush1.bf16.msra.mxu0 %v3950_v11  ;;  %4300 = vmatprep.mubr.bf16.mxu0 %v8876_v27  ;;  %v3758_v11 = vld [vmem:[#allocation2 + $0x14e0] sm:$0xff] }
 0x652   :  { %4311 = vmatprep.subr.bf16.mxu1 %v4041_v40  ;;  %4270 = vmatprep.subr.bf16.mxu0 %v3945_v14  ;;  %v4089_v40 = vunpack.c.l.s8.bf16 %v3807_v45  ;;  %v3998_v14 = vunpack.c.h.s8.bf16 %v3758_v11  ;;  %v3992_v54 = vunpack.c.l.s8.bf16 %v3758_v11  ;;  %v3689_v11 = vld [vmem:[#allocation2 + $0x12b8] sm:$0xff] }
 0x653   :  { %4312 = vmatpush1.bf16.msra.mxu1 %v4040_v44  ;;  %v3801_v44 = vld [vmem:[#allocation2 + $0x1638] sm:$0xff] }
 0x654   :  { %4313 = vmatprep.subr.bf16.mxu1 %v4035_v63  ;;  %v4088_v63 = vunpack.c.l.s8.bf16 %v3806_v18  ;;  %v4077_v23 = vunpack.c.l.s8.bf16 %v3801_v44 }
 0x655   :  { %4271 = vmatpush1.bf16.msra.mxu0 %v3944_v7  ;;  %v4083_v7 = vunpack.c.h.s8.bf16 %v3801_v44 }
 0x656   :  { %4272 = vmatprep.subr.bf16.mxu0 %v3939_v4  ;;  %v3800_v4 = vld [vmem:[#allocation2 + $0x1630] sm:$0xff] }
 0x657   :  { %4314 = vmatpush1.bf16.msra.mxu1 %v4034_v43  ;;  %v3987_v43 = vunpack.c.h.s8.bf16 %v3753_v20 }
 0x658   :  { %4315 = vmatprep.subr.bf16.mxu1 %v4029_v5  ;;  %v3752_v5 = vld [vmem:[#allocation2 + $0x14b0] sm:$0xff] }
 0x659   :  { %4273 = vmatpush1.bf16.msra.mxu0 %v3938_v8  ;;  %v4082_v8 = vunpack.c.h.s8.bf16 %v3800_v4  ;;  %v3980_v1 = vunpack.c.l.s8.bf16 %v3752_v5 }
 0x65a   :  { %4274 = vmatprep.subr.bf16.mxu0 %v3933_v59  ;;  %v3986_v59 = vunpack.c.h.s8.bf16 %v3752_v5 }
 0x65b   :  { %4316 = vmatpush1.bf16.msra.mxu1 %v4028_v13  ;;  %v3795_v13 = vld [vmem:[#allocation2 + $0x1608] sm:$0xff] }
 0x65c   :  { %4317 = vmatprep.subr.bf16.mxu1 %v4023_v42  ;;  %v4076_v42 = vunpack.c.l.s8.bf16 %v3800_v4  ;;  %v4065_v53 = vunpack.c.l.s8.bf16 %v3795_v13 }
 0x65d   :  { %4275 = vmatpush1.bf16.msra.mxu0 %v3932_v15  ;;  %v4071_v15 = vunpack.c.h.s8.bf16 %v3795_v13 }
 0x65e   :  { %4276 = vmatprep.subr.bf16.mxu0 %v3927_v30  ;;  %v3794_v30 = vld [vmem:[#allocation2 + $0x1600] sm:$0xff] }
 0x65f   :  { %4318 = vmatpush1.bf16.msra.mxu1 %v4022_v50  ;;  %v3975_v50 = vunpack.c.h.s8.bf16 %v3747_v26 }
 0x660   :  { %4319 = vmatprep.subr.bf16.mxu1 %v4017_v10  ;;  %v3746_v10 = vld [vmem:[#allocation2 + $0x1480] sm:$0xff] }
 0x661   :  { %4277 = vmatpush1.bf16.msra.mxu0 %v3926_v28  ;;  %v4070_v28 = vunpack.c.h.s8.bf16 %v3794_v30  ;;  %v3968_v60 = vunpack.c.l.s8.bf16 %v3746_v10 }
 0x662   :  { %4278 = vmatprep.subr.bf16.mxu0 %v3921_v32  ;;  %v3974_v32 = vunpack.c.h.s8.bf16 %v3746_v10  ;;  %v3677_v10 = vld [vmem:[#allocation2 + $0x1258] sm:$0xff] }
 0x663   :  { %4320 = vmatpush1.bf16.msra.mxu1 %v4016_v39  ;;  %v3789_v39 = vld [vmem:[#allocation2 + $0x15d8] sm:$0xff] }
 0x664   :  { %4321 = vmatprep.subr.bf16.mxu1 %v4011_v2  ;;  %v4064_v2 = vunpack.c.l.s8.bf16 %v3794_v30  ;;  %v3725_v30 = vld [vmem:[#allocation2 + $0x13d8] sm:$0xff] }
 0x665   :  { %4279 = vmatpush1.bf16.msra.mxu0 %v3920_v52  ;;  %v4059_v52 = vunpack.c.h.s8.bf16 %v3789_v39 }
 0x666   :  { %4280 = vmatprep.subr.bf16.mxu0 %v3915_v19  ;;  %v3788_v19 = vld [vmem:[#allocation2 + $0x15d0] sm:$0xff] }
 0x667   :  { %4322 = vmatpush1.bf16.msra.mxu1 %v4010_v16  ;;  %v4058_v45 = vunpack.c.h.s8.bf16 %v3788_v19 }
 0x668   :  { %4323 = vmatprep.subr.bf16.mxu1 %v4005_v3  ;;  %v3963_v3 = vunpack.c.h.s8.bf16 %v3741_v21 }
 0x669   :  { %4281 = vmatpush1.bf16.msra.mxu0 %v3914_v62  ;;  %v3740_v62 = vld [vmem:[#allocation2 + $0x1450] sm:$0xff] }
 0x66a   :  { %4282 = vmatprep.subr.bf16.mxu0 %v3909_v61  ;;  %v3962_v6 = vunpack.c.h.s8.bf16 %v3740_v62  ;;  %v3956_v44 = vunpack.c.l.s8.bf16 %v3740_v62 }
 0x66b   :  { %4324 = vmatpush1.bf16.msra.mxu1 %v4004_v58  ;;  %v4053_v58 = vunpack.c.l.s8.bf16 %v3789_v39  ;;  %v3676_v39 = vld [vmem:[#allocation2 + $0x1250] sm:$0xff] }
 0x66c   :  { %4325 = vmatprep.subr.bf16.mxu1 %v4095_v22  ;;  %v3737_v22 = vld [vmem:[#allocation2 + $0x1438] sm:$0xff] }
 0x66d   :  { %4283 = vmatpush1.bf16.msra.mxu0 %v3908_v17  ;;  %v3957_v17 = vunpack.c.l.s8.bf16 %v3741_v21  ;;  %v3832_v21 = vunpack.c.h.s8.bf16 %v3676_v39 }
 0x66e   :  { %4284 = vmatprep.subr.bf16.mxu0 %v3999_v56  ;;  %v4052_v56 = vunpack.c.l.s8.bf16 %v3788_v19  ;;  %v3827_v19 = vunpack.c.l.s8.bf16 %v3677_v10 }
 0x66f   :  { %4326 = vmatpush2.bf16.msra.mxu1 %v4094_v9 }
 0x670   :  { %4327 = vmatprep.subr.bf16.mxu1 %v4089_v40  ;;  %v3953_v40 = vunpack.c.h.s8.bf16 %v3737_v22 }
 0x671   :  { %4285 = vmatpush2.bf16.msra.mxu0 %v3998_v14  ;;  %v3736_v14 = vld [vmem:[#allocation2 + $0x1430] sm:$0xff] }
 0x672   :  { %4286 = vmatprep.subr.bf16.mxu0 %v3993_v33  ;;  %v3857_v33 = vunpack.c.h.s8.bf16 %v3689_v11  ;;  %v3952_v20 = vunpack.c.h.s8.bf16 %v3736_v14  ;;  %v3946_v5 = vunpack.c.l.s8.bf16 %v3736_v14  ;;  %v3713_v14 = vld [vmem:[#allocation2 + $0x1378] sm:$0xff] }
 0x673   :  { %4328 = vmatpush2.bf16.msra.mxu1 %v4088_v63  ;;  %v3688_v63 = vld [vmem:[#allocation2 + $0x12b0] sm:$0xff] }
 0x674   :  { %4329 = vmatprep.subr.bf16.mxu1 %v4083_v7  ;;  %v3947_v7 = vunpack.c.l.s8.bf16 %v3737_v22  ;;  %v3856_v4 = vunpack.c.h.s8.bf16 %v3688_v63  ;;  %v3850_v13 = vunpack.c.l.s8.bf16 %v3688_v63  ;;  %v3670_v22 = vld [vmem:[#allocation2 + $0x1220] sm:$0xff] }
 0x675   :  { %4287 = vmatpush2.bf16.msra.mxu0 %v3992_v54  ;;  %v3731_v54 = vld [vmem:[#allocation2 + $0x1408] sm:$0xff]  ;;  %v3814_v63 = vunpack.c.l.s8.bf16 %v3670_v22 }
 0x676   :  { %4288 = vmatprep.subr.bf16.mxu0 %v3987_v43  ;;  %v3851_v43 = vunpack.c.l.s8.bf16 %v3689_v11  ;;  %v3761_v11 = vld [vmem:[#allocation2 + $0x14f8] sm:$0xff] }
 0x677   :  { %4330 = vmatpush2.bf16.msra.mxu1 %v4082_v8  ;;  %v3683_v8 = vld [vmem:[#allocation2 + $0x1288] sm:$0xff] }
 0x678   :  { %4331 = vmatprep.subr.bf16.mxu1 %v4077_v23  ;;  %v3941_v23 = vunpack.c.h.s8.bf16 %v3731_v54 }
 0x679   :  { %4289 = vmatpush2.bf16.msra.mxu0 %v3986_v59  ;;  %v3730_v59 = vld [vmem:[#allocation2 + $0x1400] sm:$0xff] }
 0x67a   :  { %4290 = vmatprep.subr.bf16.mxu0 %v3981_v25  ;;  %v3845_v25 = vunpack.c.h.s8.bf16 %v3683_v8  ;;  %v3940_v26 = vunpack.c.h.s8.bf16 %v3730_v59 }
 0x67b   :  { %4332 = vmatpush2.bf16.msra.mxu1 %v4076_v42  ;;  %v3682_v42 = vld [vmem:[#allocation2 + $0x1280] sm:$0xff] }
 0x67c   :  { %4333 = vmatprep.subr.bf16.mxu1 %v4071_v15  ;;  %v3935_v15 = vunpack.c.l.s8.bf16 %v3731_v54  ;;  %v3995_v54 = vunpack.c.l.s8.bf16 %v3761_v11 }
 0x67d   :  { %4291 = vmatpush2.bf16.msra.mxu0 %v3980_v1  ;;  %v3839_v1 = vunpack.c.l.s8.bf16 %v3683_v8  ;;  %v3899_v8 = vunpack.c.l.s8.bf16 %v3713_v14 }
 0x67e   :  { %4292 = vmatprep.subr.bf16.mxu0 %v3975_v50  ;;  %v3934_v50 = vunpack.c.l.s8.bf16 %v3730_v59  ;;  %v3707_v59 = vld [vmem:[#allocation2 + $0x1348] sm:$0xff] }
 0x67f   :  { %4334 = vmatpush2.bf16.msra.mxu1 %v4070_v28  ;;  %v3929_v28 = vunpack.c.h.s8.bf16 %v3725_v30 }
 0x680   :  { %4335 = vmatprep.subr.bf16.mxu1 %v4065_v53  ;;  %v3724_v53 = vld [vmem:[#allocation2 + $0x13d0] sm:$0xff] }
 0x681   :  { %4293 = vmatpush2.bf16.msra.mxu0 %v3974_v32  ;;  %v3833_v32 = vunpack.c.h.s8.bf16 %v3677_v10  ;;  %v3887_v10 = vunpack.c.l.s8.bf16 %v3707_v59 }
 0x682   :  { %v8906_v16 = vpop.f32.mrf.mxu0  ;;  %4294 = vmatprep.subr.bf16.mxu0 %v3969_v0  ;;  %v3928_v0 = vunpack.c.h.s8.bf16 %v3724_v53 }
 0x683   :  { %4336 = vmatpush2.bf16.msra.mxu1 %v4064_v2  ;;  %v3923_v2 = vunpack.c.l.s8.bf16 %v3725_v30 }
 0x684   :  { %v8908_v61 = vpop.f32.mrf.mxu0  ;;  %4337 = vmatprep.subr.bf16.mxu1 %v4059_v52  ;;  %v3719_v52 = vld [vmem:[#allocation2 + $0x13a8] sm:$0xff] }
 0x685   :  { %4295 = vmatpush2.bf16.msra.mxu0 %v3968_v60  ;;  %v3922_v60 = vunpack.c.l.s8.bf16 %v3724_v53  ;;  %v3917_v62 = vunpack.c.h.s8.bf16 %v3719_v52  ;;  %v3701_v53 = vld [vmem:[#allocation2 + $0x1318] sm:$0xff] }
 0x686   :  { %v4142_v18 = vpop.f32.mrf.mxu0  ;;  %4296 = vmatprep.subr.bf16.mxu0 %v3963_v3  ;;  %v3671_v3 = vld [vmem:[#allocation2 + $0x1228] sm:$0xff] }
 0x687   :  { %4338 = vmatpush2.bf16.msra.mxu1 %v4058_v45  ;;  %v3718_v45 = vld [vmem:[#allocation2 + $0x13a0] sm:$0xff] }
 0x688   :  { %v4143_v9 = vpop.f32.mrf.mxu0  ;;  %4339 = vmatprep.subr.bf16.mxu1 %v4053_v58  ;;  %v3826_v58 = vunpack.c.l.s8.bf16 %v3676_v39  ;;  %v3916_v18 = vunpack.c.h.s8.bf16 %v3718_v45 }
 0x689   :  { %4297 = vmatpush2.bf16.msra.mxu0 %v3962_v6  ;;  %v3821_v6 = vunpack.c.h.s8.bf16 %v3671_v3  ;;  %v3815_v9 = vunpack.c.l.s8.bf16 %v3671_v3  ;;  %v3875_v3 = vunpack.c.l.s8.bf16 %v3701_v53 }
 0x68a   :  { %4298 = vmatprep.subr.bf16.mxu0 %v3957_v17  ;;  %v3911_v17 = vunpack.c.l.s8.bf16 %v3719_v52 }
 0x68b   :  { %4340 = vmatpush2.bf16.msra.mxu1 %v4052_v56  ;;  %v3820_v56 = vunpack.c.h.s8.bf16 %v3670_v22 }
 0x68c   :  { %4391 = vmatprep.subr.bf16.mxu1 %v3953_v40  ;;  %v3910_v40 = vunpack.c.l.s8.bf16 %v3718_v45  ;;  %v3695_v45 = vld [vmem:[#allocation2 + $0x12e8] sm:$0xff] }
 0x68d   :  { %4299 = vmatpush2.bf16.msra.mxu0 %v3956_v44  ;;  %v4001_v44 = vunpack.c.h.s8.bf16 %v3761_v11 }
 0x68e   :  { %4342 = vmatmul.mubr.bf16.vlgmr.msra.gmra.mxu1 %v8898_v48  ;;  %4350 = vmatprep.subr.bf16.mxu0 %v3857_v33  ;;  %v3760_v33 = vld [vmem:[#allocation2 + $0x14f0] sm:$0xff] }
 0x68f   :  { %4392 = vmatpush1.bf16.msra.mxu1 %v3952_v20  ;;  %4423 = vmatprep.mubr.bf16.mxu1 %v8876_v27  ;;  %v3844_v27 = vunpack.c.h.s8.bf16 %v3682_v42  ;;  %v3905_v20 = vunpack.c.h.s8.bf16 %v3713_v14  ;;  %v3863_v14 = vunpack.c.l.s8.bf16 %v3695_v45 }
 0x690   :  { %4301 = vmatmul.mubr.bf16.vlgmr.msra.gmra.mxu0 %v8878_v41  ;;  %4393 = vmatprep.subr.bf16.mxu1 %v3947_v7  ;;  %v3712_v7 = vld [vmem:[#allocation2 + $0x1370] sm:$0xff] }
 0x691   :  { %4351 = vmatpush1.bf16.msra.mxu0 %v3856_v4  ;;  %4382 = vmatprep.mubr.bf16.mxu0 %v8836_v12  ;;  %v3838_v12 = vunpack.c.l.s8.bf16 %v3682_v42  ;;  %v4000_v4 = vunpack.c.h.s8.bf16 %v3760_v33  ;;  %v3898_v42 = vunpack.c.l.s8.bf16 %v3712_v7 }
 0x692   :  { %4352 = vmatprep.subr.bf16.mxu0 %v3851_v43  ;;  %v3904_v43 = vunpack.c.h.s8.bf16 %v3712_v7 }
 0x693   :  { %4394 = vmatpush1.bf16.msra.mxu1 %v3946_v5  ;;  %v3755_v5 = vld [vmem:[#allocation2 + $0x14c8] sm:$0xff] }
 0x694   :  { %4395 = vmatprep.subr.bf16.mxu1 %v3941_v23  ;;  %v3994_v23 = vunpack.c.l.s8.bf16 %v3760_v33  ;;  %v3983_v30 = vunpack.c.l.s8.bf16 %v3755_v5  ;;  %v3785_v33 = vld [vmem:[#allocation2 + $0x15b8] sm:$0xff] }
 0x695   :  { %4353 = vmatpush1.bf16.msra.mxu0 %v3850_v13  ;;  %v3989_v13 = vunpack.c.h.s8.bf16 %v3755_v5 }
 0x696   :  { %4354 = vmatprep.subr.bf16.mxu0 %v3845_v25  ;;  %v3754_v25 = vld [vmem:[#allocation2 + $0x14c0] sm:$0xff] }
 0x697   :  { %4396 = vmatpush1.bf16.msra.mxu1 %v3940_v26  ;;  %v3893_v26 = vunpack.c.h.s8.bf16 %v3707_v59 }
 0x698   :  { %4397 = vmatprep.subr.bf16.mxu1 %v3935_v15  ;;  %v3706_v15 = vld [vmem:[#allocation2 + $0x1340] sm:$0xff] }
 0x699   :  { %4355 = vmatpush1.bf16.msra.mxu0 %v3844_v27  ;;  %v3988_v27 = vunpack.c.h.s8.bf16 %v3754_v25  ;;  %v3886_v39 = vunpack.c.l.s8.bf16 %v3706_v15 }
 0x69a   :  { %4356 = vmatprep.subr.bf16.mxu0 %v3839_v1  ;;  %v3892_v1 = vunpack.c.h.s8.bf16 %v3706_v15 }
 0x69b   :  { %4398 = vmatpush1.bf16.msra.mxu1 %v3934_v50  ;;  %v3749_v50 = vld [vmem:[#allocation2 + $0x1498] sm:$0xff] }
 0x69c   :  { %4399 = vmatprep.subr.bf16.mxu1 %v3929_v28  ;;  %v3982_v28 = vunpack.c.l.s8.bf16 %v3754_v25  ;;  %v3971_v52 = vunpack.c.l.s8.bf16 %v3749_v50  ;;  %v3779_v25 = vld [vmem:[#allocation2 + $0x1588] sm:$0xff] }
 0x69d   :  { %4357 = vmatpush1.bf16.msra.mxu0 %v3838_v12  ;;  %v3977_v12 = vunpack.c.h.s8.bf16 %v3749_v50  ;;  %v3778_v50 = vld [vmem:[#allocation2 + $0x1580] sm:$0xff] }
 0x69e   :  { %4358 = vmatprep.subr.bf16.mxu0 %v3833_v32  ;;  %v3748_v32 = vld [vmem:[#allocation2 + $0x1490] sm:$0xff] }
 0x69f   :  { %4400 = vmatpush1.bf16.msra.mxu1 %v3928_v0  ;;  %v3881_v0 = vunpack.c.h.s8.bf16 %v3701_v53 }
 0x6a0   :  { %4401 = vmatprep.subr.bf16.mxu1 %v3923_v2  ;;  %v3700_v2 = vld [vmem:[#allocation2 + $0x1310] sm:$0xff] }
 0x6a1   :  { %4359 = vmatpush1.bf16.msra.mxu0 %v3832_v21  ;;  %v3976_v21 = vunpack.c.h.s8.bf16 %v3748_v32  ;;  %v3874_v22 = vunpack.c.l.s8.bf16 %v3700_v2 }
 0x6a2   :  { %4360 = vmatprep.subr.bf16.mxu0 %v3827_v19  ;;  %v3880_v19 = vunpack.c.h.s8.bf16 %v3700_v2  ;;  %v4558_v2 = vld [vmem:[#allocation2 + $0x16b0] sm:$0xff] }
 0x6a3   :  { %4402 = vmatpush1.bf16.msra.mxu1 %v3922_v60  ;;  %v3743_v60 = vld [vmem:[#allocation2 + $0x1468] sm:$0xff] }
 0x6a4   :  { %4403 = vmatprep.subr.bf16.mxu1 %v3917_v62  ;;  %v3970_v62 = vunpack.c.l.s8.bf16 %v3748_v32  ;;  %v3959_v11 = vunpack.c.l.s8.bf16 %v3743_v60  ;;  %v4031_v32 = vunpack.c.l.s8.bf16 %v3779_v25 }
 0x6a5   :  { %4361 = vmatpush1.bf16.msra.mxu0 %v3826_v58  ;;  %v3965_v58 = vunpack.c.h.s8.bf16 %v3743_v60  ;;  %v4714_v60 = vunpack.c.h.s8.bf16 %v4558_v2 }
 0x6a6   :  { %4362 = vmatprep.subr.bf16.mxu0 %v3821_v6  ;;  %v3742_v6 = vld [vmem:[#allocation2 + $0x1460] sm:$0xff] }
 0x6a7   :  { %4404 = vmatpush1.bf16.msra.mxu1 %v3916_v18  ;;  %v3869_v18 = vunpack.c.h.s8.bf16 %v3695_v45  ;;  %v4553_v45 = vld [vmem:[#allocation2 + $0x1688] sm:$0xff] }
 0x6a8   :  { %4405 = vmatprep.subr.bf16.mxu1 %v3911_v17  ;;  %v3694_v17 = vld [vmem:[#allocation2 + $0x12e0] sm:$0xff] }
 0x6a9   :  { %4363 = vmatpush1.bf16.msra.mxu0 %v3820_v56  ;;  %v3964_v56 = vunpack.c.h.s8.bf16 %v3742_v6  ;;  %v3862_v7 = vunpack.c.l.s8.bf16 %v3694_v17 }
 0x6aa   :  { %4364 = vmatprep.subr.bf16.mxu0 %v3815_v9  ;;  %v3868_v9 = vunpack.c.h.s8.bf16 %v3694_v17  ;;  %v4552_v17 = vld [vmem:[#allocation2 + $0x1680] sm:$0xff] }
 0x6ab   :  { %4406 = vmatpush1.bf16.msra.mxu1 %v3910_v40  ;;  %v4571_v40 = vld [vmem:[#allocation2 + $0x1718] sm:$0xff] }
 0x6ac   :  { %4407 = vmatprep.subr.bf16.mxu1 %v4001_v44  ;;  %v3958_v44 = vunpack.c.l.s8.bf16 %v3742_v6  ;;  %v4733_v5 = vunpack.c.l.s8.bf16 %v4571_v40  ;;  %v3767_v6 = vld [vmem:[#allocation2 + $0x1528] sm:$0xff] }
 0x6ad   :  { %4365 = vmatpush1.bf16.msra.mxu0 %v3814_v63  ;;  %v4739_v63 = vunpack.c.h.s8.bf16 %v4571_v40  ;;  %v4702_v40 = vunpack.c.h.s8.bf16 %v4552_v17 }
 0x6ae   :  { %4366 = vmatprep.subr.bf16.mxu0 %v3905_v20  ;;  %v4570_v20 = vld [vmem:[#allocation2 + $0x1710] sm:$0xff] }
 0x6af   :  { %4408 = vmatpush2.bf16.msra.mxu1 %v4000_v4  ;;  %v4049_v4 = vunpack.c.h.s8.bf16 %v3785_v33 }
 0x6b0   :  { %4409 = vmatprep.subr.bf16.mxu1 %v3995_v54  ;;  %v3784_v54 = vld [vmem:[#allocation2 + $0x15b0] sm:$0xff] }
 0x6b1   :  { %4367 = vmatpush2.bf16.msra.mxu0 %v3904_v43  ;;  %v4738_v43 = vunpack.c.h.s8.bf16 %v4570_v20 }
 0x6b2   :  { %4368 = vmatprep.subr.bf16.mxu0 %v3899_v8  ;;  %v4048_v8 = vunpack.c.h.s8.bf16 %v3784_v54 }
 0x6b3   :  { %4410 = vmatpush2.bf16.msra.mxu1 %v3994_v23  ;;  %v4565_v23 = vld [vmem:[#allocation2 + $0x16e8] sm:$0xff] }
 0x6b4   :  { %4411 = vmatprep.subr.bf16.mxu1 %v3989_v13  ;;  %v4043_v13 = vunpack.c.l.s8.bf16 %v3785_v33  ;;  %v4727_v15 = vunpack.c.h.s8.bf16 %v4565_v23  ;;  %v4721_v53 = vunpack.c.l.s8.bf16 %v4565_v23  ;;  %v4595_v33 = vld [vmem:[#allocation2 + $0x17d8] sm:$0xff] }
 0x6b5   :  { %4369 = vmatpush2.bf16.msra.mxu0 %v3898_v42  ;;  %v4732_v42 = vunpack.c.l.s8.bf16 %v4570_v20  ;;  %v3809_v20 = vld [vmem:[#allocation2 + $0x1678] sm:$0xff] }
 0x6b6   :  { %4370 = vmatprep.subr.bf16.mxu0 %v3893_v26 }
 0x6b7   :  { %4412 = vmatpush2.bf16.msra.mxu1 %v3988_v27  ;;  %v4564_v27 = vld [vmem:[#allocation2 + $0x16e0] sm:$0xff] }
 0x6b8   :  { %4413 = vmatprep.subr.bf16.mxu1 %v3983_v30  ;;  %v4042_v30 = vunpack.c.l.s8.bf16 %v3784_v54  ;;  %v4594_v54 = vld [vmem:[#allocation2 + $0x17d0] sm:$0xff] }
 0x6b9   :  { %4371 = vmatpush2.bf16.msra.mxu0 %v3892_v1  ;;  %v4786_v23 = vunpack.c.h.s8.bf16 %v4594_v54 }
 0x6ba   :  { %4372 = vmatprep.subr.bf16.mxu0 %v3887_v10  ;;  %v4726_v10 = vunpack.c.h.s8.bf16 %v4564_v27 }
 0x6bb   :  { %4414 = vmatpush2.bf16.msra.mxu1 %v3982_v28 }
 0x6bc   :  { %4415 = vmatprep.subr.bf16.mxu1 %v3977_v12  ;;  %v4559_v12 = vld [vmem:[#allocation2 + $0x16b8] sm:$0xff] }
 0x6bd   :  { %4373 = vmatpush2.bf16.msra.mxu0 %v3886_v39  ;;  %v3773_v39 = vld [vmem:[#allocation2 + $0x1558] sm:$0xff] }
 0x6be   :  { %4374 = vmatprep.subr.bf16.mxu0 %v3881_v0  ;;  %v4720_v0 = vunpack.c.l.s8.bf16 %v4564_v27  ;;  %v3803_v27 = vld [vmem:[#allocation2 + $0x1648] sm:$0xff] }
 0x6bf   :  { %4416 = vmatpush2.bf16.msra.mxu1 %v3976_v21  ;;  %v4030_v21 = vunpack.c.l.s8.bf16 %v3778_v50 }
 0x6c0   :  { %4417 = vmatprep.subr.bf16.mxu1 %v3971_v52  ;;  %v4025_v52 = vunpack.c.h.s8.bf16 %v3773_v39 }
 0x6c1   :  { %4375 = vmatpush2.bf16.msra.mxu0 %v3880_v19  ;;  %v3772_v19 = vld [vmem:[#allocation2 + $0x1550] sm:$0xff] }
 0x6c2   :  { %4376 = vmatprep.subr.bf16.mxu0 %v3875_v3  ;;  %v4709_v3 = vunpack.c.l.s8.bf16 %v4559_v12 }
 0x6c3   :  { %4418 = vmatpush2.bf16.msra.mxu1 %v3970_v62  ;;  %v4024_v62 = vunpack.c.h.s8.bf16 %v3772_v19 }
 0x6c4   :  { %4419 = vmatprep.subr.bf16.mxu1 %v3965_v58  ;;  %v4019_v58 = vunpack.c.l.s8.bf16 %v3773_v39  ;;  %v4079_v39 = vunpack.c.l.s8.bf16 %v3803_v27 }
 0x6c5   :  { %4377 = vmatpush2.bf16.msra.mxu0 %v3874_v22  ;;  %v4708_v22 = vunpack.c.l.s8.bf16 %v4558_v2 }
 0x6c6   :  { %4378 = vmatprep.subr.bf16.mxu0 %v3869_v18  ;;  %v4703_v18 = vunpack.c.h.s8.bf16 %v4553_v45 }
 0x6c7   :  { %4420 = vmatpush2.bf16.msra.mxu1 %v3964_v56  ;;  %v4018_v56 = vunpack.c.l.s8.bf16 %v3772_v19 }
 0x6c8   :  { %4421 = vmatprep.subr.bf16.mxu1 %v3959_v11  ;;  %v4013_v11 = vunpack.c.h.s8.bf16 %v3767_v6 }
 0x6c9   :  { %4379 = vmatpush2.bf16.msra.mxu0 %v3868_v9  ;;  %v3766_v9 = vld [vmem:[#allocation2 + $0x1520] sm:$0xff] }
 0x6ca   :  { %4380 = vmatprep.subr.bf16.mxu0 %v3863_v14  ;;  %v4697_v14 = vunpack.c.l.s8.bf16 %v4553_v45 }
 0x6cb   :  { %4422 = vmatpush2.bf16.msra.mxu1 %v3958_v44  ;;  %v4012_v44 = vunpack.c.h.s8.bf16 %v3766_v9 }
 0x6cc   :  { %4990 = vmatprep.subr.bf16.mxu1 %v4739_v63  ;;  %v4007_v63 = vunpack.c.l.s8.bf16 %v3767_v6 }
 0x6cd   :  { %4381 = vmatpush2.bf16.msra.mxu0 %v3862_v7  ;;  %v4696_v7 = vunpack.c.l.s8.bf16 %v4552_v17 }
 0x6ce   :  { %4424 = vmatmul.mubr.bf16.vlgmr.msra.gmra.mxu1 %v8878_v41  ;;  %v8915_v59 = vpop.f32.mrf.mxu1  ;;  %4432 = vmatprep.subr.bf16.mxu0 %v4049_v4  ;;  %v4037_v41 = vunpack.c.h.s8.bf16 %v3779_v25  ;;  %v4787_v4 = vunpack.c.h.s8.bf16 %v4595_v33 }
 0x6cf   :  { %4991 = vmatpush1.bf16.msra.mxu1 %v4738_v43  ;;  %v4006_v43 = vunpack.c.l.s8.bf16 %v3766_v9 }
 0x6d0   :  { %4383 = vmatmul.mubr.bf16.vlgmr.msra.gmra.mxu0 %v8846_v57  ;;  %v8918_v26 = vpop.f32.mrf.mxu1  ;;  %4992 = vmatprep.subr.bf16.mxu1 %v4733_v5  ;;  %v4036_v57 = vunpack.c.h.s8.bf16 %v3778_v50  ;;  %v4097_v5 = vunpack.c.h.s8.bf16 %v3809_v20 }
 0x6d1   :  { %4433 = vmatpush1.bf16.msra.mxu0 %v4048_v8  ;;  %4464 = vmatprep.mubr.bf16.mxu0 %v8896_v35  ;;  %v4715_v35 = vunpack.c.h.s8.bf16 %v4559_v12  ;;  %v3808_v8 = vld [vmem:[#allocation2 + $0x1670] sm:$0xff] }
 0x6d2   :  { %v4183_v1 = vpop.f32.mrf.mxu1  ;;  %4434 = vmatprep.subr.bf16.mxu0 %v4043_v13  ;;  %v4781_v13 = vunpack.c.l.s8.bf16 %v4595_v33  ;;  %v4096_v25 = vunpack.c.h.s8.bf16 %v3808_v8  ;;  %v4090_v50 = vunpack.c.l.s8.bf16 %v3808_v8 }
 0x6d3   :  { %4993 = vmatpush1.bf16.msra.mxu1 %v4732_v42  ;;  %v4589_v42 = vld [vmem:[#allocation2 + $0x17a8] sm:$0xff] }
 0x6d4   :  { %v4184_v28 = vpop.f32.mrf.mxu1  ;;  %4994 = vmatprep.subr.bf16.mxu1 %v4727_v15  ;;  %v4091_v15 = vunpack.c.l.s8.bf16 %v3809_v20  ;;  %v4775_v1 = vunpack.c.h.s8.bf16 %v4589_v42 }
 0x6d5   :  { %4435 = vmatpush1.bf16.msra.mxu0 %v4042_v30  ;;  %v4780_v30 = vunpack.c.l.s8.bf16 %v4594_v54  ;;  %v3802_v28 = vld [vmem:[#allocation2 + $0x1640] sm:$0xff] }
 0x6d6   :  { %4436 = vmatprep.subr.bf16.mxu0 %v4037_v41  ;;  %v4588_v41 = vld [vmem:[#allocation2 + $0x17a0] sm:$0xff]  ;;  %v4084_v12 = vunpack.c.h.s8.bf16 %v3802_v28 }
 0x6d7   :  { %4995 = vmatpush1.bf16.msra.mxu1 %v4726_v10  ;;  %v4085_v10 = vunpack.c.h.s8.bf16 %v3803_v27  ;;  %v4613_v27 = vld [vmem:[#allocation2 + $0x1868] sm:$0xff] }
 0x6d8   :  { %4996 = vmatprep.subr.bf16.mxu1 %v4721_v53  ;;  %v4774_v53 = vunpack.c.h.s8.bf16 %v4588_v41 }
 0x6d9   :  { %4437 = vmatpush1.bf16.msra.mxu0 %v4036_v57  ;;  %v4769_v57 = vunpack.c.l.s8.bf16 %v4589_v42 }
 0x6da   :  { %4438 = vmatprep.subr.bf16.mxu0 %v4031_v32  ;;  %v4583_v32 = vld [vmem:[#allocation2 + $0x1778] sm:$0xff] }
 0x6db   :  { %4997 = vmatpush1.bf16.msra.mxu1 %v4720_v0  ;;  %v3797_v0 = vld [vmem:[#allocation2 + $0x1618] sm:$0xff]  ;;  %v4763_v2 = vunpack.c.h.s8.bf16 %v4583_v32 }
 0x6dc   :  { %4998 = vmatprep.subr.bf16.mxu1 %v4715_v35  ;;  %v4768_v35 = vunpack.c.l.s8.bf16 %v4588_v41  ;;  %v4073_v19 = vunpack.c.h.s8.bf16 %v3797_v0  ;;  %v4067_v6 = vunpack.c.l.s8.bf16 %v3797_v0  ;;  %v4182_v41 = vadd.f32 %v8918_v26, %v8908_v61 }
 0x6dd   :  { %4439 = vmatpush1.bf16.msra.mxu0 %v4030_v21  ;;  %v4582_v21 = vld [vmem:[#allocation2 + $0x1770] sm:$0xff] }
 0x6de   :  { %4440 = vmatprep.subr.bf16.mxu0 %v4025_v52  ;;  %v4078_v52 = vunpack.c.l.s8.bf16 %v3802_v28 }
 0x6df   :  { %4999 = vmatpush1.bf16.msra.mxu1 %v4714_v60  ;;  %v3796_v60 = vld [vmem:[#allocation2 + $0x1610] sm:$0xff] }
 0x6e0   :  { %5000 = vmatprep.subr.bf16.mxu1 %v4709_v3  ;;  %v4762_v3 = vunpack.c.h.s8.bf16 %v4582_v21  ;;  %v4072_v45 = vunpack.c.h.s8.bf16 %v3796_v60 }
 0x6e1   :  { %4441 = vmatpush1.bf16.msra.mxu0 %v4024_v62  ;;  %v4757_v62 = vunpack.c.l.s8.bf16 %v4583_v32 }
 0x6e2   :  { %4442 = vmatprep.subr.bf16.mxu0 %v4019_v58  ;;  %v4577_v58 = vld [vmem:[#allocation2 + $0x1748] sm:$0xff] }
 0x6e3   :  { %5001 = vmatpush1.bf16.msra.mxu1 %v4708_v22  ;;  %v3791_v22 = vld [vmem:[#allocation2 + $0x15e8] sm:$0xff]  ;;  %v4751_v17 = vunpack.c.h.s8.bf16 %v4577_v58 }
 0x6e4   :  { %5002 = vmatprep.subr.bf16.mxu1 %v4703_v18  ;;  %v4756_v18 = vunpack.c.l.s8.bf16 %v4582_v21  ;;  %v4061_v9 = vunpack.c.h.s8.bf16 %v3791_v22 }
 0x6e5   :  { %4443 = vmatpush1.bf16.msra.mxu0 %v4018_v56  ;;  %v4576_v56 = vld [vmem:[#allocation2 + $0x1740] sm:$0xff] }
 0x6e6   :  { %4444 = vmatprep.subr.bf16.mxu0 %v4013_v11  ;;  %v4066_v11 = vunpack.c.l.s8.bf16 %v3796_v60  ;;  %v4744_v20 = vunpack.c.l.s8.bf16 %v4576_v56  ;;  %v4607_v60 = vld [vmem:[#allocation2 + $0x1838] sm:$0xff] }
 0x6e7   :  { %5003 = vmatpush1.bf16.msra.mxu1 %v4702_v40  ;;  %v3790_v40 = vld [vmem:[#allocation2 + $0x15e0] sm:$0xff] }
 0x6e8   :  { %5004 = vmatprep.subr.bf16.mxu1 %v4697_v14  ;;  %v4750_v14 = vunpack.c.h.s8.bf16 %v4576_v56  ;;  %v4060_v33 = vunpack.c.h.s8.bf16 %v3790_v40 }
 0x6e9   :  { %4445 = vmatpush1.bf16.msra.mxu0 %v4012_v44  ;;  %v4745_v44 = vunpack.c.l.s8.bf16 %v4577_v58 }
 0x6ea   :  { %4446 = vmatprep.subr.bf16.mxu0 %v4007_v63  ;;  %v4055_v63 = vunpack.c.l.s8.bf16 %v3791_v22  ;;  %v4606_v22 = vld [vmem:[#allocation2 + $0x1830] sm:$0xff] }
 0x6eb   :  { %5005 = vmatpush1.bf16.msra.mxu1 %v4696_v7  ;;  %v4619_v7 = vld [vmem:[#allocation2 + $0x1898] sm:$0xff] }
 0x6ec   :  { %5006 = vmatprep.subr.bf16.mxu1 %v4787_v4  ;;  %v4054_v4 = vunpack.c.l.s8.bf16 %v3790_v40  ;;  %v4835_v54 = vunpack.c.h.s8.bf16 %v4619_v7 }
 0x6ed   :  { %4447 = vmatpush1.bf16.msra.mxu0 %v4006_v43  ;;  %v4618_v43 = vld [vmem:[#allocation2 + $0x1890] sm:$0xff] }
 0x6ee   :  { %4448 = vmatprep.subr.bf16.mxu0 %v4097_v5  ;;  %v8921_v5 = vld [vmem:[#allocation4 + $0x18] sm:$0x3f]  ;;  %v4834_v8 = vunpack.c.h.s8.bf16 %v4618_v43 }
 0x6ef   :  { %5007 = vmatpush2.bf16.msra.mxu1 %v4786_v23  ;;  %v4479_v42 = vrot.slane %v8921_v5, %v8485_v34 }
 0x6f0   :  { %5008 = vmatprep.subr.bf16.mxu1 %v4781_v13  ;;  %v4829_v13 = vunpack.c.l.s8.bf16 %v4619_v7  ;;  %v4600_v7 = vld [vmem:[#allocation2 + $0x1800] sm:$0xff] }
 0x6f1   :  { %4449 = vmatpush2.bf16.msra.mxu0 %v4096_v25  ;;  %v4180_v25 = vadd.f32 %v8915_v59, %v8906_v16  ;;  %v4828_v16 = vunpack.c.l.s8.bf16 %v4618_v43 }
 0x6f2   :  { %4450 = vmatprep.subr.bf16.mxu0 %v4091_v15  ;;  %v8929_v15 = vld [vmem:[#allocation6 + $0x18] sm:$0x3f] }
 0x6f3   :  { %5009 = vmatpush2.bf16.msra.mxu1 %v4780_v30  ;;  %v4518_v59 = vrot.slane %v8929_v15, %v8485_v34 }
 0x6f4   :  { %5010 = vmatprep.subr.bf16.mxu1 %v4775_v1 }
 0x6f5   :  { %4451 = vmatpush2.bf16.msra.mxu0 %v4090_v50 }
 0x6f6   :  { %4452 = vmatprep.subr.bf16.mxu0 %v4085_v10  ;;  %v4483_v10 = vrot.slane %v8921_v5, %v8490_v38 }
 0x6f7   :  { %5011 = vmatpush2.bf16.msra.mxu1 %v4774_v53 }
 0x6f8   :  { %5012 = vmatprep.subr.bf16.mxu1 %v4769_v57  ;;  %v4823_v57 = vunpack.c.h.s8.bf16 %v4613_v27 }
 0x6f9   :  { %4453 = vmatpush2.bf16.msra.mxu0 %v4084_v12  ;;  %v4612_v12 = vld [vmem:[#allocation2 + $0x1860] sm:$0xff] }
 0x6fa   :  { %4454 = vmatprep.subr.bf16.mxu0 %v4079_v39  ;;  %v4522_v39 = vrot.slane %v8929_v15, %v8490_v38 }
 0x6fb   :  { %5013 = vmatpush2.bf16.msra.mxu1 %v4768_v35  ;;  %v4822_v35 = vunpack.c.h.s8.bf16 %v4612_v12 }
 0x6fc   :  { %5014 = vmatprep.subr.bf16.mxu1 %v4763_v2 }
 0x6fd   :  { %4455 = vmatpush2.bf16.msra.mxu0 %v4078_v52  ;;  %v4817_v52 = vunpack.c.l.s8.bf16 %v4613_v27 }
 0x6fe   :  { %4456 = vmatprep.subr.bf16.mxu0 %v4073_v19 }
 0x6ff   :  { %5015 = vmatpush2.bf16.msra.mxu1 %v4762_v3 }
 0x700   :  { %5016 = vmatprep.subr.bf16.mxu1 %v4757_v62  ;;  %v4816_v62 = vunpack.c.l.s8.bf16 %v4612_v12 }
 0x701   :  { %4457 = vmatpush2.bf16.msra.mxu0 %v4072_v45  ;;  %v4667_v45 = vld [vmem:[#allocation2 + $0x1a18] sm:$0xff] }
 0x702   :  { %4458 = vmatprep.subr.bf16.mxu0 %v4067_v6  ;;  %v4811_v6 = vunpack.c.h.s8.bf16 %v4607_v60  ;;  %v4925_v40 = vunpack.c.l.s8.bf16 %v4667_v45 }
 0x703   :  { %5017 = vmatpush2.bf16.msra.mxu1 %v4756_v18  ;;  %v4931_v18 = vunpack.c.h.s8.bf16 %v4667_v45 }
 0x704   :  { %5018 = vmatprep.subr.bf16.mxu1 %v4751_v17  ;;  %v4666_v17 = vld [vmem:[#allocation2 + $0x1a10] sm:$0xff] }
 0x705   :  { %4459 = vmatpush2.bf16.msra.mxu0 %v4066_v11  ;;  %v4930_v56 = vunpack.c.h.s8.bf16 %v4666_v17  ;;  %v4810_v11 = vunpack.c.h.s8.bf16 %v4606_v22 }
 0x706   :  { %4460 = vmatprep.subr.bf16.mxu0 %v4061_v9  ;;  %v4805_v9 = vunpack.c.l.s8.bf16 %v4607_v60 }
 0x707   :  { %5019 = vmatpush2.bf16.msra.mxu1 %v4750_v14  ;;  %v4601_v14 = vld [vmem:[#allocation2 + $0x1808] sm:$0xff] }
 0x708   :  { %5020 = vmatprep.subr.bf16.mxu1 %v4745_v44  ;;  %v4924_v44 = vunpack.c.l.s8.bf16 %v4666_v17  ;;  %v4630_v17 = vld [vmem:[#allocation2 + $0x18f0] sm:$0xff] }
 0x709   :  { %4461 = vmatpush2.bf16.msra.mxu0 %v4060_v33  ;;  %v4804_v33 = vunpack.c.l.s8.bf16 %v4606_v22  ;;  %v4691_v22 = vld [vmem:[#allocation2 + $0x1ad8] sm:$0xff] }
 0x70a   :  { %4462 = vmatprep.subr.bf16.mxu0 %v4055_v63  ;;  %v4661_v63 = vld [vmem:[#allocation2 + $0x19e8] sm:$0xff] }
 0x70b   :  { %5021 = vmatpush2.bf16.msra.mxu1 %v4744_v20  ;;  %v4799_v20 = vunpack.c.h.s8.bf16 %v4601_v14 }
 0x70c   :  { %5072 = vmatprep.subr.bf16.mxu1 %v4931_v18 }
 0x70d   :  { %4463 = vmatpush2.bf16.msra.mxu0 %v4054_v4  ;;  %v4919_v4 = vunpack.c.h.s8.bf16 %v4661_v63 }
 0x70e   :  { %v8923_v23 = vpop.f32.mrf.mxu1  ;;  %5031 = vmatprep.subr.bf16.mxu0 %v4835_v54  ;;  %v4660_v54 = vld [vmem:[#allocation2 + $0x19e0] sm:$0xff] }
 0x70f   :  { %v4918_v43 = vunpack.c.h.s8.bf16 %v4660_v54  ;;  %v4912_v27 = vunpack.c.l.s8.bf16 %v4660_v54  ;;  %v4624_v54 = vld [vmem:[#allocation2 + $0x18c0] sm:$0xff] }
 0x710   :  { %v8931_v30 = vpop.f32.mrf.mxu1  ;;  %4465 = vmatmul.mubr.bf16.vlgmr.msra.gmra.mxu0 %v8898_v48  ;;  %v4220_v1 = vpop.f32.mrf.mxu0 }
 0x711   :  { %v4221_v50 = vadd.f32 %v4220_v1, %v4180_v25  ;;  %5032 = vmatpush1.bf16.msra.mxu0 %v4834_v8  ;;  %v4798_v8 = vunpack.c.h.s8.bf16 %v4600_v7  ;;  %v4913_v25 = vunpack.c.l.s8.bf16 %v4661_v63  ;;  %v4792_v1 = vunpack.c.l.s8.bf16 %v4600_v7  ;;  %v4685_v7 = vld [vmem:[#allocation2 + $0x1aa8] sm:$0xff] }
 0x712   :  { %v4265_v28 = vpop.f32.mrf.mxu1  ;;  %v4222_v53 = vpop.f32.mrf.mxu0  ;;  %5033 = vmatprep.subr.bf16.mxu0 %v4829_v13  ;;  %v4793_v13 = vunpack.c.l.s8.bf16 %v4601_v14 }
 0x713   :  { %v4506_v32 = vmul.f32 %v4479_v42, %v4221_v50  ;;  %v4223_v48 = vadd.f32 %v4222_v53, %v4182_v41  ;;  %v4643_v42 = vld [vmem:[#allocation2 + $0x1958] sm:$0xff] }
 0x714   :  { %v4266_v61 = vpop.f32.mrf.mxu1  ;;  %v4224_v26 = vpop.f32.mrf.mxu0  ;;  %v4655_v41 = vld [vmem:[#allocation2 + $0x19b8] sm:$0xff]  ;;  %v4883_v50 = vunpack.c.h.s8.bf16 %v4643_v42 }
 0x715   :  { %v4507_v0 = vmul.f32 %v4483_v10, %v4223_v48  ;;  %5034 = vmatpush1.bf16.msra.mxu0 %v4828_v16  ;;  %v4545_v2 = vadd.f32 %v4518_v59, %v4506_v32  ;;  %v4642_v10 = vld [vmem:[#allocation2 + $0x1950] sm:$0xff]  ;;  %v4907_v16 = vunpack.c.h.s8.bf16 %v4655_v41  ;;  %v4901_v12 = vunpack.c.l.s8.bf16 %v4655_v41  ;;  %v4637_v32 = vld [vmem:[#allocation2 + $0x1928] sm:$0xff] }
 0x716   :  { %v4225_v21 = vpop.f32.mrf.mxu0  ;;  %5035 = vmatprep.subr.bf16.mxu0 %v4823_v57  ;;  %v4654_v59 = vld [vmem:[#allocation2 + $0x19b0] sm:$0xff]  ;;  %v4882_v53 = vunpack.c.h.s8.bf16 %v4642_v10  ;;  %v4877_v57 = vunpack.c.l.s8.bf16 %v4643_v42  ;;  %v4649_v61 = vld [vmem:[#allocation2 + $0x1988] sm:$0xff]  ;;  %v4871_v26 = vunpack.c.h.s8.bf16 %v4637_v32 }
 0x717   :  { %v4546_v19 = vadd.f32 %v4522_v39, %v4507_v0  ;;  %v8944_v58 = vpack.c.bf16 %v4545_v2, %v4545_v2  ;;  %v4906_v28 = vunpack.c.h.s8.bf16 %v4654_v59  ;;  %v4900_v48 = vunpack.c.l.s8.bf16 %v4654_v59  ;;  %v4636_v0 = vld [vmem:[#allocation2 + $0x1920] sm:$0xff] }
 0x718   :  { %v4876_v39 = vunpack.c.l.s8.bf16 %v4642_v10  ;;  %v4648_v2 = vld [vmem:[#allocation2 + $0x1980] sm:$0xff]  ;;  %v4889_v60 = vunpack.c.l.s8.bf16 %v4649_v61  ;;  %v4679_v10 = vld [vmem:[#allocation2 + $0x1a78] sm:$0xff] }
 0x719   :  { %v8942_v3 = vpack.c.bf16 %v4546_v19, %v4546_v19  ;;  %5036 = vmatpush1.bf16.msra.mxu0 %v4822_v35  ;;  %v4895_v35 = vunpack.c.h.s8.bf16 %v4649_v61  ;;  %v4894_v21 = vunpack.c.h.s8.bf16 %v4648_v2  ;;  %v4865_v19 = vunpack.c.l.s8.bf16 %v4637_v32 }
 0x71a   :  { %5037 = vmatprep.subr.bf16.mxu0 %v4817_v52  ;;  %v4870_v52 = vunpack.c.h.s8.bf16 %v4636_v0  ;;  %v4888_v45 = vunpack.c.l.s8.bf16 %v4648_v2  ;;  %v4955_v59 = vunpack.c.h.s8.bf16 %v4679_v10 }
 0x71b   :  { %5022 = vmatprep.mubr.bf16.mxu1 %v8942_v3 }
 0x71c   :  { %5023 = vmatmul.mubr.bf16.vlgmr.msra.gmra.mxu1 %v8944_v58 }
 0x71d   :  { %5038 = vmatpush1.bf16.msra.mxu0 %v4816_v62  ;;  %5073 = vmatpush1.bf16.msra.mxu1 %v4930_v56  ;;  %v4631_v62 = vld [vmem:[#allocation2 + $0x18f8] sm:$0xff]  ;;  %v4979_v56 = vunpack.c.h.s8.bf16 %v4691_v22 }
 0x71e   :  { %5039 = vmatprep.subr.bf16.mxu0 %v4811_v6  ;;  %5074 = vmatprep.subr.bf16.mxu1 %v4925_v40  ;;  %v4864_v6 = vunpack.c.l.s8.bf16 %v4636_v0  ;;  %v4859_v18 = vunpack.c.h.s8.bf16 %v4631_v62  ;;  %v4858_v40 = vunpack.c.h.s8.bf16 %v4630_v17  ;;  %v4853_v14 = vunpack.c.l.s8.bf16 %v4631_v62  ;;  %v4673_v0 = vld [vmem:[#allocation2 + $0x1a48] sm:$0xff] }
 0x71f   :  { %v4491_v62 = vrot.slane %v8921_v5, %v8523_v51 }
 0x721   :  { %5040 = vmatpush1.bf16.msra.mxu0 %v4810_v11  ;;  %5075 = vmatpush1.bf16.msra.mxu1 %v4924_v44  ;;  %v4690_v11 = vld [vmem:[#allocation2 + $0x1ad0] sm:$0xff]  ;;  %v4973_v44 = vunpack.c.l.s8.bf16 %v4691_v22 }
 0x722   :  { %5041 = vmatprep.subr.bf16.mxu0 %v4805_v9  ;;  %5076 = vmatprep.subr.bf16.mxu1 %v4919_v4  ;;  %v4978_v9 = vunpack.c.h.s8.bf16 %v4690_v11  ;;  %v4972_v63 = vunpack.c.l.s8.bf16 %v4690_v11 }
 0x725   :  { %5042 = vmatpush1.bf16.msra.mxu0 %v4804_v33  ;;  %5077 = vmatpush1.bf16.msra.mxu1 %v4918_v43  ;;  %v4625_v33 = vld [vmem:[#allocation2 + $0x18c8] sm:$0xff]  ;;  %v4967_v43 = vunpack.c.h.s8.bf16 %v4685_v7 }
 0x726   :  { %5043 = vmatprep.subr.bf16.mxu0 %v4799_v20  ;;  %5078 = vmatprep.subr.bf16.mxu1 %v4913_v25  ;;  %v4852_v20 = vunpack.c.l.s8.bf16 %v4630_v17  ;;  %v4847_v4 = vunpack.c.h.s8.bf16 %v4625_v33  ;;  %v4846_v25 = vunpack.c.h.s8.bf16 %v4624_v54  ;;  %v4841_v42 = vunpack.c.l.s8.bf16 %v4625_v33 }
 0x729   :  { %5044 = vmatpush1.bf16.msra.mxu0 %v4798_v8  ;;  %5079 = vmatpush1.bf16.msra.mxu1 %v4912_v27  ;;  %v4684_v8 = vld [vmem:[#allocation2 + $0x1aa0] sm:$0xff]  ;;  %v4961_v27 = vunpack.c.l.s8.bf16 %v4685_v7 }
 0x72a   :  { %5045 = vmatprep.subr.bf16.mxu0 %v4793_v13  ;;  %5080 = vmatprep.subr.bf16.mxu1 %v4907_v16  ;;  %v4966_v13 = vunpack.c.h.s8.bf16 %v4684_v8  ;;  %v4960_v41 = vunpack.c.l.s8.bf16 %v4684_v8  ;;  %v4567_v8 = vld [vmem:[#allocation2 + $0x16f8] sm:$0xff] }
 0x72d   :  { %5046 = vmatpush1.bf16.msra.mxu0 %v4792_v1  ;;  %5081 = vmatpush1.bf16.msra.mxu1 %v4906_v28  ;;  %v8948_v1 = vld [vmem:[#allocation2 + $0x1728] sm:$0xff]  ;;  %v4678_v28 = vld [vmem:[#allocation2 + $0x1a70] sm:$0xff] }
 0x72e   :  { %5047 = vmatprep.subr.bf16.mxu0 %v4883_v50  ;;  %5082 = vmatprep.subr.bf16.mxu1 %v4901_v12  ;;  %v4840_v50 = vunpack.c.l.s8.bf16 %v4624_v54  ;;  %v4741_v16 = vunpack.c.h.s8.bf16 %v8948_v1  ;;  %v4949_v12 = vunpack.c.l.s8.bf16 %v4679_v10  ;;  %v4948_v32 = vunpack.c.l.s8.bf16 %v4678_v28 }
 0x731   :  { %5048 = vmatpush2.bf16.msra.mxu0 %v4882_v53  ;;  %5083 = vmatpush1.bf16.msra.mxu1 %v4900_v48  ;;  %v4954_v53 = vunpack.c.h.s8.bf16 %v4678_v28 }
 0x732   :  { %5049 = vmatprep.subr.bf16.mxu0 %v4877_v57  ;;  %5084 = vmatprep.subr.bf16.mxu1 %v4895_v35 }
 0x735   :  { %5050 = vmatpush2.bf16.msra.mxu0 %v4876_v39  ;;  %5085 = vmatpush1.bf16.msra.mxu1 %v4894_v21  ;;  %v4943_v21 = vunpack.c.h.s8.bf16 %v4673_v0 }
 0x736   :  { %5051 = vmatprep.subr.bf16.mxu0 %v4871_v26  ;;  %5086 = vmatprep.subr.bf16.mxu1 %v4889_v60  ;;  %v4487_v26 = vrot.slane %v8921_v5, %v8520_v49 }
 0x739   :  { %5052 = vmatpush2.bf16.msra.mxu0 %v4870_v52  ;;  %5087 = vmatpush1.bf16.msra.mxu1 %v4888_v45  ;;  %v4672_v52 = vld [vmem:[#allocation2 + $0x1a40] sm:$0xff] }
 0x73a   :  { %5053 = vmatprep.subr.bf16.mxu0 %v4865_v19  ;;  %5088 = vmatprep.subr.bf16.mxu1 %v4979_v56  ;;  %v4942_v45 = vunpack.c.h.s8.bf16 %v4672_v52  ;;  %v4530_v56 = vrot.slane %v8929_v15, %v8523_v51 }
 0x73d   :  { %5054 = vmatpush2.bf16.msra.mxu0 %v4864_v6  ;;  %5089 = vmatpush2.bf16.msra.mxu1 %v4978_v9  ;;  %v4526_v6 = vrot.slane %v8929_v15, %v8520_v49  ;;  %v4937_v9 = vunpack.c.l.s8.bf16 %v4673_v0 }
 0x73e   :  { %5055 = vmatprep.subr.bf16.mxu0 %v4859_v18  ;;  %5090 = vmatprep.subr.bf16.mxu1 %v4973_v44  ;;  %v4572_v44 = vld [vmem:[#allocation2 + $0x1720] sm:$0xff] }
 0x741   :  { %5056 = vmatpush2.bf16.msra.mxu0 %v4858_v40  ;;  %5091 = vmatpush2.bf16.msra.mxu1 %v4972_v63  ;;  %v8961_v63 = vld [vmem:[#allocation2 + $0x18a8] sm:$0xff] }
 0x742   :  { %5057 = vmatprep.subr.bf16.mxu0 %v4853_v14  ;;  %5092 = vmatprep.subr.bf16.mxu1 %v4967_v43  ;;  %v4735_v43 = vunpack.c.l.s8.bf16 %v8948_v1 }
 0x745   :  { %5058 = vmatpush2.bf16.msra.mxu0 %v4852_v20  ;;  %5093 = vmatpush2.bf16.msra.mxu1 %v4966_v13  ;;  %v4837_v20 = vunpack.c.h.s8.bf16 %v8961_v63  ;;  %v4734_v13 = vunpack.c.l.s8.bf16 %v4572_v44 }
 0x746   :  { %5059 = vmatprep.subr.bf16.mxu0 %v4847_v4  ;;  %5094 = vmatprep.subr.bf16.mxu1 %v4961_v27  ;;  %v4740_v4 = vunpack.c.h.s8.bf16 %v4572_v44 }
 0x749   :  { %5060 = vmatpush2.bf16.msra.mxu0 %v4846_v25  ;;  %5095 = vmatpush2.bf16.msra.mxu1 %v4960_v41  ;;  %v4729_v25 = vunpack.c.h.s8.bf16 %v4567_v8  ;;  %v4723_v41 = vunpack.c.l.s8.bf16 %v4567_v8 }
 0x74a   :  { %5061 = vmatprep.subr.bf16.mxu0 %v4841_v42  ;;  %5096 = vmatprep.subr.bf16.mxu1 %v4955_v59  ;;  %v4566_v42 = vld [vmem:[#allocation2 + $0x16f0] sm:$0xff] }
 0x74b   :  { %v4728_v27 = vunpack.c.h.s8.bf16 %v4566_v42  ;;  %v4722_v1 = vunpack.c.l.s8.bf16 %v4566_v42 }
 0x74d   :  { %5062 = vmatpush2.bf16.msra.mxu0 %v4840_v50  ;;  %5097 = vmatpush2.bf16.msra.mxu1 %v4954_v53  ;;  %v4561_v50 = vld [vmem:[#allocation2 + $0x16c8] sm:$0xff]  ;;  %v4555_v53 = vld [vmem:[#allocation2 + $0x1698] sm:$0xff] }
 0x74e   :  { %v4343_v57 = vpop.f32.mrf.mxu1  ;;  %5113 = vmatprep.subr.bf16.mxu0 %v4741_v16  ;;  %5098 = vmatprep.subr.bf16.mxu1 %v4949_v12  ;;  %v4717_v10 = vunpack.c.h.s8.bf16 %v4561_v50  ;;  %v4560_v16 = vld [vmem:[#allocation2 + $0x16c0] sm:$0xff]  ;;  %v4711_v28 = vunpack.c.l.s8.bf16 %v4561_v50  ;;  %v4705_v12 = vunpack.c.h.s8.bf16 %v4555_v53 }
 0x74f   :  { %v4716_v59 = vunpack.c.h.s8.bf16 %v4560_v16 }
 0x750   :  { %v4302_v48 = vpop.f32.mrf.mxu0  ;;  %v4345_v39 = vpop.f32.mrf.mxu1 }
 0x751   :  { %v4303_v61 = vadd.f32 %v4302_v48, %v8923_v23  ;;  %5099 = vmatpush2.bf16.msra.mxu1 %v4948_v32  ;;  %v4554_v32 = vld [vmem:[#allocation2 + $0x1690] sm:$0xff] }
 0x752   :  { %v4304_v35 = vpop.f32.mrf.mxu0  ;;  %v4347_v2 = vpop.f32.mrf.mxu1  ;;  %5100 = vmatprep.subr.bf16.mxu1 %v4943_v21  ;;  %v4704_v48 = vunpack.c.h.s8.bf16 %v4554_v32 }
 0x753   :  { %v4344_v19 = vadd.f32 %v4343_v57, %v4303_v61  ;;  %v4305_v60 = vadd.f32 %v4304_v35, %v8931_v30  ;;  %v4936_v30 = vunpack.c.l.s8.bf16 %v4672_v52  ;;  %v4710_v57 = vunpack.c.l.s8.bf16 %v4560_v16  ;;  %v4597_v61 = vld [vmem:[#allocation2 + $0x17e8] sm:$0xff]  ;;  %v4596_v35 = vld [vmem:[#allocation2 + $0x17e0] sm:$0xff]  ;;  %v4591_v52 = vld [vmem:[#allocation2 + $0x17b8] sm:$0xff] }
 0x754   :  { %v4306_v23 = vpop.f32.mrf.mxu0  ;;  %v4348_v22 = vpop.f32.mrf.mxu1  ;;  %v4789_v0 = vunpack.c.h.s8.bf16 %v4597_v61  ;;  %v4788_v2 = vunpack.c.h.s8.bf16 %v4596_v35  ;;  %v4783_v21 = vunpack.c.l.s8.bf16 %v4597_v61  ;;  %v4668_v16 = vld [vmem:[#allocation2 + $0x1a20] sm:$0xff]  ;;  %v4657_v61 = vld [vmem:[#allocation2 + $0x19c8] sm:$0xff] }
 0x755   :  { %v4508_v18 = vmul.f32 %v4487_v26, %v4344_v19  ;;  %v4346_v17 = vadd.f32 %v4345_v39, %v4305_v60  ;;  %5101 = vmatpush2.bf16.msra.mxu1 %v4942_v45  ;;  %v4699_v39 = vunpack.c.l.s8.bf16 %v4555_v53  ;;  %v4698_v26 = vunpack.c.l.s8.bf16 %v4554_v32  ;;  %v4585_v23 = vld [vmem:[#allocation2 + $0x1788] sm:$0xff]  ;;  %v4663_v53 = vld [vmem:[#allocation2 + $0x19f8] sm:$0xff]  ;;  %v4662_v32 = vld [vmem:[#allocation2 + $0x19f0] sm:$0xff] }
 0x756   :  { %v4307_v11 = vpop.f32.mrf.mxu0  ;;  %5102 = vmatprep.subr.bf16.mxu1 %v4937_v9  ;;  %v4782_v19 = vunpack.c.l.s8.bf16 %v4596_v35  ;;  %v4777_v60 = vunpack.c.h.s8.bf16 %v4591_v52  ;;  %v4579_v9 = vld [vmem:[#allocation2 + $0x1758] sm:$0xff]  ;;  %v4656_v35 = vld [vmem:[#allocation2 + $0x19c0] sm:$0xff] }
 0x757   :  { %v4509_v40 = vmul.f32 %v4491_v62, %v4346_v17  ;;  %v4547_v14 = vadd.f32 %v4526_v6, %v4508_v18  ;;  %v4590_v62 = vld [vmem:[#allocation2 + $0x17b0] sm:$0xff]  ;;  %v4771_v6 = vunpack.c.l.s8.bf16 %v4591_v52  ;;  %v4765_v18 = vunpack.c.h.s8.bf16 %v4585_v23  ;;  %v4584_v17 = vld [vmem:[#allocation2 + $0x1780] sm:$0xff]  ;;  %v4651_v52 = vld [vmem:[#allocation2 + $0x1998] sm:$0xff] }
 0x758   :  { %v4776_v45 = vunpack.c.h.s8.bf16 %v4590_v62  ;;  %v4770_v22 = vunpack.c.l.s8.bf16 %v4590_v62  ;;  %v4759_v11 = vunpack.c.l.s8.bf16 %v4585_v23  ;;  %v4650_v62 = vld [vmem:[#allocation2 + $0x1990] sm:$0xff]  ;;  %v4693_v23 = vld [vmem:[#allocation2 + $0x1ae8] sm:$0xff] }
 0x759   :  { %v4548_v33 = vadd.f32 %v4530_v56, %v4509_v40  ;;  %5103 = vmatpush2.bf16.msra.mxu1 %v4936_v30  ;;  %v8966_v54 = vpack.c.bf16 %v4547_v14, %v4547_v14  ;;  %v4764_v56 = vunpack.c.h.s8.bf16 %v4584_v17  ;;  %v4758_v30 = vunpack.c.l.s8.bf16 %v4584_v17  ;;  %v4692_v17 = vld [vmem:[#allocation2 + $0x1ae0] sm:$0xff] }
 0x75a   :  { %5154 = vmatprep.subr.bf16.mxu1 %v4837_v20  ;;  %v4578_v20 = vld [vmem:[#allocation2 + $0x1750] sm:$0xff] }
 0x75b   :  { %v8964_v7 = vpack.c.bf16 %v4548_v33, %v4548_v33  ;;  %v4753_v33 = vunpack.c.h.s8.bf16 %v4579_v9 }
 0x75d   :  { %5063 = vmatprep.mubr.bf16.mxu0 %v8964_v7 }
 0x75e   :  { %5064 = vmatmul.mubr.bf16.vlgmr.msra.gmra.mxu0 %v8966_v54 }
 0x75f   :  { %5114 = vmatpush1.bf16.msra.mxu0 %v4740_v4  ;;  %5145 = vmatprep.mubr.bf16.mxu0 %v8942_v3 }
 0x760   :  { %5115 = vmatprep.subr.bf16.mxu0 %v4735_v43 }
 0x763   :  { %5116 = vmatpush1.bf16.msra.mxu0 %v4734_v13  ;;  %v4752_v13 = vunpack.c.h.s8.bf16 %v4578_v20 }
 0x764   :  { %5117 = vmatprep.subr.bf16.mxu0 %v4729_v25 }
 0x767   :  { %5118 = vmatpush1.bf16.msra.mxu0 %v4728_v27  ;;  %v4747_v27 = vunpack.c.l.s8.bf16 %v4579_v9  ;;  %v4687_v9 = vld [vmem:[#allocation2 + $0x1ab8] sm:$0xff] }
 0x768   :  { %5119 = vmatprep.subr.bf16.mxu0 %v4723_v41  ;;  %v4669_v41 = vld [vmem:[#allocation2 + $0x1a28] sm:$0xff] }
 0x76b   :  { %5120 = vmatpush1.bf16.msra.mxu0 %v4722_v1  ;;  %v4746_v1 = vunpack.c.l.s8.bf16 %v4578_v20  ;;  %v4963_v20 = vunpack.c.l.s8.bf16 %v4687_v9 }
 0x76c   :  { %5121 = vmatprep.subr.bf16.mxu0 %v4717_v10  ;;  %v4933_v10 = vunpack.c.h.s8.bf16 %v4669_v41 }
 0x76f   :  { %5122 = vmatpush1.bf16.msra.mxu0 %v4716_v59  ;;  %v4932_v59 = vunpack.c.h.s8.bf16 %v4668_v16 }
 0x770   :  { %5123 = vmatprep.subr.bf16.mxu0 %v4711_v28  ;;  %v4927_v28 = vunpack.c.l.s8.bf16 %v4669_v41 }
 0x773   :  { %5124 = vmatpush1.bf16.msra.mxu0 %v4710_v57  ;;  %v4926_v57 = vunpack.c.l.s8.bf16 %v4668_v16 }
 0x774   :  { %5125 = vmatprep.subr.bf16.mxu0 %v4705_v12  ;;  %v4921_v12 = vunpack.c.h.s8.bf16 %v4663_v53 }
 0x777   :  { %5126 = vmatpush1.bf16.msra.mxu0 %v4704_v48  ;;  %v4920_v48 = vunpack.c.h.s8.bf16 %v4662_v32 }
 0x778   :  { %5127 = vmatprep.subr.bf16.mxu0 %v4699_v39  ;;  %v4915_v39 = vunpack.c.l.s8.bf16 %v4663_v53 }
 0x77b   :  { %5128 = vmatpush1.bf16.msra.mxu0 %v4698_v26  ;;  %v4914_v26 = vunpack.c.l.s8.bf16 %v4662_v32  ;;  %v4534_v32 = vrot.slane %v8929_v15, %v8554_v29 }
 0x77c   :  { %5129 = vmatprep.subr.bf16.mxu0 %v4789_v0  ;;  %v4909_v0 = vunpack.c.h.s8.bf16 %v4657_v61 }
 0x77f   :  { %5130 = vmatpush2.bf16.msra.mxu0 %v4788_v2  ;;  %v4908_v2 = vunpack.c.h.s8.bf16 %v4656_v35 }
 0x780   :  { %5131 = vmatprep.subr.bf16.mxu0 %v4783_v21  ;;  %v4903_v21 = vunpack.c.l.s8.bf16 %v4657_v61 }
 0x783   :  { %5132 = vmatpush2.bf16.msra.mxu0 %v4782_v19  ;;  %v4902_v19 = vunpack.c.l.s8.bf16 %v4656_v35 }
 0x784   :  { %5133 = vmatprep.subr.bf16.mxu0 %v4777_v60  ;;  %v4897_v60 = vunpack.c.h.s8.bf16 %v4651_v52 }
 0x787   :  { %5134 = vmatpush2.bf16.msra.mxu0 %v4776_v45  ;;  %v4896_v45 = vunpack.c.h.s8.bf16 %v4650_v62 }
 0x788   :  { %5135 = vmatprep.subr.bf16.mxu0 %v4771_v6  ;;  %v4891_v6 = vunpack.c.l.s8.bf16 %v4651_v52 }
 0x78b   :  { %5136 = vmatpush2.bf16.msra.mxu0 %v4770_v22  ;;  %v4890_v22 = vunpack.c.l.s8.bf16 %v4650_v62 }
 0x78c   :  { %5137 = vmatprep.subr.bf16.mxu0 %v4765_v18  ;;  %v4981_v18 = vunpack.c.h.s8.bf16 %v4693_v23 }
 0x78e   :  { %v4425_v40 = vpop.f32.mrf.mxu1 }
 0x78f   :  { %5138 = vmatpush2.bf16.msra.mxu0 %v4764_v56  ;;  %v4980_v56 = vunpack.c.h.s8.bf16 %v4692_v17 }
 0x790   :  { %v4384_v14 = vpop.f32.mrf.mxu0  ;;  %v8972_v44 = vpop.f32.mrf.mxu1  ;;  %5139 = vmatprep.subr.bf16.mxu0 %v4759_v11  ;;  %v4975_v11 = vunpack.c.l.s8.bf16 %v4693_v23 }
 0x791   :  { %v8974_v4 = vadd.f32 %v4425_v40, %v4384_v14  ;;  %v4974_v40 = vunpack.c.l.s8.bf16 %v4692_v17  ;;  %v4686_v14 = vld [vmem:[#allocation2 + $0x1ab0] sm:$0xff]  ;;  %v4831_v17 = vunpack.c.l.s8.bf16 %v8961_v63 }
 0x792   :  { %v8976_v43 = vpop.f32.mrf.mxu0  ;;  %v4429_v8 = vpop.f32.mrf.mxu1 }
 0x793   :  { %5140 = vmatpush2.bf16.msra.mxu0 %v4758_v30  ;;  %v4969_v30 = vunpack.c.h.s8.bf16 %v4687_v9  ;;  %v4681_v8 = vld [vmem:[#allocation2 + $0x1a88] sm:$0xff]  ;;  %v4428_v53 = vadd.f32 %v8972_v44, %v8976_v43 }
 0x794   :  { %v4388_v25 = vpop.f32.mrf.mxu0  ;;  %v4430_v42 = vpop.f32.mrf.mxu1  ;;  %5141 = vmatprep.subr.bf16.mxu0 %v4753_v33  ;;  %v4968_v33 = vunpack.c.h.s8.bf16 %v4686_v14  ;;  %v4951_v41 = vunpack.c.l.s8.bf16 %v4681_v8  ;;  %v4617_v9 = vld [vmem:[#allocation2 + $0x1888] sm:$0xff] }
 0x795   :  { %v4957_v25 = vunpack.c.h.s8.bf16 %v4681_v8  ;;  %v4680_v42 = vld [vmem:[#allocation2 + $0x1a80] sm:$0xff]  ;;  %v4827_v63 = vunpack.c.h.s8.bf16 %v4617_v9 }
 0x796   :  { %v4389_v50 = vpop.f32.mrf.mxu0  ;;  %v4616_v8 = vld [vmem:[#allocation2 + $0x1880] sm:$0xff] }
 0x797   :  { %5142 = vmatpush2.bf16.msra.mxu0 %v4752_v13  ;;  %v4962_v13 = vunpack.c.l.s8.bf16 %v4686_v14  ;;  %v4675_v50 = vld [vmem:[#allocation2 + $0x1a58] sm:$0xff]  ;;  %v4614_v14 = vld [vmem:[#allocation2 + $0x1870] sm:$0xff] }
 0x798   :  { %5143 = vmatprep.subr.bf16.mxu0 %v4747_v27  ;;  %v4956_v27 = vunpack.c.h.s8.bf16 %v4680_v42 }
 0x79b   :  { %5144 = vmatpush2.bf16.msra.mxu0 %v4746_v1  ;;  %v4495_v1 = vrot.slane %v8921_v5, %v8554_v29 }
 0x79c   :  { %5195 = vmatprep.subr.bf16.mxu0 %v4933_v10  ;;  %v4950_v10 = vunpack.c.l.s8.bf16 %v4680_v42 }
 0x79e   :  { %5146 = vmatmul.mubr.bf16.vlgmr.msra.gmra.mxu0 %v8944_v58 }
 0x79f   :  { %5196 = vmatpush1.bf16.msra.mxu0 %v4932_v59  ;;  %v4945_v59 = vunpack.c.h.s8.bf16 %v4675_v50 }
 0x7a0   :  { %5197 = vmatprep.subr.bf16.mxu0 %v4927_v28  ;;  %v4674_v28 = vld [vmem:[#allocation2 + $0x1a50] sm:$0xff] }
 0x7a3   :  { %5198 = vmatpush1.bf16.msra.mxu0 %v4926_v57 }
 0x7a4   :  { %5199 = vmatprep.subr.bf16.mxu0 %v4921_v12  ;;  %v4499_v12 = vrot.slane %v8921_v5, %v8557_v31  ;;  %v4938_v5 = vunpack.c.l.s8.bf16 %v4674_v28 }
 0x7a7   :  { %5200 = vmatpush1.bf16.msra.mxu0 %v4920_v48 }
 0x7a8   :  { %5201 = vmatprep.subr.bf16.mxu0 %v4915_v39 }
 0x7ab   :  { %5202 = vmatpush1.bf16.msra.mxu0 %v4914_v26  ;;  %v4944_v26 = vunpack.c.h.s8.bf16 %v4674_v28 }
 0x7ac   :  { %5203 = vmatprep.subr.bf16.mxu0 %v4909_v0  ;;  %v4538_v0 = vrot.slane %v8929_v15, %v8557_v31 }
 0x7af   :  { %5204 = vmatpush1.bf16.msra.mxu0 %v4908_v2  ;;  %v4939_v2 = vunpack.c.l.s8.bf16 %v4675_v50  ;;  %v4821_v50 = vunpack.c.l.s8.bf16 %v4617_v9 }
 0x7b0   :  { %5205 = vmatprep.subr.bf16.mxu0 %v4903_v21  ;;  %v4620_v21 = vld [vmem:[#allocation2 + $0x18a0] sm:$0xff] }
 0x7b3   :  { %5206 = vmatpush1.bf16.msra.mxu0 %v4902_v19  ;;  %v4623_v19 = vld [vmem:[#allocation2 + $0x18b8] sm:$0xff] }
 0x7b4   :  { %5207 = vmatprep.subr.bf16.mxu0 %v4897_v60  ;;  %v4622_v60 = vld [vmem:[#allocation2 + $0x18b0] sm:$0xff]  ;;  %v4839_v23 = vunpack.c.h.s8.bf16 %v4623_v19 }
 0x7b5   :  { %v4838_v15 = vunpack.c.h.s8.bf16 %v4622_v60 }
 0x7b7   :  { %5208 = vmatpush1.bf16.msra.mxu0 %v4896_v45  ;;  %v4836_v45 = vunpack.c.h.s8.bf16 %v4620_v21 }
 0x7b8   :  { %5209 = vmatprep.subr.bf16.mxu0 %v4891_v6 }
 0x7bb   :  { %5210 = vmatpush1.bf16.msra.mxu0 %v4890_v22  ;;  %v4615_v22 = vld [vmem:[#allocation2 + $0x1878] sm:$0xff] }
 0x7bc   :  { %5211 = vmatprep.subr.bf16.mxu0 %v4981_v18  ;;  %v4819_v42 = vunpack.c.l.s8.bf16 %v4615_v22 }
 0x7bf   :  { %5212 = vmatpush2.bf16.msra.mxu0 %v4980_v56  ;;  %v4833_v56 = vunpack.c.l.s8.bf16 %v4623_v19 }
 0x7c0   :  { %5213 = vmatprep.subr.bf16.mxu0 %v4975_v11  ;;  %v4830_v11 = vunpack.c.l.s8.bf16 %v4620_v21 }
 0x7c3   :  { %5214 = vmatpush2.bf16.msra.mxu0 %v4974_v40 }
 0x7c4   :  { %5215 = vmatprep.subr.bf16.mxu0 %v4969_v30  ;;  %v4825_v30 = vunpack.c.h.s8.bf16 %v4615_v22 }
 0x7c7   :  { %5216 = vmatpush2.bf16.msra.mxu0 %v4968_v33  ;;  %v4832_v33 = vunpack.c.l.s8.bf16 %v4622_v60 }
 0x7c8   :  { %5217 = vmatprep.subr.bf16.mxu0 %v4963_v20 }
 0x7cb   :  { %5218 = vmatpush2.bf16.msra.mxu0 %v4962_v13  ;;  %v4824_v13 = vunpack.c.h.s8.bf16 %v4614_v14 }
 0x7cc   :  { %5219 = vmatprep.subr.bf16.mxu0 %v4957_v25 }
 0x7cf   :  { %5220 = vmatpush2.bf16.msra.mxu0 %v4956_v27  ;;  %v4826_v27 = vunpack.c.h.s8.bf16 %v4616_v8 }
 0x7d0   :  { %v4466_v16 = vpop.f32.mrf.mxu0  ;;  %5221 = vmatprep.subr.bf16.mxu0 %v4951_v41  ;;  %v4609_v41 = vld [vmem:[#allocation2 + $0x1848] sm:$0xff] }
 0x7d1   :  { %v4467_v57 = vadd.f32 %v4466_v16, %v8974_v4  ;;  %v4608_v16 = vld [vmem:[#allocation2 + $0x1840] sm:$0xff] }
 0x7d2   :  { %v4468_v48 = vpop.f32.mrf.mxu0 }
 0x7d3   :  { %v4510_v39 = vmul.f32 %v4495_v1, %v4467_v57  ;;  %v4469_v61 = vadd.f32 %v4468_v48, %v4428_v53  ;;  %5222 = vmatpush2.bf16.msra.mxu0 %v4950_v10  ;;  %v4818_v1 = vunpack.c.l.s8.bf16 %v4614_v14  ;;  %v4611_v10 = vld [vmem:[#allocation2 + $0x1858] sm:$0xff]  ;;  %v4610_v53 = vld [vmem:[#allocation2 + $0x1850] sm:$0xff]  ;;  %v4812_v57 = vunpack.c.h.s8.bf16 %v4608_v16 }
 0x7d4   :  { %v4470_v35 = vpop.f32.mrf.mxu0  ;;  %5223 = vmatprep.subr.bf16.mxu0 %v4945_v59  ;;  %v4820_v59 = vunpack.c.l.s8.bf16 %v4616_v8  ;;  %v4815_v28 = vunpack.c.h.s8.bf16 %v4611_v10  ;;  %v4603_v48 = vld [vmem:[#allocation2 + $0x1818] sm:$0xff] }
 0x7d5   :  { %v4511_v44 = vmul.f32 %v4499_v12, %v4469_v61  ;;  %v4549_v43 = vadd.f32 %v4534_v32, %v4510_v39  ;;  %v4807_v12 = vunpack.c.l.s8.bf16 %v4609_v41  ;;  %v4814_v32 = vunpack.c.h.s8.bf16 %v4610_v53  ;;  %v4602_v35 = vld [vmem:[#allocation2 + $0x1810] sm:$0xff]  ;;  %v4639_v14 = vld [vmem:[#allocation2 + $0x1938] sm:$0xff] }
 0x7d6   :  { %v4471_v4 = vpop.f32.mrf.mxu0  ;;  %v4809_v39 = vunpack.c.l.s8.bf16 %v4611_v10  ;;  %v4806_v61 = vunpack.c.l.s8.bf16 %v4608_v16  ;;  %v4795_v21 = vunpack.c.l.s8.bf16 %v4603_v48  ;;  %v4794_v60 = vunpack.c.l.s8.bf16 %v4602_v35  ;;  %v4633_v10 = vld [vmem:[#allocation2 + $0x1908] sm:$0xff] }
 0x7d7   :  { %5224 = vmatpush2.bf16.msra.mxu0 %v4944_v26  ;;  %v4550_v52 = vadd.f32 %v4538_v0, %v4511_v44  ;;  %v8992_v6 = vpack.c.bf16 %v4549_v43, %v4549_v43  ;;  %v4605_v26 = vld [vmem:[#allocation2 + $0x1828] sm:$0xff]  ;;  %v4801_v0 = vunpack.c.h.s8.bf16 %v4603_v48  ;;  %v4604_v43 = vld [vmem:[#allocation2 + $0x1820] sm:$0xff]  ;;  %v4800_v4 = vunpack.c.h.s8.bf16 %v4602_v35 }
 0x7d8   :  { %5225 = vmatprep.subr.bf16.mxu0 %v4939_v2  ;;  %v4808_v2 = vunpack.c.l.s8.bf16 %v4610_v53  ;;  %v4803_v44 = vunpack.c.h.s8.bf16 %v4605_v26  ;;  %v4797_v19 = vunpack.c.l.s8.bf16 %v4605_v26  ;;  %v4796_v22 = vunpack.c.l.s8.bf16 %v4604_v43  ;;  %v4632_v53 = vld [vmem:[#allocation2 + $0x1900] sm:$0xff]  ;;  %v4627_v26 = vld [vmem:[#allocation2 + $0x18d8] sm:$0xff] }
 0x7d9   :  { %v8990_v62 = vpack.c.bf16 %v4550_v52, %v4550_v52  ;;  %v4645_v52 = vld [vmem:[#allocation2 + $0x1968] sm:$0xff]  ;;  %v4873_v8 = vunpack.c.h.s8.bf16 %v4639_v14  ;;  %v4860_v48 = vunpack.c.h.s8.bf16 %v4632_v53  ;;  %v4854_v35 = vunpack.c.l.s8.bf16 %v4632_v53 }
 0x7da   :  { %v4879_v9 = vunpack.c.l.s8.bf16 %v4645_v52 }
 0x7db   :  { %5226 = vmatpush2.bf16.msra.mxu0 %v4938_v5  ;;  %5104 = vmatprep.mubr.bf16.mxu1 %v8990_v62  ;;  %v4802_v5 = vunpack.c.h.s8.bf16 %v4604_v43  ;;  %v4626_v43 = vld [vmem:[#allocation2 + $0x18d0] sm:$0xff] }
 0x7dc   :  { %5227 = vmatprep.mubr.bf16.mxu0 %v8990_v62  ;;  %5105 = vmatmul.mubr.bf16.vlgmr.msra.gmra.mxu1 %v8992_v6  ;;  %v8997_v18 = vpop.f32.mrf.mxu1 }
 0x7dd   :  { %5155 = vmatpush1.bf16.msra.mxu1 %v4836_v45  ;;  %5186 = vmatprep.mubr.bf16.mxu1 %v8964_v7  ;;  %v4647_v45 = vld [vmem:[#allocation2 + $0x1978] sm:$0xff] }
 0x7de   :  { %5228 = vmatmul.mubr.bf16.vlgmr.msra.gmra.mxu0 %v8992_v6  ;;  %5277 = vmatprep.subr.bf16.mxu0 %v4839_v23  ;;  %v9002_v40 = vpop.f32.mrf.mxu1  ;;  %v4885_v23 = vunpack.c.h.s8.bf16 %v4645_v52  ;;  %v4848_v52 = vunpack.c.h.s8.bf16 %v4626_v43 }
 0x7df   :  { %5278 = vmatpush1.bf16.msra.mxu0 %v4838_v15  ;;  %5309 = vmatprep.mubr.bf16.mxu0 %v8964_v7  ;;  %v4813_v7 = vunpack.c.h.s8.bf16 %v4609_v41  ;;  %v4644_v15 = vld [vmem:[#allocation2 + $0x1960] sm:$0xff] }
 0x7e0   :  { %5156 = vmatprep.subr.bf16.mxu1 %v4831_v17  ;;  %v5028_v20 = vpop.f32.mrf.mxu1  ;;  %5279 = vmatprep.subr.bf16.mxu0 %v4833_v56  ;;  %v4887_v17 = vunpack.c.h.s8.bf16 %v4647_v45  ;;  %v4646_v56 = vld [vmem:[#allocation2 + $0x1970] sm:$0xff] }
 0x7e1   :  { %5157 = vmatpush1.bf16.msra.mxu1 %v4830_v11  ;;  %v4884_v11 = vunpack.c.h.s8.bf16 %v4644_v15  ;;  %v4878_v20 = vunpack.c.l.s8.bf16 %v4644_v15  ;;  %v4842_v15 = vunpack.c.l.s8.bf16 %v4626_v43 }
 0x7e2   :  { %v5029_v25 = vpop.f32.mrf.mxu1  ;;  %5158 = vmatprep.subr.bf16.mxu1 %v4825_v30  ;;  %v4886_v30 = vunpack.c.h.s8.bf16 %v4646_v56 }
 0x7e3   :  { %5280 = vmatpush1.bf16.msra.mxu0 %v4832_v33  ;;  %v4881_v33 = vunpack.c.l.s8.bf16 %v4647_v45  ;;  %v4880_v25 = vunpack.c.l.s8.bf16 %v4646_v56  ;;  %v4575_v45 = vld [vmem:[#allocation2 + $0x1738] sm:$0xff]  ;;  %v4574_v56 = vld [vmem:[#allocation2 + $0x1730] sm:$0xff] }
 0x7e4   :  { %5281 = vmatprep.subr.bf16.mxu0 %v4827_v63  ;;  %v4641_v63 = vld [vmem:[#allocation2 + $0x1948] sm:$0xff] }
 0x7e5   :  { %5159 = vmatpush1.bf16.msra.mxu1 %v4824_v13  ;;  %v4638_v13 = vld [vmem:[#allocation2 + $0x1930] sm:$0xff] }
 0x7e6   :  { %5160 = vmatprep.subr.bf16.mxu1 %v4819_v42  ;;  %v4875_v42 = vunpack.c.h.s8.bf16 %v4641_v63  ;;  %v4872_v41 = vunpack.c.h.s8.bf16 %v4638_v13  ;;  %v4866_v16 = vunpack.c.l.s8.bf16 %v4638_v13  ;;  %v4736_v13 = vunpack.c.l.s8.bf16 %v4574_v56 }
 0x7e7   :  { %5282 = vmatpush1.bf16.msra.mxu0 %v4826_v27  ;;  %v4640_v27 = vld [vmem:[#allocation2 + $0x1940] sm:$0xff] }
 0x7e8   :  { %5283 = vmatprep.subr.bf16.mxu0 %v4821_v50  ;;  %v4867_v50 = vunpack.c.l.s8.bf16 %v4639_v14  ;;  %v4742_v14 = vunpack.c.h.s8.bf16 %v4574_v56 }
 0x7e9   :  { %5161 = vmatpush1.bf16.msra.mxu1 %v4818_v1  ;;  %v4874_v1 = vunpack.c.h.s8.bf16 %v4640_v27 }
 0x7ea   :  { %5162 = vmatprep.subr.bf16.mxu1 %v4813_v7  ;;  %v4869_v7 = vunpack.c.l.s8.bf16 %v4641_v63 }
 0x7eb   :  { %5284 = vmatpush1.bf16.msra.mxu0 %v4820_v59  ;;  %v4635_v59 = vld [vmem:[#allocation2 + $0x1918] sm:$0xff] }
 0x7ec   :  { %5285 = vmatprep.subr.bf16.mxu0 %v4815_v28  ;;  %v4861_v28 = vunpack.c.h.s8.bf16 %v4633_v10 }
 0x7ed   :  { %5163 = vmatpush1.bf16.msra.mxu1 %v4812_v57  ;;  %v4868_v57 = vunpack.c.l.s8.bf16 %v4640_v27 }
 0x7ee   :  { %5164 = vmatprep.subr.bf16.mxu1 %v4807_v12  ;;  %v4863_v12 = vunpack.c.h.s8.bf16 %v4635_v59 }
 0x7ef   :  { %5286 = vmatpush1.bf16.msra.mxu0 %v4814_v32  ;;  %v4634_v32 = vld [vmem:[#allocation2 + $0x1910] sm:$0xff] }
 0x7f0   :  { %5287 = vmatprep.subr.bf16.mxu0 %v4809_v39  ;;  %v4855_v39 = vunpack.c.l.s8.bf16 %v4633_v10 }
 0x7f1   :  { %5165 = vmatpush1.bf16.msra.mxu1 %v4806_v61  ;;  %v4862_v61 = vunpack.c.h.s8.bf16 %v4634_v32 }
 0x7f2   :  { %5166 = vmatprep.subr.bf16.mxu1 %v4801_v0  ;;  %v4857_v0 = vunpack.c.l.s8.bf16 %v4635_v59 }
 0x7f3   :  { %5288 = vmatpush1.bf16.msra.mxu0 %v4808_v2  ;;  %v4629_v2 = vld [vmem:[#allocation2 + $0x18e8] sm:$0xff] }
 0x7f4   :  { %5289 = vmatprep.subr.bf16.mxu0 %v4803_v44  ;;  %v4849_v44 = vunpack.c.h.s8.bf16 %v4627_v26 }
 0x7f5   :  { %5167 = vmatpush1.bf16.msra.mxu1 %v4800_v4  ;;  %v4856_v4 = vunpack.c.l.s8.bf16 %v4634_v32  ;;  %v5512_v32 = vld [vmem:[#allocation2 + $0x1b38] sm:$0xff] }
 0x7f6   :  { %5168 = vmatprep.subr.bf16.mxu1 %v4795_v21  ;;  %v4851_v21 = vunpack.c.h.s8.bf16 %v4629_v2 }
 0x7f7   :  { %5290 = vmatpush1.bf16.msra.mxu0 %v4802_v5  ;;  %v4628_v5 = vld [vmem:[#allocation2 + $0x18e0] sm:$0xff] }
 0x7f8   :  { %5291 = vmatprep.subr.bf16.mxu0 %v4797_v19  ;;  %v4843_v19 = vunpack.c.l.s8.bf16 %v4627_v26  ;;  %v5668_v26 = vunpack.c.h.s8.bf16 %v5512_v32 }
 0x7f9   :  { %5169 = vmatpush1.bf16.msra.mxu1 %v4794_v60  ;;  %v4850_v60 = vunpack.c.h.s8.bf16 %v4628_v5 }
 0x7fa   :  { %5170 = vmatprep.subr.bf16.mxu1 %v4885_v23  ;;  %v4845_v23 = vunpack.c.l.s8.bf16 %v4629_v2 }
 0x7fb   :  { %5292 = vmatpush1.bf16.msra.mxu0 %v4796_v22  ;;  %v5524_v22 = vld [vmem:[#allocation2 + $0x1b98] sm:$0xff] }
 0x7fc   :  { %5293 = vmatprep.subr.bf16.mxu0 %v4887_v17  ;;  %v4743_v17 = vunpack.c.h.s8.bf16 %v4575_v45 }
 0x7fd   :  { %5171 = vmatpush2.bf16.msra.mxu1 %v4884_v11  ;;  %v4844_v11 = vunpack.c.l.s8.bf16 %v4628_v5  ;;  %v5506_v5 = vld [vmem:[#allocation2 + $0x1b08] sm:$0xff] }
 0x7fe   :  { %5172 = vmatprep.subr.bf16.mxu1 %v4879_v9  ;;  %v5692_v9 = vunpack.c.h.s8.bf16 %v5524_v22 }
 0x7ff   :  { %5294 = vmatpush2.bf16.msra.mxu0 %v4886_v30  ;;  %v5523_v30 = vld [vmem:[#allocation2 + $0x1b90] sm:$0xff] }
 0x800   :  { %5295 = vmatprep.subr.bf16.mxu0 %v4881_v33  ;;  %v4737_v33 = vunpack.c.l.s8.bf16 %v4575_v45  ;;  %v5691_v63 = vunpack.c.h.s8.bf16 %v5523_v30  ;;  %v5656_v45 = vunpack.c.h.s8.bf16 %v5506_v5 }
 0x801   :  { %5173 = vmatpush2.bf16.msra.mxu1 %v4878_v20  ;;  %v4569_v20 = vld [vmem:[#allocation2 + $0x1708] sm:$0xff] }
 0x802   :  { %5174 = vmatprep.subr.bf16.mxu1 %v4873_v8  ;;  %v5686_v8 = vunpack.c.l.s8.bf16 %v5524_v22  ;;  %v4731_v27 = vunpack.c.h.s8.bf16 %v4569_v20  ;;  %v4725_v59 = vunpack.c.l.s8.bf16 %v4569_v20 }
 0x803   :  { %5296 = vmatpush2.bf16.msra.mxu0 %v4880_v25  ;;  %v5518_v25 = vld [vmem:[#allocation2 + $0x1b68] sm:$0xff] }
 0x804   :  { %5297 = vmatprep.subr.bf16.mxu0 %v4875_v42  ;;  %v5680_v10 = vunpack.c.h.s8.bf16 %v5518_v25 }
 0x805   :  { %5175 = vmatpush2.bf16.msra.mxu1 %v4872_v41  ;;  %v4568_v41 = vld [vmem:[#allocation2 + $0x1700] sm:$0xff] }
 0x806   :  { %5176 = vmatprep.subr.bf16.mxu1 %v4867_v50  ;;  %v5685_v50 = vunpack.c.l.s8.bf16 %v5523_v30  ;;  %v5548_v30 = vld [vmem:[#allocation2 + $0x1c58] sm:$0xff] }
 0x807   :  { %5298 = vmatpush2.bf16.msra.mxu0 %v4874_v1 }
 0x808   :  { %5299 = vmatprep.subr.bf16.mxu0 %v4869_v7  ;;  %v5517_v7 = vld [vmem:[#allocation2 + $0x1b60] sm:$0xff] }
 0x809   :  { %5177 = vmatpush2.bf16.msra.mxu1 %v4866_v16 }
 0x80a   :  { %5178 = vmatprep.subr.bf16.mxu1 %v4861_v28  ;;  %v5679_v28 = vunpack.c.h.s8.bf16 %v5517_v7 }
 0x80b   :  { %5300 = vmatpush2.bf16.msra.mxu0 %v4868_v57  ;;  %v5674_v57 = vunpack.c.l.s8.bf16 %v5518_v25 }
 0x80c   :  { %5301 = vmatprep.subr.bf16.mxu0 %v4863_v12  ;;  %v4724_v12 = vunpack.c.l.s8.bf16 %v4568_v41 }
 0x80d   :  { %5179 = vmatpush2.bf16.msra.mxu1 %v4860_v48 }
 0x80e   :  { %5180 = vmatprep.subr.bf16.mxu1 %v4855_v39  ;;  %v4562_v39 = vld [vmem:[#allocation2 + $0x16d0] sm:$0xff] }
 0x80f   :  { %5302 = vmatpush2.bf16.msra.mxu0 %v4862_v61  ;;  %v5673_v61 = vunpack.c.l.s8.bf16 %v5517_v7  ;;  %v5542_v7 = vld [vmem:[#allocation2 + $0x1c28] sm:$0xff] }
 0x810   :  { %5303 = vmatprep.subr.bf16.mxu0 %v4857_v0  ;;  %v5511_v0 = vld [vmem:[#allocation2 + $0x1b30] sm:$0xff] }
 0x811   :  { %5181 = vmatpush2.bf16.msra.mxu1 %v4854_v35  ;;  %v4718_v35 = vunpack.c.h.s8.bf16 %v4562_v39  ;;  %v5667_v43 = vunpack.c.h.s8.bf16 %v5511_v0 }
 0x812   :  { %5182 = vmatprep.subr.bf16.mxu1 %v4849_v44  ;;  %v4557_v44 = vld [vmem:[#allocation2 + $0x16a8] sm:$0xff] }
 0x813   :  { %5304 = vmatpush2.bf16.msra.mxu0 %v4856_v4  ;;  %v5662_v4 = vunpack.c.l.s8.bf16 %v5512_v32  ;;  %v4701_v22 = vunpack.c.l.s8.bf16 %v4557_v44 }
 0x814   :  { %5305 = vmatprep.subr.bf16.mxu0 %v4851_v21  ;;  %v4712_v21 = vunpack.c.l.s8.bf16 %v4562_v39 }
 0x815   :  { %5183 = vmatpush2.bf16.msra.mxu1 %v4848_v52  ;;  %v4707_v52 = vunpack.c.h.s8.bf16 %v4557_v44  ;;  %v5535_v44 = vld [vmem:[#allocation2 + $0x1bf0] sm:$0xff] }
 0x816   :  { %5184 = vmatprep.subr.bf16.mxu1 %v4843_v19  ;;  %v4556_v19 = vld [vmem:[#allocation2 + $0x16a0] sm:$0xff] }
 0x817   :  { %5306 = vmatpush2.bf16.msra.mxu0 %v4850_v60  ;;  %v5661_v60 = vunpack.c.l.s8.bf16 %v5511_v0  ;;  %v4586_v0 = vld [vmem:[#allocation2 + $0x1790] sm:$0xff] }
 0x818   :  { %5307 = vmatprep.subr.bf16.mxu0 %v4845_v23  ;;  %v5505_v23 = vld [vmem:[#allocation2 + $0x1b00] sm:$0xff] }
 0x819   :  { %5185 = vmatpush2.bf16.msra.mxu1 %v4842_v15  ;;  %v4706_v15 = vunpack.c.h.s8.bf16 %v4556_v19  ;;  %v5655_v56 = vunpack.c.h.s8.bf16 %v5505_v23  ;;  %v5649_v20 = vunpack.c.l.s8.bf16 %v5505_v23  ;;  %v4580_v23 = vld [vmem:[#allocation2 + $0x1760] sm:$0xff] }
 0x81a   :  { %5236 = vmatprep.subr.bf16.mxu1 %v4743_v17  ;;  %v4599_v17 = vld [vmem:[#allocation2 + $0x17f8] sm:$0xff] }
 0x81b   :  { %5308 = vmatpush2.bf16.msra.mxu0 %v4844_v11  ;;  %v5650_v11 = vunpack.c.l.s8.bf16 %v5506_v5  ;;  %v4785_v25 = vunpack.c.l.s8.bf16 %v4599_v17  ;;  %v5715_v5 = vunpack.c.h.s8.bf16 %v5535_v44 }
 0x81c   :  { %5187 = vmatmul.mubr.bf16.vlgmr.msra.gmra.mxu1 %v8966_v54  ;;  %5937 = vmatprep.subr.bf16.mxu0 %v5692_v9  ;;  %v4700_v9 = vunpack.c.l.s8.bf16 %v4556_v19  ;;  %v4760_v19 = vunpack.c.l.s8.bf16 %v4586_v0 }
 0x81d   :  { %5237 = vmatpush1.bf16.msra.mxu1 %v4742_v14  ;;  %5268 = vmatprep.mubr.bf16.mxu1 %v8942_v3  ;;  %v4730_v3 = vunpack.c.h.s8.bf16 %v4568_v41  ;;  %v4791_v14 = vunpack.c.h.s8.bf16 %v4599_v17  ;;  %v5529_v17 = vld [vmem:[#allocation2 + $0x1bc0] sm:$0xff] }
 0x81e   :  { %5310 = vmatmul.mubr.bf16.vlgmr.msra.gmra.mxu0 %v8966_v54  ;;  %v9008_v42 = vpop.f32.mrf.mxu0  ;;  %5238 = vmatprep.subr.bf16.mxu1 %v4737_v33  ;;  %v4563_v54 = vld [vmem:[#allocation2 + $0x16d8] sm:$0xff]  ;;  %v4598_v33 = vld [vmem:[#allocation2 + $0x17f0] sm:$0xff] }
 0x81f   :  { %5938 = vmatpush1.bf16.msra.mxu0 %v5691_v63  ;;  %5969 = vmatprep.mubr.bf16.mxu0 %v8435_v36  ;;  %v4719_v48 = vunpack.c.h.s8.bf16 %v4563_v54  ;;  %v4713_v2 = vunpack.c.l.s8.bf16 %v4563_v54  ;;  %v5740_v63 = vunpack.c.h.s8.bf16 %v5548_v30  ;;  %v5728_v54 = vunpack.c.h.s8.bf16 %v5542_v7 }
 0x820   :  { %v9011_v1 = vpop.f32.mrf.mxu0  ;;  %5939 = vmatprep.subr.bf16.mxu0 %v5686_v8  ;;  %v5547_v8 = vld [vmem:[#allocation2 + $0x1c50] sm:$0xff] }
 0x821   :  { %5239 = vmatpush1.bf16.msra.mxu1 %v4736_v13  ;;  %v4790_v13 = vunpack.c.h.s8.bf16 %v4598_v33  ;;  %v5739_v41 = vunpack.c.h.s8.bf16 %v5547_v8 }
 0x822   :  { %v5069_v16 = vpop.f32.mrf.mxu0  ;;  %5240 = vmatprep.subr.bf16.mxu1 %v4731_v27  ;;  %v4593_v27 = vld [vmem:[#allocation2 + $0x17c8] sm:$0xff] }
 0x823   :  { %5940 = vmatpush1.bf16.msra.mxu0 %v5685_v50  ;;  %v5734_v50 = vunpack.c.l.s8.bf16 %v5548_v30  ;;  %v4592_v16 = vld [vmem:[#allocation2 + $0x17c0] sm:$0xff]  ;;  %v5703_v30 = vunpack.c.h.s8.bf16 %v5529_v17 }
 0x824   :  { %v5070_v53 = vpop.f32.mrf.mxu0  ;;  %5941 = vmatprep.subr.bf16.mxu0 %v5680_v10  ;;  %v4784_v10 = vunpack.c.l.s8.bf16 %v4598_v33  ;;  %v4772_v39 = vunpack.c.l.s8.bf16 %v4592_v16  ;;  %v4748_v33 = vunpack.c.l.s8.bf16 %v4580_v23 }
 0x825   :  { %5241 = vmatpush1.bf16.msra.mxu1 %v4730_v3  ;;  %v4779_v3 = vunpack.c.h.s8.bf16 %v4593_v27  ;;  %v4778_v53 = vunpack.c.h.s8.bf16 %v4592_v16 }
 0x826   :  { %5242 = vmatprep.subr.bf16.mxu1 %v4725_v59  ;;  %v5733_v59 = vunpack.c.l.s8.bf16 %v5547_v8  ;;  %v4670_v8 = vld [vmem:[#allocation2 + $0x1a30] sm:$0xff] }
 0x827   :  { %5942 = vmatpush1.bf16.msra.mxu0 %v5679_v28  ;;  %v5541_v28 = vld [vmem:[#allocation2 + $0x1c20] sm:$0xff]  ;;  %v4928_v16 = vunpack.c.l.s8.bf16 %v4670_v8 }
 0x828   :  { %5943 = vmatprep.subr.bf16.mxu0 %v5674_v57  ;;  %v4773_v57 = vunpack.c.l.s8.bf16 %v4593_v27  ;;  %v5727_v32 = vunpack.c.h.s8.bf16 %v5541_v28  ;;  %v5619_v27 = vld [vmem:[#allocation2 + $0x1e90] sm:$0xff] }
 0x829   :  { %5243 = vmatpush1.bf16.msra.mxu1 %v4724_v12  ;;  %v4587_v12 = vld [vmem:[#allocation2 + $0x1798] sm:$0xff] }
 0x82a   :  { %5244 = vmatprep.subr.bf16.mxu1 %v4719_v48  ;;  %v5722_v48 = vunpack.c.l.s8.bf16 %v5542_v7  ;;  %v5883_v7 = vunpack.c.h.s8.bf16 %v5619_v27 }
 0x82b   :  { %5944 = vmatpush1.bf16.msra.mxu0 %v5673_v61  ;;  %v5536_v61 = vld [vmem:[#allocation2 + $0x1bf8] sm:$0xff] }
 0x82c   :  { %5945 = vmatprep.subr.bf16.mxu0 %v5668_v26  ;;  %v4767_v26 = vunpack.c.h.s8.bf16 %v4587_v12 }
 0x82d   :  { %5245 = vmatpush1.bf16.msra.mxu1 %v4718_v35  ;;  %v5721_v35 = vunpack.c.l.s8.bf16 %v5541_v28 }
 0x82e   :  { %5246 = vmatprep.subr.bf16.mxu1 %v4713_v2  ;;  %v5716_v2 = vunpack.c.h.s8.bf16 %v5536_v61 }
 0x82f   :  { %5946 = vmatpush1.bf16.msra.mxu0 %v5667_v43  ;;  %v4766_v43 = vunpack.c.h.s8.bf16 %v4586_v0 }
 0x830   :  { %5947 = vmatprep.subr.bf16.mxu0 %v5662_v4  ;;  %v4761_v4 = vunpack.c.l.s8.bf16 %v4587_v12 }
 0x831   :  { %5247 = vmatpush1.bf16.msra.mxu1 %v4712_v21  ;;  %v4581_v21 = vld [vmem:[#allocation2 + $0x1768] sm:$0xff] }
 0x832   :  { %5248 = vmatprep.subr.bf16.mxu1 %v4707_v52  ;;  %v5710_v52 = vunpack.c.l.s8.bf16 %v5536_v61  ;;  %v4659_v61 = vld [vmem:[#allocation2 + $0x19d8] sm:$0xff] }
 0x833   :  { %5948 = vmatpush1.bf16.msra.mxu0 %v5661_v60  ;;  %v5530_v60 = vld [vmem:[#allocation2 + $0x1bc8] sm:$0xff] }
 0x834   :  { %5949 = vmatprep.subr.bf16.mxu0 %v5656_v45  ;;  %v4755_v45 = vunpack.c.h.s8.bf16 %v4581_v21 }
 0x835   :  { %5249 = vmatpush1.bf16.msra.mxu1 %v4706_v15  ;;  %v5709_v15 = vunpack.c.l.s8.bf16 %v5535_v44  ;;  %v5608_v44 = vld [vmem:[#allocation2 + $0x1e38] sm:$0xff] }
 0x836   :  { %5250 = vmatprep.subr.bf16.mxu1 %v4701_v22  ;;  %v5704_v22 = vunpack.c.h.s8.bf16 %v5530_v60 }
 0x837   :  { %5950 = vmatpush1.bf16.msra.mxu0 %v5655_v56  ;;  %v4754_v56 = vunpack.c.h.s8.bf16 %v4580_v23 }
 0x838   :  { %5951 = vmatprep.subr.bf16.mxu0 %v5650_v11  ;;  %v4749_v11 = vunpack.c.l.s8.bf16 %v4581_v21 }
 0x839   :  { %5251 = vmatpush1.bf16.msra.mxu1 %v4700_v9  ;;  %v4671_v9 = vld [vmem:[#allocation2 + $0x1a38] sm:$0xff] }
 0x83a   :  { %5252 = vmatprep.subr.bf16.mxu1 %v4791_v14  ;;  %v5698_v14 = vunpack.c.l.s8.bf16 %v5530_v60  ;;  %v4905_v60 = vunpack.c.l.s8.bf16 %v4659_v61 }
 0x83b   :  { %5952 = vmatpush1.bf16.msra.mxu0 %v5649_v20  ;;  %v5620_v20 = vld [vmem:[#allocation2 + $0x1e98] sm:$0xff] }
 0x83c   :  { %5953 = vmatprep.subr.bf16.mxu0 %v5740_v63  ;;  %v4935_v63 = vunpack.c.h.s8.bf16 %v4671_v9 }
 0x83d   :  { %5253 = vmatpush2.bf16.msra.mxu1 %v4790_v13  ;;  %v5697_v13 = vunpack.c.l.s8.bf16 %v5529_v17  ;;  %v5602_v17 = vld [vmem:[#allocation2 + $0x1e08] sm:$0xff] }
 0x83e   :  { %5254 = vmatprep.subr.bf16.mxu1 %v4785_v25  ;;  %v5884_v25 = vunpack.c.h.s8.bf16 %v5620_v20 }
 0x83f   :  { %5954 = vmatpush2.bf16.msra.mxu0 %v5739_v41  ;;  %v4934_v41 = vunpack.c.h.s8.bf16 %v4670_v8 }
 0x840   :  { %5955 = vmatprep.subr.bf16.mxu0 %v5734_v50  ;;  %v4929_v50 = vunpack.c.l.s8.bf16 %v4671_v9 }
 0x841   :  { %5255 = vmatpush2.bf16.msra.mxu1 %v4784_v10  ;;  %v4665_v10 = vld [vmem:[#allocation2 + $0x1a08] sm:$0xff] }
 0x842   :  { %5256 = vmatprep.subr.bf16.mxu1 %v4779_v3  ;;  %v5878_v3 = vunpack.c.l.s8.bf16 %v5620_v20  ;;  %v4923_v28 = vunpack.c.h.s8.bf16 %v4665_v10 }
 0x843   :  { %5956 = vmatpush2.bf16.msra.mxu0 %v5733_v59  ;;  %v5614_v59 = vld [vmem:[#allocation2 + $0x1e68] sm:$0xff] }
 0x844   :  { %5957 = vmatprep.subr.bf16.mxu0 %v5728_v54 }
 0x845   :  { %5257 = vmatpush2.bf16.msra.mxu1 %v4778_v53  ;;  %v4664_v53 = vld [vmem:[#allocation2 + $0x1a00] sm:$0xff] }
 0x846   :  { %5258 = vmatprep.subr.bf16.mxu1 %v4773_v57  ;;  %v5877_v57 = vunpack.c.l.s8.bf16 %v5619_v27  ;;  %v5644_v27 = vld [vmem:[#allocation2 + $0x1f58] sm:$0xff] }
 0x847   :  { %5958 = vmatpush2.bf16.msra.mxu0 %v5727_v32  ;;  %v5613_v32 = vld [vmem:[#allocation2 + $0x1e60] sm:$0xff] }
 0x848   :  { %5959 = vmatprep.subr.bf16.mxu0 %v5722_v48  ;;  %v5865_v21 = vunpack.c.l.s8.bf16 %v5613_v32 }
 0x849   :  { %5259 = vmatpush2.bf16.msra.mxu1 %v4772_v39  ;;  %v4917_v39 = vunpack.c.l.s8.bf16 %v4665_v10 }
 0x84a   :  { %5260 = vmatprep.subr.bf16.mxu1 %v4767_v26  ;;  %v5871_v26 = vunpack.c.h.s8.bf16 %v5613_v32  ;;  %v5638_v32 = vld [vmem:[#allocation2 + $0x1f28] sm:$0xff] }
 0x84b   :  { %5960 = vmatpush2.bf16.msra.mxu0 %v5721_v35  ;;  %v5866_v35 = vunpack.c.l.s8.bf16 %v5614_v59 }
 0x84c   :  { %5961 = vmatprep.subr.bf16.mxu0 %v5716_v2  ;;  %v4916_v2 = vunpack.c.l.s8.bf16 %v4664_v53 }
 0x84d   :  { %5261 = vmatpush2.bf16.msra.mxu1 %v4766_v43  ;;  %v4911_v43 = vunpack.c.h.s8.bf16 %v4659_v61  ;;  %v5920_v61 = vunpack.c.h.s8.bf16 %v5638_v32 }
 0x84e   :  { %5262 = vmatprep.subr.bf16.mxu1 %v4761_v4  ;;  %v4658_v4 = vld [vmem:[#allocation2 + $0x19d0] sm:$0xff] }
 0x84f   :  { %5962 = vmatpush2.bf16.msra.mxu0 %v5715_v5  ;;  %v5860_v5 = vunpack.c.h.s8.bf16 %v5608_v44 }
 0x850   :  { %5963 = vmatprep.subr.bf16.mxu0 %v5710_v52  ;;  %v5607_v52 = vld [vmem:[#allocation2 + $0x1e30] sm:$0xff] }
 0x851   :  { %5263 = vmatpush2.bf16.msra.mxu1 %v4760_v19  ;;  %v4910_v19 = vunpack.c.h.s8.bf16 %v4658_v4  ;;  %v5859_v23 = vunpack.c.h.s8.bf16 %v5607_v52  ;;  %v5853_v9 = vunpack.c.l.s8.bf16 %v5607_v52  ;;  %v4682_v52 = vld [vmem:[#allocation2 + $0x1a90] sm:$0xff] }
 0x852   :  { %5264 = vmatprep.subr.bf16.mxu1 %v4755_v45  ;;  %v4653_v45 = vld [vmem:[#allocation2 + $0x19a8] sm:$0xff] }
 0x853   :  { %5964 = vmatpush2.bf16.msra.mxu0 %v5709_v15  ;;  %v5854_v15 = vunpack.c.l.s8.bf16 %v5608_v44  ;;  %v4893_v20 = vunpack.c.l.s8.bf16 %v4653_v45 }
 0x854   :  { %5965 = vmatprep.subr.bf16.mxu0 %v5704_v22  ;;  %v4904_v22 = vunpack.c.l.s8.bf16 %v4658_v4 }
 0x855   :  { %5265 = vmatpush2.bf16.msra.mxu1 %v4754_v56  ;;  %v4899_v56 = vunpack.c.h.s8.bf16 %v4653_v45  ;;  %v5631_v45 = vld [vmem:[#allocation2 + $0x1ef0] sm:$0xff] }
 0x856   :  { %5266 = vmatprep.subr.bf16.mxu1 %v4749_v11  ;;  %v4652_v11 = vld [vmem:[#allocation2 + $0x19a0] sm:$0xff] }
 0x857   :  { %5966 = vmatpush2.bf16.msra.mxu0 %v5703_v30  ;;  %v5848_v30 = vunpack.c.h.s8.bf16 %v5602_v17 }
 0x858   :  { %5967 = vmatprep.subr.bf16.mxu0 %v5698_v14  ;;  %v5601_v14 = vld [vmem:[#allocation2 + $0x1e00] sm:$0xff] }
 0x859   :  { %5267 = vmatpush2.bf16.msra.mxu1 %v4748_v33  ;;  %v4898_v33 = vunpack.c.h.s8.bf16 %v4652_v11  ;;  %v5847_v8 = vunpack.c.h.s8.bf16 %v5601_v14  ;;  %v5841_v10 = vunpack.c.l.s8.bf16 %v5601_v14  ;;  %v4676_v14 = vld [vmem:[#allocation2 + $0x1a60] sm:$0xff] }
 0x85a   :  { %5318 = vmatprep.subr.bf16.mxu1 %v4935_v63  ;;  %v4695_v63 = vld [vmem:[#allocation2 + $0x1af8] sm:$0xff] }
 0x85b   :  { %5968 = vmatpush2.bf16.msra.mxu0 %v5697_v13  ;;  %v5842_v13 = vunpack.c.l.s8.bf16 %v5602_v17  ;;  %v5907_v17 = vunpack.c.h.s8.bf16 %v5631_v45 }
 0x85c   :  { %5269 = vmatmul.mubr.bf16.vlgmr.msra.gmra.mxu1 %v8944_v58  ;;  %6019 = vmatprep.subr.bf16.mxu0 %v5884_v25  ;;  %v5872_v58 = vunpack.c.h.s8.bf16 %v5614_v59  ;;  %v4892_v25 = vunpack.c.l.s8.bf16 %v4652_v11  ;;  %v4977_v59 = vunpack.c.l.s8.bf16 %v4695_v63  ;;  %v4952_v11 = vunpack.c.l.s8.bf16 %v4682_v52 }
 0x85d   :  { %5319 = vmatpush1.bf16.msra.mxu1 %v4934_v41  ;;  %5350 = vmatprep.mubr.bf16.mxu1 %v8990_v62  ;;  %v4922_v62 = vunpack.c.h.s8.bf16 %v4664_v53  ;;  %v4983_v41 = vunpack.c.h.s8.bf16 %v4695_v63  ;;  %v5625_v63 = vld [vmem:[#allocation2 + $0x1ec0] sm:$0xff] }
 0x85e   :  { %v9015_v54 = vpop.f32.mrf.mxu0  ;;  %5320 = vmatprep.subr.bf16.mxu1 %v4929_v50  ;;  %5970 = vmatmul.mubr.bf16.vlgmr.msra.gmra.mxu0 %v8447_v46  ;;  %v4694_v50 = vld [vmem:[#allocation2 + $0x1af0] sm:$0xff] }
 0x85f   :  { %6020 = vmatpush1.bf16.msra.mxu0 %v5883_v7  ;;  %6051 = vmatprep.mubr.bf16.mxu0 %v8454_v55  ;;  %v5932_v7 = vunpack.c.h.s8.bf16 %v5644_v27 }
 0x860   :  { %v9019_v12 = vpop.f32.mrf.mxu0  ;;  %6021 = vmatprep.subr.bf16.mxu0 %v5878_v3  ;;  %v5643_v3 = vld [vmem:[#allocation2 + $0x1f50] sm:$0xff] }
 0x861   :  { %5321 = vmatpush1.bf16.msra.mxu1 %v4928_v16  ;;  %v4982_v16 = vunpack.c.h.s8.bf16 %v4694_v50  ;;  %v5931_v53 = vunpack.c.h.s8.bf16 %v5643_v3 }
 0x862   :  { %v5151_v48 = vpop.f32.mrf.mxu0  ;;  %5322 = vmatprep.subr.bf16.mxu1 %v4923_v28  ;;  %v4689_v28 = vld [vmem:[#allocation2 + $0x1ac8] sm:$0xff] }
 0x863   :  { %6022 = vmatpush1.bf16.msra.mxu0 %v5877_v57  ;;  %v5926_v57 = vunpack.c.l.s8.bf16 %v5644_v27  ;;  %v4688_v48 = vld [vmem:[#allocation2 + $0x1ac0] sm:$0xff]  ;;  %v5895_v27 = vunpack.c.h.s8.bf16 %v5625_v63 }
 0x864   :  { %v5152_v0 = vpop.f32.mrf.mxu0  ;;  %6023 = vmatprep.subr.bf16.mxu0 %v5872_v58  ;;  %v4976_v58 = vunpack.c.l.s8.bf16 %v4694_v50  ;;  %v4964_v4 = vunpack.c.l.s8.bf16 %v4688_v48  ;;  %v4940_v50 = vunpack.c.l.s8.bf16 %v4676_v14 }
 0x865   :  { %5323 = vmatpush1.bf16.msra.mxu1 %v4922_v62  ;;  %v4971_v62 = vunpack.c.h.s8.bf16 %v4689_v28  ;;  %v4970_v0 = vunpack.c.h.s8.bf16 %v4688_v48 }
 0x866   :  { %5324 = vmatprep.subr.bf16.mxu1 %v4917_v39  ;;  %v5925_v39 = vunpack.c.l.s8.bf16 %v5643_v3  ;;  %v5571_v3 = vld [vmem:[#allocation2 + $0x1d10] sm:$0xff] }
 0x867   :  { %6024 = vmatpush1.bf16.msra.mxu0 %v5871_v26  ;;  %v5637_v26 = vld [vmem:[#allocation2 + $0x1f20] sm:$0xff] }
 0x868   :  { %6025 = vmatprep.subr.bf16.mxu0 %v5866_v35  ;;  %v4965_v35 = vunpack.c.l.s8.bf16 %v4689_v28  ;;  %v5919_v44 = vunpack.c.h.s8.bf16 %v5637_v26 }
 0x869   :  { %5325 = vmatpush1.bf16.msra.mxu1 %v4916_v2  ;;  %v4683_v2 = vld [vmem:[#allocation2 + $0x1a98] sm:$0xff] }
 0x86a   :  { %5326 = vmatprep.subr.bf16.mxu1 %v4911_v43  ;;  %v5914_v43 = vunpack.c.l.s8.bf16 %v5638_v32 }
 0x86b   :  { %6026 = vmatpush1.bf16.msra.mxu0 %v5865_v21  ;;  %v5632_v21 = vld [vmem:[#allocation2 + $0x1ef8] sm:$0xff] }
 0x86c   :  { %6027 = vmatprep.subr.bf16.mxu0 %v5860_v5  ;;  %v4959_v5 = vunpack.c.h.s8.bf16 %v4683_v2 }
 0x86d   :  { %5327 = vmatpush1.bf16.msra.mxu1 %v4910_v19  ;;  %v5913_v19 = vunpack.c.l.s8.bf16 %v5637_v26 }
 0x86e   :  { %5328 = vmatprep.subr.bf16.mxu1 %v4905_v60  ;;  %v5908_v60 = vunpack.c.h.s8.bf16 %v5632_v21 }
 0x86f   :  { %6028 = vmatpush1.bf16.msra.mxu0 %v5859_v23  ;;  %v4958_v23 = vunpack.c.h.s8.bf16 %v4682_v52 }
 0x870   :  { %6029 = vmatprep.subr.bf16.mxu0 %v5854_v15  ;;  %v4953_v15 = vunpack.c.l.s8.bf16 %v4683_v2  ;;  %v5068_v2 = vadd.f32 %v9011_v1, %v9002_v40 }
 0x871   :  { %5329 = vmatpush1.bf16.msra.mxu1 %v4904_v22  ;;  %v4677_v22 = vld [vmem:[#allocation2 + $0x1a68] sm:$0xff] }
 0x872   :  { %5330 = vmatprep.subr.bf16.mxu1 %v4899_v56  ;;  %v5902_v56 = vunpack.c.l.s8.bf16 %v5632_v21 }
 0x873   :  { %6030 = vmatpush1.bf16.msra.mxu0 %v5853_v9  ;;  %v5626_v9 = vld [vmem:[#allocation2 + $0x1ec8] sm:$0xff] }
 0x874   :  { %6031 = vmatprep.subr.bf16.mxu0 %v5848_v30  ;;  %v4947_v30 = vunpack.c.h.s8.bf16 %v4677_v22 }
 0x875   :  { %5331 = vmatpush1.bf16.msra.mxu1 %v4898_v33  ;;  %v5901_v33 = vunpack.c.l.s8.bf16 %v5631_v45 }
 0x876   :  { %5332 = vmatprep.subr.bf16.mxu1 %v4893_v20  ;;  %v5896_v20 = vunpack.c.h.s8.bf16 %v5626_v9 }
 0x877   :  { %6032 = vmatpush1.bf16.msra.mxu0 %v5847_v8  ;;  %v4946_v8 = vunpack.c.h.s8.bf16 %v4676_v14 }
 0x878   :  { %6033 = vmatprep.subr.bf16.mxu0 %v5842_v13  ;;  %v4941_v13 = vunpack.c.l.s8.bf16 %v4677_v22 }
 0x879   :  { %5333 = vmatpush1.bf16.msra.mxu1 %v4892_v25  ;;  %v5572_v25 = vld [vmem:[#allocation2 + $0x1d18] sm:$0xff] }
 0x87a   :  { %5334 = vmatprep.subr.bf16.mxu1 %v4983_v41  ;;  %v5890_v41 = vunpack.c.l.s8.bf16 %v5626_v9  ;;  %v5782_v32 = vunpack.c.l.s8.bf16 %v5572_v25 }
 0x87b   :  { %6034 = vmatpush1.bf16.msra.mxu0 %v5841_v10  ;;  %v5574_v10 = vld [vmem:[#allocation2 + $0x1d28] sm:$0xff] }
 0x87c   :  { %6035 = vmatprep.subr.bf16.mxu0 %v5932_v7  ;;  %v5788_v7 = vunpack.c.h.s8.bf16 %v5572_v25  ;;  %v5790_v28 = vunpack.c.h.s8.bf16 %v5574_v10 }
 0x87d   :  { %5335 = vmatpush2.bf16.msra.mxu1 %v4982_v16  ;;  %v5889_v16 = vunpack.c.l.s8.bf16 %v5625_v63 }
 0x87e   :  { %5336 = vmatprep.subr.bf16.mxu1 %v4977_v59  ;;  %v9021_v59 = vld [vmem:[#allocation4 + $0x1e] sm:$0x3f] }
 0x87f   :  { %6036 = vmatpush2.bf16.msra.mxu0 %v5931_v53  ;;  %v5573_v53 = vld [vmem:[#allocation2 + $0x1d20] sm:$0xff]  ;;  %v5365_v48 = vrot.slane %v9021_v59, %v8485_v34 }
 0x880   :  { %6037 = vmatprep.subr.bf16.mxu0 %v5926_v57  ;;  %v9023_v57 = vld [vmem:[#allocation6 + $0x1e] sm:$0x3f]  ;;  %v5783_v1 = vunpack.c.l.s8.bf16 %v5573_v53 }
 0x881   :  { %5337 = vmatpush2.bf16.msra.mxu1 %v4976_v58  ;;  %v5787_v58 = vunpack.c.h.s8.bf16 %v5571_v3  ;;  %v5408_v40 = vrot.slane %v9023_v57, %v8490_v38 }
 0x882   :  { %5338 = vmatprep.subr.bf16.mxu1 %v4971_v62  ;;  %v5066_v62 = vadd.f32 %v9008_v42, %v8997_v18  ;;  %v5369_v18 = vrot.slane %v9021_v59, %v8490_v38  ;;  %v5781_v42 = vunpack.c.l.s8.bf16 %v5571_v3 }
 0x883   :  { %6038 = vmatpush2.bf16.msra.mxu0 %v5925_v39  ;;  %v5566_v39 = vld [vmem:[#allocation2 + $0x1ce8] sm:$0xff] }
 0x884   :  { %6039 = vmatprep.subr.bf16.mxu0 %v5920_v61  ;;  %v5789_v61 = vunpack.c.h.s8.bf16 %v5573_v53  ;;  %v5776_v21 = vunpack.c.h.s8.bf16 %v5566_v39 }
 0x885   :  { %5339 = vmatpush2.bf16.msra.mxu1 %v4970_v0  ;;  %v5404_v0 = vrot.slane %v9023_v57, %v8485_v34 }
 0x886   :  { %5340 = vmatprep.subr.bf16.mxu1 %v4965_v35  ;;  %v5784_v35 = vunpack.c.l.s8.bf16 %v5574_v10 }
 0x887   :  { %6040 = vmatpush2.bf16.msra.mxu0 %v5919_v44 }
 0x888   :  { %6041 = vmatprep.subr.bf16.mxu0 %v5914_v43  ;;  %v5568_v43 = vld [vmem:[#allocation2 + $0x1cf8] sm:$0xff] }
 0x889   :  { %5341 = vmatpush2.bf16.msra.mxu1 %v4964_v4 }
 0x88a   :  { %5342 = vmatprep.subr.bf16.mxu1 %v4959_v5  ;;  %v5565_v5 = vld [vmem:[#allocation2 + $0x1ce0] sm:$0xff] }
 0x88b   :  { %6042 = vmatpush2.bf16.msra.mxu0 %v5913_v19 }
 0x88c   :  { %6043 = vmatprep.subr.bf16.mxu0 %v5908_v60 }
 0x88d   :  { %5343 = vmatpush2.bf16.msra.mxu1 %v4958_v23  ;;  %v5778_v23 = vunpack.c.h.s8.bf16 %v5568_v43 }
 0x88e   :  { %5344 = vmatprep.subr.bf16.mxu1 %v4953_v15  ;;  %v5567_v15 = vld [vmem:[#allocation2 + $0x1cf0] sm:$0xff] }
 0x88f   :  { %6044 = vmatpush2.bf16.msra.mxu0 %v5907_v17  ;;  %v5777_v63 = vunpack.c.h.s8.bf16 %v5567_v15 }
 0x890   :  { %6045 = vmatprep.subr.bf16.mxu0 %v5902_v56  ;;  %v5775_v56 = vunpack.c.h.s8.bf16 %v5565_v5 }
 0x891   :  { %5345 = vmatpush2.bf16.msra.mxu1 %v4952_v11 }
 0x892   :  { %5346 = vmatprep.subr.bf16.mxu1 %v4947_v30  ;;  %v5770_v30 = vunpack.c.l.s8.bf16 %v5566_v39  ;;  %v5554_v39 = vld [vmem:[#allocation2 + $0x1c88] sm:$0xff] }
 0x893   :  { %6046 = vmatpush2.bf16.msra.mxu0 %v5901_v33 }
 0x894   :  { %6047 = vmatprep.subr.bf16.mxu0 %v5896_v20  ;;  %v5560_v20 = vld [vmem:[#allocation2 + $0x1cb8] sm:$0xff] }
 0x895   :  { %5347 = vmatpush2.bf16.msra.mxu1 %v4946_v8  ;;  %v5764_v10 = vunpack.c.h.s8.bf16 %v5560_v20 }
 0x896   :  { %5348 = vmatprep.subr.bf16.mxu1 %v4941_v13  ;;  %v5772_v13 = vunpack.c.l.s8.bf16 %v5568_v43  ;;  %v5555_v43 = vld [vmem:[#allocation2 + $0x1c90] sm:$0xff] }
 0x897   :  { %6048 = vmatpush2.bf16.msra.mxu0 %v5895_v27 }
 0x898   :  { %6049 = vmatprep.subr.bf16.mxu0 %v5890_v41  ;;  %v5769_v41 = vunpack.c.l.s8.bf16 %v5565_v5  ;;  %v5596_v5 = vld [vmem:[#allocation2 + $0x1dd8] sm:$0xff] }
 0x899   :  { %5349 = vmatpush2.bf16.msra.mxu1 %v4940_v50  ;;  %v5562_v50 = vld [vmem:[#allocation2 + $0x1cc8] sm:$0xff] }
 0x89a   :  { %5978 = vmatprep.subr.bf16.mxu1 %v5788_v7  ;;  %v5559_v7 = vld [vmem:[#allocation2 + $0x1cb0] sm:$0xff]  ;;  %v5766_v53 = vunpack.c.h.s8.bf16 %v5562_v50 }
 0x89b   :  { %6050 = vmatpush2.bf16.msra.mxu0 %v5889_v16 }
 0x89c   :  { %5351 = vmatmul.mubr.bf16.vlgmr.msra.gmra.mxu1 %v8992_v6  ;;  %v5106_v26 = vpop.f32.mrf.mxu1  ;;  %6101 = vmatprep.subr.bf16.mxu0 %v5790_v28  ;;  %v5771_v28 = vunpack.c.l.s8.bf16 %v5567_v15  ;;  %v5595_v15 = vld [vmem:[#allocation2 + $0x1dd0] sm:$0xff] }
 0x89d   :  { %v5107_v44 = vadd.f32 %v5106_v26, %v5066_v62  ;;  %5979 = vmatpush1.bf16.msra.mxu1 %v5787_v58  ;;  %6010 = vmatprep.mubr.bf16.mxu1 %v8437_v37  ;;  %v5561_v58 = vld [vmem:[#allocation2 + $0x1cc0] sm:$0xff]  ;;  %v5763_v62 = vunpack.c.h.s8.bf16 %v5559_v7  ;;  %v5760_v26 = vunpack.c.l.s8.bf16 %v5562_v50 }
 0x89e   :  { %v9037_v4 = vpop.f32.mrf.mxu0  ;;  %v5108_v6 = vpop.f32.mrf.mxu1  ;;  %5980 = vmatprep.subr.bf16.mxu1 %v5782_v32  ;;  %6052 = vmatmul.mubr.bf16.vlgmr.msra.gmra.mxu0 %v8463_v24 }
 0x89f   :  { %v5392_v52 = vmul.f32 %v5365_v48, %v5107_v44  ;;  %v5109_v19 = vadd.f32 %v5108_v6, %v5068_v2  ;;  %6102 = vmatpush1.bf16.msra.mxu0 %v5789_v61  ;;  %6133 = vmatprep.mubr.bf16.mxu0 %v8437_v37  ;;  %v5758_v48 = vunpack.c.l.s8.bf16 %v5560_v20  ;;  %v5765_v61 = vunpack.c.h.s8.bf16 %v5561_v58  ;;  %v5553_v44 = vld [vmem:[#allocation2 + $0x1c80] sm:$0xff] }
 0x8a0   :  { %v9043_v60 = vpop.f32.mrf.mxu0  ;;  %v5110_v45 = vpop.f32.mrf.mxu1  ;;  %6103 = vmatprep.subr.bf16.mxu0 %v5784_v35  ;;  %v5556_v35 = vld [vmem:[#allocation2 + $0x1c98] sm:$0xff]  ;;  %v5752_v2 = vunpack.c.h.s8.bf16 %v5554_v39  ;;  %v5751_v6 = vunpack.c.h.s8.bf16 %v5553_v44  ;;  %v5835_v20 = vunpack.c.h.s8.bf16 %v5595_v15 }
 0x8a1   :  { %v9045_v22 = vadd.f32 %v5404_v0, %v5392_v52  ;;  %v5393_v17 = vmul.f32 %v5369_v18, %v5109_v19  ;;  %5981 = vmatpush1.bf16.msra.mxu1 %v5781_v42  ;;  %v5757_v0 = vunpack.c.l.s8.bf16 %v5559_v7  ;;  %v5759_v18 = vunpack.c.l.s8.bf16 %v5561_v58  ;;  %v5584_v58 = vld [vmem:[#allocation2 + $0x1d78] sm:$0xff] }
 0x8a2   :  { %v5233_v11 = vpop.f32.mrf.mxu0  ;;  %v5111_v9 = vpop.f32.mrf.mxu1  ;;  %5982 = vmatprep.subr.bf16.mxu1 %v5776_v21  ;;  %v5754_v42 = vunpack.c.h.s8.bf16 %v5556_v35  ;;  %v5746_v21 = vunpack.c.l.s8.bf16 %v5554_v39  ;;  %v5753_v52 = vunpack.c.h.s8.bf16 %v5555_v43  ;;  %v5748_v19 = vunpack.c.l.s8.bf16 %v5556_v35  ;;  %v5586_v39 = vld [vmem:[#allocation2 + $0x1d88] sm:$0xff] }
 0x8a3   :  { %v5437_v14 = vand.u32 2147483647, %v9045_v22  ;;  %v9048_v33 = vadd.f32 %v5408_v40, %v5393_v17  ;;  %6104 = vmatpush1.bf16.msra.mxu0 %v5783_v1  ;;  %v5745_v40 = vunpack.c.l.s8.bf16 %v5553_v44  ;;  %v5598_v1 = vld [vmem:[#allocation2 + $0x1de8] sm:$0xff]  ;;  %vm5461_vm6 = vcmp.ge.f32.partialorder %v9045_v22, 0.0 }
 0x8a4   :  { %v5234_v8 = vpop.f32.mrf.mxu0  ;;  %6105 = vmatprep.subr.bf16.mxu0 %v5778_v23  ;;  %v5836_v23 = vunpack.c.h.s8.bf16 %v5596_v5  ;;  %v5838_v9 = vunpack.c.h.s8.bf16 %v5598_v1  ;;  %v5808_v22 = vunpack.c.l.s8.bf16 %v5586_v39 }
 0x8a5   :  { %v5443_v25 = vsub.f32 0.0, %v5437_v14  ;;  %v5438_v27 = vand.u32 2147483647, %v9048_v33  ;;  %5983 = vmatpush1.bf16.msra.mxu1 %v5775_v56  ;;  %v5747_v56 = vunpack.c.l.s8.bf16 %v5555_v43  ;;  %v5590_v8 = vld [vmem:[#allocation2 + $0x1da8] sm:$0xff]  ;;  %vm5462_vm7 = vcmp.ge.f32.partialorder %v9048_v33, 0.0 }
 0x8a6   :  { %5984 = vmatprep.subr.bf16.mxu1 %v5770_v30  ;;  %v5597_v30 = vld [vmem:[#allocation2 + $0x1de0] sm:$0xff]  ;;  %v5824_v50 = vunpack.c.h.s8.bf16 %v5590_v8 }
 0x8a7   :  { %v5449_v3 = vmul.f32 1.442695, %v5443_v25  ;;  %v5444_v16 = vsub.f32 0.0, %v5438_v27  ;;  %6106 = vmatpush1.bf16.msra.mxu0 %v5777_v63  ;;  %v5830_v63 = vunpack.c.l.s8.bf16 %v5596_v5  ;;  %v5832_v25 = vunpack.c.l.s8.bf16 %v5598_v1 }
 0x8a8   :  { %6107 = vmatprep.subr.bf16.mxu0 %v5772_v13  ;;  %v5837_v13 = vunpack.c.h.s8.bf16 %v5597_v30  ;;  %v5829_v27 = vunpack.c.l.s8.bf16 %v5595_v15  ;;  %v5831_v7 = vunpack.c.l.s8.bf16 %v5597_v30  ;;  %v5806_v5 = vunpack.c.l.s8.bf16 %v5584_v58  ;;  %v5577_v15 = vld [vmem:[#allocation2 + $0x1d40] sm:$0xff]  ;;  %v5526_v30 = vld [vmem:[#allocation2 + $0x1ba8] sm:$0xff] }
 0x8a9   :  { %8272 = vpow2.f32 %v5449_v3  ;;  %v5451_v32 = vmul.f32 1.442695, %v5444_v16  ;;  %5985 = vmatpush1.bf16.msra.mxu1 %v5769_v41  ;;  %v5592_v41 = vld [vmem:[#allocation2 + $0x1db8] sm:$0xff]  ;;  %v5591_v16 = vld [vmem:[#allocation2 + $0x1db0] sm:$0xff] }
 0x8aa   :  { %5986 = vmatprep.subr.bf16.mxu1 %v5764_v10  ;;  %v5589_v10 = vld [vmem:[#allocation2 + $0x1da0] sm:$0xff]  ;;  %v5826_v3 = vunpack.c.h.s8.bf16 %v5592_v41 }
 0x8ab   :  { %8274 = vpow2.f32 %v5451_v32  ;;  %6108 = vmatpush1.bf16.msra.mxu0 %v5771_v28  ;;  %v5823_v28 = vunpack.c.h.s8.bf16 %v5589_v10  ;;  %v5825_v32 = vunpack.c.h.s8.bf16 %v5591_v16 }
 0x8ac   :  { %6109 = vmatprep.subr.bf16.mxu0 %v5766_v53  ;;  %v5818_v53 = vunpack.c.l.s8.bf16 %v5590_v8  ;;  %v5528_v8 = vld [vmem:[#allocation2 + $0x1bb8] sm:$0xff] }
 0x8ad   :  { %5987 = vmatpush1.bf16.msra.mxu1 %v5763_v62  ;;  %v5820_v62 = vunpack.c.l.s8.bf16 %v5592_v41  ;;  %v5696_v41 = vunpack.c.h.s8.bf16 %v5528_v8 }
 0x8ae   :  { %5988 = vmatprep.subr.bf16.mxu1 %v5758_v48  ;;  %v5817_v48 = vunpack.c.l.s8.bf16 %v5589_v10 }
 0x8af   :  { %6110 = vmatpush1.bf16.msra.mxu0 %v5765_v61 }
 0x8b0   :  { %6111 = vmatprep.subr.bf16.mxu0 %v5760_v26  ;;  %v5812_v26 = vunpack.c.h.s8.bf16 %v5584_v58 }
 0x8b1   :  { %5989 = vmatpush1.bf16.msra.mxu1 %v5757_v0  ;;  %v5583_v0 = vld [vmem:[#allocation2 + $0x1d70] sm:$0xff] }
 0x8b2   :  { %5990 = vmatprep.subr.bf16.mxu1 %v5752_v2  ;;  %v5819_v2 = vunpack.c.l.s8.bf16 %v5591_v16  ;;  %v5805_v1 = vunpack.c.l.s8.bf16 %v5583_v0 }
 0x8b3   :  { %6112 = vmatpush1.bf16.msra.mxu0 %v5759_v18  ;;  %v5814_v18 = vunpack.c.h.s8.bf16 %v5586_v39  ;;  %v5412_v39 = vrot.slane %v9023_v57, %v8520_v49 }
 0x8b4   :  { %6113 = vmatprep.subr.bf16.mxu0 %v5754_v42  ;;  %v5585_v42 = vld [vmem:[#allocation2 + $0x1d80] sm:$0xff] }
 0x8b5   :  { %5991 = vmatpush1.bf16.msra.mxu1 %v5751_v6  ;;  %v5807_v33 = vunpack.c.l.s8.bf16 %v5585_v42 }
 0x8b6   :  { %v8273_v45 = vpop.eup %8272  ;;  %5992 = vmatprep.subr.bf16.mxu1 %v5746_v21  ;;  %v5811_v21 = vunpack.c.h.s8.bf16 %v5583_v0 }
 0x8b7   :  { %v5467_v17 = vadd.f32 1.0, %v8273_v45  ;;  %6114 = vmatpush1.bf16.msra.mxu0 %v5753_v52 }
 0x8b8   :  { %v8275_v11 = vpop.eup %8274  ;;  %6115 = vmatprep.subr.bf16.mxu0 %v5748_v19  ;;  %v5578_v19 = vld [vmem:[#allocation2 + $0x1d48] sm:$0xff] }
 0x8b9   :  { %8276 = vrcp.f32 %v5467_v17  ;;  %v5468_v14 = vadd.f32 1.0, %v8275_v11  ;;  %5993 = vmatpush1.bf16.msra.mxu1 %v5745_v40  ;;  %v5813_v40 = vunpack.c.h.s8.bf16 %v5585_v42 }
 0x8ba   :  { %5994 = vmatprep.subr.bf16.mxu1 %v5836_v23  ;;  %v5800_v23 = vunpack.c.h.s8.bf16 %v5578_v19 }
 0x8bb   :  { %8278 = vrcp.f32 %v5468_v14  ;;  %6116 = vmatpush1.bf16.msra.mxu0 %v5747_v56  ;;  %v5579_v56 = vld [vmem:[#allocation2 + $0x1d50] sm:$0xff] }
 0x8bc   :  { %6117 = vmatprep.subr.bf16.mxu0 %v5838_v9  ;;  %v5794_v9 = vunpack.c.l.s8.bf16 %v5578_v19  ;;  %v5801_v14 = vunpack.c.h.s8.bf16 %v5579_v56 }
 0x8bd   :  { %5995 = vmatpush2.bf16.msra.mxu1 %v5835_v20 }
 0x8be   :  { %5996 = vmatprep.subr.bf16.mxu1 %v5830_v63  ;;  %v5793_v63 = vunpack.c.l.s8.bf16 %v5577_v15 }
 0x8bf   :  { %6118 = vmatpush2.bf16.msra.mxu0 %v5837_v13  ;;  %v5694_v13 = vunpack.c.h.s8.bf16 %v5526_v30 }
 0x8c0   :  { %6119 = vmatprep.subr.bf16.mxu0 %v5832_v25  ;;  %v5525_v25 = vld [vmem:[#allocation2 + $0x1ba0] sm:$0xff] }
 0x8c1   :  { %5997 = vmatpush2.bf16.msra.mxu1 %v5829_v27  ;;  %v5795_v27 = vunpack.c.l.s8.bf16 %v5579_v56  ;;  %v5693_v10 = vunpack.c.h.s8.bf16 %v5525_v25 }
 0x8c2   :  { %5998 = vmatprep.subr.bf16.mxu1 %v5824_v50  ;;  %v5527_v50 = vld [vmem:[#allocation2 + $0x1bb0] sm:$0xff] }
 0x8c3   :  { %6120 = vmatpush2.bf16.msra.mxu0 %v5831_v7  ;;  %v5688_v7 = vunpack.c.l.s8.bf16 %v5526_v30  ;;  %v5695_v16 = vunpack.c.h.s8.bf16 %v5527_v50 }
 0x8c4   :  { %6121 = vmatprep.subr.bf16.mxu0 %v5826_v3  ;;  %v5520_v3 = vld [vmem:[#allocation2 + $0x1b78] sm:$0xff] }
 0x8c5   :  { %5999 = vmatpush2.bf16.msra.mxu1 %v5823_v28  ;;  %v5682_v0 = vunpack.c.h.s8.bf16 %v5520_v3 }
 0x8c6   :  { %v8277_v61 = vpop.eup %8276  ;;  %6000 = vmatprep.subr.bf16.mxu1 %v5818_v53  ;;  %v5690_v53 = vunpack.c.l.s8.bf16 %v5528_v8 }
 0x8c7   :  { %v5485_v35 = vmul.f32 %v8277_v61, %v8273_v45  ;;  %6122 = vmatpush2.bf16.msra.mxu0 %v5825_v32  ;;  %v5580_v45 = vld [vmem:[#allocation2 + $0x1d58] sm:$0xff]  ;;  %v5373_v32 = vrot.slane %v9021_v59, %v8520_v49 }
 0x8c8   :  { %v8279_v44 = vpop.eup %8278  ;;  %6123 = vmatprep.subr.bf16.mxu0 %v5820_v62  ;;  %v5802_v17 = vunpack.c.h.s8.bf16 %v5580_v45  ;;  %v5796_v20 = vunpack.c.l.s8.bf16 %v5580_v45  ;;  %v5687_v62 = vunpack.c.l.s8.bf16 %v5525_v25 }
 0x8c9   :  { %v5491_v43 = vsel %vm5461_vm6, %v8277_v61, %v5485_v35  ;;  %v5486_v6 = vmul.f32 %v8279_v44, %v8275_v11  ;;  %6001 = vmatpush2.bf16.msra.mxu1 %v5817_v48  ;;  %v5799_v11 = vunpack.c.h.s8.bf16 %v5577_v15  ;;  %v5522_v48 = vld [vmem:[#allocation2 + $0x1b88] sm:$0xff]  ;;  %v5519_v35 = vld [vmem:[#allocation2 + $0x1b70] sm:$0xff] }
 0x8ca   :  { %8229 = vst [vmem:[%s9393_s4 + $0x30] sm:$0xff] %v5491_v43  ;;  %6002 = vmatprep.subr.bf16.mxu1 %v5812_v26  ;;  %v5678_v15 = vunpack.c.l.s8.bf16 %v5522_v48 }
 0x8cb   :  { %v5492_v52 = vsel %vm5462_vm7, %v8279_v44, %v5486_v6  ;;  %6124 = vmatpush2.bf16.msra.mxu0 %v5819_v2  ;;  %v5377_v44 = vrot.slane %v9021_v59, %v8523_v51  ;;  %v5684_v6 = vunpack.c.h.s8.bf16 %v5522_v48 }
 0x8cc   :  { %8230 = vst [vmem:[%s9393_s4 + $0x38] sm:$0xff] %v5492_v52  ;;  %6125 = vmatprep.subr.bf16.mxu0 %v5814_v18  ;;  %v5689_v18 = vunpack.c.l.s8.bf16 %v5527_v50  ;;  %v5508_v50 = vld [vmem:[#allocation2 + $0x1b18] sm:$0xff] }
 0x8cd   :  { %6003 = vmatpush2.bf16.msra.mxu1 %v5811_v21  ;;  %v5521_v21 = vld [vmem:[#allocation2 + $0x1b80] sm:$0xff] }
 0x8ce   :  { %6004 = vmatprep.subr.bf16.mxu1 %v5806_v5  ;;  %v5683_v45 = vunpack.c.h.s8.bf16 %v5521_v21 }
 0x8cf   :  { %6126 = vmatpush2.bf16.msra.mxu0 %v5813_v40  ;;  %v5676_v40 = vunpack.c.l.s8.bf16 %v5520_v3 }
 0x8d0   :  { %6127 = vmatprep.subr.bf16.mxu0 %v5808_v22 }
 0x8d1   :  { %6005 = vmatpush2.bf16.msra.mxu1 %v5805_v1  ;;  %v5514_v1 = vld [vmem:[#allocation2 + $0x1b48] sm:$0xff] }
 0x8d2   :  { %6006 = vmatprep.subr.bf16.mxu1 %v5800_v23  ;;  %v5670_v56 = vunpack.c.h.s8.bf16 %v5514_v1 }
 0x8d3   :  { %6128 = vmatpush2.bf16.msra.mxu0 %v5807_v33 }
 0x8d4   :  { %6129 = vmatprep.subr.bf16.mxu0 %v5802_v17  ;;  %v5516_v17 = vld [vmem:[#allocation2 + $0x1b58] sm:$0xff] }
 0x8d5   :  { %6007 = vmatpush2.bf16.msra.mxu1 %v5799_v11  ;;  %v5513_v11 = vld [vmem:[#allocation2 + $0x1b40] sm:$0xff] }
 0x8d6   :  { %6008 = vmatprep.subr.bf16.mxu1 %v5794_v9  ;;  %v5669_v25 = vunpack.c.h.s8.bf16 %v5513_v11  ;;  %v5663_v3 = vunpack.c.l.s8.bf16 %v5513_v11 }
 0x8d7   :  { %6130 = vmatpush2.bf16.msra.mxu0 %v5801_v14  ;;  %v5677_v14 = vunpack.c.l.s8.bf16 %v5521_v21 }
 0x8d8   :  { %6131 = vmatprep.subr.bf16.mxu0 %v5796_v20  ;;  %v5672_v20 = vunpack.c.h.s8.bf16 %v5516_v17 }
 0x8d9   :  { %6009 = vmatpush2.bf16.msra.mxu1 %v5793_v63  ;;  %v5515_v63 = vld [vmem:[#allocation2 + $0x1b50] sm:$0xff] }
 0x8da   :  { %6060 = vmatprep.subr.bf16.mxu1 %v5694_v13 }
 0x8db   :  { %6132 = vmatpush2.bf16.msra.mxu0 %v5795_v27  ;;  %v5664_v27 = vunpack.c.l.s8.bf16 %v5514_v1 }
 0x8dc   :  { %v5188_v28 = vpop.f32.mrf.mxu1  ;;  %6011 = vmatmul.mubr.bf16.vlgmr.msra.gmra.mxu1 %v8449_v47  ;;  %6183 = vmatprep.subr.bf16.mxu0 %v5696_v41 }
 0x8dd   :  { %v5189_v58 = vadd.f32 %v5188_v28, %v9015_v54  ;;  %6061 = vmatpush1.bf16.msra.mxu1 %v5693_v10  ;;  %6092 = vmatprep.mubr.bf16.mxu1 %v8435_v36  ;;  %v5671_v10 = vunpack.c.h.s8.bf16 %v5515_v63  ;;  %v5658_v28 = vunpack.c.h.s8.bf16 %v5508_v50 }
 0x8de   :  { %v5190_v61 = vpop.f32.mrf.mxu1  ;;  %v9066_v26 = vpop.f32.mrf.mxu0  ;;  %6062 = vmatprep.subr.bf16.mxu1 %v5688_v7  ;;  %6134 = vmatmul.mubr.bf16.vlgmr.msra.gmra.mxu0 %v8449_v47  ;;  %v5666_v7 = vunpack.c.l.s8.bf16 %v5516_v17 }
 0x8df   :  { %v5230_v54 = vadd.f32 %v9037_v4, %v5189_v58  ;;  %v5191_v2 = vadd.f32 %v5190_v61, %v9019_v12  ;;  %6184 = vmatpush1.bf16.msra.mxu0 %v5695_v16  ;;  %6215 = vmatprep.mubr.bf16.mxu0 %v8435_v36  ;;  %v5416_v4 = vrot.slane %v9023_v57, %v8523_v51  ;;  %v5681_v12 = vunpack.c.h.s8.bf16 %v5519_v35  ;;  %v5510_v16 = vld [vmem:[#allocation2 + $0x1b28] sm:$0xff] }
 0x8e0   :  { %v5192_v42 = vpop.f32.mrf.mxu1  ;;  %v9074_v43 = vpop.f32.mrf.mxu0  ;;  %6185 = vmatprep.subr.bf16.mxu0 %v5690_v53  ;;  %v5675_v57 = vunpack.c.l.s8.bf16 %v5519_v35  ;;  %v5507_v53 = vld [vmem:[#allocation2 + $0x1b10] sm:$0xff]  ;;  %v5665_v58 = vunpack.c.l.s8.bf16 %v5515_v63  ;;  %v5550_v61 = vld [vmem:[#allocation2 + $0x1c68] sm:$0xff]  ;;  %v5654_v35 = vunpack.c.l.s8.bf16 %v5510_v16 }
 0x8e1   :  { %v5394_v5 = vmul.f32 %v5373_v32, %v5230_v54  ;;  %v5232_v52 = vadd.f32 %v9043_v60, %v5191_v2  ;;  %6063 = vmatpush1.bf16.msra.mxu1 %v5687_v62  ;;  %v5660_v32 = vunpack.c.h.s8.bf16 %v5510_v16  ;;  %v5509_v62 = vld [vmem:[#allocation2 + $0x1b20] sm:$0xff]  ;;  %v5657_v48 = vunpack.c.h.s8.bf16 %v5507_v53  ;;  %v5552_v2 = vld [vmem:[#allocation2 + $0x1c78] sm:$0xff] }
 0x8e2   :  { %v5193_v19 = vpop.f32.mrf.mxu1  ;;  %v5315_v59 = vpop.f32.mrf.mxu0  ;;  %6064 = vmatprep.subr.bf16.mxu1 %v5682_v0  ;;  %v5659_v0 = vunpack.c.h.s8.bf16 %v5509_v62  ;;  %v5651_v54 = vunpack.c.l.s8.bf16 %v5507_v53  ;;  %v5653_v42 = vunpack.c.l.s8.bf16 %v5509_v62  ;;  %v5744_v21 = vunpack.c.h.s8.bf16 %v5552_v2 }
 0x8e3   :  { %v9079_v22 = vadd.f32 %v5412_v39, %v5394_v5  ;;  %v5395_v36 = vmul.f32 %v5377_v44, %v5232_v52  ;;  %6186 = vmatpush1.bf16.msra.mxu0 %v5689_v18  ;;  %v5652_v39 = vunpack.c.l.s8.bf16 %v5508_v50  ;;  %v5742_v44 = vunpack.c.h.s8.bf16 %v5550_v61  ;;  %v5549_v18 = vld [vmem:[#allocation2 + $0x1c60] sm:$0xff]  ;;  %v5551_v5 = vld [vmem:[#allocation2 + $0x1c70] sm:$0xff] }
 0x8e4   :  { %v5316_v23 = vpop.f32.mrf.mxu0  ;;  %6187 = vmatprep.subr.bf16.mxu0 %v5684_v6  ;;  %v5736_v19 = vunpack.c.l.s8.bf16 %v5550_v61  ;;  %v5738_v1 = vunpack.c.l.s8.bf16 %v5552_v2 }
 0x8e5   :  { %v5439_v60 = vand.u32 2147483647, %v9079_v22  ;;  %v9082_v33 = vadd.f32 %v5416_v4, %v5395_v36  ;;  %6065 = vmatpush1.bf16.msra.mxu1 %v5681_v12  ;;  %v5741_v4 = vunpack.c.h.s8.bf16 %v5549_v18  ;;  %v5743_v36 = vunpack.c.h.s8.bf16 %v5551_v5  ;;  %v5546_v23 = vld [vmem:[#allocation2 + $0x1c48] sm:$0xff] }
 0x8e6   :  { %6066 = vmatprep.subr.bf16.mxu1 %v5676_v40  ;;  %v5544_v40 = vld [vmem:[#allocation2 + $0x1c38] sm:$0xff]  ;;  %v5732_v17 = vunpack.c.h.s8.bf16 %v5546_v23  ;;  %vm5463_vm8 = vcmp.ge.f32.partialorder %v9079_v22, 0.0 }
 0x8e7   :  { %v5445_v9 = vsub.f32 0.0, %v5439_v60  ;;  %v5440_v30 = vand.u32 2147483647, %v9082_v33  ;;  %6188 = vmatpush1.bf16.msra.mxu0 %v5683_v45  ;;  %v5735_v45 = vunpack.c.l.s8.bf16 %v5549_v18  ;;  %v5543_v60 = vld [vmem:[#allocation2 + $0x1c30] sm:$0xff]  ;;  %vm5464_vm9 = vcmp.ge.f32.partialorder %v9082_v33, 0.0 }
 0x8e8   :  { %6189 = vmatprep.subr.bf16.mxu0 %v5678_v15  ;;  %v5730_v15 = vunpack.c.h.s8.bf16 %v5544_v40  ;;  %v5729_v11 = vunpack.c.h.s8.bf16 %v5543_v60  ;;  %v5723_v63 = vunpack.c.l.s8.bf16 %v5543_v60 }
 0x8e9   :  { %v5453_v8 = vmul.f32 1.442695, %v5445_v9  ;;  %v5446_v13 = vsub.f32 0.0, %v5440_v30  ;;  %6067 = vmatpush1.bf16.msra.mxu1 %v5675_v57  ;;  %v5737_v57 = vunpack.c.l.s8.bf16 %v5551_v5  ;;  %v5724_v9 = vunpack.c.l.s8.bf16 %v5544_v40  ;;  %v5538_v30 = vld [vmem:[#allocation2 + $0x1c08] sm:$0xff]  ;;  %v5623_v40 = vld [vmem:[#allocation2 + $0x1eb0] sm:$0xff] }
 0x8ea   :  { %6068 = vmatprep.subr.bf16.mxu1 %v5670_v56  ;;  %v5545_v56 = vld [vmem:[#allocation2 + $0x1c40] sm:$0xff] }
 0x8eb   :  { %8280 = vpow2.f32 %v5453_v8  ;;  %v5455_v41 = vmul.f32 1.442695, %v5446_v13  ;;  %6190 = vmatpush1.bf16.msra.mxu0 %v5677_v14  ;;  %v5731_v14 = vunpack.c.h.s8.bf16 %v5545_v56  ;;  %v5540_v8 = vld [vmem:[#allocation2 + $0x1c18] sm:$0xff]  ;;  %v5718_v13 = vunpack.c.h.s8.bf16 %v5538_v30 }
 0x8ec   :  { %6191 = vmatprep.subr.bf16.mxu0 %v5672_v20  ;;  %v5726_v20 = vunpack.c.l.s8.bf16 %v5546_v23  ;;  %v5720_v50 = vunpack.c.h.s8.bf16 %v5540_v8  ;;  %v5887_v23 = vunpack.c.h.s8.bf16 %v5623_v40 }
 0x8ed   :  { %8282 = vpow2.f32 %v5455_v41  ;;  %6069 = vmatpush1.bf16.msra.mxu1 %v5669_v25  ;;  %v5537_v25 = vld [vmem:[#allocation2 + $0x1c00] sm:$0xff] }
 0x8ee   :  { %6070 = vmatprep.subr.bf16.mxu1 %v5664_v27  ;;  %v5725_v27 = vunpack.c.l.s8.bf16 %v5545_v56  ;;  %v5711_v61 = vunpack.c.l.s8.bf16 %v5537_v25 }
 0x8ef   :  { %6192 = vmatpush1.bf16.msra.mxu0 %v5671_v10  ;;  %v5539_v10 = vld [vmem:[#allocation2 + $0x1c10] sm:$0xff] }
 0x8f0   :  { %6193 = vmatprep.subr.bf16.mxu0 %v5666_v7  ;;  %v5719_v62 = vunpack.c.h.s8.bf16 %v5539_v10 }
 0x8f1   :  { %6071 = vmatpush1.bf16.msra.mxu1 %v5663_v3  ;;  %v5717_v3 = vunpack.c.h.s8.bf16 %v5537_v25 }
 0x8f2   :  { %6072 = vmatprep.subr.bf16.mxu1 %v5658_v28  ;;  %v5712_v28 = vunpack.c.l.s8.bf16 %v5538_v30 }
 0x8f3   :  { %6194 = vmatpush1.bf16.msra.mxu0 %v5665_v58 }
 0x8f4   :  { %6195 = vmatprep.subr.bf16.mxu0 %v5660_v32  ;;  %v5532_v32 = vld [vmem:[#allocation2 + $0x1bd8] sm:$0xff] }
 0x8f5   :  { %6073 = vmatpush1.bf16.msra.mxu1 %v5657_v48  ;;  %v5714_v48 = vunpack.c.l.s8.bf16 %v5540_v8  ;;  %v5706_v22 = vunpack.c.h.s8.bf16 %v5532_v32  ;;  %v5700_v18 = vunpack.c.l.s8.bf16 %v5532_v32 }
 0x8f6   :  { %6074 = vmatprep.subr.bf16.mxu1 %v5652_v39 }
 0x8f7   :  { %6196 = vmatpush1.bf16.msra.mxu0 %v5659_v0  ;;  %v5534_v0 = vld [vmem:[#allocation2 + $0x1be8] sm:$0xff] }
 0x8f8   :  { %v8281_v6 = vpop.eup %8280  ;;  %6197 = vmatprep.subr.bf16.mxu0 %v5654_v35  ;;  %v5531_v35 = vld [vmem:[#allocation2 + $0x1bd0] sm:$0xff]  ;;  %v5708_v2 = vunpack.c.h.s8.bf16 %v5534_v0 }
 0x8f9   :  { %v5469_v52 = vadd.f32 1.0, %v8281_v6  ;;  %6075 = vmatpush1.bf16.msra.mxu1 %v5651_v54  ;;  %v5713_v54 = vunpack.c.l.s8.bf16 %v5539_v10  ;;  %v5705_v33 = vunpack.c.h.s8.bf16 %v5531_v35  ;;  %v5699_v5 = vunpack.c.l.s8.bf16 %v5531_v35  ;;  %v5610_v10 = vld [vmem:[#allocation2 + $0x1e48] sm:$0xff] }
 0x8fa   :  { %v8283_v12 = vpop.eup %8282  ;;  %6076 = vmatprep.subr.bf16.mxu1 %v5742_v44  ;;  %v5533_v44 = vld [vmem:[#allocation2 + $0x1be0] sm:$0xff] }
 0x8fb   :  { %8284 = vrcp.f32 %v5469_v52  ;;  %v5470_v59 = vadd.f32 1.0, %v8283_v12  ;;  %6198 = vmatpush1.bf16.msra.mxu0 %v5653_v42  ;;  %v5622_v42 = vld [vmem:[#allocation2 + $0x1ea8] sm:$0xff]  ;;  %v5624_v52 = vld [vmem:[#allocation2 + $0x1eb8] sm:$0xff] }
 0x8fc   :  { %6199 = vmatprep.subr.bf16.mxu0 %v5744_v21  ;;  %v5702_v21 = vunpack.c.l.s8.bf16 %v5534_v0  ;;  %v5882_v60 = vunpack.c.l.s8.bf16 %v5624_v52 }
 0x8fd   :  { %8286 = vrcp.f32 %v5470_v59  ;;  %6077 = vmatpush2.bf16.msra.mxu1 %v5741_v4  ;;  %v5886_v4 = vunpack.c.h.s8.bf16 %v5622_v42  ;;  %v5888_v59 = vunpack.c.h.s8.bf16 %v5624_v52 }
 0x8fe   :  { %6078 = vmatprep.subr.bf16.mxu1 %v5736_v19  ;;  %v5701_v19 = vunpack.c.l.s8.bf16 %v5533_v44 }
 0x8ff   :  { %6200 = vmatpush2.bf16.msra.mxu0 %v5743_v36 }
 0x900   :  { %6201 = vmatprep.subr.bf16.mxu0 %v5738_v1  ;;  %v5880_v1 = vunpack.c.l.s8.bf16 %v5622_v42  ;;  %v5605_v42 = vld [vmem:[#allocation2 + $0x1e20] sm:$0xff] }
 0x901   :  { %6079 = vmatpush2.bf16.msra.mxu1 %v5735_v45  ;;  %v5616_v45 = vld [vmem:[#allocation2 + $0x1e78] sm:$0xff]  ;;  %v5851_v52 = vunpack.c.h.s8.bf16 %v5605_v42 }
 0x902   :  { %6080 = vmatprep.subr.bf16.mxu1 %v5730_v15 }
 0x903   :  { %6202 = vmatpush2.bf16.msra.mxu0 %v5737_v57 }
 0x904   :  { %6203 = vmatprep.subr.bf16.mxu0 %v5732_v17  ;;  %v5618_v17 = vld [vmem:[#allocation2 + $0x1e88] sm:$0xff] }
 0x905   :  { %6081 = vmatpush2.bf16.msra.mxu1 %v5729_v11  ;;  %v5874_v11 = vunpack.c.h.s8.bf16 %v5616_v45  ;;  %v5876_v8 = vunpack.c.h.s8.bf16 %v5618_v17 }
 0x906   :  { %6082 = vmatprep.subr.bf16.mxu1 %v5724_v9  ;;  %v5615_v9 = vld [vmem:[#allocation2 + $0x1e70] sm:$0xff] }
 0x907   :  { %6204 = vmatpush2.bf16.msra.mxu0 %v5731_v14  ;;  %v5881_v14 = vunpack.c.l.s8.bf16 %v5623_v40  ;;  %v5873_v25 = vunpack.c.h.s8.bf16 %v5615_v9  ;;  %v5645_v40 = vld [vmem:[#allocation2 + $0x1f60] sm:$0xff] }
 0x908   :  { %v8285_v41 = vpop.eup %8284  ;;  %6205 = vmatprep.subr.bf16.mxu0 %v5726_v20 }
 0x909   :  { %v5487_v7 = vmul.f32 %v8285_v41, %v8281_v6  ;;  %6083 = vmatpush2.bf16.msra.mxu1 %v5723_v63  ;;  %v5707_v6 = vunpack.c.h.s8.bf16 %v5533_v44  ;;  %v5603_v44 = vld [vmem:[#allocation2 + $0x1e10] sm:$0xff] }
 0x90a   :  { %v8287_v16 = vpop.eup %8286  ;;  %6084 = vmatprep.subr.bf16.mxu1 %v5718_v13  ;;  %v5617_v13 = vld [vmem:[#allocation2 + $0x1e80] sm:$0xff] }
 0x90b   :  { %v5493_v53 = vsel %vm5463_vm8, %v8285_v41, %v5487_v7  ;;  %v5488_v58 = vmul.f32 %v8287_v16, %v8283_v12  ;;  %6206 = vmatpush2.bf16.msra.mxu0 %v5725_v27  ;;  %v5621_v12 = vld [vmem:[#allocation2 + $0x1ea0] sm:$0xff]  ;;  %v5868_v41 = vunpack.c.l.s8.bf16 %v5616_v45  ;;  %v5875_v7 = vunpack.c.h.s8.bf16 %v5617_v13  ;;  %v5647_v45 = vld [vmem:[#allocation2 + $0x1f70] sm:$0xff] }
 0x90c   :  { %8231 = vst [vmem:[%s9393_s4 + $0x40] sm:$0xff] %v5493_v53  ;;  %6207 = vmatprep.subr.bf16.mxu0 %v5720_v50  ;;  %v5885_v36 = vunpack.c.h.s8.bf16 %v5621_v12  ;;  %v5879_v57 = vunpack.c.l.s8.bf16 %v5621_v12  ;;  %v5609_v53 = vld [vmem:[#allocation2 + $0x1e40] sm:$0xff]  ;;  %v5843_v12 = vunpack.c.l.s8.bf16 %v5603_v44 }
 0x90d   :  { %v5494_v39 = vsel %vm5464_vm9, %v8287_v16, %v5488_v58  ;;  %6085 = vmatpush2.bf16.msra.mxu1 %v5717_v3  ;;  %v5870_v3 = vunpack.c.l.s8.bf16 %v5618_v17  ;;  %v5612_v16 = vld [vmem:[#allocation2 + $0x1e58] sm:$0xff]  ;;  %v5869_v58 = vunpack.c.l.s8.bf16 %v5617_v13  ;;  %v5855_v35 = vunpack.c.l.s8.bf16 %v5609_v53 }
 0x90e   :  { %8232 = vst [vmem:[%s9393_s4 + $0x48] sm:$0xff] %v5494_v39  ;;  %6086 = vmatprep.subr.bf16.mxu1 %v5712_v28  ;;  %v5862_v28 = vunpack.c.h.s8.bf16 %v5610_v10  ;;  %v5864_v32 = vunpack.c.h.s8.bf16 %v5612_v16  ;;  %v5856_v39 = vunpack.c.l.s8.bf16 %v5610_v10  ;;  %v5935_v17 = vunpack.c.h.s8.bf16 %v5647_v45  ;;  %v5634_v10 = vld [vmem:[#allocation2 + $0x1f08] sm:$0xff] }
 0x90f   :  { %6208 = vmatpush2.bf16.msra.mxu0 %v5719_v62  ;;  %v5611_v62 = vld [vmem:[#allocation2 + $0x1e50] sm:$0xff]  ;;  %v5929_v13 = vunpack.c.l.s8.bf16 %v5647_v45  ;;  %v8322_v45 = vld [vmem:[#allocation4 + $0x1e] sm:$0x3f] }
 0x910   :  { %6209 = vmatprep.subr.bf16.mxu0 %v5714_v48  ;;  %v5861_v48 = vunpack.c.h.s8.bf16 %v5609_v53  ;;  %v5863_v0 = vunpack.c.h.s8.bf16 %v5611_v62 }
 0x911   :  { %6087 = vmatpush2.bf16.msra.mxu1 %v5711_v61  ;;  %v5604_v61 = vld [vmem:[#allocation2 + $0x1e18] sm:$0xff] }
 0x912   :  { %6088 = vmatprep.subr.bf16.mxu1 %v5706_v22  ;;  %v5858_v22 = vunpack.c.l.s8.bf16 %v5612_v16  ;;  %v5910_v16 = vunpack.c.h.s8.bf16 %v5634_v10 }
 0x913   :  { %6210 = vmatpush2.bf16.msra.mxu0 %v5713_v54  ;;  %v5606_v54 = vld [vmem:[#allocation2 + $0x1e28] sm:$0xff] }
 0x914   :  { %6211 = vmatprep.subr.bf16.mxu0 %v5708_v2  ;;  %v5850_v2 = vunpack.c.h.s8.bf16 %v5604_v61 }
 0x915   :  { %6089 = vmatpush2.bf16.msra.mxu1 %v5705_v33  ;;  %v5857_v33 = vunpack.c.l.s8.bf16 %v5611_v62 }
 0x916   :  { %6090 = vmatprep.subr.bf16.mxu1 %v5700_v18  ;;  %v5852_v18 = vunpack.c.h.s8.bf16 %v5606_v54 }
 0x917   :  { %6212 = vmatpush2.bf16.msra.mxu0 %v5707_v6  ;;  %v5849_v6 = vunpack.c.h.s8.bf16 %v5603_v44 }
 0x918   :  { %6213 = vmatprep.subr.bf16.mxu0 %v5702_v21  ;;  %v5844_v21 = vunpack.c.l.s8.bf16 %v5604_v61 }
 0x919   :  { %6091 = vmatpush2.bf16.msra.mxu1 %v5699_v5  ;;  %v5646_v5 = vld [vmem:[#allocation2 + $0x1f68] sm:$0xff] }
 0x91a   :  { %6142 = vmatprep.subr.bf16.mxu1 %v5886_v4  ;;  %v5846_v4 = vunpack.c.l.s8.bf16 %v5606_v54 }
 0x91b   :  { %6214 = vmatpush2.bf16.msra.mxu0 %v5701_v19  ;;  %v5648_v19 = vld [vmem:[#allocation2 + $0x1f78] sm:$0xff] }
 0x91c   :  { %v9093_v15 = vpop.f32.mrf.mxu1  ;;  %6093 = vmatmul.mubr.bf16.vlgmr.msra.gmra.mxu1 %v8447_v46  ;;  %6265 = vmatprep.subr.bf16.mxu0 %v5888_v59  ;;  %v5934_v59 = vunpack.c.h.s8.bf16 %v5646_v5 }
 0x91d   :  { %6143 = vmatpush1.bf16.msra.mxu1 %v5885_v36  ;;  %6174 = vmatprep.mubr.bf16.mxu1 %v8454_v55  ;;  %v5845_v36 = vunpack.c.l.s8.bf16 %v5605_v42 }
 0x91e   :  { %v9097_v56 = vpop.f32.mrf.mxu1  ;;  %6144 = vmatprep.subr.bf16.mxu1 %v5880_v1  ;;  %v9099_v30 = vpop.f32.mrf.mxu0  ;;  %6216 = vmatmul.mubr.bf16.vlgmr.msra.gmra.mxu0 %v8447_v46  ;;  %v5936_v1 = vunpack.c.h.s8.bf16 %v5648_v19 }
 0x91f   :  { %6266 = vmatpush1.bf16.msra.mxu0 %v5887_v23  ;;  %6297 = vmatprep.mubr.bf16.mxu0 %v8454_v55  ;;  %v5867_v55 = vunpack.c.l.s8.bf16 %v5615_v9  ;;  %v5933_v23 = vunpack.c.h.s8.bf16 %v5645_v40  ;;  %v5927_v9 = vunpack.c.l.s8.bf16 %v5645_v40 }
 0x920   :  { %v5274_v20 = vpop.f32.mrf.mxu1  ;;  %v9103_v63 = vpop.f32.mrf.mxu0  ;;  %6267 = vmatprep.subr.bf16.mxu0 %v5882_v60  ;;  %v5928_v60 = vunpack.c.l.s8.bf16 %v5646_v5 }
 0x921   :  { %6145 = vmatpush1.bf16.msra.mxu1 %v5879_v57  ;;  %v5640_v57 = vld [vmem:[#allocation2 + $0x1f38] sm:$0xff] }
 0x922   :  { %v5275_v27 = vpop.f32.mrf.mxu1  ;;  %6146 = vmatprep.subr.bf16.mxu1 %v5874_v11  ;;  %v5975_v50 = vpop.f32.mrf.mxu0  ;;  %v5930_v11 = vunpack.c.l.s8.bf16 %v5648_v19  ;;  %v5922_v20 = vunpack.c.h.s8.bf16 %v5640_v57  ;;  %v5575_v19 = vld [vmem:[#allocation2 + $0x1d30] sm:$0xff] }
 0x923   :  { %6268 = vmatpush1.bf16.msra.mxu0 %v5881_v14  ;;  %v5642_v14 = vld [vmem:[#allocation2 + $0x1f48] sm:$0xff]  ;;  %v5641_v27 = vld [vmem:[#allocation2 + $0x1f40] sm:$0xff]  ;;  %v5916_v50 = vunpack.c.l.s8.bf16 %v5640_v57  ;;  %v5791_v40 = vunpack.c.h.s8.bf16 %v5575_v19 }
 0x924   :  { %v5976_v46 = vpop.f32.mrf.mxu0  ;;  %6269 = vmatprep.subr.bf16.mxu0 %v5876_v8  ;;  %v5639_v8 = vld [vmem:[#allocation2 + $0x1f30] sm:$0xff]  ;;  %v5917_v53 = vunpack.c.l.s8.bf16 %v5641_v27 }
 0x925   :  { %6147 = vmatpush1.bf16.msra.mxu1 %v5873_v25  ;;  %v5924_v25 = vunpack.c.h.s8.bf16 %v5642_v14  ;;  %v5918_v46 = vunpack.c.l.s8.bf16 %v5642_v14 }
 0x926   :  { %6148 = vmatprep.subr.bf16.mxu1 %v5868_v41  ;;  %v5921_v41 = vunpack.c.h.s8.bf16 %v5639_v8 }
 0x927   :  { %6270 = vmatpush1.bf16.msra.mxu0 %v5875_v7  ;;  %v5923_v7 = vunpack.c.h.s8.bf16 %v5641_v27 }
 0x928   :  { %6271 = vmatprep.subr.bf16.mxu0 %v5870_v3  ;;  %v5915_v3 = vunpack.c.l.s8.bf16 %v5639_v8  ;;  %v5785_v8 = vunpack.c.l.s8.bf16 %v5575_v19 }
 0x929   :  { %6149 = vmatpush1.bf16.msra.mxu1 %v5867_v55  ;;  %v5636_v55 = vld [vmem:[#allocation2 + $0x1f18] sm:$0xff] }
 0x92a   :  { %6150 = vmatprep.subr.bf16.mxu1 %v5862_v28  ;;  %v5633_v28 = vld [vmem:[#allocation2 + $0x1f00] sm:$0xff] }
 0x92b   :  { %6272 = vmatpush1.bf16.msra.mxu0 %v5869_v58  ;;  %v5912_v58 = vunpack.c.h.s8.bf16 %v5636_v55  ;;  %v5909_v62 = vunpack.c.h.s8.bf16 %v5633_v28 }
 0x92c   :  { %6273 = vmatprep.subr.bf16.mxu0 %v5864_v32  ;;  %v5635_v32 = vld [vmem:[#allocation2 + $0x1f10] sm:$0xff] }
 0x92d   :  { %6151 = vmatpush1.bf16.msra.mxu1 %v5861_v48  ;;  %v5904_v48 = vunpack.c.l.s8.bf16 %v5634_v10  ;;  %v5911_v61 = vunpack.c.h.s8.bf16 %v5635_v32  ;;  %v5905_v44 = vunpack.c.l.s8.bf16 %v5635_v32 }
 0x92e   :  { %6152 = vmatprep.subr.bf16.mxu1 %v5856_v39  ;;  %v5628_v39 = vld [vmem:[#allocation2 + $0x1ed8] sm:$0xff] }
 0x92f   :  { %6274 = vmatpush1.bf16.msra.mxu0 %v5863_v0  ;;  %v5906_v0 = vunpack.c.l.s8.bf16 %v5636_v55  ;;  %v5898_v54 = vunpack.c.h.s8.bf16 %v5628_v39 }
 0x930   :  { %6275 = vmatprep.subr.bf16.mxu0 %v5858_v22  ;;  %v5903_v22 = vunpack.c.l.s8.bf16 %v5633_v28 }
 0x931   :  { %6153 = vmatpush1.bf16.msra.mxu1 %v5855_v35  ;;  %v5630_v35 = vld [vmem:[#allocation2 + $0x1ee8] sm:$0xff] }
 0x932   :  { %6154 = vmatprep.subr.bf16.mxu1 %v5850_v2  ;;  %v5627_v2 = vld [vmem:[#allocation2 + $0x1ed0] sm:$0xff] }
 0x933   :  { %6276 = vmatpush1.bf16.msra.mxu0 %v5857_v33  ;;  %v5900_v33 = vunpack.c.h.s8.bf16 %v5630_v35  ;;  %v5897_v42 = vunpack.c.h.s8.bf16 %v5627_v2 }
 0x934   :  { %6277 = vmatprep.subr.bf16.mxu0 %v5852_v18  ;;  %v5629_v18 = vld [vmem:[#allocation2 + $0x1ee0] sm:$0xff] }
 0x935   :  { %6155 = vmatpush1.bf16.msra.mxu1 %v5849_v6  ;;  %v5892_v6 = vunpack.c.l.s8.bf16 %v5628_v39  ;;  %v5899_v5 = vunpack.c.h.s8.bf16 %v5629_v18 }
 0x936   :  { %6156 = vmatprep.subr.bf16.mxu1 %v5844_v21  ;;  %v5576_v21 = vld [vmem:[#allocation2 + $0x1d38] sm:$0xff] }
 0x937   :  { %6278 = vmatpush1.bf16.msra.mxu0 %v5851_v52  ;;  %v5894_v52 = vunpack.c.l.s8.bf16 %v5630_v35 }
 0x938   :  { %6279 = vmatprep.subr.bf16.mxu0 %v5846_v4  ;;  %v5891_v4 = vunpack.c.l.s8.bf16 %v5627_v2  ;;  %v5563_v2 = vld [vmem:[#allocation2 + $0x1cd0] sm:$0xff] }
 0x939   :  { %6157 = vmatpush1.bf16.msra.mxu1 %v5843_v12  ;;  %v5792_v12 = vunpack.c.h.s8.bf16 %v5576_v21 }
 0x93a   :  { %6158 = vmatprep.subr.bf16.mxu1 %v5934_v59  ;;  %v5893_v59 = vunpack.c.l.s8.bf16 %v5629_v18 }
 0x93b   :  { %6280 = vmatpush1.bf16.msra.mxu0 %v5845_v36  ;;  %v5786_v36 = vunpack.c.l.s8.bf16 %v5576_v21 }
 0x93c   :  { %6281 = vmatprep.subr.bf16.mxu0 %v5936_v1  ;;  %v5312_v1 = vadd.f32 %v9066_v26, %v9093_v15 }
 0x93d   :  { %6159 = vmatpush2.bf16.msra.mxu1 %v5933_v23  ;;  %v5381_v23 = vrot.slane %v8322_v45, %v8554_v29 }
 0x93e   :  { %6160 = vmatprep.subr.bf16.mxu1 %v5928_v60  ;;  %v5570_v60 = vld [vmem:[#allocation2 + $0x1d08] sm:$0xff] }
 0x93f   :  { %6282 = vmatpush2.bf16.msra.mxu0 %v5935_v17  ;;  %v8323_v17 = vld [vmem:[#allocation6 + $0x1e] sm:$0x3f]  ;;  %v5780_v15 = vunpack.c.h.s8.bf16 %v5570_v60 }
 0x940   :  { %6283 = vmatprep.subr.bf16.mxu0 %v5930_v11  ;;  %v5420_v11 = vrot.slane %v8323_v17, %v8554_v29 }
 0x941   :  { %6161 = vmatpush2.bf16.msra.mxu1 %v5927_v9  ;;  %v5314_v9 = vadd.f32 %v9074_v43, %v9097_v56 }
 0x942   :  { %6162 = vmatprep.subr.bf16.mxu1 %v5922_v20  ;;  %v5385_v20 = vrot.slane %v8322_v45, %v8557_v31 }
 0x943   :  { %6284 = vmatpush2.bf16.msra.mxu0 %v5929_v13  ;;  %v5569_v13 = vld [vmem:[#allocation2 + $0x1d00] sm:$0xff] }
 0x944   :  { %6285 = vmatprep.subr.bf16.mxu0 %v5924_v25  ;;  %v5773_v35 = vunpack.c.l.s8.bf16 %v5569_v13 }
 0x945   :  { %6163 = vmatpush2.bf16.msra.mxu1 %v5921_v41 }
 0x946   :  { %6164 = vmatprep.subr.bf16.mxu1 %v5916_v50  ;;  %v5424_v50 = vrot.slane %v8323_v17, %v8557_v31 }
 0x947   :  { %6286 = vmatpush2.bf16.msra.mxu0 %v5923_v7 }
 0x948   :  { %6287 = vmatprep.subr.bf16.mxu0 %v5918_v46 }
 0x949   :  { %6165 = vmatpush2.bf16.msra.mxu1 %v5915_v3  ;;  %v5774_v3 = vunpack.c.l.s8.bf16 %v5570_v60  ;;  %v6439_v60 = vld [vmem:[#allocation2 + $0x2130] sm:$0xff] }
 0x94a   :  { %6166 = vmatprep.subr.bf16.mxu1 %v5910_v16  ;;  %v6452_v16 = vld [vmem:[#allocation2 + $0x2198] sm:$0xff] }
 0x94b   :  { %6288 = vmatpush2.bf16.msra.mxu0 %v5917_v53  ;;  %v6668_v32 = vunpack.c.h.s8.bf16 %v6452_v16  ;;  %v6662_v39 = vunpack.c.l.s8.bf16 %v6452_v16  ;;  %v5594_v16 = vld [vmem:[#allocation2 + $0x1dc8] sm:$0xff] }
 0x94c   :  { %6289 = vmatprep.subr.bf16.mxu0 %v5912_v58  ;;  %v5564_v58 = vld [vmem:[#allocation2 + $0x1cd8] sm:$0xff] }
 0x94d   :  { %6167 = vmatpush2.bf16.msra.mxu1 %v5909_v62 }
 0x94e   :  { %6168 = vmatprep.subr.bf16.mxu1 %v5904_v48 }
 0x94f   :  { %6290 = vmatpush2.bf16.msra.mxu0 %v5911_v61  ;;  %v6446_v61 = vld [vmem:[#allocation2 + $0x2168] sm:$0xff] }
 0x950   :  { %6291 = vmatprep.subr.bf16.mxu0 %v5906_v0  ;;  %v6650_v19 = vunpack.c.l.s8.bf16 %v6446_v61 }
 0x951   :  { %6169 = vmatpush2.bf16.msra.mxu1 %v5903_v22 }
 0x952   :  { %6170 = vmatprep.subr.bf16.mxu1 %v5898_v54  ;;  %v5768_v54 = vunpack.c.h.s8.bf16 %v5564_v58 }
 0x953   :  { %6292 = vmatpush2.bf16.msra.mxu0 %v5905_v44 }
 0x954   :  { %6293 = vmatprep.subr.bf16.mxu0 %v5900_v33 }
 0x955   :  { %6171 = vmatpush2.bf16.msra.mxu1 %v5897_v42  ;;  %v6656_v42 = vunpack.c.h.s8.bf16 %v6446_v61  ;;  %v6475_v61 = vld [vmem:[#allocation2 + $0x2250] sm:$0xff] }
 0x956   :  { %6172 = vmatprep.subr.bf16.mxu1 %v5892_v6  ;;  %v6445_v6 = vld [vmem:[#allocation2 + $0x2160] sm:$0xff] }
 0x957   :  { %6294 = vmatpush2.bf16.msra.mxu0 %v5899_v5  ;;  %v5767_v5 = vunpack.c.h.s8.bf16 %v5563_v2  ;;  %v6649_v45 = vunpack.c.l.s8.bf16 %v6445_v6 }
 0x958   :  { %6295 = vmatprep.subr.bf16.mxu0 %v5894_v52  ;;  %v5762_v52 = vunpack.c.l.s8.bf16 %v5564_v58 }
 0x959   :  { %6173 = vmatpush2.bf16.msra.mxu1 %v5891_v4  ;;  %v6655_v4 = vunpack.c.h.s8.bf16 %v6445_v6  ;;  %v5587_v6 = vld [vmem:[#allocation2 + $0x1d90] sm:$0xff] }
 0x95a   :  { %6224 = vmatprep.subr.bf16.mxu1 %v5792_v12  ;;  %v5558_v12 = vld [vmem:[#allocation2 + $0x1ca8] sm:$0xff] }
 0x95b   :  { %6296 = vmatpush2.bf16.msra.mxu0 %v5893_v59  ;;  %v6440_v59 = vld [vmem:[#allocation2 + $0x2138] sm:$0xff]  ;;  %v5750_v17 = vunpack.c.l.s8.bf16 %v5558_v12 }
 0x95c   :  { %v5352_v57 = vpop.f32.mrf.mxu1  ;;  %6175 = vmatmul.mubr.bf16.vlgmr.msra.gmra.mxu1 %v8463_v24  ;;  %6864 = vmatprep.subr.bf16.mxu0 %v6668_v32  ;;  %v5828_v32 = vunpack.c.h.s8.bf16 %v5594_v16 }
 0x95d   :  { %v5353_v14 = vadd.f32 %v5352_v57, %v5312_v1  ;;  %6225 = vmatpush1.bf16.msra.mxu1 %v5791_v40  ;;  %6256 = vmatprep.mubr.bf16.mxu1 %v8437_v37  ;;  %v5779_v37 = vunpack.c.h.s8.bf16 %v5569_v13  ;;  %v5761_v40 = vunpack.c.l.s8.bf16 %v5563_v2  ;;  %v5557_v1 = vld [vmem:[#allocation2 + $0x1ca0] sm:$0xff]  ;;  %v5599_v13 = vld [vmem:[#allocation2 + $0x1df0] sm:$0xff] }
 0x95e   :  { %v5354_v26 = vpop.f32.mrf.mxu1  ;;  %6226 = vmatprep.subr.bf16.mxu1 %v5786_v36  ;;  %6298 = vmatmul.mubr.bf16.vlgmr.msra.gmra.mxu0 %v8463_v24  ;;  %v9115_v25 = vpop.f32.mrf.mxu0  ;;  %v6451_v24 = vld [vmem:[#allocation2 + $0x2190] sm:$0xff]  ;;  %v5756_v36 = vunpack.c.h.s8.bf16 %v5558_v12  ;;  %v5755_v57 = vunpack.c.h.s8.bf16 %v5557_v1  ;;  %v5833_v58 = vunpack.c.l.s8.bf16 %v5599_v13 }
 0x95f   :  { %v5396_v27 = vmul.f32 %v5381_v23, %v5353_v14  ;;  %v5355_v41 = vadd.f32 %v5354_v26, %v5314_v9  ;;  %v6667_v48 = vunpack.c.h.s8.bf16 %v6451_v24  ;;  %v6661_v44 = vunpack.c.l.s8.bf16 %v6451_v24  ;;  %v5600_v9 = vld [vmem:[#allocation2 + $0x1df8] sm:$0xff] }
 0x960   :  { %v5356_v43 = vpop.f32.mrf.mxu1  ;;  %v9118_v56 = vpop.f32.mrf.mxu0  ;;  %v6644_v23 = vunpack.c.h.s8.bf16 %v6440_v59  ;;  %v6638_v14 = vunpack.c.l.s8.bf16 %v6440_v59 }
 0x961   :  { %v9120_v10 = vadd.f32 %v5420_v11, %v5396_v27  ;;  %v5397_v7 = vmul.f32 %v5385_v20, %v5355_v41  ;;  %6227 = vmatpush1.bf16.msra.mxu1 %v5785_v8  ;;  %6865 = vmatpush1.bf16.msra.mxu0 %v6667_v48  ;;  %v6643_v11 = vunpack.c.h.s8.bf16 %v6439_v60  ;;  %v6434_v20 = vld [vmem:[#allocation2 + $0x2108] sm:$0xff]  ;;  %v5749_v8 = vunpack.c.l.s8.bf16 %v5557_v1  ;;  %v6433_v43 = vld [vmem:[#allocation2 + $0x2100] sm:$0xff] }
 0x962   :  { %v5357_v46 = vpop.f32.mrf.mxu1  ;;  %6228 = vmatprep.subr.bf16.mxu1 %v5780_v15  ;;  %v6057_v55 = vpop.f32.mrf.mxu0  ;;  %6866 = vmatprep.subr.bf16.mxu0 %v6662_v39  ;;  %v5840_v15 = vunpack.c.h.s8.bf16 %v5600_v9  ;;  %v6637_v27 = vunpack.c.l.s8.bf16 %v6439_v60  ;;  %v6626_v24 = vunpack.c.l.s8.bf16 %v6434_v20  ;;  %v6625_v48 = vunpack.c.l.s8.bf16 %v6433_v43 }
 0x963   :  { %v5441_v28 = vand.u32 2147483647, %v9120_v10  ;;  %v9123_v53 = vadd.f32 %v5424_v50, %v5397_v7  ;;  %v6632_v50 = vunpack.c.h.s8.bf16 %v6434_v20  ;;  %v5839_v46 = vunpack.c.h.s8.bf16 %v5599_v13 }
 0x964   :  { %v6058_v62 = vpop.f32.mrf.mxu0  ;;  %v6631_v55 = vunpack.c.h.s8.bf16 %v6433_v43  ;;  %vm5465_vm10 = vcmp.ge.f32.partialorder %v9120_v10, 0.0  ;;  %v6464_v10 = vld [vmem:[#allocation2 + $0x21f8] sm:$0xff] }
 0x965   :  { %v5447_v0 = vsub.f32 0.0, %v5441_v28  ;;  %v5442_v22 = vand.u32 2147483647, %v9123_v53  ;;  %6229 = vmatpush1.bf16.msra.mxu1 %v5779_v37  ;;  %6867 = vmatpush1.bf16.msra.mxu0 %v6661_v44  ;;  %v6476_v28 = vld [vmem:[#allocation2 + $0x2258] sm:$0xff]  ;;  %v5593_v62 = vld [vmem:[#allocation2 + $0x1dc0] sm:$0xff]  ;;  %v6470_v44 = vld [vmem:[#allocation2 + $0x2228] sm:$0xff]  ;;  %v6686_v13 = vunpack.c.l.s8.bf16 %v6464_v10 }
 0x966   :  { %6230 = vmatprep.subr.bf16.mxu1 %v5774_v3  ;;  %6868 = vmatprep.subr.bf16.mxu0 %v6656_v42  ;;  %v5834_v3 = vunpack.c.l.s8.bf16 %v5600_v9  ;;  %v6716_v39 = vunpack.c.h.s8.bf16 %v6476_v28  ;;  %v6710_v2 = vunpack.c.l.s8.bf16 %v6476_v28  ;;  %vm5466_vm11 = vcmp.ge.f32.partialorder %v9123_v53, 0.0  ;;  %v6457_v28 = vld [vmem:[#allocation2 + $0x21c0] sm:$0xff] }
 0x967   :  { %v5457_v33 = vmul.f32 1.442695, %v5447_v0  ;;  %v5448_v18 = vsub.f32 0.0, %v5442_v22  ;;  %v5827_v0 = vunpack.c.h.s8.bf16 %v5593_v62  ;;  %v5822_v22 = vunpack.c.l.s8.bf16 %v5594_v16 }
 0x968   :  { %v6698_v60 = vunpack.c.l.s8.bf16 %v6470_v44  ;;  %v6692_v9 = vunpack.c.h.s8.bf16 %v6464_v10 }
 0x969   :  { %8288 = vpow2.f32 %v5457_v33  ;;  %v5459_v21 = vmul.f32 1.442695, %v5448_v18  ;;  %6231 = vmatpush1.bf16.msra.mxu1 %v5773_v35  ;;  %6869 = vmatpush1.bf16.msra.mxu0 %v6655_v4  ;;  %v6715_v35 = vunpack.c.h.s8.bf16 %v6475_v61  ;;  %v5821_v33 = vunpack.c.l.s8.bf16 %v5593_v62  ;;  %v6469_v4 = vld [vmem:[#allocation2 + $0x2220] sm:$0xff] }
 0x96a   :  { %6232 = vmatprep.subr.bf16.mxu1 %v5768_v54  ;;  %6870 = vmatprep.subr.bf16.mxu0 %v6650_v19  ;;  %v5588_v54 = vld [vmem:[#allocation2 + $0x1d98] sm:$0xff]  ;;  %v6703_v1 = vunpack.c.h.s8.bf16 %v6469_v4  ;;  %v6697_v53 = vunpack.c.l.s8.bf16 %v6469_v4 }
 0x96b   :  { %8290 = vpow2.f32 %v5459_v21  ;;  %v5816_v42 = vunpack.c.h.s8.bf16 %v5588_v54  ;;  %v6709_v21 = vunpack.c.l.s8.bf16 %v6475_v61  ;;  %v6679_v61 = vunpack.c.h.s8.bf16 %v6457_v28 }
 0x96d   :  { %6233 = vmatpush1.bf16.msra.mxu1 %v5767_v5  ;;  %6871 = vmatpush1.bf16.msra.mxu0 %v6649_v45 }
 0x96e   :  { %6234 = vmatprep.subr.bf16.mxu1 %v5762_v52  ;;  %6872 = vmatprep.subr.bf16.mxu0 %v6644_v23  ;;  %v6704_v52 = vunpack.c.h.s8.bf16 %v6470_v44  ;;  %v5582_v23 = vld [vmem:[#allocation2 + $0x1d68] sm:$0xff] }
 0x971   :  { %6235 = vmatpush1.bf16.msra.mxu1 %v5761_v40  ;;  %6873 = vmatpush1.bf16.msra.mxu0 %v6643_v11  ;;  %v5815_v40 = vunpack.c.h.s8.bf16 %v5587_v6  ;;  %v5581_v11 = vld [vmem:[#allocation2 + $0x1d60] sm:$0xff] }
 0x972   :  { %6236 = vmatprep.subr.bf16.mxu1 %v5756_v36  ;;  %6874 = vmatprep.subr.bf16.mxu0 %v6638_v14  ;;  %v5810_v36 = vunpack.c.l.s8.bf16 %v5588_v54  ;;  %v6463_v14 = vld [vmem:[#allocation2 + $0x21f0] sm:$0xff]  ;;  %v5803_v20 = vunpack.c.h.s8.bf16 %v5581_v11 }
 0x975   :  { %6237 = vmatpush1.bf16.msra.mxu1 %v5755_v57  ;;  %6875 = vmatpush1.bf16.msra.mxu0 %v6637_v27  ;;  %v5809_v57 = vunpack.c.l.s8.bf16 %v5587_v6  ;;  %v5797_v27 = vunpack.c.l.s8.bf16 %v5581_v11 }
 0x976   :  { %v8289_v26 = vpop.eup %8288  ;;  %6238 = vmatprep.subr.bf16.mxu1 %v5750_v17  ;;  %6876 = vmatprep.subr.bf16.mxu0 %v6632_v50  ;;  %v5804_v17 = vunpack.c.h.s8.bf16 %v5582_v23  ;;  %v6403_v50 = vld [vmem:[#allocation2 + $0x2010] sm:$0xff] }
 0x977   :  { %v5471_v41 = vadd.f32 1.0, %v8289_v26  ;;  %v6571_v43 = vunpack.c.h.s8.bf16 %v6403_v50  ;;  %v6565_v16 = vunpack.c.l.s8.bf16 %v6403_v50  ;;  %v6421_v50 = vld [vmem:[#allocation2 + $0x20a0] sm:$0xff] }
 0x978   :  { %v8291_v7 = vpop.eup %8290 }
 0x979   :  { %8292 = vrcp.f32 %v5471_v41  ;;  %v5472_v37 = vadd.f32 1.0, %v8291_v7  ;;  %6239 = vmatpush1.bf16.msra.mxu1 %v5749_v8  ;;  %6877 = vmatpush1.bf16.msra.mxu0 %v6631_v55  ;;  %v5798_v8 = vunpack.c.l.s8.bf16 %v5582_v23  ;;  %v6458_v55 = vld [vmem:[#allocation2 + $0x21c8] sm:$0xff] }
 0x97a   :  { %6240 = vmatprep.subr.bf16.mxu1 %v5840_v15  ;;  %6878 = vmatprep.subr.bf16.mxu0 %v6626_v24  ;;  %v6404_v15 = vld [vmem:[#allocation2 + $0x2018] sm:$0xff]  ;;  %v6680_v24 = vunpack.c.h.s8.bf16 %v6458_v55 }
 0x97b   :  { %8294 = vrcp.f32 %v5472_v37  ;;  %v6572_v41 = vunpack.c.h.s8.bf16 %v6404_v15  ;;  %v6685_v37 = vunpack.c.l.s8.bf16 %v6463_v14 }
 0x97d   :  { %6241 = vmatpush2.bf16.msra.mxu1 %v5839_v46  ;;  %6879 = vmatpush1.bf16.msra.mxu0 %v6625_v48  ;;  %v6398_v46 = vld [vmem:[#allocation2 + $0x1fe8] sm:$0xff]  ;;  %v6397_v48 = vld [vmem:[#allocation2 + $0x1fe0] sm:$0xff] }
 0x97e   :  { %6242 = vmatprep.subr.bf16.mxu1 %v5834_v3  ;;  %6880 = vmatprep.subr.bf16.mxu0 %v6716_v39  ;;  %v6560_v62 = vunpack.c.h.s8.bf16 %v6398_v46  ;;  %v6559_v44 = vunpack.c.h.s8.bf16 %v6397_v48 }
 0x981   :  { %6243 = vmatpush2.bf16.msra.mxu1 %v5833_v58  ;;  %6881 = vmatpush2.bf16.msra.mxu0 %v6715_v35  ;;  %v9137_v58 = vld [vmem:[#allocation4 + $0x24] sm:$0x3f] }
 0x982   :  { %6244 = vmatprep.subr.bf16.mxu1 %v5828_v32  ;;  %6882 = vmatprep.subr.bf16.mxu0 %v6710_v2 }
 0x985   :  { %6245 = vmatpush2.bf16.msra.mxu1 %v5827_v0  ;;  %6883 = vmatpush2.bf16.msra.mxu0 %v6709_v21  ;;  %v6673_v21 = vunpack.c.l.s8.bf16 %v6457_v28 }
 0x986   :  { %v8293_v18 = vpop.eup %8292  ;;  %6246 = vmatprep.subr.bf16.mxu1 %v5822_v22  ;;  %6884 = vmatprep.subr.bf16.mxu0 %v6704_v52  ;;  %v9144_v22 = vld [vmem:[#allocation6 + $0x24] sm:$0x3f] }
 0x987   :  { %v5489_v5 = vmul.f32 %v8293_v18, %v8289_v26  ;;  %v6691_v26 = vunpack.c.h.s8.bf16 %v6463_v14  ;;  %v6392_v52 = vld [vmem:[#allocation2 + $0x1fb8] sm:$0xff] }
 0x988   :  { %v8295_v12 = vpop.eup %8294  ;;  %v6542_v23 = vunpack.c.l.s8.bf16 %v6392_v52 }
 0x989   :  { %v5495_v19 = vsel %vm5465_vm10, %v8293_v18, %v5489_v5  ;;  %v5490_v59 = vmul.f32 %v8295_v12, %v8291_v7  ;;  %6247 = vmatpush2.bf16.msra.mxu1 %v5821_v33  ;;  %6885 = vmatpush2.bf16.msra.mxu0 %v6703_v1  ;;  %v6566_v7 = vunpack.c.l.s8.bf16 %v6404_v15  ;;  %v6355_v33 = vrot.slane %v9144_v22, %v8490_v38 }
 0x98a   :  { %8233 = vst [vmem:[%s9393_s4 + $0x50] sm:$0xff] %v5495_v19  ;;  %6248 = vmatprep.subr.bf16.mxu1 %v5816_v42  ;;  %6886 = vmatprep.subr.bf16.mxu0 %v6698_v60  ;;  %v6674_v18 = vunpack.c.l.s8.bf16 %v6458_v55  ;;  %v6386_v60 = vld [vmem:[#allocation2 + $0x1f88] sm:$0xff] }
 0x98b   :  { %v5496_v45 = vsel %vm5466_vm11, %v8295_v12, %v5490_v59  ;;  %v9151_v12 = vld [vmem:[#allocation2 + $0x2028] sm:$0xff] }
 0x98c   :  { %8234 = vst [vmem:[%s9393_s4 + $0x58] sm:$0xff] %v5496_v45  ;;  %v6574_v59 = vunpack.c.h.s8.bf16 %v9151_v12 }
 0x98d   :  { %6249 = vmatpush2.bf16.msra.mxu1 %v5815_v40  ;;  %6887 = vmatpush2.bf16.msra.mxu0 %v6697_v53  ;;  %v6548_v40 = vunpack.c.h.s8.bf16 %v6392_v52  ;;  %v6530_v53 = vunpack.c.l.s8.bf16 %v6386_v60  ;;  %v6494_v52 = vld [vmem:[#allocation2 + $0x22e8] sm:$0xff] }
 0x98e   :  { %6250 = vmatprep.subr.bf16.mxu1 %v5810_v36  ;;  %6888 = vmatprep.subr.bf16.mxu0 %v6692_v9  ;;  %v6391_v36 = vld [vmem:[#allocation2 + $0x1fb0] sm:$0xff]  ;;  %v6428_v9 = vld [vmem:[#allocation2 + $0x20d8] sm:$0xff] }
 0x98f   :  { %v6547_v45 = vunpack.c.h.s8.bf16 %v6391_v36  ;;  %v6541_v10 = vunpack.c.l.s8.bf16 %v6391_v36  ;;  %v6614_v15 = vunpack.c.l.s8.bf16 %v6428_v9  ;;  %v6752_v36 = vunpack.c.h.s8.bf16 %v6494_v52 }
 0x991   :  { %6251 = vmatpush2.bf16.msra.mxu1 %v5809_v57  ;;  %6889 = vmatpush2.bf16.msra.mxu0 %v6691_v26  ;;  %v6536_v57 = vunpack.c.h.s8.bf16 %v6386_v60 }
 0x992   :  { %6252 = vmatprep.subr.bf16.mxu1 %v5804_v17  ;;  %6890 = vmatprep.subr.bf16.mxu0 %v6686_v13  ;;  %v6385_v17 = vld [vmem:[#allocation2 + $0x1f80] sm:$0xff]  ;;  %v6422_v13 = vld [vmem:[#allocation2 + $0x20a8] sm:$0xff] }
 0x993   :  { %v6535_v11 = vunpack.c.h.s8.bf16 %v6385_v17  ;;  %v6529_v14 = vunpack.c.l.s8.bf16 %v6385_v17 }
 0x995   :  { %6253 = vmatpush2.bf16.msra.mxu1 %v5803_v20  ;;  %6891 = vmatpush2.bf16.msra.mxu0 %v6685_v37  ;;  %v6620_v20 = vunpack.c.h.s8.bf16 %v6428_v9  ;;  %v6416_v37 = vld [vmem:[#allocation2 + $0x2078] sm:$0xff] }
 0x996   :  { %6254 = vmatprep.subr.bf16.mxu1 %v5798_v8  ;;  %6892 = vmatprep.subr.bf16.mxu0 %v6680_v24  ;;  %v6427_v8 = vld [vmem:[#allocation2 + $0x20d0] sm:$0xff]  ;;  %v6596_v55 = vunpack.c.h.s8.bf16 %v6416_v37 }
 0x997   :  { %v6619_v26 = vunpack.c.h.s8.bf16 %v6427_v8 }
 0x999   :  { %6255 = vmatpush2.bf16.msra.mxu1 %v5797_v27  ;;  %6893 = vmatpush2.bf16.msra.mxu0 %v6679_v61  ;;  %v6613_v27 = vunpack.c.l.s8.bf16 %v6427_v8 }
 0x99a   :  { %6823 = vmatprep.subr.bf16.mxu1 %v6572_v41  ;;  %6894 = vmatprep.subr.bf16.mxu0 %v6674_v18  ;;  %v6608_v41 = vunpack.c.h.s8.bf16 %v6422_v13 }
 0x99c   :  { %v9134_v3 = vpop.f32.mrf.mxu1  ;;  %6257 = vmatmul.mubr.bf16.vlgmr.msra.gmra.mxu1 %v8449_v47  ;;  %v6316_v47 = vrot.slane %v9137_v58, %v8490_v38 }
 0x99d   :  { %6824 = vmatpush1.bf16.msra.mxu1 %v6571_v43  ;;  %6895 = vmatpush2.bf16.msra.mxu0 %v6673_v21  ;;  %v6607_v43 = vunpack.c.h.s8.bf16 %v6421_v50  ;;  %v6013_v28 = vadd.f32 %v9134_v3, %v9099_v30  ;;  %v6500_v3 = vld [vmem:[#allocation2 + $0x2318] sm:$0xff] }
 0x99e   :  { %v6014_v32 = vpop.f32.mrf.mxu1  ;;  %6825 = vmatprep.subr.bf16.mxu1 %v6566_v7  ;;  %v9139_v39 = vpop.f32.mrf.mxu0  ;;  %6946 = vmatprep.subr.bf16.mxu0 %v6574_v59  ;;  %v6602_v7 = vunpack.c.l.s8.bf16 %v6422_v13 }
 0x99f   :  { %v6015_v0 = vadd.f32 %v6014_v32, %v9103_v63  ;;  %v6554_v63 = vunpack.c.l.s8.bf16 %v6398_v46  ;;  %v6601_v46 = vunpack.c.l.s8.bf16 %v6421_v50  ;;  %v6590_v32 = vunpack.c.l.s8.bf16 %v6416_v37 }
 0x9a0   :  { %v6016_v35 = vpop.f32.mrf.mxu1  ;;  %v9146_v54 = vpop.f32.mrf.mxu0  ;;  %v6054_v61 = vadd.f32 %v9115_v25, %v6013_v28  ;;  %v6764_v25 = vunpack.c.h.s8.bf16 %v6500_v3  ;;  %v6518_v28 = vld [vmem:[#allocation2 + $0x23a8] sm:$0xff] }
 0x9a1   :  { %v6056_v2 = vadd.f32 %v9118_v56, %v6015_v0  ;;  %6826 = vmatpush1.bf16.msra.mxu1 %v6565_v16  ;;  %v6553_v56 = vunpack.c.l.s8.bf16 %v6397_v48  ;;  %v6415_v16 = vld [vmem:[#allocation2 + $0x2070] sm:$0xff]  ;;  %v6312_v0 = vrot.slane %v9137_v58, %v8485_v34  ;;  %v6409_v35 = vld [vmem:[#allocation2 + $0x2040] sm:$0xff] }
 0x9a2   :  { %v6017_v42 = vpop.f32.mrf.mxu1  ;;  %6827 = vmatprep.subr.bf16.mxu1 %v6560_v62  ;;  %v6139_v6 = vpop.f32.mrf.mxu0  ;;  %v6595_v24 = vunpack.c.h.s8.bf16 %v6415_v16  ;;  %v6410_v62 = vld [vmem:[#allocation2 + $0x2048] sm:$0xff]  ;;  %v6589_v48 = vunpack.c.l.s8.bf16 %v6415_v16  ;;  %v6577_v18 = vunpack.c.l.s8.bf16 %v6409_v35 }
 0x9a3   :  { %v6340_v5 = vmul.f32 %v6316_v47, %v6056_v2  ;;  %v6584_v47 = vunpack.c.h.s8.bf16 %v6410_v62  ;;  %v6583_v2 = vunpack.c.h.s8.bf16 %v6409_v35  ;;  %v6578_v30 = vunpack.c.l.s8.bf16 %v6410_v62 }
 0x9a4   :  { %v6140_v4 = vpop.f32.mrf.mxu0  ;;  %v6800_v62 = vunpack.c.h.s8.bf16 %v6518_v28 }
 0x9a5   :  { %6828 = vmatpush1.bf16.msra.mxu1 %v6559_v44  ;;  %v6379_v19 = vadd.f32 %v6355_v33, %v6340_v5  ;;  %v6339_v44 = vmul.f32 %v6312_v0, %v6054_v61  ;;  %v6351_v33 = vrot.slane %v9144_v22, %v8485_v34  ;;  %v6758_v5 = vunpack.c.l.s8.bf16 %v6500_v3  ;;  %v6506_v3 = vld [vmem:[#allocation2 + $0x2348] sm:$0xff] }
 0x9a6   :  { %6829 = vmatprep.subr.bf16.mxu1 %v6554_v63  ;;  %v6499_v63 = vld [vmem:[#allocation2 + $0x2310] sm:$0xff]  ;;  %v6794_v0 = vunpack.c.l.s8.bf16 %v6518_v28  ;;  %v6394_v28 = vld [vmem:[#allocation2 + $0x1fc8] sm:$0xff] }
 0x9a7   :  { %v9154_v1 = vpack.c.bf16 %v6379_v19, %v6379_v19  ;;  %v6378_v42 = vadd.f32 %v6351_v33, %v6339_v44  ;;  %v6763_v6 = vunpack.c.h.s8.bf16 %v6499_v63  ;;  %v6757_v19 = vunpack.c.l.s8.bf16 %v6499_v63  ;;  %v6511_v44 = vld [vmem:[#allocation2 + $0x2370] sm:$0xff] }
 0x9a8   :  { %v6787_v33 = vunpack.c.h.s8.bf16 %v6511_v44 }
 0x9a9   :  { %6830 = vmatpush1.bf16.msra.mxu1 %v6553_v56  ;;  %6855 = vmatprep.mubr.bf16.mxu1 %v9154_v1  ;;  %v9164_v21 = vpack.c.bf16 %v6378_v42, %v6378_v42  ;;  %v6776_v42 = vunpack.c.h.s8.bf16 %v6506_v3 }
 0x9aa   :  { %6831 = vmatprep.subr.bf16.mxu1 %v6548_v40 }
 0x9ad   :  { %6832 = vmatpush1.bf16.msra.mxu1 %v6547_v45  ;;  %v6493_v45 = vld [vmem:[#allocation2 + $0x22e0] sm:$0xff] }
 0x9ae   :  { %6833 = vmatprep.subr.bf16.mxu1 %v6542_v23  ;;  %v6745_v9 = vunpack.c.l.s8.bf16 %v6493_v45 }
 0x9b1   :  { %6834 = vmatpush1.bf16.msra.mxu1 %v6541_v10  ;;  %v6751_v10 = vunpack.c.h.s8.bf16 %v6493_v45 }
 0x9b2   :  { %6835 = vmatprep.subr.bf16.mxu1 %v6536_v57 }
 0x9b5   :  { %6836 = vmatpush1.bf16.msra.mxu1 %v6535_v11  ;;  %v6746_v11 = vunpack.c.l.s8.bf16 %v6494_v52 }
 0x9b6   :  { %6837 = vmatprep.subr.bf16.mxu1 %v6530_v53 }
 0x9b9   :  { %6838 = vmatpush1.bf16.msra.mxu1 %v6529_v14 }
 0x9ba   :  { %6839 = vmatprep.subr.bf16.mxu1 %v6620_v20  ;;  %v6487_v20 = vld [vmem:[#allocation2 + $0x22b0] sm:$0xff] }
 0x9bb   :  { %v6739_v8 = vunpack.c.h.s8.bf16 %v6487_v20  ;;  %v6733_v13 = vunpack.c.l.s8.bf16 %v6487_v20 }
 0x9bd   :  { %6840 = vmatpush2.bf16.msra.mxu1 %v6619_v26 }
 0x9be   :  { %6841 = vmatprep.subr.bf16.mxu1 %v6614_v15  ;;  %v6482_v15 = vld [vmem:[#allocation2 + $0x2288] sm:$0xff] }
 0x9c1   :  { %6842 = vmatpush2.bf16.msra.mxu1 %v6613_v27  ;;  %v6728_v27 = vunpack.c.h.s8.bf16 %v6482_v15 }
 0x9c2   :  { %6843 = vmatprep.subr.bf16.mxu1 %v6608_v41  ;;  %v6481_v41 = vld [vmem:[#allocation2 + $0x2280] sm:$0xff] }
 0x9c3   :  { %v6727_v50 = vunpack.c.h.s8.bf16 %v6481_v41  ;;  %v6721_v37 = vunpack.c.l.s8.bf16 %v6481_v41 }
 0x9c5   :  { %6844 = vmatpush2.bf16.msra.mxu1 %v6607_v43  ;;  %v6722_v43 = vunpack.c.l.s8.bf16 %v6482_v15 }
 0x9c6   :  { %6845 = vmatprep.subr.bf16.mxu1 %v6602_v7  ;;  %v6524_v7 = vld [vmem:[#allocation2 + $0x23d8] sm:$0xff] }
 0x9c9   :  { %6846 = vmatpush2.bf16.msra.mxu1 %v6601_v46  ;;  %v6812_v46 = vunpack.c.h.s8.bf16 %v6524_v7 }
 0x9ca   :  { %6847 = vmatprep.subr.bf16.mxu1 %v6596_v55  ;;  %v6523_v55 = vld [vmem:[#allocation2 + $0x23d0] sm:$0xff] }
 0x9cb   :  { %v6811_v16 = vunpack.c.h.s8.bf16 %v6523_v55 }
 0x9cd   :  { %6848 = vmatpush2.bf16.msra.mxu1 %v6595_v24  ;;  %v6806_v24 = vunpack.c.l.s8.bf16 %v6524_v7  ;;  %v6400_v7 = vld [vmem:[#allocation2 + $0x1ff8] sm:$0xff] }
 0x9ce   :  { %6849 = vmatprep.subr.bf16.mxu1 %v6590_v32  ;;  %v6805_v32 = vunpack.c.l.s8.bf16 %v6523_v55  ;;  %v6399_v55 = vld [vmem:[#allocation2 + $0x1ff0] sm:$0xff] }
 0x9d1   :  { %6850 = vmatpush2.bf16.msra.mxu1 %v6589_v48  ;;  %v6517_v48 = vld [vmem:[#allocation2 + $0x23a0] sm:$0xff] }
 0x9d2   :  { %6851 = vmatprep.subr.bf16.mxu1 %v6584_v47  ;;  %v6799_v61 = vunpack.c.h.s8.bf16 %v6517_v48  ;;  %v6512_v47 = vld [vmem:[#allocation2 + $0x2378] sm:$0xff]  ;;  %v6793_v35 = vunpack.c.l.s8.bf16 %v6517_v48 }
 0x9d5   :  { %6852 = vmatpush2.bf16.msra.mxu1 %v6583_v2  ;;  %v6788_v2 = vunpack.c.h.s8.bf16 %v6512_v47 }
 0x9d6   :  { %6853 = vmatprep.subr.bf16.mxu1 %v6578_v30  ;;  %v6782_v30 = vunpack.c.l.s8.bf16 %v6512_v47 }
 0x9d9   :  { %6854 = vmatpush2.bf16.msra.mxu1 %v6577_v18  ;;  %v6781_v18 = vunpack.c.l.s8.bf16 %v6511_v44 }
 0x9da   :  { %6905 = vmatprep.subr.bf16.mxu1 %v6764_v25  ;;  %v6505_v25 = vld [vmem:[#allocation2 + $0x2340] sm:$0xff] }
 0x9db   :  { %v6775_v63 = vunpack.c.h.s8.bf16 %v6505_v25  ;;  %v6769_v52 = vunpack.c.l.s8.bf16 %v6505_v25 }
 0x9dc   :  { %v6094_v4 = vpop.f32.mrf.mxu1  ;;  %6856 = vmatmul.mubr.bf16.vlgmr.msra.gmra.mxu1 %v9164_v21 }
 0x9dd   :  { %v9168_v56 = vadd.f32 %v9139_v39, %v6094_v4  ;;  %6906 = vmatpush1.bf16.msra.mxu1 %v6763_v6  ;;  %v6488_v39 = vld [vmem:[#allocation2 + $0x22b8] sm:$0xff]  ;;  %v6770_v6 = vunpack.c.l.s8.bf16 %v6506_v3 }
 0x9de   :  { %v9170_v59 = vpop.f32.mrf.mxu1  ;;  %v9172_v40 = vpop.f32.mrf.mxu0  ;;  %6907 = vmatprep.subr.bf16.mxu1 %v6758_v5  ;;  %v6740_v14 = vunpack.c.h.s8.bf16 %v6488_v39  ;;  %v6734_v26 = vunpack.c.l.s8.bf16 %v6488_v39  ;;  %v9176_v5 = vld [vmem:[#allocation2 + $0x21a8] sm:$0xff] }
 0x9df   :  { %v6670_v4 = vunpack.c.h.s8.bf16 %v9176_v5  ;;  %v6138_v45 = vadd.f32 %v9146_v54, %v9170_v59 }
 0x9e0   :  { %v6098_v23 = vpop.f32.mrf.mxu1  ;;  %v9174_v60 = vpop.f32.mrf.mxu0 }
 0x9e1   :  { %6908 = vmatpush1.bf16.msra.mxu1 %v6757_v19  ;;  %v6320_v19 = vrot.slane %v9137_v58, %v8520_v49 }
 0x9e2   :  { %v6099_v57 = vpop.f32.mrf.mxu1  ;;  %v6221_v17 = vpop.f32.mrf.mxu0  ;;  %6909 = vmatprep.subr.bf16.mxu1 %v6752_v36 }
 0x9e3   :  { %v6359_v57 = vrot.slane %v9144_v22, %v8520_v49 }
 0x9e4   :  { %v6222_v53 = vpop.f32.mrf.mxu0 }
 0x9e5   :  { %6910 = vmatpush1.bf16.msra.mxu1 %v6751_v10  ;;  %v6324_v10 = vrot.slane %v9137_v58, %v8523_v51 }
 0x9e6   :  { %6911 = vmatprep.subr.bf16.mxu1 %v6746_v11 }
 0x9e9   :  { %6912 = vmatpush1.bf16.msra.mxu1 %v6745_v9  ;;  %v6363_v9 = vrot.slane %v9144_v22, %v8523_v51 }
 0x9ea   :  { %6913 = vmatprep.subr.bf16.mxu1 %v6740_v14 }
 0x9ed   :  { %6914 = vmatpush1.bf16.msra.mxu1 %v6739_v8  ;;  %v6405_v8 = vld [vmem:[#allocation2 + $0x2020] sm:$0xff] }
 0x9ee   :  { %6915 = vmatprep.subr.bf16.mxu1 %v6734_v26  ;;  %v6573_v41 = vunpack.c.h.s8.bf16 %v6405_v8 }
 0x9f1   :  { %6916 = vmatpush1.bf16.msra.mxu1 %v6733_v13 }
 0x9f2   :  { %6917 = vmatprep.subr.bf16.mxu1 %v6728_v27 }
 0x9f5   :  { %6918 = vmatpush1.bf16.msra.mxu1 %v6727_v50 }
 0x9f6   :  { %6919 = vmatprep.subr.bf16.mxu1 %v6722_v43  ;;  %v6568_v43 = vunpack.c.l.s8.bf16 %v9151_v12  ;;  %v6550_v12 = vunpack.c.h.s8.bf16 %v6394_v28 }
 0x9f9   :  { %6920 = vmatpush1.bf16.msra.mxu1 %v6721_v37  ;;  %v6567_v37 = vunpack.c.l.s8.bf16 %v6405_v8 }
 0x9fa   :  { %6921 = vmatprep.subr.bf16.mxu1 %v6812_v46  ;;  %v6562_v46 = vunpack.c.h.s8.bf16 %v6400_v7 }
 0x9fd   :  { %6922 = vmatpush2.bf16.msra.mxu1 %v6811_v16  ;;  %v6561_v16 = vunpack.c.h.s8.bf16 %v6399_v55 }
 0x9fe   :  { %6923 = vmatprep.subr.bf16.mxu1 %v6806_v24  ;;  %v6556_v24 = vunpack.c.l.s8.bf16 %v6400_v7 }
 0xa01   :  { %6924 = vmatpush2.bf16.msra.mxu1 %v6805_v32  ;;  %v6555_v32 = vunpack.c.l.s8.bf16 %v6399_v55  ;;  %v6367_v55 = vrot.slane %v9144_v22, %v8554_v29 }
 0xa02   :  { %6925 = vmatprep.subr.bf16.mxu1 %v6800_v62  ;;  %v6393_v62 = vld [vmem:[#allocation2 + $0x1fc0] sm:$0xff] }
 0xa03   :  { %v6549_v48 = vunpack.c.h.s8.bf16 %v6393_v62  ;;  %v6543_v47 = vunpack.c.l.s8.bf16 %v6393_v62 }
 0xa05   :  { %6926 = vmatpush2.bf16.msra.mxu1 %v6799_v61  ;;  %v6544_v61 = vunpack.c.l.s8.bf16 %v6394_v28 }
 0xa06   :  { %6927 = vmatprep.subr.bf16.mxu1 %v6794_v0  ;;  %v6388_v0 = vld [vmem:[#allocation2 + $0x1f98] sm:$0xff] }
 0xa09   :  { %6928 = vmatpush2.bf16.msra.mxu1 %v6793_v35  ;;  %v6538_v35 = vunpack.c.h.s8.bf16 %v6388_v0 }
 0xa0a   :  { %6929 = vmatprep.subr.bf16.mxu1 %v6788_v2  ;;  %v6387_v2 = vld [vmem:[#allocation2 + $0x1f90] sm:$0xff] }
 0xa0b   :  { %v6537_v44 = vunpack.c.h.s8.bf16 %v6387_v2  ;;  %v6531_v3 = vunpack.c.l.s8.bf16 %v6387_v2 }
 0xa0d   :  { %6930 = vmatpush2.bf16.msra.mxu1 %v6787_v33  ;;  %v6532_v33 = vunpack.c.l.s8.bf16 %v6388_v0 }
 0xa0e   :  { %6931 = vmatprep.subr.bf16.mxu1 %v6782_v30  ;;  %v6430_v30 = vld [vmem:[#allocation2 + $0x20e8] sm:$0xff] }
 0xa11   :  { %6932 = vmatpush2.bf16.msra.mxu1 %v6781_v18  ;;  %v6622_v18 = vunpack.c.h.s8.bf16 %v6430_v30 }
 0xa12   :  { %6933 = vmatprep.subr.bf16.mxu1 %v6776_v42  ;;  %v6429_v42 = vld [vmem:[#allocation2 + $0x20e0] sm:$0xff] }
 0xa13   :  { %v6621_v25 = vunpack.c.h.s8.bf16 %v6429_v42 }
 0xa15   :  { %6934 = vmatpush2.bf16.msra.mxu1 %v6775_v63  ;;  %v6616_v63 = vunpack.c.l.s8.bf16 %v6430_v30  ;;  %v6448_v30 = vld [vmem:[#allocation2 + $0x2178] sm:$0xff] }
 0xa16   :  { %6935 = vmatprep.subr.bf16.mxu1 %v6770_v6  ;;  %v6424_v6 = vld [vmem:[#allocation2 + $0x20b8] sm:$0xff] }
 0xa19   :  { %6936 = vmatpush2.bf16.msra.mxu1 %v6769_v52  ;;  %v6615_v52 = vunpack.c.l.s8.bf16 %v6429_v42 }
 0xa1a   :  { %6987 = vmatprep.subr.bf16.mxu1 %v6670_v4  ;;  %v6610_v4 = vunpack.c.h.s8.bf16 %v6424_v6 }
 0xa1c   :  { %v6176_v36 = vpop.f32.mrf.mxu1 }
 0xa1d   :  { %v6177_v23 = vadd.f32 %v6176_v36, %v9168_v56 }
 0xa1e   :  { %v6178_v17 = vpop.f32.mrf.mxu1  ;;  %v9188_v11 = vpop.f32.mrf.mxu0 }
 0xa1f   :  { %v6341_v39 = vmul.f32 %v6320_v19, %v6177_v23  ;;  %v6179_v53 = vadd.f32 %v6178_v17, %v6138_v45  ;;  %v6423_v19 = vld [vmem:[#allocation2 + $0x20b0] sm:$0xff]  ;;  %v6604_v45 = vunpack.c.l.s8.bf16 %v6424_v6  ;;  %v6418_v23 = vld [vmem:[#allocation2 + $0x2088] sm:$0xff]  ;;  %v6417_v17 = vld [vmem:[#allocation2 + $0x2080] sm:$0xff] }
 0xa20   :  { %v6180_v14 = vpop.f32.mrf.mxu1  ;;  %v9192_v20 = vpop.f32.mrf.mxu0  ;;  %v6609_v36 = vunpack.c.h.s8.bf16 %v6423_v19 }
 0xa21   :  { %v6342_v54 = vmul.f32 %v6324_v10, %v6179_v53  ;;  %v6380_v59 = vadd.f32 %v6359_v57, %v6341_v39  ;;  %v6603_v10 = vunpack.c.l.s8.bf16 %v6423_v19  ;;  %v6598_v57 = vunpack.c.h.s8.bf16 %v6418_v23 }
 0xa22   :  { %v6181_v56 = vpop.f32.mrf.mxu1  ;;  %v6303_v26 = vpop.f32.mrf.mxu0  ;;  %v6597_v39 = vunpack.c.h.s8.bf16 %v6417_v17  ;;  %v6592_v53 = vunpack.c.l.s8.bf16 %v6418_v23  ;;  %v6591_v14 = vunpack.c.l.s8.bf16 %v6417_v17  ;;  %v6652_v19 = vunpack.c.l.s8.bf16 %v6448_v30 }
 0xa23   :  { %v6381_v15 = vadd.f32 %v6363_v9, %v6342_v54  ;;  %v9196_v50 = vpack.c.bf16 %v6380_v59, %v6380_v59  ;;  %v6412_v9 = vld [vmem:[#allocation2 + $0x2058] sm:$0xff]  ;;  %v6411_v59 = vld [vmem:[#allocation2 + $0x2050] sm:$0xff]  ;;  %v6328_v26 = vrot.slane %v9137_v58, %v8554_v29 }
 0xa24   :  { %v6304_v13 = vpop.f32.mrf.mxu0  ;;  %v6586_v54 = vunpack.c.h.s8.bf16 %v6412_v9  ;;  %v6579_v28 = vunpack.c.l.s8.bf16 %v6411_v59 }
 0xa25   :  { %v9194_v27 = vpack.c.bf16 %v6381_v15, %v6381_v15  ;;  %v6585_v15 = vunpack.c.h.s8.bf16 %v6411_v59 }
 0xa27   :  { %6896 = vmatprep.mubr.bf16.mxu0 %v9194_v27 }
 0xa28   :  { %6897 = vmatmul.mubr.bf16.vlgmr.msra.gmra.mxu0 %v9196_v50 }
 0xa29   :  { %6947 = vmatpush1.bf16.msra.mxu0 %v6573_v41  ;;  %6978 = vmatprep.mubr.bf16.mxu0 %v9154_v1  ;;  %v6580_v41 = vunpack.c.l.s8.bf16 %v6412_v9 }
 0xa2a   :  { %6948 = vmatprep.subr.bf16.mxu0 %v6568_v43 }
 0xa2d   :  { %6949 = vmatpush1.bf16.msra.mxu0 %v6567_v37  ;;  %v6332_v37 = vrot.slane %v9137_v58, %v8557_v31  ;;  %v6453_v58 = vld [vmem:[#allocation2 + $0x21a0] sm:$0xff] }
 0xa2e   :  { %6950 = vmatprep.subr.bf16.mxu0 %v6562_v46  ;;  %v6502_v46 = vld [vmem:[#allocation2 + $0x2328] sm:$0xff]  ;;  %v6663_v42 = vunpack.c.l.s8.bf16 %v6453_v58 }
 0xa31   :  { %6951 = vmatpush1.bf16.msra.mxu0 %v6561_v16 }
 0xa32   :  { %6952 = vmatprep.subr.bf16.mxu0 %v6556_v24 }
 0xa35   :  { %6953 = vmatpush1.bf16.msra.mxu0 %v6555_v32  ;;  %v6371_v32 = vrot.slane %v9144_v22, %v8557_v31  ;;  %v6760_v22 = vunpack.c.l.s8.bf16 %v6502_v46 }
 0xa36   :  { %6954 = vmatprep.subr.bf16.mxu0 %v6550_v12 }
 0xa39   :  { %6955 = vmatpush1.bf16.msra.mxu0 %v6549_v48 }
 0xa3a   :  { %6956 = vmatprep.subr.bf16.mxu0 %v6544_v61 }
 0xa3d   :  { %6957 = vmatpush1.bf16.msra.mxu0 %v6543_v47 }
 0xa3e   :  { %6958 = vmatprep.subr.bf16.mxu0 %v6538_v35  ;;  %v6669_v35 = vunpack.c.h.s8.bf16 %v6453_v58 }
 0xa41   :  { %6959 = vmatpush1.bf16.msra.mxu0 %v6537_v44  ;;  %v6664_v44 = vunpack.c.l.s8.bf16 %v9176_v5 }
 0xa42   :  { %6960 = vmatprep.subr.bf16.mxu0 %v6532_v33 }
 0xa45   :  { %6961 = vmatpush1.bf16.msra.mxu0 %v6531_v3 }
 0xa46   :  { %6962 = vmatprep.subr.bf16.mxu0 %v6622_v18  ;;  %v6495_v18 = vld [vmem:[#allocation2 + $0x22f0] sm:$0xff] }
 0xa47   :  { %v6753_v5 = vunpack.c.h.s8.bf16 %v6495_v18 }
 0xa49   :  { %6963 = vmatpush2.bf16.msra.mxu0 %v6621_v25  ;;  %v6658_v25 = vunpack.c.h.s8.bf16 %v6448_v30 }
 0xa4a   :  { %6964 = vmatprep.subr.bf16.mxu0 %v6616_v63  ;;  %v6447_v63 = vld [vmem:[#allocation2 + $0x2170] sm:$0xff] }
 0xa4d   :  { %6965 = vmatpush2.bf16.msra.mxu0 %v6615_v52  ;;  %v6657_v52 = vunpack.c.h.s8.bf16 %v6447_v63 }
 0xa4e   :  { %6966 = vmatprep.subr.bf16.mxu0 %v6610_v4  ;;  %v6490_v4 = vld [vmem:[#allocation2 + $0x22c8] sm:$0xff] }
 0xa4f   :  { %v6742_v23 = vunpack.c.h.s8.bf16 %v6490_v4  ;;  %v6736_v9 = vunpack.c.l.s8.bf16 %v6490_v4 }
 0xa51   :  { %6967 = vmatpush2.bf16.msra.mxu0 %v6609_v36  ;;  %v6747_v36 = vunpack.c.l.s8.bf16 %v6495_v18 }
 0xa52   :  { %6968 = vmatprep.subr.bf16.mxu0 %v6604_v45  ;;  %v6442_v45 = vld [vmem:[#allocation2 + $0x2148] sm:$0xff] }
 0xa53   :  { %v6646_v17 = vunpack.c.h.s8.bf16 %v6442_v45  ;;  %v6640_v59 = vunpack.c.l.s8.bf16 %v6442_v45 }
 0xa55   :  { %6969 = vmatpush2.bf16.msra.mxu0 %v6603_v10  ;;  %v6489_v10 = vld [vmem:[#allocation2 + $0x22c0] sm:$0xff] }
 0xa56   :  { %6970 = vmatprep.subr.bf16.mxu0 %v6598_v57  ;;  %v6651_v57 = vunpack.c.l.s8.bf16 %v6447_v63  ;;  %v6514_v63 = vld [vmem:[#allocation2 + $0x2388] sm:$0xff] }
 0xa57   :  { %v6790_v4 = vunpack.c.h.s8.bf16 %v6514_v63 }
 0xa59   :  { %6971 = vmatpush2.bf16.msra.mxu0 %v6597_v39  ;;  %v6441_v39 = vld [vmem:[#allocation2 + $0x2140] sm:$0xff] }
 0xa5a   :  { %6972 = vmatprep.subr.bf16.mxu0 %v6592_v53  ;;  %v6741_v53 = vunpack.c.h.s8.bf16 %v6489_v10 }
 0xa5c   :  { %v6258_v56 = vpop.f32.mrf.mxu1 }
 0xa5d   :  { %v6259_v8 = vadd.f32 %v6258_v56, %v9172_v40  ;;  %6973 = vmatpush2.bf16.msra.mxu0 %v6591_v14  ;;  %v6645_v14 = vunpack.c.h.s8.bf16 %v6441_v39  ;;  %v6735_v56 = vunpack.c.l.s8.bf16 %v6489_v10 }
 0xa5e   :  { %v6260_v13 = vpop.f32.mrf.mxu1  ;;  %6974 = vmatprep.subr.bf16.mxu0 %v6586_v54  ;;  %v6484_v54 = vld [vmem:[#allocation2 + $0x2298] sm:$0xff] }
 0xa5f   :  { %v6300_v43 = vadd.f32 %v9188_v11, %v6259_v8  ;;  %v6261_v7 = vadd.f32 %v6260_v13, %v9174_v60  ;;  %v6766_v11 = vunpack.c.h.s8.bf16 %v6502_v46  ;;  %v6501_v60 = vld [vmem:[#allocation2 + $0x2320] sm:$0xff]  ;;  %v6436_v8 = vld [vmem:[#allocation2 + $0x2118] sm:$0xff]  ;;  %v6639_v13 = vunpack.c.l.s8.bf16 %v6441_v39 }
 0xa60   :  { %v6262_v40 = vpop.f32.mrf.mxu1  ;;  %v6765_v61 = vunpack.c.h.s8.bf16 %v6501_v60  ;;  %v6759_v33 = vunpack.c.l.s8.bf16 %v6501_v60  ;;  %v6477_v60 = vld [vmem:[#allocation2 + $0x2260] sm:$0xff]  ;;  %v6508_v39 = vld [vmem:[#allocation2 + $0x2358] sm:$0xff] }
 0xa61   :  { %v6343_v16 = vmul.f32 %v6328_v26, %v6300_v43  ;;  %v6302_v24 = vadd.f32 %v9192_v20, %v6261_v7  ;;  %6975 = vmatpush2.bf16.msra.mxu0 %v6585_v15  ;;  %v6496_v20 = vld [vmem:[#allocation2 + $0x22f8] sm:$0xff]  ;;  %v6730_v26 = vunpack.c.h.s8.bf16 %v6484_v54  ;;  %v6483_v15 = vld [vmem:[#allocation2 + $0x2290] sm:$0xff]  ;;  %v6628_v40 = vunpack.c.l.s8.bf16 %v6436_v8 }
 0xa62   :  { %v6263_v12 = vpop.f32.mrf.mxu1  ;;  %6976 = vmatprep.subr.bf16.mxu0 %v6580_v41  ;;  %v6754_v3 = vunpack.c.h.s8.bf16 %v6496_v20  ;;  %v6748_v6 = vunpack.c.l.s8.bf16 %v6496_v20  ;;  %v6634_v41 = vunpack.c.h.s8.bf16 %v6436_v8  ;;  %v6435_v43 = vld [vmem:[#allocation2 + $0x2110] sm:$0xff]  ;;  %v6729_v7 = vunpack.c.h.s8.bf16 %v6483_v15  ;;  %v6472_v20 = vld [vmem:[#allocation2 + $0x2238] sm:$0xff] }
 0xa63   :  { %v6344_v62 = vmul.f32 %v6332_v37, %v6302_v24  ;;  %v6382_v48 = vadd.f32 %v6367_v55, %v6343_v16  ;;  %v6724_v37 = vunpack.c.l.s8.bf16 %v6484_v54  ;;  %v6633_v46 = vunpack.c.h.s8.bf16 %v6435_v43  ;;  %v6526_v55 = vld [vmem:[#allocation2 + $0x23e8] sm:$0xff] }
 0xa64   :  { %v6723_v16 = vunpack.c.l.s8.bf16 %v6483_v15  ;;  %v6478_v24 = vld [vmem:[#allocation2 + $0x2268] sm:$0xff]  ;;  %v6627_v12 = vunpack.c.l.s8.bf16 %v6435_v43  ;;  %v6717_v58 = vunpack.c.h.s8.bf16 %v6477_v60  ;;  %v6706_v30 = vunpack.c.h.s8.bf16 %v6472_v20  ;;  %v6459_v15 = vld [vmem:[#allocation2 + $0x21d0] sm:$0xff] }
 0xa65   :  { %6977 = vmatpush2.bf16.msra.mxu0 %v6579_v28  ;;  %v6383_v0 = vadd.f32 %v6371_v32, %v6344_v62  ;;  %v9216_v2 = vpack.c.bf16 %v6382_v48, %v6382_v48  ;;  %v6814_v28 = vunpack.c.h.s8.bf16 %v6526_v55  ;;  %v6525_v32 = vld [vmem:[#allocation2 + $0x23e0] sm:$0xff]  ;;  %v6808_v48 = vunpack.c.l.s8.bf16 %v6526_v55 }
 0xa66   :  { %7028 = vmatprep.subr.bf16.mxu0 %v6766_v11  ;;  %v6718_v11 = vunpack.c.h.s8.bf16 %v6478_v24  ;;  %v6813_v62 = vunpack.c.h.s8.bf16 %v6525_v32  ;;  %v6778_v54 = vunpack.c.h.s8.bf16 %v6508_v39  ;;  %v6772_v43 = vunpack.c.l.s8.bf16 %v6508_v39 }
 0xa67   :  { %v9214_v47 = vpack.c.bf16 %v6383_v0, %v6383_v0  ;;  %v6712_v0 = vunpack.c.l.s8.bf16 %v6478_v24 }
 0xa68   :  { %6979 = vmatmul.mubr.bf16.vlgmr.msra.gmra.mxu0 %v9164_v21 }
 0xa69   :  { %7029 = vmatpush1.bf16.msra.mxu0 %v6765_v61  ;;  %6937 = vmatprep.mubr.bf16.mxu1 %v9214_v47  ;;  %v6520_v61 = vld [vmem:[#allocation2 + $0x23b8] sm:$0xff] }
 0xa6a   :  { %7060 = vmatprep.mubr.bf16.mxu0 %v9214_v47  ;;  %6938 = vmatmul.mubr.bf16.vlgmr.msra.gmra.mxu1 %v9216_v2 }
 0xa6b   :  { %6988 = vmatpush1.bf16.msra.mxu1 %v6669_v35  ;;  %7019 = vmatprep.mubr.bf16.mxu1 %v9194_v27  ;;  %v6807_v35 = vunpack.c.l.s8.bf16 %v6525_v32  ;;  %v6455_v32 = vld [vmem:[#allocation2 + $0x21b0] sm:$0xff] }
 0xa6c   :  { %7030 = vmatprep.subr.bf16.mxu0 %v6760_v22  ;;  %6989 = vmatprep.subr.bf16.mxu1 %v6664_v44  ;;  %v6802_v22 = vunpack.c.h.s8.bf16 %v6520_v61  ;;  %v6519_v44 = vld [vmem:[#allocation2 + $0x23b0] sm:$0xff] }
 0xa6d   :  { %7031 = vmatpush1.bf16.msra.mxu0 %v6759_v33  ;;  %v6711_v33 = vunpack.c.l.s8.bf16 %v6477_v60  ;;  %v6801_v18 = vunpack.c.h.s8.bf16 %v6519_v44  ;;  %v6407_v60 = vld [vmem:[#allocation2 + $0x2030] sm:$0xff] }
 0xa6e   :  { %7032 = vmatprep.subr.bf16.mxu0 %v6754_v3  ;;  %v6471_v3 = vld [vmem:[#allocation2 + $0x2230] sm:$0xff] }
 0xa6f   :  { %6990 = vmatpush1.bf16.msra.mxu1 %v6663_v42  ;;  %v6796_v42 = vunpack.c.l.s8.bf16 %v6520_v61  ;;  %v6450_v61 = vld [vmem:[#allocation2 + $0x2188] sm:$0xff] }
 0xa70   :  { %6991 = vmatprep.subr.bf16.mxu1 %v6658_v25  ;;  %v6705_v25 = vunpack.c.h.s8.bf16 %v6471_v3 }
 0xa71   :  { %7033 = vmatpush1.bf16.msra.mxu0 %v6753_v5  ;;  %v6700_v5 = vunpack.c.l.s8.bf16 %v6472_v20  ;;  %v6402_v20 = vld [vmem:[#allocation2 + $0x2008] sm:$0xff] }
 0xa72   :  { %7034 = vmatprep.subr.bf16.mxu0 %v6748_v6  ;;  %v6795_v6 = vunpack.c.l.s8.bf16 %v6519_v44  ;;  %v6449_v44 = vld [vmem:[#allocation2 + $0x2180] sm:$0xff] }
 0xa73   :  { %6992 = vmatpush1.bf16.msra.mxu1 %v6657_v52  ;;  %v6466_v52 = vld [vmem:[#allocation2 + $0x2208] sm:$0xff] }
 0xa74   :  { %6993 = vmatprep.subr.bf16.mxu1 %v6652_v19  ;;  %v6513_v19 = vld [vmem:[#allocation2 + $0x2380] sm:$0xff]  ;;  %v6694_v45 = vunpack.c.h.s8.bf16 %v6466_v52 }
 0xa75   :  { %7035 = vmatpush1.bf16.msra.mxu0 %v6747_v36  ;;  %v6699_v36 = vunpack.c.l.s8.bf16 %v6471_v3  ;;  %v6789_v10 = vunpack.c.h.s8.bf16 %v6513_v19  ;;  %v6401_v3 = vld [vmem:[#allocation2 + $0x2000] sm:$0xff] }
 0xa76   :  { %7036 = vmatprep.subr.bf16.mxu0 %v6742_v23  ;;  %v6465_v23 = vld [vmem:[#allocation2 + $0x2200] sm:$0xff] }
 0xa77   :  { %6994 = vmatpush1.bf16.msra.mxu1 %v6651_v57  ;;  %v6784_v57 = vunpack.c.l.s8.bf16 %v6514_v63  ;;  %v6558_v63 = vunpack.c.l.s8.bf16 %v6402_v20 }
 0xa78   :  { %6995 = vmatprep.subr.bf16.mxu1 %v6646_v17  ;;  %v6693_v17 = vunpack.c.h.s8.bf16 %v6465_v23 }
 0xa79   :  { %7037 = vmatpush1.bf16.msra.mxu0 %v6741_v53  ;;  %v6688_v53 = vunpack.c.l.s8.bf16 %v6466_v52 }
 0xa7a   :  { %7038 = vmatprep.subr.bf16.mxu0 %v6736_v9  ;;  %v6783_v9 = vunpack.c.l.s8.bf16 %v6513_v19 }
 0xa7b   :  { %6996 = vmatpush1.bf16.msra.mxu1 %v6645_v14  ;;  %v6460_v14 = vld [vmem:[#allocation2 + $0x21d8] sm:$0xff] }
 0xa7c   :  { %6997 = vmatprep.subr.bf16.mxu1 %v6640_v59  ;;  %v6507_v59 = vld [vmem:[#allocation2 + $0x2350] sm:$0xff]  ;;  %v6676_v55 = vunpack.c.l.s8.bf16 %v6460_v14 }
 0xa7d   :  { %7039 = vmatpush1.bf16.msra.mxu0 %v6735_v56  ;;  %v6687_v56 = vunpack.c.l.s8.bf16 %v6465_v23 }
 0xa7e   :  { %7040 = vmatprep.subr.bf16.mxu0 %v6730_v26  ;;  %v6682_v26 = vunpack.c.h.s8.bf16 %v6460_v14  ;;  %v6437_v14 = vld [vmem:[#allocation2 + $0x2120] sm:$0xff] }
 0xa7f   :  { %6998 = vmatpush1.bf16.msra.mxu1 %v6639_v13  ;;  %v6777_v13 = vunpack.c.h.s8.bf16 %v6507_v59 }
 0xa80   :  { %6999 = vmatprep.subr.bf16.mxu1 %v6634_v41 }
 0xa81   :  { %7041 = vmatpush1.bf16.msra.mxu0 %v6729_v7  ;;  %v6681_v7 = vunpack.c.h.s8.bf16 %v6459_v15 }
 0xa82   :  { %7042 = vmatprep.subr.bf16.mxu0 %v6724_v37  ;;  %v6456_v37 = vld [vmem:[#allocation2 + $0x21b8] sm:$0xff] }
 0xa83   :  { %7000 = vmatpush1.bf16.msra.mxu1 %v6633_v46 }
 0xa84   :  { %7001 = vmatprep.subr.bf16.mxu1 %v6628_v40  ;;  %v6771_v40 = vunpack.c.l.s8.bf16 %v6507_v59 }
 0xa85   :  { %7043 = vmatpush1.bf16.msra.mxu0 %v6723_v16  ;;  %v6408_v16 = vld [vmem:[#allocation2 + $0x2038] sm:$0xff] }
 0xa86   :  { %7044 = vmatprep.subr.bf16.mxu0 %v6814_v28  ;;  %v6672_v28 = vunpack.c.h.s8.bf16 %v6456_v37 }
 0xa87   :  { %7002 = vmatpush1.bf16.msra.mxu1 %v6627_v12  ;;  %v6675_v12 = vunpack.c.l.s8.bf16 %v6459_v15 }
 0xa88   :  { %7003 = vmatprep.subr.bf16.mxu1 %v6718_v11  ;;  %v6576_v11 = vunpack.c.h.s8.bf16 %v6408_v16 }
 0xa89   :  { %7045 = vmatpush2.bf16.msra.mxu0 %v6813_v62  ;;  %v6671_v62 = vunpack.c.h.s8.bf16 %v6455_v32 }
 0xa8a   :  { %7046 = vmatprep.subr.bf16.mxu0 %v6808_v48  ;;  %v6666_v48 = vunpack.c.l.s8.bf16 %v6456_v37  ;;  %v6629_v37 = vunpack.c.l.s8.bf16 %v6437_v14 }
 0xa8b   :  { %7004 = vmatpush2.bf16.msra.mxu1 %v6717_v58  ;;  %v6575_v58 = vunpack.c.h.s8.bf16 %v6407_v60 }
 0xa8c   :  { %7005 = vmatprep.subr.bf16.mxu1 %v6712_v0  ;;  %v6570_v0 = vunpack.c.l.s8.bf16 %v6408_v16 }
 0xa8d   :  { %7047 = vmatpush2.bf16.msra.mxu0 %v6807_v35  ;;  %v6665_v35 = vunpack.c.l.s8.bf16 %v6455_v32 }
 0xa8e   :  { %7048 = vmatprep.subr.bf16.mxu0 %v6802_v22  ;;  %v6660_v22 = vunpack.c.h.s8.bf16 %v6450_v61 }
 0xa8f   :  { %7006 = vmatpush2.bf16.msra.mxu1 %v6711_v33  ;;  %v6569_v33 = vunpack.c.l.s8.bf16 %v6407_v60  ;;  %v6474_v60 = vld [vmem:[#allocation2 + $0x2248] sm:$0xff] }
 0xa90   :  { %7007 = vmatprep.subr.bf16.mxu1 %v6706_v30  ;;  %v6564_v30 = vunpack.c.h.s8.bf16 %v6402_v20 }
 0xa91   :  { %7049 = vmatpush2.bf16.msra.mxu0 %v6801_v18  ;;  %v6659_v18 = vunpack.c.h.s8.bf16 %v6449_v44 }
 0xa92   :  { %7050 = vmatprep.subr.bf16.mxu0 %v6796_v42  ;;  %v6654_v42 = vunpack.c.l.s8.bf16 %v6450_v61  ;;  %v6708_v61 = vunpack.c.h.s8.bf16 %v6474_v60 }
 0xa93   :  { %7008 = vmatpush2.bf16.msra.mxu1 %v6705_v25  ;;  %v6444_v25 = vld [vmem:[#allocation2 + $0x2158] sm:$0xff] }
 0xa94   :  { %7009 = vmatprep.subr.bf16.mxu1 %v6700_v5  ;;  %v6653_v5 = vunpack.c.l.s8.bf16 %v6449_v44  ;;  %v6648_v52 = vunpack.c.h.s8.bf16 %v6444_v25  ;;  %v6642_v23 = vunpack.c.l.s8.bf16 %v6444_v25 }
 0xa95   :  { %7051 = vmatpush2.bf16.msra.mxu0 %v6795_v6  ;;  %v6396_v6 = vld [vmem:[#allocation2 + $0x1fd8] sm:$0xff] }
 0xa96   :  { %7052 = vmatprep.subr.bf16.mxu0 %v6790_v4  ;;  %v6443_v4 = vld [vmem:[#allocation2 + $0x2150] sm:$0xff]  ;;  %v6552_v19 = vunpack.c.h.s8.bf16 %v6396_v6 }
 0xa97   :  { %7010 = vmatpush2.bf16.msra.mxu1 %v6699_v36  ;;  %v6395_v36 = vld [vmem:[#allocation2 + $0x1fd0] sm:$0xff]  ;;  %v6641_v39 = vunpack.c.l.s8.bf16 %v6443_v4 }
 0xa98   :  { %7011 = vmatprep.subr.bf16.mxu1 %v6694_v45  ;;  %v6647_v45 = vunpack.c.h.s8.bf16 %v6443_v4 }
 0xa99   :  { %7053 = vmatpush2.bf16.msra.mxu0 %v6789_v10  ;;  %v6551_v10 = vunpack.c.h.s8.bf16 %v6395_v36 }
 0xa9a   :  { %7054 = vmatprep.subr.bf16.mxu0 %v6784_v57  ;;  %v6438_v57 = vld [vmem:[#allocation2 + $0x2128] sm:$0xff] }
 0xa9b   :  { %7012 = vmatpush2.bf16.msra.mxu1 %v6693_v17  ;;  %v6546_v17 = vunpack.c.l.s8.bf16 %v6396_v6  ;;  %v6630_v15 = vunpack.c.l.s8.bf16 %v6438_v57 }
 0xa9c   :  { %v9224_v8 = vpop.f32.mrf.mxu1  ;;  %7013 = vmatprep.subr.bf16.mxu1 %v6688_v53  ;;  %v6390_v53 = vld [vmem:[#allocation2 + $0x1fa8] sm:$0xff] }
 0xa9d   :  { %7055 = vmatpush2.bf16.msra.mxu0 %v6783_v9  ;;  %v6636_v9 = vunpack.c.h.s8.bf16 %v6438_v57  ;;  %v6540_v59 = vunpack.c.h.s8.bf16 %v6390_v53 }
 0xa9e   :  { %v9226_v41 = vpop.f32.mrf.mxu1  ;;  %7056 = vmatprep.subr.bf16.mxu0 %v6778_v54  ;;  %v6545_v54 = vunpack.c.l.s8.bf16 %v6395_v36  ;;  %v6462_v36 = vld [vmem:[#allocation2 + $0x21e8] sm:$0xff] }
 0xa9f   :  { %7014 = vmatpush2.bf16.msra.mxu1 %v6687_v56  ;;  %v6389_v56 = vld [vmem:[#allocation2 + $0x1fa0] sm:$0xff]  ;;  %v6684_v57 = vunpack.c.h.s8.bf16 %v6462_v36 }
 0xaa0   :  { %v6861_v46 = vpop.f32.mrf.mxu1  ;;  %7015 = vmatprep.subr.bf16.mxu1 %v6682_v26  ;;  %v6635_v26 = vunpack.c.h.s8.bf16 %v6437_v14  ;;  %v6533_v16 = vunpack.c.l.s8.bf16 %v6389_v56 }
 0xaa1   :  { %7057 = vmatpush2.bf16.msra.mxu0 %v6777_v13  ;;  %v6539_v13 = vunpack.c.h.s8.bf16 %v6389_v56  ;;  %v6432_v46 = vld [vmem:[#allocation2 + $0x20f8] sm:$0xff] }
 0xaa2   :  { %v6862_v24 = vpop.f32.mrf.mxu1  ;;  %7058 = vmatprep.subr.bf16.mxu0 %v6772_v43  ;;  %v6480_v43 = vld [vmem:[#allocation2 + $0x2278] sm:$0xff] }
 0xaa3   :  { %7016 = vmatpush2.bf16.msra.mxu1 %v6681_v7  ;;  %v6534_v7 = vunpack.c.l.s8.bf16 %v6390_v53  ;;  %v6624_v24 = vunpack.c.h.s8.bf16 %v6432_v46  ;;  %v7290_v56 = vld [vmem:[#allocation2 + $0x2498] sm:$0xff] }
 0xaa4   :  { %7017 = vmatprep.subr.bf16.mxu1 %v6676_v55  ;;  %v6720_v55 = vunpack.c.h.s8.bf16 %v6480_v43 }
 0xaa5   :  { %7059 = vmatpush2.bf16.msra.mxu0 %v6771_v40  ;;  %v6479_v40 = vld [vmem:[#allocation2 + $0x2270] sm:$0xff] }
 0xaa6   :  { %7110 = vmatprep.subr.bf16.mxu0 %v6672_v28  ;;  %v6431_v28 = vld [vmem:[#allocation2 + $0x20f0] sm:$0xff]  ;;  %v6719_v32 = vunpack.c.h.s8.bf16 %v6479_v40 }
 0xaa7   :  { %7018 = vmatpush2.bf16.msra.mxu1 %v6675_v12  ;;  %v6714_v12 = vunpack.c.l.s8.bf16 %v6480_v43  ;;  %v7458_v43 = vunpack.c.h.s8.bf16 %v7290_v56 }
 0xaa8   :  { %7061 = vmatmul.mubr.bf16.vlgmr.msra.gmra.mxu0 %v9216_v2  ;;  %7069 = vmatprep.subr.bf16.mxu1 %v6576_v11  ;;  %v6623_v11 = vunpack.c.h.s8.bf16 %v6431_v28 }
 0xaa9   :  { %7111 = vmatpush1.bf16.msra.mxu0 %v6671_v62  ;;  %7142 = vmatprep.mubr.bf16.mxu0 %v9194_v27  ;;  %v6563_v27 = vunpack.c.h.s8.bf16 %v6401_v3  ;;  %v6618_v62 = vunpack.c.l.s8.bf16 %v6432_v46 }
 0xaaa   :  { %7020 = vmatmul.mubr.bf16.vlgmr.msra.gmra.mxu1 %v9196_v50  ;;  %7112 = vmatprep.subr.bf16.mxu0 %v6666_v48  ;;  %v6713_v48 = vunpack.c.l.s8.bf16 %v6479_v40 }
 0xaab   :  { %7070 = vmatpush1.bf16.msra.mxu1 %v6575_v58  ;;  %7101 = vmatprep.mubr.bf16.mxu1 %v9154_v1  ;;  %v6557_v1 = vunpack.c.l.s8.bf16 %v6401_v3  ;;  %v6426_v58 = vld [vmem:[#allocation2 + $0x20c8] sm:$0xff]  ;;  %v6468_v3 = vld [vmem:[#allocation2 + $0x2218] sm:$0xff] }
 0xaac   :  { %7071 = vmatprep.subr.bf16.mxu1 %v6570_v0  ;;  %v6473_v0 = vld [vmem:[#allocation2 + $0x2240] sm:$0xff]  ;;  %v6612_v20 = vunpack.c.h.s8.bf16 %v6426_v58  ;;  %v6696_v25 = vunpack.c.h.s8.bf16 %v6468_v3 }
 0xaad   :  { %7113 = vmatpush1.bf16.msra.mxu0 %v6665_v35  ;;  %v6617_v35 = vunpack.c.l.s8.bf16 %v6431_v28  ;;  %v6707_v44 = vunpack.c.h.s8.bf16 %v6473_v0  ;;  %v7284_v28 = vld [vmem:[#allocation2 + $0x2468] sm:$0xff] }
 0xaae   :  { %7114 = vmatprep.subr.bf16.mxu0 %v6660_v22  ;;  %v6425_v22 = vld [vmem:[#allocation2 + $0x20c0] sm:$0xff] }
 0xaaf   :  { %7072 = vmatpush1.bf16.msra.mxu1 %v6569_v33  ;;  %v6702_v33 = vunpack.c.l.s8.bf16 %v6474_v60 }
 0xab0   :  { %7073 = vmatprep.subr.bf16.mxu1 %v6564_v30  ;;  %v6611_v30 = vunpack.c.h.s8.bf16 %v6425_v22 }
 0xab1   :  { %7115 = vmatpush1.bf16.msra.mxu0 %v6659_v18  ;;  %v6606_v18 = vunpack.c.l.s8.bf16 %v6426_v58  ;;  %v7283_v58 = vld [vmem:[#allocation2 + $0x2460] sm:$0xff] }
 0xab2   :  { %7116 = vmatprep.subr.bf16.mxu0 %v6654_v42  ;;  %v6701_v42 = vunpack.c.l.s8.bf16 %v6473_v0 }
 0xab3   :  { %7074 = vmatpush1.bf16.msra.mxu1 %v6563_v27  ;;  %v6420_v27 = vld [vmem:[#allocation2 + $0x2098] sm:$0xff] }
 0xab4   :  { %7075 = vmatprep.subr.bf16.mxu1 %v6558_v63  ;;  %v6467_v63 = vld [vmem:[#allocation2 + $0x2210] sm:$0xff]  ;;  %v6600_v6 = vunpack.c.h.s8.bf16 %v6420_v27 }
 0xab5   :  { %7117 = vmatpush1.bf16.msra.mxu0 %v6653_v5  ;;  %v6605_v5 = vunpack.c.l.s8.bf16 %v6425_v22  ;;  %v6695_v4 = vunpack.c.h.s8.bf16 %v6467_v63 }
 0xab6   :  { %7118 = vmatprep.subr.bf16.mxu0 %v6648_v52  ;;  %v6419_v52 = vld [vmem:[#allocation2 + $0x2090] sm:$0xff] }
 0xab7   :  { %7076 = vmatpush1.bf16.msra.mxu1 %v6557_v1  ;;  %v6690_v1 = vunpack.c.l.s8.bf16 %v6468_v3  ;;  %v6492_v3 = vld [vmem:[#allocation2 + $0x22d8] sm:$0xff] }
 0xab8   :  { %7077 = vmatprep.subr.bf16.mxu1 %v6552_v19  ;;  %v6599_v19 = vunpack.c.h.s8.bf16 %v6419_v52 }
 0xab9   :  { %7119 = vmatpush1.bf16.msra.mxu0 %v6647_v45  ;;  %v6594_v45 = vunpack.c.l.s8.bf16 %v6420_v27 }
 0xaba   :  { %7120 = vmatprep.subr.bf16.mxu0 %v6642_v23  ;;  %v6689_v23 = vunpack.c.l.s8.bf16 %v6467_v63  ;;  %v6491_v63 = vld [vmem:[#allocation2 + $0x22d0] sm:$0xff] }
 0xabb   :  { %7078 = vmatpush1.bf16.msra.mxu1 %v6551_v10  ;;  %v6414_v10 = vld [vmem:[#allocation2 + $0x2068] sm:$0xff] }
 0xabc   :  { %7079 = vmatprep.subr.bf16.mxu1 %v6546_v17  ;;  %v6461_v17 = vld [vmem:[#allocation2 + $0x21e0] sm:$0xff]  ;;  %v6588_v53 = vunpack.c.h.s8.bf16 %v6414_v10 }
 0xabd   :  { %7121 = vmatpush1.bf16.msra.mxu0 %v6641_v39  ;;  %v6593_v39 = vunpack.c.l.s8.bf16 %v6419_v52  ;;  %v6683_v14 = vunpack.c.h.s8.bf16 %v6461_v17  ;;  %v6743_v52 = vunpack.c.h.s8.bf16 %v6491_v63 }
 0xabe   :  { %7122 = vmatprep.subr.bf16.mxu0 %v6636_v9  ;;  %v6413_v9 = vld [vmem:[#allocation2 + $0x2060] sm:$0xff] }
 0xabf   :  { %7080 = vmatpush1.bf16.msra.mxu1 %v6545_v54  ;;  %v6678_v54 = vunpack.c.l.s8.bf16 %v6462_v36 }
 0xac0   :  { %7081 = vmatprep.subr.bf16.mxu1 %v6540_v59  ;;  %v6587_v59 = vunpack.c.h.s8.bf16 %v6413_v9 }
 0xac1   :  { %7123 = vmatpush1.bf16.msra.mxu0 %v6635_v26  ;;  %v6582_v26 = vunpack.c.l.s8.bf16 %v6414_v10  ;;  %v6737_v10 = vunpack.c.l.s8.bf16 %v6491_v63 }
 0xac2   :  { %7124 = vmatprep.subr.bf16.mxu0 %v6630_v15  ;;  %v6677_v15 = vunpack.c.l.s8.bf16 %v6461_v17  ;;  %v6485_v17 = vld [vmem:[#allocation2 + $0x22a0] sm:$0xff] }
 0xac3   :  { %7082 = vmatpush1.bf16.msra.mxu1 %v6539_v13  ;;  %v6504_v13 = vld [vmem:[#allocation2 + $0x2338] sm:$0xff] }
 0xac4   :  { %7083 = vmatprep.subr.bf16.mxu1 %v6534_v7  ;;  %v7289_v7 = vld [vmem:[#allocation2 + $0x2490] sm:$0xff]  ;;  %v6768_v46 = vunpack.c.h.s8.bf16 %v6504_v13 }
 0xac5   :  { %7125 = vmatpush1.bf16.msra.mxu0 %v6629_v37  ;;  %v6581_v37 = vunpack.c.l.s8.bf16 %v6413_v9  ;;  %v7457_v40 = vunpack.c.h.s8.bf16 %v7289_v7  ;;  %v7451_v60 = vunpack.c.l.s8.bf16 %v7289_v7  ;;  %v6731_v9 = vunpack.c.h.s8.bf16 %v6485_v17  ;;  %v6527_v7 = vld [vmem:[#allocation2 + $0x23f0] sm:$0xff] }
 0xac6   :  { %7126 = vmatprep.subr.bf16.mxu0 %v6720_v55  ;;  %v6503_v55 = vld [vmem:[#allocation2 + $0x2330] sm:$0xff] }
 0xac7   :  { %7084 = vmatpush1.bf16.msra.mxu1 %v6533_v16  ;;  %v7452_v16 = vunpack.c.l.s8.bf16 %v7290_v56 }
 0xac8   :  { %7085 = vmatprep.subr.bf16.mxu1 %v6624_v24  ;;  %v6767_v24 = vunpack.c.h.s8.bf16 %v6503_v55 }
 0xac9   :  { %7127 = vmatpush2.bf16.msra.mxu0 %v6719_v32 }
 0xaca   :  { %7128 = vmatprep.subr.bf16.mxu0 %v6714_v12  ;;  %v6762_v12 = vunpack.c.l.s8.bf16 %v6504_v13  ;;  %v6725_v13 = vunpack.c.l.s8.bf16 %v6485_v17 }
 0xacb   :  { %7086 = vmatpush2.bf16.msra.mxu1 %v6623_v11  ;;  %v6498_v11 = vld [vmem:[#allocation2 + $0x2308] sm:$0xff] }
 0xacc   :  { %7087 = vmatprep.subr.bf16.mxu1 %v6618_v62 }
 0xacd   :  { %7129 = vmatpush2.bf16.msra.mxu0 %v6713_v48  ;;  %v7446_v48 = vunpack.c.h.s8.bf16 %v7284_v28 }
 0xace   :  { %7130 = vmatprep.subr.bf16.mxu0 %v6708_v61  ;;  %v6761_v61 = vunpack.c.l.s8.bf16 %v6503_v55  ;;  %v6815_v55 = vunpack.c.h.s8.bf16 %v6527_v7 }
 0xacf   :  { %7088 = vmatpush2.bf16.msra.mxu1 %v6617_v35  ;;  %v6497_v35 = vld [vmem:[#allocation2 + $0x2300] sm:$0xff] }
 0xad0   :  { %7089 = vmatprep.subr.bf16.mxu1 %v6612_v20  ;;  %v7445_v20 = vunpack.c.h.s8.bf16 %v7283_v58  ;;  %v6749_v27 = vunpack.c.l.s8.bf16 %v6497_v35 }
 0xad1   :  { %7131 = vmatpush2.bf16.msra.mxu0 %v6707_v44  ;;  %v7440_v44 = vunpack.c.l.s8.bf16 %v7284_v28 }
 0xad2   :  { %7132 = vmatprep.subr.bf16.mxu0 %v6702_v33  ;;  %v7278_v33 = vld [vmem:[#allocation2 + $0x2438] sm:$0xff] }
 0xad3   :  { %7090 = vmatpush2.bf16.msra.mxu1 %v6611_v30  ;;  %v6750_v30 = vunpack.c.l.s8.bf16 %v6498_v11 }
 0xad4   :  { %7091 = vmatprep.subr.bf16.mxu1 %v6606_v18  ;;  %v7439_v18 = vunpack.c.l.s8.bf16 %v7283_v58  ;;  %v6521_v58 = vld [vmem:[#allocation2 + $0x23c0] sm:$0xff] }
 0xad5   :  { %7133 = vmatpush2.bf16.msra.mxu0 %v6701_v42  ;;  %v7277_v42 = vld [vmem:[#allocation2 + $0x2430] sm:$0xff] }
 0xad6   :  { %7134 = vmatprep.subr.bf16.mxu0 %v6696_v25  ;;  %v6744_v25 = vunpack.c.h.s8.bf16 %v6492_v3  ;;  %v7427_v36 = vunpack.c.l.s8.bf16 %v7277_v42 }
 0xad7   :  { %7092 = vmatpush2.bf16.msra.mxu1 %v6605_v5  ;;  %v7433_v5 = vunpack.c.h.s8.bf16 %v7277_v42 }
 0xad8   :  { %7093 = vmatprep.subr.bf16.mxu1 %v6600_v6  ;;  %v7428_v6 = vunpack.c.l.s8.bf16 %v7278_v33 }
 0xad9   :  { %7135 = vmatpush2.bf16.msra.mxu0 %v6695_v4  ;;  %v7272_v4 = vld [vmem:[#allocation2 + $0x2408] sm:$0xff] }
 0xada   :  { %7136 = vmatprep.subr.bf16.mxu0 %v6690_v1  ;;  %v6738_v1 = vunpack.c.l.s8.bf16 %v6492_v3 }
 0xadb   :  { %7094 = vmatpush2.bf16.msra.mxu1 %v6599_v19  ;;  %v6486_v19 = vld [vmem:[#allocation2 + $0x22a8] sm:$0xff] }
 0xadc   :  { %7095 = vmatprep.subr.bf16.mxu1 %v6594_v45  ;;  %v7422_v45 = vunpack.c.h.s8.bf16 %v7272_v4 }
 0xadd   :  { %7137 = vmatpush2.bf16.msra.mxu0 %v6689_v23  ;;  %v7271_v23 = vld [vmem:[#allocation2 + $0x2400] sm:$0xff] }
 0xade   :  { %7138 = vmatprep.subr.bf16.mxu0 %v6684_v57  ;;  %v6732_v57 = vunpack.c.h.s8.bf16 %v6486_v19  ;;  %v7415_v56 = vunpack.c.l.s8.bf16 %v7271_v23 }
 0xadf   :  { %7096 = vmatpush2.bf16.msra.mxu1 %v6593_v39  ;;  %v7421_v39 = vunpack.c.h.s8.bf16 %v7271_v23 }
 0xae0   :  { %7097 = vmatprep.subr.bf16.mxu1 %v6588_v53  ;;  %v7416_v53 = vunpack.c.l.s8.bf16 %v7272_v4  ;;  %v7295_v4 = vld [vmem:[#allocation2 + $0x24c0] sm:$0xff] }
 0xae1   :  { %7139 = vmatpush2.bf16.msra.mxu0 %v6683_v14  ;;  %v7314_v14 = vld [vmem:[#allocation2 + $0x2558] sm:$0xff]  ;;  %v7463_v17 = vunpack.c.l.s8.bf16 %v7295_v4 }
 0xae2   :  { %7140 = vmatprep.subr.bf16.mxu0 %v6678_v54  ;;  %v6726_v54 = vunpack.c.l.s8.bf16 %v6486_v19 }
 0xae3   :  { %7098 = vmatpush2.bf16.msra.mxu1 %v6587_v59  ;;  %v6528_v59 = vld [vmem:[#allocation2 + $0x23f8] sm:$0xff] }
 0xae4   :  { %7099 = vmatprep.subr.bf16.mxu1 %v6582_v26  ;;  %v7506_v26 = vunpack.c.h.s8.bf16 %v7314_v14 }
 0xae5   :  { %7141 = vmatpush2.bf16.msra.mxu0 %v6677_v15  ;;  %v7313_v15 = vld [vmem:[#allocation2 + $0x2550] sm:$0xff] }
 0xae6   :  { %7709 = vmatprep.subr.bf16.mxu0 %v7458_v43  ;;  %v6816_v43 = vunpack.c.h.s8.bf16 %v6528_v59  ;;  %v7499_v28 = vunpack.c.l.s8.bf16 %v7313_v15 }
 0xae7   :  { %7100 = vmatpush2.bf16.msra.mxu1 %v6581_v37  ;;  %v7505_v37 = vunpack.c.h.s8.bf16 %v7313_v15 }
 0xae8   :  { %7143 = vmatmul.mubr.bf16.vlgmr.msra.gmra.mxu0 %v9196_v50  ;;  %v9233_v32 = vpop.f32.mrf.mxu0  ;;  %7151 = vmatprep.subr.bf16.mxu1 %v6768_v46  ;;  %v6756_v50 = vunpack.c.h.s8.bf16 %v6498_v11  ;;  %v7500_v46 = vunpack.c.l.s8.bf16 %v7314_v14  ;;  %v7307_v11 = vld [vmem:[#allocation2 + $0x2520] sm:$0xff]  ;;  %v7337_v14 = vld [vmem:[#allocation2 + $0x2610] sm:$0xff] }
 0xae9   :  { %7710 = vmatpush1.bf16.msra.mxu0 %v7457_v40  ;;  %v7308_v40 = vld [vmem:[#allocation2 + $0x2528] sm:$0xff]  ;;  %v6899_v15 = vadd.f32 %v9233_v32, %v9224_v8  ;;  %v7547_v8 = vunpack.c.l.s8.bf16 %v7337_v14 }
 0xaea   :  { %7102 = vmatmul.mubr.bf16.vlgmr.msra.gmra.mxu1 %v9164_v21  ;;  %v9236_v62 = vpop.f32.mrf.mxu0  ;;  %7711 = vmatprep.subr.bf16.mxu0 %v7452_v16  ;;  %v6755_v21 = vunpack.c.h.s8.bf16 %v6497_v35  ;;  %v6810_v16 = vunpack.c.l.s8.bf16 %v6528_v59  ;;  %v7302_v35 = vld [vmem:[#allocation2 + $0x24f8] sm:$0xff]  ;;  %v7553_v59 = vunpack.c.h.s8.bf16 %v7337_v14 }
 0xaeb   :  { %7152 = vmatpush1.bf16.msra.mxu1 %v6767_v24  ;;  %7183 = vmatprep.mubr.bf16.mxu1 %v9214_v47  ;;  %v7434_v47 = vunpack.c.h.s8.bf16 %v7278_v33  ;;  %v6522_v24 = vld [vmem:[#allocation2 + $0x23c8] sm:$0xff]  ;;  %v7301_v33 = vld [vmem:[#allocation2 + $0x24f0] sm:$0xff]  ;;  %v7476_v42 = vunpack.c.l.s8.bf16 %v7302_v35 }
 0xaec   :  { %v6902_v0 = vpop.f32.mrf.mxu0  ;;  %7153 = vmatprep.subr.bf16.mxu1 %v6762_v12  ;;  %v7494_v12 = vunpack.c.h.s8.bf16 %v7308_v40 }
 0xaed   :  { %7712 = vmatpush1.bf16.msra.mxu0 %v7451_v60  ;;  %v6809_v60 = vunpack.c.l.s8.bf16 %v6527_v7  ;;  %v7488_v0 = vunpack.c.l.s8.bf16 %v7308_v40  ;;  %v7332_v7 = vld [vmem:[#allocation2 + $0x25e8] sm:$0xff] }
 0xaee   :  { %v6903_v22 = vpop.f32.mrf.mxu0  ;;  %7713 = vmatprep.subr.bf16.mxu0 %v7446_v48  ;;  %v6804_v48 = vunpack.c.h.s8.bf16 %v6522_v24 }
 0xaef   :  { %7154 = vmatpush1.bf16.msra.mxu1 %v6761_v61  ;;  %v7493_v61 = vunpack.c.h.s8.bf16 %v7307_v11  ;;  %v6516_v22 = vld [vmem:[#allocation2 + $0x2398] sm:$0xff] }
 0xaf0   :  { %7155 = vmatprep.subr.bf16.mxu1 %v6756_v50  ;;  %v6803_v50 = vunpack.c.h.s8.bf16 %v6521_v58  ;;  %v6792_v3 = vunpack.c.h.s8.bf16 %v6516_v22  ;;  %v6786_v63 = vunpack.c.l.s8.bf16 %v6516_v22  ;;  %v7326_v22 = vld [vmem:[#allocation2 + $0x25b8] sm:$0xff] }
 0xaf1   :  { %7714 = vmatpush1.bf16.msra.mxu0 %v7445_v20  ;;  %v6798_v20 = vunpack.c.l.s8.bf16 %v6522_v24 }
 0xaf2   :  { %7715 = vmatprep.subr.bf16.mxu0 %v7440_v44  ;;  %v7487_v44 = vunpack.c.l.s8.bf16 %v7307_v11  ;;  %v7331_v11 = vld [vmem:[#allocation2 + $0x25e0] sm:$0xff] }
 0xaf3   :  { %7156 = vmatpush1.bf16.msra.mxu1 %v6755_v21  ;;  %v7482_v21 = vunpack.c.h.s8.bf16 %v7302_v35  ;;  %v7536_v35 = vunpack.c.l.s8.bf16 %v7332_v7 }
 0xaf4   :  { %7157 = vmatprep.subr.bf16.mxu1 %v6750_v30  ;;  %v6797_v30 = vunpack.c.l.s8.bf16 %v6521_v58 }
 0xaf5   :  { %7716 = vmatpush1.bf16.msra.mxu0 %v7439_v18  ;;  %v6515_v18 = vld [vmem:[#allocation2 + $0x2390] sm:$0xff] }
 0xaf6   :  { %7717 = vmatprep.subr.bf16.mxu0 %v7434_v47  ;;  %v7481_v47 = vunpack.c.h.s8.bf16 %v7301_v33 }
 0xaf7   :  { %7158 = vmatpush1.bf16.msra.mxu1 %v6749_v27  ;;  %v6791_v27 = vunpack.c.h.s8.bf16 %v6515_v18 }
 0xaf8   :  { %7159 = vmatprep.subr.bf16.mxu1 %v6744_v25  ;;  %v7296_v25 = vld [vmem:[#allocation2 + $0x24c8] sm:$0xff] }
 0xaf9   :  { %7718 = vmatpush1.bf16.msra.mxu0 %v7433_v5  ;;  %v6510_v5 = vld [vmem:[#allocation2 + $0x2368] sm:$0xff]  ;;  %v7464_v23 = vunpack.c.l.s8.bf16 %v7296_v25 }
 0xafa   :  { %7719 = vmatprep.subr.bf16.mxu0 %v7428_v6  ;;  %v7475_v6 = vunpack.c.l.s8.bf16 %v7301_v33  ;;  %v6780_v19 = vunpack.c.h.s8.bf16 %v6510_v5  ;;  %v7386_v33 = vld [vmem:[#allocation2 + $0x2798] sm:$0xff] }
 0xafb   :  { %7160 = vmatpush1.bf16.msra.mxu1 %v6743_v52  ;;  %v7470_v52 = vunpack.c.h.s8.bf16 %v7296_v25 }
 0xafc   :  { %7161 = vmatprep.subr.bf16.mxu1 %v6738_v1  ;;  %v6785_v1 = vunpack.c.l.s8.bf16 %v6515_v18  ;;  %v7325_v18 = vld [vmem:[#allocation2 + $0x25b0] sm:$0xff] }
 0xafd   :  { %7720 = vmatpush1.bf16.msra.mxu0 %v7427_v36  ;;  %v6509_v36 = vld [vmem:[#allocation2 + $0x2360] sm:$0xff]  ;;  %v7529_v25 = vunpack.c.h.s8.bf16 %v7325_v18 }
 0xafe   :  { %7721 = vmatprep.subr.bf16.mxu0 %v7422_v45  ;;  %v7469_v45 = vunpack.c.h.s8.bf16 %v7295_v4  ;;  %v7523_v4 = vunpack.c.l.s8.bf16 %v7325_v18 }
 0xaff   :  { %7162 = vmatpush1.bf16.msra.mxu1 %v6737_v10  ;;  %v6779_v10 = vunpack.c.h.s8.bf16 %v6509_v36 }
 0xb00   :  { %7163 = vmatprep.subr.bf16.mxu1 %v6732_v57  ;;  %v6774_v57 = vunpack.c.l.s8.bf16 %v6510_v5  ;;  %v7644_v5 = vunpack.c.l.s8.bf16 %v7386_v33 }
 0xb01   :  { %7722 = vmatpush1.bf16.msra.mxu0 %v7421_v39  ;;  %v7338_v39 = vld [vmem:[#allocation2 + $0x2618] sm:$0xff] }
 0xb02   :  { %7723 = vmatprep.subr.bf16.mxu0 %v7416_v53  ;;  %v6773_v53 = vunpack.c.l.s8.bf16 %v6509_v36  ;;  %v7319_v36 = vld [vmem:[#allocation2 + $0x2580] sm:$0xff] }
 0xb03   :  { %7164 = vmatpush1.bf16.msra.mxu1 %v6731_v9  ;;  %v7554_v9 = vunpack.c.h.s8.bf16 %v7338_v39  ;;  %v7511_v14 = vunpack.c.l.s8.bf16 %v7319_v36 }
 0xb04   :  { %7165 = vmatprep.subr.bf16.mxu1 %v6726_v54  ;;  %v9239_v54 = vld [vmem:[#allocation4 + $0x2a] sm:$0x3f] }
 0xb05   :  { %7724 = vmatpush1.bf16.msra.mxu0 %v7415_v56 }
 0xb06   :  { %7725 = vmatprep.subr.bf16.mxu0 %v7506_v26  ;;  %v7548_v26 = vunpack.c.l.s8.bf16 %v7338_v39 }
 0xb07   :  { %7166 = vmatpush1.bf16.msra.mxu1 %v6725_v13  ;;  %v7198_v13 = vrot.slane %v9239_v54, %v8485_v34 }
 0xb08   :  { %7167 = vmatprep.subr.bf16.mxu1 %v6816_v43  ;;  %v9247_v43 = vld [vmem:[#allocation6 + $0x2a] sm:$0x3f] }
 0xb09   :  { %7726 = vmatpush2.bf16.msra.mxu0 %v7505_v37  ;;  %v7237_v32 = vrot.slane %v9247_v43, %v8485_v34 }
 0xb0a   :  { %7727 = vmatprep.subr.bf16.mxu0 %v7500_v46 }
 0xb0b   :  { %7168 = vmatpush2.bf16.msra.mxu1 %v6815_v55  ;;  %v6901_v55 = vadd.f32 %v9236_v62, %v9226_v41 }
 0xb0c   :  { %7169 = vmatprep.subr.bf16.mxu1 %v6810_v16  ;;  %v7202_v16 = vrot.slane %v9239_v54, %v8490_v38 }
 0xb0d   :  { %7728 = vmatpush2.bf16.msra.mxu0 %v7499_v28 }
 0xb0e   :  { %7729 = vmatprep.subr.bf16.mxu0 %v7494_v12  ;;  %v7542_v12 = vunpack.c.h.s8.bf16 %v7332_v7  ;;  %v7373_v7 = vld [vmem:[#allocation2 + $0x2730] sm:$0xff] }
 0xb0f   :  { %7170 = vmatpush2.bf16.msra.mxu1 %v6809_v60 }
 0xb10   :  { %7171 = vmatprep.subr.bf16.mxu1 %v6804_v48  ;;  %v7241_v48 = vrot.slane %v9247_v43, %v8490_v38 }
 0xb11   :  { %7730 = vmatpush2.bf16.msra.mxu0 %v7493_v61  ;;  %v7541_v61 = vunpack.c.h.s8.bf16 %v7331_v11 }
 0xb12   :  { %7731 = vmatprep.subr.bf16.mxu0 %v7488_v0 }
 0xb13   :  { %7172 = vmatpush2.bf16.msra.mxu1 %v6803_v50 }
 0xb14   :  { %7173 = vmatprep.subr.bf16.mxu1 %v6798_v20 }
 0xb15   :  { %7732 = vmatpush2.bf16.msra.mxu0 %v7487_v44 }
 0xb16   :  { %7733 = vmatprep.subr.bf16.mxu0 %v7482_v21  ;;  %v7535_v21 = vunpack.c.l.s8.bf16 %v7331_v11  ;;  %v7355_v11 = vld [vmem:[#allocation2 + $0x26a0] sm:$0xff] }
 0xb17   :  { %7174 = vmatpush2.bf16.msra.mxu1 %v6797_v30 }
 0xb18   :  { %7175 = vmatprep.subr.bf16.mxu1 %v6792_v3  ;;  %v7530_v3 = vunpack.c.h.s8.bf16 %v7326_v22 }
 0xb19   :  { %7734 = vmatpush2.bf16.msra.mxu0 %v7481_v47  ;;  %v7650_v47 = vunpack.c.h.s8.bf16 %v7386_v33  ;;  %v7409_v33 = vld [vmem:[#allocation2 + $0x2850] sm:$0xff] }
 0xb1a   :  { %7735 = vmatprep.subr.bf16.mxu0 %v7476_v42  ;;  %v7385_v42 = vld [vmem:[#allocation2 + $0x2790] sm:$0xff] }
 0xb1b   :  { %7176 = vmatpush2.bf16.msra.mxu1 %v6791_v27  ;;  %v7649_v27 = vunpack.c.h.s8.bf16 %v7385_v42 }
 0xb1c   :  { %7177 = vmatprep.subr.bf16.mxu1 %v6786_v63  ;;  %v7524_v63 = vunpack.c.l.s8.bf16 %v7326_v22  ;;  %v7349_v22 = vld [vmem:[#allocation2 + $0x2670] sm:$0xff] }
 0xb1d   :  { %7736 = vmatpush2.bf16.msra.mxu0 %v7475_v6  ;;  %v7320_v6 = vld [vmem:[#allocation2 + $0x2588] sm:$0xff]  ;;  %v7577_v18 = vunpack.c.h.s8.bf16 %v7349_v22 }
 0xb1e   :  { %7737 = vmatprep.subr.bf16.mxu0 %v7470_v52  ;;  %v7643_v52 = vunpack.c.l.s8.bf16 %v7385_v42 }
 0xb1f   :  { %7178 = vmatpush2.bf16.msra.mxu1 %v6785_v1  ;;  %v7380_v1 = vld [vmem:[#allocation2 + $0x2768] sm:$0xff] }
 0xb20   :  { %7179 = vmatprep.subr.bf16.mxu1 %v6780_v19  ;;  %v7518_v19 = vunpack.c.h.s8.bf16 %v7320_v6  ;;  %v7632_v39 = vunpack.c.l.s8.bf16 %v7380_v1 }
 0xb21   :  { %7738 = vmatpush2.bf16.msra.mxu0 %v7469_v45  ;;  %v7638_v45 = vunpack.c.h.s8.bf16 %v7380_v1  ;;  %v7403_v1 = vld [vmem:[#allocation2 + $0x2820] sm:$0xff] }
 0xb22   :  { %7739 = vmatprep.subr.bf16.mxu0 %v7464_v23  ;;  %v7379_v23 = vld [vmem:[#allocation2 + $0x2760] sm:$0xff] }
 0xb23   :  { %7180 = vmatpush2.bf16.msra.mxu1 %v6779_v10  ;;  %v7637_v10 = vunpack.c.h.s8.bf16 %v7379_v23 }
 0xb24   :  { %7181 = vmatprep.subr.bf16.mxu1 %v6774_v57  ;;  %v7517_v57 = vunpack.c.h.s8.bf16 %v7319_v36 }
 0xb25   :  { %7740 = vmatpush2.bf16.msra.mxu0 %v7463_v17  ;;  %v7512_v17 = vunpack.c.l.s8.bf16 %v7320_v6 }
 0xb26   :  { %7791 = vmatprep.subr.bf16.mxu0 %v7650_v47 }
 0xb27   :  { %7182 = vmatpush2.bf16.msra.mxu1 %v6773_v53  ;;  %v7362_v53 = vld [vmem:[#allocation2 + $0x26d8] sm:$0xff] }
 0xb28   :  { %v9241_v56 = vpop.f32.mrf.mxu0  ;;  %7750 = vmatprep.subr.bf16.mxu1 %v7554_v9  ;;  %v7631_v9 = vunpack.c.l.s8.bf16 %v7379_v23 }
 0xb2a   :  { %v9249_v37 = vpop.f32.mrf.mxu0  ;;  %7184 = vmatmul.mubr.bf16.vlgmr.msra.gmra.mxu1 %v9216_v2  ;;  %v6939_v46 = vpop.f32.mrf.mxu1 }
 0xb2b   :  { %v6940_v40 = vadd.f32 %v6939_v46, %v6899_v15  ;;  %7751 = vmatpush1.bf16.msra.mxu1 %v7553_v59  ;;  %v7374_v59 = vld [vmem:[#allocation2 + $0x2738] sm:$0xff]  ;;  %v7361_v15 = vld [vmem:[#allocation2 + $0x26d0] sm:$0xff]  ;;  %v7625_v46 = vunpack.c.h.s8.bf16 %v7373_v7 }
 0xb2c   :  { %v6984_v24 = vpop.f32.mrf.mxu0  ;;  %v6941_v28 = vpop.f32.mrf.mxu1  ;;  %7752 = vmatprep.subr.bf16.mxu1 %v7548_v26  ;;  %v7602_v26 = vunpack.c.h.s8.bf16 %v7362_v53 }
 0xb2d   :  { %v7225_v60 = vmul.f32 %v7198_v13, %v6940_v40  ;;  %v6942_v2 = vadd.f32 %v6941_v28, %v6901_v55  ;;  %v7626_v13 = vunpack.c.h.s8.bf16 %v7374_v59  ;;  %v7601_v55 = vunpack.c.h.s8.bf16 %v7361_v15  ;;  %v7368_v28 = vld [vmem:[#allocation2 + $0x2708] sm:$0xff] }
 0xb2e   :  { %v6985_v41 = vpop.f32.mrf.mxu0  ;;  %v6943_v62 = vpop.f32.mrf.mxu1  ;;  %v7596_v40 = vunpack.c.l.s8.bf16 %v7362_v53  ;;  %v7595_v24 = vunpack.c.l.s8.bf16 %v7361_v15 }
 0xb2f   :  { %v7226_v58 = vmul.f32 %v7202_v16, %v6942_v2  ;;  %7753 = vmatpush1.bf16.msra.mxu1 %v7547_v8  ;;  %v7264_v0 = vadd.f32 %v7237_v32, %v7225_v60  ;;  %v7620_v16 = vunpack.c.l.s8.bf16 %v7374_v59  ;;  %v7356_v8 = vld [vmem:[#allocation2 + $0x26a8] sm:$0xff]  ;;  %v7619_v32 = vunpack.c.l.s8.bf16 %v7373_v7  ;;  %v7367_v2 = vld [vmem:[#allocation2 + $0x2700] sm:$0xff] }
 0xb30   :  { %v6944_v50 = vpop.f32.mrf.mxu1  ;;  %7754 = vmatprep.subr.bf16.mxu1 %v7542_v12  ;;  %v7590_v12 = vunpack.c.h.s8.bf16 %v7356_v8  ;;  %v7614_v60 = vunpack.c.h.s8.bf16 %v7368_v28  ;;  %v7589_v41 = vunpack.c.h.s8.bf16 %v7355_v11  ;;  %v7584_v62 = vunpack.c.l.s8.bf16 %v7356_v8 }
 0xb31   :  { %v7265_v20 = vadd.f32 %v7241_v48, %v7226_v58  ;;  %v9262_v30 = vpack.c.bf16 %v7264_v0, %v7264_v0  ;;  %v7613_v48 = vunpack.c.h.s8.bf16 %v7367_v2  ;;  %v7608_v58 = vunpack.c.l.s8.bf16 %v7368_v28  ;;  %v7391_v28 = vld [vmem:[#allocation2 + $0x27c0] sm:$0xff] }
 0xb32   :  { %v7607_v0 = vunpack.c.l.s8.bf16 %v7367_v2  ;;  %v7583_v50 = vunpack.c.l.s8.bf16 %v7355_v11  ;;  %v7661_v2 = vunpack.c.h.s8.bf16 %v7391_v28 }
 0xb33   :  { %v9260_v44 = vpack.c.bf16 %v7265_v20, %v7265_v20  ;;  %7755 = vmatpush1.bf16.msra.mxu1 %v7541_v61  ;;  %v7350_v61 = vld [vmem:[#allocation2 + $0x2678] sm:$0xff] }
 0xb34   :  { %7756 = vmatprep.subr.bf16.mxu1 %v7536_v35  ;;  %v7410_v35 = vld [vmem:[#allocation2 + $0x2858] sm:$0xff]  ;;  %v7578_v20 = vunpack.c.h.s8.bf16 %v7350_v61  ;;  %v7572_v47 = vunpack.c.l.s8.bf16 %v7350_v61  ;;  %v7249_v61 = vrot.slane %v9247_v43, %v8523_v51 }
 0xb35   :  { %7741 = vmatprep.mubr.bf16.mxu0 %v9260_v44  ;;  %v7692_v42 = vunpack.c.l.s8.bf16 %v7410_v35 }
 0xb36   :  { %7742 = vmatmul.mubr.bf16.vlgmr.msra.gmra.mxu0 %v9262_v30 }
 0xb37   :  { %7757 = vmatpush1.bf16.msra.mxu1 %v7535_v21  ;;  %7792 = vmatpush1.bf16.msra.mxu0 %v7649_v27  ;;  %v7698_v21 = vunpack.c.h.s8.bf16 %v7410_v35  ;;  %v7344_v27 = vld [vmem:[#allocation2 + $0x2648] sm:$0xff] }
 0xb38   :  { %7758 = vmatprep.subr.bf16.mxu1 %v7530_v3  ;;  %7793 = vmatprep.subr.bf16.mxu0 %v7644_v5  ;;  %v7697_v3 = vunpack.c.h.s8.bf16 %v7409_v33  ;;  %v7404_v5 = vld [vmem:[#allocation2 + $0x2828] sm:$0xff]  ;;  %v7566_v6 = vunpack.c.h.s8.bf16 %v7344_v27 }
 0xb39   :  { %v7680_v23 = vunpack.c.l.s8.bf16 %v7404_v5 }
 0xb3b   :  { %7759 = vmatpush1.bf16.msra.mxu1 %v7529_v25  ;;  %7794 = vmatpush1.bf16.msra.mxu0 %v7643_v52  ;;  %v7691_v25 = vunpack.c.l.s8.bf16 %v7409_v33  ;;  %v7343_v52 = vld [vmem:[#allocation2 + $0x2640] sm:$0xff]  ;;  %v9279_v33 = vld [vmem:[#allocation2 + $0x2628] sm:$0xff] }
 0xb3c   :  { %7760 = vmatprep.subr.bf16.mxu1 %v7524_v63  ;;  %7795 = vmatprep.subr.bf16.mxu0 %v7638_v45  ;;  %v7571_v63 = vunpack.c.l.s8.bf16 %v7349_v22  ;;  %v7565_v36 = vunpack.c.h.s8.bf16 %v7343_v52  ;;  %v7560_v45 = vunpack.c.l.s8.bf16 %v7344_v27  ;;  %v7291_v22 = vld [vmem:[#allocation2 + $0x24a0] sm:$0xff] }
 0xb3f   :  { %7761 = vmatpush1.bf16.msra.mxu1 %v7523_v4  ;;  %7796 = vmatpush1.bf16.msra.mxu0 %v7637_v10  ;;  %v7686_v4 = vunpack.c.h.s8.bf16 %v7404_v5  ;;  %v9266_v10 = vld [vmem:[#allocation2 + $0x24a8] sm:$0xff] }
 0xb40   :  { %7762 = vmatprep.subr.bf16.mxu1 %v7518_v19  ;;  %7797 = vmatprep.subr.bf16.mxu0 %v7632_v39  ;;  %v7685_v19 = vunpack.c.h.s8.bf16 %v7403_v1  ;;  %v7398_v39 = vld [vmem:[#allocation2 + $0x27f8] sm:$0xff]  ;;  %v7460_v53 = vunpack.c.h.s8.bf16 %v9266_v10  ;;  %v7454_v27 = vunpack.c.l.s8.bf16 %v9266_v10 }
 0xb41   :  { %v7668_v15 = vunpack.c.l.s8.bf16 %v7398_v39 }
 0xb43   :  { %7763 = vmatpush1.bf16.msra.mxu1 %v7517_v57  ;;  %7798 = vmatpush1.bf16.msra.mxu0 %v7631_v9  ;;  %v7679_v57 = vunpack.c.l.s8.bf16 %v7403_v1  ;;  %v7674_v9 = vunpack.c.h.s8.bf16 %v7398_v39  ;;  %v7280_v1 = vld [vmem:[#allocation2 + $0x2448] sm:$0xff] }
 0xb44   :  { %7764 = vmatprep.subr.bf16.mxu1 %v7512_v17  ;;  %7799 = vmatprep.subr.bf16.mxu0 %v7626_v13  ;;  %v7559_v17 = vunpack.c.l.s8.bf16 %v7343_v52  ;;  %v7430_v10 = vunpack.c.l.s8.bf16 %v7280_v1 }
 0xb47   :  { %7765 = vmatpush1.bf16.msra.mxu1 %v7511_v14  ;;  %7800 = vmatpush1.bf16.msra.mxu0 %v7625_v46  ;;  %v7397_v14 = vld [vmem:[#allocation2 + $0x27f0] sm:$0xff] }
 0xb48   :  { %7766 = vmatprep.subr.bf16.mxu1 %v7602_v26  ;;  %7801 = vmatprep.subr.bf16.mxu0 %v7620_v16  ;;  %v7673_v59 = vunpack.c.h.s8.bf16 %v7397_v14  ;;  %v7667_v13 = vunpack.c.l.s8.bf16 %v7397_v14  ;;  %v7392_v16 = vld [vmem:[#allocation2 + $0x27c8] sm:$0xff] }
 0xb4b   :  { %7767 = vmatpush2.bf16.msra.mxu1 %v7601_v55  ;;  %7802 = vmatpush1.bf16.msra.mxu0 %v7619_v32 }
 0xb4c   :  { %7768 = vmatprep.subr.bf16.mxu1 %v7596_v40  ;;  %7803 = vmatprep.subr.bf16.mxu0 %v7614_v60  ;;  %v7206_v40 = vrot.slane %v9239_v54, %v8520_v49  ;;  %v7210_v60 = vrot.slane %v9239_v54, %v8523_v51 }
 0xb4f   :  { %7769 = vmatpush2.bf16.msra.mxu1 %v7595_v24  ;;  %7804 = vmatpush1.bf16.msra.mxu0 %v7613_v48  ;;  %v7662_v24 = vunpack.c.h.s8.bf16 %v7392_v16  ;;  %v7245_v48 = vrot.slane %v9247_v43, %v8520_v49 }
 0xb50   :  { %7770 = vmatprep.subr.bf16.mxu1 %v7590_v12  ;;  %7805 = vmatprep.subr.bf16.mxu0 %v7608_v58 }
 0xb53   :  { %7771 = vmatpush2.bf16.msra.mxu1 %v7589_v41  ;;  %7806 = vmatpush1.bf16.msra.mxu0 %v7607_v0 }
 0xb54   :  { %7772 = vmatprep.subr.bf16.mxu1 %v7584_v62  ;;  %7807 = vmatprep.subr.bf16.mxu0 %v7698_v21 }
 0xb57   :  { %7773 = vmatpush2.bf16.msra.mxu1 %v7583_v50  ;;  %7808 = vmatpush2.bf16.msra.mxu0 %v7697_v3  ;;  %v7656_v50 = vunpack.c.l.s8.bf16 %v7392_v16  ;;  %v7556_v3 = vunpack.c.h.s8.bf16 %v9279_v33 }
 0xb58   :  { %7774 = vmatprep.subr.bf16.mxu1 %v7578_v20  ;;  %7809 = vmatprep.subr.bf16.mxu0 %v7692_v42 }
 0xb5b   :  { %7775 = vmatpush2.bf16.msra.mxu1 %v7577_v18  ;;  %7810 = vmatpush2.bf16.msra.mxu0 %v7691_v25  ;;  %v7286_v25 = vld [vmem:[#allocation2 + $0x2478] sm:$0xff] }
 0xb5c   :  { %7776 = vmatprep.subr.bf16.mxu1 %v7572_v47  ;;  %7811 = vmatprep.subr.bf16.mxu0 %v7686_v4  ;;  %v7459_v47 = vunpack.c.h.s8.bf16 %v7291_v22  ;;  %v7448_v5 = vunpack.c.h.s8.bf16 %v7286_v25  ;;  %v7442_v4 = vunpack.c.l.s8.bf16 %v7286_v25 }
 0xb5f   :  { %7777 = vmatpush2.bf16.msra.mxu1 %v7571_v63  ;;  %7812 = vmatpush2.bf16.msra.mxu0 %v7685_v19  ;;  %v7453_v63 = vunpack.c.l.s8.bf16 %v7291_v22 }
 0xb60   :  { %7778 = vmatprep.subr.bf16.mxu1 %v7566_v6  ;;  %7813 = vmatprep.subr.bf16.mxu0 %v7680_v23  ;;  %v7285_v6 = vld [vmem:[#allocation2 + $0x2470] sm:$0xff] }
 0xb61   :  { %v7447_v52 = vunpack.c.h.s8.bf16 %v7285_v6  ;;  %v7441_v19 = vunpack.c.l.s8.bf16 %v7285_v6  ;;  %v7387_v6 = vld [vmem:[#allocation2 + $0x27a0] sm:$0xff] }
 0xb63   :  { %7779 = vmatpush2.bf16.msra.mxu1 %v7565_v36  ;;  %7814 = vmatpush2.bf16.msra.mxu0 %v7679_v57  ;;  %v7436_v36 = vunpack.c.h.s8.bf16 %v7280_v1  ;;  %v7274_v57 = vld [vmem:[#allocation2 + $0x2418] sm:$0xff] }
 0xb64   :  { %7780 = vmatprep.subr.bf16.mxu1 %v7560_v45  ;;  %7815 = vmatprep.subr.bf16.mxu0 %v7674_v9  ;;  %v7279_v45 = vld [vmem:[#allocation2 + $0x2440] sm:$0xff]  ;;  %v7424_v39 = vunpack.c.h.s8.bf16 %v7274_v57  ;;  %v7418_v14 = vunpack.c.l.s8.bf16 %v7274_v57  ;;  %v7382_v1 = vld [vmem:[#allocation2 + $0x2778] sm:$0xff]  ;;  %v7376_v57 = vld [vmem:[#allocation2 + $0x2748] sm:$0xff] }
 0xb65   :  { %v7435_v23 = vunpack.c.h.s8.bf16 %v7279_v45 }
 0xb67   :  { %7781 = vmatpush2.bf16.msra.mxu1 %v7559_v17  ;;  %7816 = vmatpush2.bf16.msra.mxu0 %v7673_v59  ;;  %v7429_v17 = vunpack.c.l.s8.bf16 %v7279_v45  ;;  %v7316_v59 = vld [vmem:[#allocation2 + $0x2568] sm:$0xff]  ;;  %v7381_v45 = vld [vmem:[#allocation2 + $0x2770] sm:$0xff] }
 0xb68   :  { %v7062_v26 = vpop.f32.mrf.mxu0  ;;  %7832 = vmatprep.subr.bf16.mxu1 %v7460_v53  ;;  %7817 = vmatprep.subr.bf16.mxu0 %v7668_v15  ;;  %v7273_v53 = vld [vmem:[#allocation2 + $0x2410] sm:$0xff]  ;;  %v7508_v15 = vunpack.c.h.s8.bf16 %v7316_v59 }
 0xb69   :  { %v7423_v9 = vunpack.c.h.s8.bf16 %v7273_v53 }
 0xb6a   :  { %v7021_v7 = vpop.f32.mrf.mxu1  ;;  %v7064_v46 = vpop.f32.mrf.mxu0 }
 0xb6b   :  { %v7022_v55 = vadd.f32 %v7021_v7, %v9241_v56  ;;  %7818 = vmatpush2.bf16.msra.mxu0 %v7667_v13  ;;  %v7315_v13 = vld [vmem:[#allocation2 + $0x2560] sm:$0xff] }
 0xb6c   :  { %v7023_v8 = vpop.f32.mrf.mxu1  ;;  %v7066_v32 = vpop.f32.mrf.mxu0  ;;  %7819 = vmatprep.subr.bf16.mxu0 %v7662_v24  ;;  %v7507_v7 = vunpack.c.h.s8.bf16 %v7315_v13 }
 0xb6d   :  { %v7063_v12 = vadd.f32 %v7062_v26, %v7022_v55  ;;  %v7024_v11 = vadd.f32 %v7023_v8, %v9249_v37  ;;  %v7655_v37 = vunpack.c.l.s8.bf16 %v7391_v28  ;;  %v7417_v26 = vunpack.c.l.s8.bf16 %v7273_v53  ;;  %v7310_v55 = vld [vmem:[#allocation2 + $0x2538] sm:$0xff]  ;;  %v7309_v8 = vld [vmem:[#allocation2 + $0x2530] sm:$0xff]  ;;  %v7304_v28 = vld [vmem:[#allocation2 + $0x2508] sm:$0xff] }
 0xb6e   :  { %v7025_v56 = vpop.f32.mrf.mxu1  ;;  %v7067_v41 = vpop.f32.mrf.mxu0  ;;  %v7496_v16 = vunpack.c.h.s8.bf16 %v7310_v55  ;;  %v7495_v32 = vunpack.c.h.s8.bf16 %v7309_v8  ;;  %v7490_v24 = vunpack.c.l.s8.bf16 %v7310_v55  ;;  %v7375_v53 = vld [vmem:[#allocation2 + $0x2740] sm:$0xff]  ;;  %v7412_v55 = vld [vmem:[#allocation2 + $0x2868] sm:$0xff] }
 0xb6f   :  { %v7227_v62 = vmul.f32 %v7206_v40, %v7063_v12  ;;  %v7065_v58 = vadd.f32 %v7064_v46, %v7024_v11  ;;  %7820 = vmatpush2.bf16.msra.mxu0 %v7661_v2  ;;  %v7502_v46 = vunpack.c.l.s8.bf16 %v7316_v59  ;;  %v7501_v40 = vunpack.c.l.s8.bf16 %v7315_v13  ;;  %v7298_v56 = vld [vmem:[#allocation2 + $0x24d8] sm:$0xff]  ;;  %v7369_v13 = vld [vmem:[#allocation2 + $0x2710] sm:$0xff] }
 0xb70   :  { %v7026_v0 = vpop.f32.mrf.mxu1  ;;  %7821 = vmatprep.subr.bf16.mxu0 %v7656_v50  ;;  %v7489_v12 = vunpack.c.l.s8.bf16 %v7309_v8  ;;  %v7484_v11 = vunpack.c.h.s8.bf16 %v7304_v28  ;;  %v7297_v50 = vld [vmem:[#allocation2 + $0x24d0] sm:$0xff]  ;;  %v7370_v59 = vld [vmem:[#allocation2 + $0x2718] sm:$0xff]  ;;  %v7411_v8 = vld [vmem:[#allocation2 + $0x2860] sm:$0xff] }
 0xb71   :  { %v7228_v35 = vmul.f32 %v7210_v60, %v7065_v58  ;;  %v7266_v20 = vadd.f32 %v7245_v48, %v7227_v62  ;;  %v7303_v60 = vld [vmem:[#allocation2 + $0x2500] sm:$0xff]  ;;  %v7478_v48 = vunpack.c.l.s8.bf16 %v7304_v28  ;;  %v7472_v0 = vunpack.c.h.s8.bf16 %v7298_v56  ;;  %v7406_v28 = vld [vmem:[#allocation2 + $0x2838] sm:$0xff] }
 0xb72   :  { %v7483_v2 = vunpack.c.h.s8.bf16 %v7303_v60  ;;  %v7477_v62 = vunpack.c.l.s8.bf16 %v7303_v60  ;;  %v7471_v22 = vunpack.c.h.s8.bf16 %v7297_v50  ;;  %v7405_v60 = vld [vmem:[#allocation2 + $0x2830] sm:$0xff] }
 0xb73   :  { %v7267_v21 = vadd.f32 %v7249_v61, %v7228_v35  ;;  %7822 = vmatpush2.bf16.msra.mxu0 %v7655_v37  ;;  %v9284_v42 = vpack.c.bf16 %v7266_v20, %v7266_v20 }
 0xb74   :  { %7873 = vmatprep.subr.bf16.mxu0 %v7556_v3 }
 0xb75   :  { %v9282_v18 = vpack.c.bf16 %v7267_v21, %v7267_v21 }
 0xb77   :  { %7782 = vmatprep.mubr.bf16.mxu1 %v9282_v18 }
 0xb78   :  { %7783 = vmatmul.mubr.bf16.vlgmr.msra.gmra.mxu1 %v9284_v42 }
 0xb79   :  { %7833 = vmatpush1.bf16.msra.mxu1 %v7459_v47  ;;  %7864 = vmatprep.mubr.bf16.mxu1 %v9260_v44  ;;  %v7466_v47 = vunpack.c.l.s8.bf16 %v7298_v56  ;;  %v7400_v56 = vld [vmem:[#allocation2 + $0x2808] sm:$0xff] }
 0xb7a   :  { %7834 = vmatprep.subr.bf16.mxu1 %v7454_v27  ;;  %v7388_v27 = vld [vmem:[#allocation2 + $0x27a8] sm:$0xff] }
 0xb7d   :  { %7835 = vmatpush1.bf16.msra.mxu1 %v7453_v63  ;;  %v7465_v63 = vunpack.c.l.s8.bf16 %v7297_v50  ;;  %v7670_v50 = vunpack.c.l.s8.bf16 %v7400_v56 }
 0xb7e   :  { %7836 = vmatprep.subr.bf16.mxu1 %v7448_v5  ;;  %v7652_v5 = vunpack.c.h.s8.bf16 %v7388_v27 }
 0xb81   :  { %7837 = vmatpush1.bf16.msra.mxu1 %v7447_v52  ;;  %v7651_v52 = vunpack.c.h.s8.bf16 %v7387_v6 }
 0xb82   :  { %7838 = vmatprep.subr.bf16.mxu1 %v7442_v4  ;;  %v7646_v4 = vunpack.c.l.s8.bf16 %v7388_v27  ;;  %v7393_v27 = vld [vmem:[#allocation2 + $0x27d0] sm:$0xff] }
 0xb85   :  { %7839 = vmatpush1.bf16.msra.mxu1 %v7441_v19  ;;  %v7645_v19 = vunpack.c.l.s8.bf16 %v7387_v6  ;;  %v7253_v6 = vrot.slane %v9247_v43, %v8554_v29 }
 0xb86   :  { %7840 = vmatprep.subr.bf16.mxu1 %v7436_v36  ;;  %v7640_v36 = vunpack.c.h.s8.bf16 %v7382_v1 }
 0xb89   :  { %7841 = vmatpush1.bf16.msra.mxu1 %v7435_v23  ;;  %v7639_v23 = vunpack.c.h.s8.bf16 %v7381_v45 }
 0xb8a   :  { %7842 = vmatprep.subr.bf16.mxu1 %v7430_v10  ;;  %v7634_v10 = vunpack.c.l.s8.bf16 %v7382_v1 }
 0xb8d   :  { %7843 = vmatpush1.bf16.msra.mxu1 %v7429_v17  ;;  %v7633_v17 = vunpack.c.l.s8.bf16 %v7381_v45 }
 0xb8e   :  { %7844 = vmatprep.subr.bf16.mxu1 %v7424_v39  ;;  %v7628_v39 = vunpack.c.h.s8.bf16 %v7376_v57 }
 0xb91   :  { %7845 = vmatpush1.bf16.msra.mxu1 %v7423_v9  ;;  %v7627_v9 = vunpack.c.h.s8.bf16 %v7375_v53 }
 0xb92   :  { %7846 = vmatprep.subr.bf16.mxu1 %v7418_v14  ;;  %v7622_v14 = vunpack.c.l.s8.bf16 %v7376_v57 }
 0xb95   :  { %7847 = vmatpush1.bf16.msra.mxu1 %v7417_v26  ;;  %v7621_v26 = vunpack.c.l.s8.bf16 %v7375_v53 }
 0xb96   :  { %7848 = vmatprep.subr.bf16.mxu1 %v7508_v15  ;;  %v7616_v15 = vunpack.c.h.s8.bf16 %v7370_v59 }
 0xb99   :  { %7849 = vmatpush2.bf16.msra.mxu1 %v7507_v7  ;;  %v7615_v7 = vunpack.c.h.s8.bf16 %v7369_v13 }
 0xb9a   :  { %7850 = vmatprep.subr.bf16.mxu1 %v7502_v46  ;;  %v7610_v46 = vunpack.c.l.s8.bf16 %v7370_v59 }
 0xb9d   :  { %7851 = vmatpush2.bf16.msra.mxu1 %v7501_v40  ;;  %v7609_v40 = vunpack.c.l.s8.bf16 %v7369_v13  ;;  %v7550_v13 = vunpack.c.l.s8.bf16 %v9279_v33 }
 0xb9e   :  { %7852 = vmatprep.subr.bf16.mxu1 %v7496_v16  ;;  %v7700_v16 = vunpack.c.h.s8.bf16 %v7412_v55 }
 0xba1   :  { %7853 = vmatpush2.bf16.msra.mxu1 %v7495_v32  ;;  %v7699_v32 = vunpack.c.h.s8.bf16 %v7411_v8 }
 0xba2   :  { %7854 = vmatprep.subr.bf16.mxu1 %v7490_v24  ;;  %v7694_v24 = vunpack.c.l.s8.bf16 %v7412_v55  ;;  %v7336_v55 = vld [vmem:[#allocation2 + $0x2608] sm:$0xff] }
 0xba3   :  { %v7546_v33 = vunpack.c.h.s8.bf16 %v7336_v55 }
 0xba5   :  { %7855 = vmatpush2.bf16.msra.mxu1 %v7489_v12  ;;  %v7693_v12 = vunpack.c.l.s8.bf16 %v7411_v8  ;;  %v7333_v8 = vld [vmem:[#allocation2 + $0x25f0] sm:$0xff] }
 0xba6   :  { %7856 = vmatprep.subr.bf16.mxu1 %v7484_v11  ;;  %v7688_v11 = vunpack.c.h.s8.bf16 %v7406_v28 }
 0xba8   :  { %v7144_v41 = vpop.f32.mrf.mxu0 }
 0xba9   :  { %7857 = vmatpush2.bf16.msra.mxu1 %v7483_v2  ;;  %v7687_v2 = vunpack.c.h.s8.bf16 %v7405_v60 }
 0xbaa   :  { %v7103_v58 = vpop.f32.mrf.mxu1  ;;  %v9290_v61 = vpop.f32.mrf.mxu0  ;;  %7858 = vmatprep.subr.bf16.mxu1 %v7478_v48  ;;  %v7682_v48 = vunpack.c.l.s8.bf16 %v7406_v28  ;;  %v7335_v28 = vld [vmem:[#allocation2 + $0x2600] sm:$0xff] }
 0xbab   :  { %v9292_v35 = vadd.f32 %v7144_v41, %v7103_v58  ;;  %v7681_v41 = vunpack.c.l.s8.bf16 %v7405_v60  ;;  %v7399_v58 = vld [vmem:[#allocation2 + $0x2800] sm:$0xff] }
 0xbac   :  { %v9294_v37 = vpop.f32.mrf.mxu1  ;;  %v7148_v20 = vpop.f32.mrf.mxu0 }
 0xbad   :  { %7859 = vmatpush2.bf16.msra.mxu1 %v7477_v62  ;;  %v7676_v62 = vunpack.c.h.s8.bf16 %v7400_v56  ;;  %v7394_v20 = vld [vmem:[#allocation2 + $0x27d8] sm:$0xff]  ;;  %v7540_v56 = vunpack.c.l.s8.bf16 %v7336_v55 }
 0xbae   :  { %v7107_v21 = vpop.f32.mrf.mxu1  ;;  %v7149_v3 = vpop.f32.mrf.mxu0  ;;  %7860 = vmatprep.subr.bf16.mxu1 %v7472_v0  ;;  %v7675_v0 = vunpack.c.h.s8.bf16 %v7399_v58 }
 0xbaf   :  { %v7669_v21 = vunpack.c.l.s8.bf16 %v7399_v58  ;;  %v7327_v58 = vld [vmem:[#allocation2 + $0x25c0] sm:$0xff] }
 0xbb0   :  { %v7108_v25 = vpop.f32.mrf.mxu1 }
 0xbb1   :  { %7861 = vmatpush2.bf16.msra.mxu1 %v7471_v22  ;;  %v7214_v22 = vrot.slane %v9239_v54, %v8554_v29  ;;  %v7147_v25 = vadd.f32 %v9290_v61, %v9294_v37 }
 0xbb2   :  { %7862 = vmatprep.subr.bf16.mxu1 %v7466_v47  ;;  %v7664_v47 = vunpack.c.h.s8.bf16 %v7394_v20 }
 0xbb5   :  { %7863 = vmatpush2.bf16.msra.mxu1 %v7465_v63 }
 0xbb6   :  { %7914 = vmatprep.subr.bf16.mxu1 %v7652_v5  ;;  %v7218_v5 = vrot.slane %v9239_v54, %v8557_v31  ;;  %v7657_v54 = vunpack.c.l.s8.bf16 %v7393_v27 }
 0xbb8   :  { %7865 = vmatmul.mubr.bf16.vlgmr.msra.gmra.mxu1 %v9262_v30 }
 0xbb9   :  { %7915 = vmatpush1.bf16.msra.mxu1 %v7651_v52 }
 0xbba   :  { %7916 = vmatprep.subr.bf16.mxu1 %v7646_v4 }
 0xbbd   :  { %7917 = vmatpush1.bf16.msra.mxu1 %v7645_v19  ;;  %v7663_v19 = vunpack.c.h.s8.bf16 %v7393_v27 }
 0xbbe   :  { %7918 = vmatprep.subr.bf16.mxu1 %v7640_v36  ;;  %v7257_v36 = vrot.slane %v9247_v43, %v8557_v31 }
 0xbc1   :  { %7919 = vmatpush1.bf16.msra.mxu1 %v7639_v23  ;;  %v7658_v23 = vunpack.c.l.s8.bf16 %v7394_v20  ;;  %v7329_v20 = vld [vmem:[#allocation2 + $0x25d0] sm:$0xff] }
 0xbc2   :  { %7920 = vmatprep.subr.bf16.mxu1 %v7634_v10  ;;  %v7339_v10 = vld [vmem:[#allocation2 + $0x2620] sm:$0xff] }
 0xbc5   :  { %7921 = vmatpush1.bf16.msra.mxu1 %v7633_v17  ;;  %v7342_v17 = vld [vmem:[#allocation2 + $0x2638] sm:$0xff] }
 0xbc6   :  { %7922 = vmatprep.subr.bf16.mxu1 %v7628_v39  ;;  %v7341_v39 = vld [vmem:[#allocation2 + $0x2630] sm:$0xff]  ;;  %v7558_v59 = vunpack.c.h.s8.bf16 %v7342_v17 }
 0xbc7   :  { %v7557_v43 = vunpack.c.h.s8.bf16 %v7341_v39 }
 0xbc9   :  { %7923 = vmatpush1.bf16.msra.mxu1 %v7627_v9  ;;  %v7555_v9 = vunpack.c.h.s8.bf16 %v7339_v10 }
 0xbca   :  { %7924 = vmatprep.subr.bf16.mxu1 %v7622_v14 }
 0xbcd   :  { %7925 = vmatpush1.bf16.msra.mxu1 %v7621_v26  ;;  %v7334_v26 = vld [vmem:[#allocation2 + $0x25f8] sm:$0xff] }
 0xbce   :  { %7926 = vmatprep.subr.bf16.mxu1 %v7616_v15  ;;  %v7538_v60 = vunpack.c.l.s8.bf16 %v7334_v26 }
 0xbd1   :  { %7927 = vmatpush1.bf16.msra.mxu1 %v7615_v7  ;;  %v7552_v7 = vunpack.c.l.s8.bf16 %v7342_v17 }
 0xbd2   :  { %7928 = vmatprep.subr.bf16.mxu1 %v7610_v46  ;;  %v7549_v46 = vunpack.c.l.s8.bf16 %v7339_v10 }
 0xbd5   :  { %7929 = vmatpush1.bf16.msra.mxu1 %v7609_v40 }
 0xbd6   :  { %7930 = vmatprep.subr.bf16.mxu1 %v7700_v16  ;;  %v7544_v16 = vunpack.c.h.s8.bf16 %v7334_v26  ;;  %v7358_v26 = vld [vmem:[#allocation2 + $0x26b8] sm:$0xff] }
 0xbd7   :  { %v7592_v55 = vunpack.c.h.s8.bf16 %v7358_v26 }
 0xbd9   :  { %7931 = vmatpush2.bf16.msra.mxu1 %v7699_v32  ;;  %v7551_v32 = vunpack.c.l.s8.bf16 %v7341_v39  ;;  %v7365_v39 = vld [vmem:[#allocation2 + $0x26f0] sm:$0xff] }
 0xbda   :  { %7932 = vmatprep.subr.bf16.mxu1 %v7694_v24 }
 0xbdd   :  { %7933 = vmatpush2.bf16.msra.mxu1 %v7693_v12  ;;  %v7543_v12 = vunpack.c.h.s8.bf16 %v7333_v8 }
 0xbde   :  { %7934 = vmatprep.subr.bf16.mxu1 %v7688_v11 }
 0xbe1   :  { %7935 = vmatpush2.bf16.msra.mxu1 %v7687_v2  ;;  %v7545_v2 = vunpack.c.h.s8.bf16 %v7335_v28 }
 0xbe2   :  { %7936 = vmatprep.subr.bf16.mxu1 %v7682_v48  ;;  %v7328_v48 = vld [vmem:[#allocation2 + $0x25c8] sm:$0xff] }
 0xbe5   :  { %7937 = vmatpush2.bf16.msra.mxu1 %v7681_v41  ;;  %v7537_v41 = vunpack.c.l.s8.bf16 %v7333_v8  ;;  %v7599_v8 = vunpack.c.l.s8.bf16 %v7365_v39 }
 0xbe6   :  { %7938 = vmatprep.subr.bf16.mxu1 %v7676_v62  ;;  %v7330_v62 = vld [vmem:[#allocation2 + $0x25d8] sm:$0xff] }
 0xbe7   :  { %v7528_v27 = vunpack.c.l.s8.bf16 %v7330_v62 }
 0xbe9   :  { %7939 = vmatpush2.bf16.msra.mxu1 %v7675_v0  ;;  %v7539_v0 = vunpack.c.l.s8.bf16 %v7335_v28  ;;  %v7586_v28 = vunpack.c.l.s8.bf16 %v7358_v26 }
 0xbea   :  { %v7185_v3 = vpop.f32.mrf.mxu1  ;;  %7940 = vmatprep.subr.bf16.mxu1 %v7670_v50  ;;  %v7534_v50 = vunpack.c.h.s8.bf16 %v7330_v62 }
 0xbeb   :  { %v7186_v63 = vadd.f32 %v7185_v3, %v9292_v35  ;;  %v7533_v3 = vunpack.c.h.s8.bf16 %v7329_v20 }
 0xbec   :  { %v7187_v52 = vpop.f32.mrf.mxu1 }
 0xbed   :  { %v7229_v4 = vmul.f32 %v7214_v22, %v7186_v63  ;;  %v7188_v1 = vadd.f32 %v7187_v52, %v7147_v25  ;;  %7941 = vmatpush2.bf16.msra.mxu1 %v7669_v21  ;;  %v7531_v22 = vunpack.c.h.s8.bf16 %v7327_v58  ;;  %v7526_v21 = vunpack.c.l.s8.bf16 %v7328_v48  ;;  %v7324_v63 = vld [vmem:[#allocation2 + $0x25a8] sm:$0xff] }
 0xbee   :  { %v7189_v45 = vpop.f32.mrf.mxu1  ;;  %7942 = vmatprep.subr.bf16.mxu1 %v7664_v47  ;;  %v7322_v47 = vld [vmem:[#allocation2 + $0x2598] sm:$0xff]  ;;  %v7525_v25 = vunpack.c.l.s8.bf16 %v7327_v58  ;;  %v7527_v52 = vunpack.c.l.s8.bf16 %v7329_v20  ;;  %v7353_v58 = vld [vmem:[#allocation2 + $0x2690] sm:$0xff] }
 0xbef   :  { %v7230_v61 = vmul.f32 %v7218_v5, %v7188_v1  ;;  %v7268_v37 = vadd.f32 %v7253_v6, %v7229_v4  ;;  %v7520_v5 = vunpack.c.h.s8.bf16 %v7322_v47  ;;  %v7321_v6 = vld [vmem:[#allocation2 + $0x2590] sm:$0xff]  ;;  %v7522_v4 = vunpack.c.h.s8.bf16 %v7324_v63  ;;  %v7323_v1 = vld [vmem:[#allocation2 + $0x25a0] sm:$0xff] }
 0xbf0   :  { %v7190_v35 = vpop.f32.mrf.mxu1  ;;  %v7521_v45 = vunpack.c.h.s8.bf16 %v7323_v1  ;;  %v7581_v20 = vunpack.c.h.s8.bf16 %v7353_v58 }
 0xbf1   :  { %7943 = vmatpush2.bf16.msra.mxu1 %v7663_v19  ;;  %v7269_v57 = vadd.f32 %v7257_v36, %v7230_v61  ;;  %v9310_v14 = vpack.c.bf16 %v7268_v37, %v7268_v37  ;;  %v7519_v19 = vunpack.c.h.s8.bf16 %v7321_v6  ;;  %v7514_v36 = vunpack.c.l.s8.bf16 %v7322_v47  ;;  %v7366_v35 = vld [vmem:[#allocation2 + $0x26f8] sm:$0xff]  ;;  %v7348_v47 = vld [vmem:[#allocation2 + $0x2668] sm:$0xff] }
 0xbf2   :  { %7944 = vmatprep.subr.bf16.mxu1 %v7658_v23  ;;  %v7364_v23 = vld [vmem:[#allocation2 + $0x26e8] sm:$0xff]  ;;  %v7516_v61 = vunpack.c.l.s8.bf16 %v7324_v63  ;;  %v7513_v37 = vunpack.c.l.s8.bf16 %v7321_v6  ;;  %v7606_v17 = vunpack.c.h.s8.bf16 %v7366_v35  ;;  %v7575_v63 = vunpack.c.l.s8.bf16 %v7353_v58  ;;  %v7347_v6 = vld [vmem:[#allocation2 + $0x2660] sm:$0xff] }
 0xbf3   :  { %v9308_v53 = vpack.c.bf16 %v7269_v57, %v7269_v57  ;;  %v7604_v10 = vunpack.c.h.s8.bf16 %v7364_v23  ;;  %v7515_v57 = vunpack.c.l.s8.bf16 %v7323_v1  ;;  %v7569_v1 = vunpack.c.h.s8.bf16 %v7347_v6 }
 0xbf5   :  { %7945 = vmatpush2.bf16.msra.mxu1 %v7657_v54  ;;  %7823 = vmatprep.mubr.bf16.mxu0 %v9308_v53  ;;  %v7363_v54 = vld [vmem:[#allocation2 + $0x26e0] sm:$0xff] }
 0xbf6   :  { %7946 = vmatprep.mubr.bf16.mxu1 %v9308_v53  ;;  %7824 = vmatmul.mubr.bf16.vlgmr.msra.gmra.mxu0 %v9310_v14  ;;  %v9315_v15 = vpop.f32.mrf.mxu0 }
 0xbf7   :  { %7874 = vmatpush1.bf16.msra.mxu0 %v7555_v9  ;;  %7905 = vmatprep.mubr.bf16.mxu0 %v9282_v18  ;;  %v7603_v9 = vunpack.c.h.s8.bf16 %v7363_v54 }
 0xbf8   :  { %7947 = vmatmul.mubr.bf16.vlgmr.msra.gmra.mxu1 %v9310_v14  ;;  %7996 = vmatprep.subr.bf16.mxu1 %v7558_v59  ;;  %v9320_v40 = vpop.f32.mrf.mxu0  ;;  %v7598_v59 = vunpack.c.l.s8.bf16 %v7364_v23 }
 0xbf9   :  { %7997 = vmatpush1.bf16.msra.mxu1 %v7557_v43  ;;  %8028 = vmatprep.mubr.bf16.mxu1 %v9282_v18  ;;  %v7532_v18 = vunpack.c.h.s8.bf16 %v7328_v48  ;;  %v7605_v43 = vunpack.c.h.s8.bf16 %v7365_v39  ;;  %v7354_v48 = vld [vmem:[#allocation2 + $0x2698] sm:$0xff] }
 0xbfa   :  { %7875 = vmatprep.subr.bf16.mxu0 %v7550_v13  ;;  %v7747_v24 = vpop.f32.mrf.mxu0  ;;  %7998 = vmatprep.subr.bf16.mxu1 %v7552_v7  ;;  %v7600_v13 = vunpack.c.l.s8.bf16 %v7366_v35  ;;  %v7597_v7 = vunpack.c.l.s8.bf16 %v7363_v54  ;;  %v7288_v54 = vld [vmem:[#allocation2 + $0x2488] sm:$0xff] }
 0xbfb   :  { %7876 = vmatpush1.bf16.msra.mxu0 %v7549_v46  ;;  %v7360_v46 = vld [vmem:[#allocation2 + $0x26c8] sm:$0xff]  ;;  %v7359_v24 = vld [vmem:[#allocation2 + $0x26c0] sm:$0xff]  ;;  %v7450_v39 = vunpack.c.h.s8.bf16 %v7288_v54 }
 0xbfc   :  { %v7748_v11 = vpop.f32.mrf.mxu0  ;;  %7877 = vmatprep.subr.bf16.mxu0 %v7544_v16  ;;  %v7357_v16 = vld [vmem:[#allocation2 + $0x26b0] sm:$0xff]  ;;  %v7587_v62 = vunpack.c.l.s8.bf16 %v7359_v24 }
 0xbfd   :  { %7999 = vmatpush1.bf16.msra.mxu1 %v7551_v32  ;;  %v7594_v32 = vunpack.c.h.s8.bf16 %v7360_v46  ;;  %v7352_v11 = vld [vmem:[#allocation2 + $0x2688] sm:$0xff] }
 0xbfe   :  { %8000 = vmatprep.subr.bf16.mxu1 %v7546_v33  ;;  %v7591_v33 = vunpack.c.h.s8.bf16 %v7357_v16 }
 0xbff   :  { %7878 = vmatpush1.bf16.msra.mxu0 %v7543_v12  ;;  %v7593_v12 = vunpack.c.h.s8.bf16 %v7359_v24 }
 0xc00   :  { %7879 = vmatprep.subr.bf16.mxu0 %v7538_v60  ;;  %v7588_v60 = vunpack.c.l.s8.bf16 %v7360_v46 }
 0xc01   :  { %8001 = vmatpush1.bf16.msra.mxu1 %v7545_v2  ;;  %v7585_v2 = vunpack.c.l.s8.bf16 %v7357_v16  ;;  %v7281_v16 = vld [vmem:[#allocation2 + $0x2450] sm:$0xff] }
 0xc02   :  { %8002 = vmatprep.subr.bf16.mxu1 %v7540_v56  ;;  %v7580_v56 = vunpack.c.h.s8.bf16 %v7352_v11  ;;  %v7431_v24 = vunpack.c.l.s8.bf16 %v7281_v16 }
 0xc03   :  { %7880 = vmatpush1.bf16.msra.mxu0 %v7537_v41  ;;  %v7351_v41 = vld [vmem:[#allocation2 + $0x2680] sm:$0xff] }
 0xc04   :  { %7881 = vmatprep.subr.bf16.mxu0 %v7532_v18  ;;  %v7582_v18 = vunpack.c.h.s8.bf16 %v7354_v48 }
 0xc05   :  { %8003 = vmatpush1.bf16.msra.mxu1 %v7539_v0  ;;  %v7579_v0 = vunpack.c.h.s8.bf16 %v7351_v41 }
 0xc06   :  { %8004 = vmatprep.subr.bf16.mxu1 %v7534_v50  ;;  %v7574_v50 = vunpack.c.l.s8.bf16 %v7352_v11 }
 0xc07   :  { %7882 = vmatpush1.bf16.msra.mxu0 %v7531_v22  ;;  %v7346_v22 = vld [vmem:[#allocation2 + $0x2658] sm:$0xff] }
 0xc08   :  { %7883 = vmatprep.subr.bf16.mxu0 %v7526_v21  ;;  %v7576_v21 = vunpack.c.l.s8.bf16 %v7354_v48 }
 0xc09   :  { %8005 = vmatpush1.bf16.msra.mxu1 %v7533_v3  ;;  %v7573_v3 = vunpack.c.l.s8.bf16 %v7351_v41 }
 0xc0a   :  { %8006 = vmatprep.subr.bf16.mxu1 %v7528_v27  ;;  %v7568_v27 = vunpack.c.h.s8.bf16 %v7346_v22 }
 0xc0b   :  { %7884 = vmatpush1.bf16.msra.mxu0 %v7525_v25  ;;  %v7345_v25 = vld [vmem:[#allocation2 + $0x2650] sm:$0xff] }
 0xc0c   :  { %7885 = vmatprep.subr.bf16.mxu0 %v7520_v5  ;;  %v7570_v5 = vunpack.c.h.s8.bf16 %v7348_v47 }
 0xc0d   :  { %8007 = vmatpush1.bf16.msra.mxu1 %v7527_v52  ;;  %v7567_v52 = vunpack.c.h.s8.bf16 %v7345_v25 }
 0xc0e   :  { %8008 = vmatprep.subr.bf16.mxu1 %v7522_v4  ;;  %v7562_v4 = vunpack.c.l.s8.bf16 %v7346_v22 }
 0xc0f   :  { %7886 = vmatpush1.bf16.msra.mxu0 %v7519_v19  ;;  %v7294_v19 = vld [vmem:[#allocation2 + $0x24b8] sm:$0xff] }
 0xc10   :  { %7887 = vmatprep.subr.bf16.mxu0 %v7514_v36  ;;  %v7564_v36 = vunpack.c.l.s8.bf16 %v7348_v47  ;;  %v7462_v23 = vunpack.c.h.s8.bf16 %v7294_v19 }
 0xc11   :  { %8009 = vmatpush1.bf16.msra.mxu1 %v7521_v45  ;;  %v7561_v45 = vunpack.c.l.s8.bf16 %v7345_v25 }
 0xc12   :  { %8010 = vmatprep.subr.bf16.mxu1 %v7516_v61  ;;  %v7293_v61 = vld [vmem:[#allocation2 + $0x24b0] sm:$0xff] }
 0xc13   :  { %7888 = vmatpush1.bf16.msra.mxu0 %v7513_v37  ;;  %v7563_v37 = vunpack.c.l.s8.bf16 %v7347_v6  ;;  %v7461_v35 = vunpack.c.h.s8.bf16 %v7293_v61 }
 0xc14   :  { %7889 = vmatprep.subr.bf16.mxu0 %v7604_v10  ;;  %v7456_v10 = vunpack.c.l.s8.bf16 %v7294_v19 }
 0xc15   :  { %8011 = vmatpush1.bf16.msra.mxu1 %v7515_v57  ;;  %v7455_v57 = vunpack.c.l.s8.bf16 %v7293_v61  ;;  %v7389_v61 = vld [vmem:[#allocation2 + $0x27b0] sm:$0xff] }
 0xc16   :  { %8012 = vmatprep.subr.bf16.mxu1 %v7606_v17 }
 0xc17   :  { %7890 = vmatpush2.bf16.msra.mxu0 %v7603_v9  ;;  %v7287_v9 = vld [vmem:[#allocation2 + $0x2480] sm:$0xff] }
 0xc18   :  { %7891 = vmatprep.subr.bf16.mxu0 %v7598_v59 }
 0xc19   :  { %8013 = vmatpush2.bf16.msra.mxu1 %v7605_v43  ;;  %v7449_v43 = vunpack.c.h.s8.bf16 %v7287_v9 }
 0xc1a   :  { %8014 = vmatprep.subr.bf16.mxu1 %v7600_v13  ;;  %v7444_v13 = vunpack.c.l.s8.bf16 %v7288_v54  ;;  %v7647_v54 = vunpack.c.l.s8.bf16 %v7389_v61 }
 0xc1b   :  { %7892 = vmatpush2.bf16.msra.mxu0 %v7597_v7  ;;  %v7282_v7 = vld [vmem:[#allocation2 + $0x2458] sm:$0xff] }
 0xc1c   :  { %7893 = vmatprep.subr.bf16.mxu0 %v7592_v55  ;;  %v7443_v55 = vunpack.c.l.s8.bf16 %v7287_v9  ;;  %v7383_v9 = vld [vmem:[#allocation2 + $0x2780] sm:$0xff] }
 0xc1d   :  { %8015 = vmatpush2.bf16.msra.mxu1 %v7599_v8  ;;  %v7432_v8 = vunpack.c.l.s8.bf16 %v7282_v7 }
 0xc1e   :  { %8016 = vmatprep.subr.bf16.mxu1 %v7594_v32  ;;  %v7276_v32 = vld [vmem:[#allocation2 + $0x2428] sm:$0xff] }
 0xc1f   :  { %7894 = vmatpush2.bf16.msra.mxu0 %v7591_v33  ;;  %v7426_v33 = vunpack.c.h.s8.bf16 %v7276_v32  ;;  %v7420_v11 = vunpack.c.l.s8.bf16 %v7276_v32 }
 0xc20   :  { %7895 = vmatprep.subr.bf16.mxu0 %v7586_v28  ;;  %v7275_v28 = vld [vmem:[#allocation2 + $0x2420] sm:$0xff] }
 0xc21   :  { %8017 = vmatpush2.bf16.msra.mxu1 %v7593_v12  ;;  %v7425_v12 = vunpack.c.h.s8.bf16 %v7275_v28 }
 0xc22   :  { %8018 = vmatprep.subr.bf16.mxu1 %v7588_v60  ;;  %v7318_v60 = vld [vmem:[#allocation2 + $0x2578] sm:$0xff] }
 0xc23   :  { %7896 = vmatpush2.bf16.msra.mxu0 %v7585_v2  ;;  %v7419_v2 = vunpack.c.l.s8.bf16 %v7275_v28  ;;  %v7510_v48 = vunpack.c.h.s8.bf16 %v7318_v60 }
 0xc24   :  { %7897 = vmatprep.subr.bf16.mxu0 %v7580_v56  ;;  %v7317_v56 = vld [vmem:[#allocation2 + $0x2570] sm:$0xff] }
 0xc25   :  { %8019 = vmatpush2.bf16.msra.mxu1 %v7587_v62  ;;  %v7509_v41 = vunpack.c.h.s8.bf16 %v7317_v56  ;;  %v7504_v62 = vunpack.c.l.s8.bf16 %v7318_v60  ;;  %v7503_v58 = vunpack.c.l.s8.bf16 %v7317_v56 }
 0xc26   :  { %8020 = vmatprep.subr.bf16.mxu1 %v7582_v18  ;;  %v7312_v18 = vld [vmem:[#allocation2 + $0x2548] sm:$0xff] }
 0xc27   :  { %7898 = vmatpush2.bf16.msra.mxu0 %v7579_v0  ;;  %v7498_v0 = vunpack.c.h.s8.bf16 %v7312_v18  ;;  %v7492_v22 = vunpack.c.l.s8.bf16 %v7312_v18 }
 0xc28   :  { %7899 = vmatprep.subr.bf16.mxu0 %v7574_v50  ;;  %v7311_v50 = vld [vmem:[#allocation2 + $0x2540] sm:$0xff] }
 0xc29   :  { %8021 = vmatpush2.bf16.msra.mxu1 %v7581_v20  ;;  %v7497_v20 = vunpack.c.h.s8.bf16 %v7311_v50 }
 0xc2a   :  { %8022 = vmatprep.subr.bf16.mxu1 %v7576_v21  ;;  %v7306_v21 = vld [vmem:[#allocation2 + $0x2518] sm:$0xff] }
 0xc2b   :  { %7900 = vmatpush2.bf16.msra.mxu0 %v7573_v3  ;;  %v7491_v3 = vunpack.c.l.s8.bf16 %v7311_v50  ;;  %v7486_v47 = vunpack.c.h.s8.bf16 %v7306_v21 }
 0xc2c   :  { %7901 = vmatprep.subr.bf16.mxu0 %v7568_v27  ;;  %v7305_v27 = vld [vmem:[#allocation2 + $0x2510] sm:$0xff] }
 0xc2d   :  { %8023 = vmatpush2.bf16.msra.mxu1 %v7575_v63  ;;  %v7485_v25 = vunpack.c.h.s8.bf16 %v7305_v27  ;;  %v7480_v63 = vunpack.c.l.s8.bf16 %v7306_v21  ;;  %v7479_v6 = vunpack.c.l.s8.bf16 %v7305_v27 }
 0xc2e   :  { %8024 = vmatprep.subr.bf16.mxu1 %v7570_v5  ;;  %v7300_v5 = vld [vmem:[#allocation2 + $0x24e8] sm:$0xff] }
 0xc2f   :  { %7902 = vmatpush2.bf16.msra.mxu0 %v7567_v52  ;;  %v7474_v52 = vunpack.c.h.s8.bf16 %v7300_v5  ;;  %v7468_v19 = vunpack.c.l.s8.bf16 %v7300_v5 }
 0xc30   :  { %7903 = vmatprep.subr.bf16.mxu0 %v7562_v4  ;;  %v7299_v4 = vld [vmem:[#allocation2 + $0x24e0] sm:$0xff] }
 0xc31   :  { %8025 = vmatpush2.bf16.msra.mxu1 %v7569_v1  ;;  %v7473_v1 = vunpack.c.h.s8.bf16 %v7299_v4 }
 0xc32   :  { %8026 = vmatprep.subr.bf16.mxu1 %v7564_v36  ;;  %v7390_v36 = vld [vmem:[#allocation2 + $0x27b8] sm:$0xff] }
 0xc33   :  { %7904 = vmatpush2.bf16.msra.mxu0 %v7561_v45  ;;  %v7467_v45 = vunpack.c.l.s8.bf16 %v7299_v4 }
 0xc34   :  { %7955 = vmatprep.subr.bf16.mxu0 %v7462_v23  ;;  %v7654_v23 = vunpack.c.h.s8.bf16 %v7390_v36 }
 0xc35   :  { %8027 = vmatpush2.bf16.msra.mxu1 %v7563_v37  ;;  %v7653_v37 = vunpack.c.h.s8.bf16 %v7389_v61 }
 0xc36   :  { %7906 = vmatmul.mubr.bf16.vlgmr.msra.gmra.mxu0 %v9284_v42 }
 0xc37   :  { %7956 = vmatpush1.bf16.msra.mxu0 %v7461_v35  ;;  %7987 = vmatprep.mubr.bf16.mxu0 %v9260_v44  ;;  %v7438_v44 = vunpack.c.h.s8.bf16 %v7282_v7  ;;  %v7648_v35 = vunpack.c.l.s8.bf16 %v7390_v36  ;;  %v9336_v36 = vld [vmem:[#allocation4 + $0x30] sm:$0x3f] }
 0xc38   :  { %8029 = vmatmul.mubr.bf16.vlgmr.msra.gmra.mxu1 %v9284_v42  ;;  %v9326_v17 = vpop.f32.mrf.mxu1  ;;  %7957 = vmatprep.subr.bf16.mxu0 %v7456_v10  ;;  %v7437_v42 = vunpack.c.h.s8.bf16 %v7281_v16  ;;  %v7384_v10 = vld [vmem:[#allocation2 + $0x2788] sm:$0xff]  ;;  %v8084_v61 = vrot.slane %v9336_v36, %v8485_v34 }
 0xc39   :  { %v7636_v7 = vunpack.c.l.s8.bf16 %v7384_v10 }
 0xc3a   :  { %v9328_v59 = vpop.f32.mrf.mxu1 }
 0xc3b   :  { %7958 = vmatpush1.bf16.msra.mxu0 %v7455_v57 }
 0xc3c   :  { %v7788_v26 = vpop.f32.mrf.mxu1  ;;  %7959 = vmatprep.subr.bf16.mxu0 %v7450_v39  ;;  %v7642_v39 = vunpack.c.h.s8.bf16 %v7384_v10 }
 0xc3d   :  { %v7641_v26 = vunpack.c.h.s8.bf16 %v7383_v9 }
 0xc3e   :  { %v7789_v46 = vpop.f32.mrf.mxu1 }
 0xc3f   :  { %7960 = vmatpush1.bf16.msra.mxu0 %v7449_v43  ;;  %v7378_v46 = vld [vmem:[#allocation2 + $0x2758] sm:$0xff] }
 0xc40   :  { %7961 = vmatprep.subr.bf16.mxu0 %v7444_v13 }
 0xc43   :  { %7962 = vmatpush1.bf16.msra.mxu0 %v7443_v55 }
 0xc44   :  { %7963 = vmatprep.subr.bf16.mxu0 %v7438_v44  ;;  %v7630_v44 = vunpack.c.h.s8.bf16 %v7378_v46 }
 0xc47   :  { %7964 = vmatpush1.bf16.msra.mxu0 %v7437_v42  ;;  %v7624_v42 = vunpack.c.l.s8.bf16 %v7378_v46 }
 0xc48   :  { %7965 = vmatprep.subr.bf16.mxu0 %v7432_v8  ;;  %v7372_v8 = vld [vmem:[#allocation2 + $0x2728] sm:$0xff] }
 0xc4b   :  { %7966 = vmatpush1.bf16.msra.mxu0 %v7431_v24  ;;  %v7618_v24 = vunpack.c.h.s8.bf16 %v7372_v8 }
 0xc4c   :  { %7967 = vmatprep.subr.bf16.mxu0 %v7426_v33  ;;  %v7371_v33 = vld [vmem:[#allocation2 + $0x2720] sm:$0xff] }
 0xc4d   :  { %v7617_v28 = vunpack.c.h.s8.bf16 %v7371_v33  ;;  %v7611_v60 = vunpack.c.l.s8.bf16 %v7371_v33 }
 0xc4f   :  { %7968 = vmatpush1.bf16.msra.mxu0 %v7425_v12  ;;  %v7612_v12 = vunpack.c.l.s8.bf16 %v7372_v8 }
 0xc50   :  { %7969 = vmatprep.subr.bf16.mxu0 %v7420_v11  ;;  %v7414_v11 = vld [vmem:[#allocation2 + $0x2878] sm:$0xff] }
 0xc53   :  { %7970 = vmatpush1.bf16.msra.mxu0 %v7419_v2  ;;  %v7702_v2 = vunpack.c.h.s8.bf16 %v7414_v11 }
 0xc54   :  { %7971 = vmatprep.subr.bf16.mxu0 %v7510_v48  ;;  %v7413_v48 = vld [vmem:[#allocation2 + $0x2870] sm:$0xff] }
 0xc55   :  { %v7701_v56 = vunpack.c.h.s8.bf16 %v7413_v48  ;;  %v7695_v18 = vunpack.c.l.s8.bf16 %v7413_v48 }
 0xc57   :  { %7972 = vmatpush2.bf16.msra.mxu0 %v7509_v41  ;;  %v7696_v41 = vunpack.c.l.s8.bf16 %v7414_v11 }
 0xc58   :  { %7973 = vmatprep.subr.bf16.mxu0 %v7504_v62  ;;  %v7408_v62 = vld [vmem:[#allocation2 + $0x2848] sm:$0xff] }
 0xc5b   :  { %7974 = vmatpush2.bf16.msra.mxu0 %v7503_v58  ;;  %v7690_v58 = vunpack.c.h.s8.bf16 %v7408_v62 }
 0xc5c   :  { %7975 = vmatprep.subr.bf16.mxu0 %v7498_v0  ;;  %v7407_v0 = vld [vmem:[#allocation2 + $0x2840] sm:$0xff] }
 0xc5d   :  { %v7689_v50 = vunpack.c.h.s8.bf16 %v7407_v0  ;;  %v7683_v21 = vunpack.c.l.s8.bf16 %v7407_v0 }
 0xc5f   :  { %7976 = vmatpush2.bf16.msra.mxu0 %v7497_v20  ;;  %v7684_v20 = vunpack.c.l.s8.bf16 %v7408_v62 }
 0xc60   :  { %7977 = vmatprep.subr.bf16.mxu0 %v7492_v22  ;;  %v7402_v22 = vld [vmem:[#allocation2 + $0x2818] sm:$0xff] }
 0xc63   :  { %7978 = vmatpush2.bf16.msra.mxu0 %v7491_v3  ;;  %v7678_v3 = vunpack.c.h.s8.bf16 %v7402_v22 }
 0xc64   :  { %7979 = vmatprep.subr.bf16.mxu0 %v7486_v47  ;;  %v7401_v47 = vld [vmem:[#allocation2 + $0x2810] sm:$0xff] }
 0xc65   :  { %v7677_v27 = vunpack.c.h.s8.bf16 %v7401_v47  ;;  %v7671_v5 = vunpack.c.l.s8.bf16 %v7401_v47 }
 0xc67   :  { %7980 = vmatpush2.bf16.msra.mxu0 %v7485_v25  ;;  %v7672_v25 = vunpack.c.l.s8.bf16 %v7402_v22 }
 0xc68   :  { %7981 = vmatprep.subr.bf16.mxu0 %v7480_v63  ;;  %v7396_v63 = vld [vmem:[#allocation2 + $0x27e8] sm:$0xff] }
 0xc6b   :  { %7982 = vmatpush2.bf16.msra.mxu0 %v7479_v6  ;;  %v7666_v6 = vunpack.c.h.s8.bf16 %v7396_v63 }
 0xc6c   :  { %7983 = vmatprep.subr.bf16.mxu0 %v7474_v52  ;;  %v7395_v52 = vld [vmem:[#allocation2 + $0x27e0] sm:$0xff] }
 0xc6d   :  { %v7665_v4 = vunpack.c.h.s8.bf16 %v7395_v52 }
 0xc6f   :  { %7984 = vmatpush2.bf16.msra.mxu0 %v7473_v1  ;;  %v7660_v1 = vunpack.c.l.s8.bf16 %v7396_v63 }
 0xc70   :  { %7985 = vmatprep.subr.bf16.mxu0 %v7468_v19  ;;  %v7659_v19 = vunpack.c.l.s8.bf16 %v7395_v52 }
 0xc73   :  { %7986 = vmatpush2.bf16.msra.mxu0 %v7467_v45  ;;  %v9338_v45 = vld [vmem:[#allocation6 + $0x30] sm:$0x3f] }
 0xc74   :  { %8037 = vmatprep.subr.bf16.mxu0 %v7654_v23  ;;  %v7785_v23 = vadd.f32 %v9326_v17, %v9315_v15  ;;  %v8127_v17 = vrot.slane %v9338_v45, %v8490_v38 }
 0xc76   :  { %7988 = vmatmul.mubr.bf16.vlgmr.msra.gmra.mxu0 %v9262_v30  ;;  %v7635_v30 = vunpack.c.l.s8.bf16 %v7383_v9 }
 0xc77   :  { %8038 = vmatpush1.bf16.msra.mxu0 %v7653_v37  ;;  %8069 = vmatprep.mubr.bf16.mxu0 %v9308_v53  ;;  %v7377_v53 = vld [vmem:[#allocation2 + $0x2750] sm:$0xff] }
 0xc78   :  { %v9332_v57 = vpop.f32.mrf.mxu1  ;;  %8039 = vmatprep.subr.bf16.mxu0 %v7648_v35  ;;  %v7629_v16 = vunpack.c.h.s8.bf16 %v7377_v53  ;;  %v7623_v32 = vunpack.c.l.s8.bf16 %v7377_v53  ;;  %v7787_v35 = vadd.f32 %v9328_v59, %v9320_v40 }
 0xc7a   :  { %v9334_v43 = vpop.f32.mrf.mxu1 }
 0xc7b   :  { %8040 = vmatpush1.bf16.msra.mxu0 %v7647_v54  ;;  %v8123_v54 = vrot.slane %v9338_v45, %v8485_v34 }
 0xc7c   :  { %v7870_v13 = vpop.f32.mrf.mxu1  ;;  %8041 = vmatprep.subr.bf16.mxu0 %v7642_v39  ;;  %v8088_v39 = vrot.slane %v9336_v36, %v8490_v38 }
 0xc7e   :  { %v7871_v55 = vpop.f32.mrf.mxu1 }
 0xc7f   :  { %8042 = vmatpush1.bf16.msra.mxu0 %v7641_v26 }
 0xc80   :  { %8043 = vmatprep.subr.bf16.mxu0 %v7636_v7 }
 0xc83   :  { %8044 = vmatpush1.bf16.msra.mxu0 %v7635_v30 }
 0xc84   :  { %8045 = vmatprep.subr.bf16.mxu0 %v7630_v44 }
 0xc87   :  { %8046 = vmatpush1.bf16.msra.mxu0 %v7629_v16 }
 0xc88   :  { %8047 = vmatprep.subr.bf16.mxu0 %v7624_v42 }
 0xc8b   :  { %8048 = vmatpush1.bf16.msra.mxu0 %v7623_v32 }
 0xc8c   :  { %8049 = vmatprep.subr.bf16.mxu0 %v7618_v24 }
 0xc8f   :  { %8050 = vmatpush1.bf16.msra.mxu0 %v7617_v28 }
 0xc90   :  { %8051 = vmatprep.subr.bf16.mxu0 %v7612_v12 }
 0xc93   :  { %8052 = vmatpush1.bf16.msra.mxu0 %v7611_v60 }
 0xc94   :  { %8053 = vmatprep.subr.bf16.mxu0 %v7702_v2 }
 0xc97   :  { %8054 = vmatpush2.bf16.msra.mxu0 %v7701_v56 }
 0xc98   :  { %8055 = vmatprep.subr.bf16.mxu0 %v7696_v41 }
 0xc9b   :  { %8056 = vmatpush2.bf16.msra.mxu0 %v7695_v18  ;;  %v8092_v18 = vrot.slane %v9336_v36, %v8520_v49 }
 0xc9c   :  { %8057 = vmatprep.subr.bf16.mxu0 %v7690_v58 }
 0xc9f   :  { %8058 = vmatpush2.bf16.msra.mxu0 %v7689_v50 }
 0xca0   :  { %8059 = vmatprep.subr.bf16.mxu0 %v7684_v20  ;;  %v8131_v20 = vrot.slane %v9338_v45, %v8520_v49 }
 0xca3   :  { %8060 = vmatpush2.bf16.msra.mxu0 %v7683_v21  ;;  %v8096_v21 = vrot.slane %v9336_v36, %v8523_v51 }
 0xca4   :  { %8061 = vmatprep.subr.bf16.mxu0 %v7678_v3 }
 0xca7   :  { %8062 = vmatpush2.bf16.msra.mxu0 %v7677_v27 }
 0xca8   :  { %8063 = vmatprep.subr.bf16.mxu0 %v7672_v25 }
 0xcab   :  { %8064 = vmatpush2.bf16.msra.mxu0 %v7671_v5 }
 0xcac   :  { %8065 = vmatprep.subr.bf16.mxu0 %v7666_v6 }
 0xcaf   :  { %8066 = vmatpush2.bf16.msra.mxu0 %v7665_v4 }
 0xcb0   :  { %8067 = vmatprep.subr.bf16.mxu0 %v7660_v1 }
 0xcb3   :  { %8068 = vmatpush2.bf16.msra.mxu0 %v7659_v19 }
 0xcb6   :  { %8070 = vmatmul.mubr.bf16.vlgmr.msra.gmra.mxu0 %v9310_v14  ;;  %v7825_v37 = vpop.f32.mrf.mxu0 }
 0xcb7   :  { %v7826_v10 = vadd.f32 %v7825_v37, %v7785_v23 }
 0xcb8   :  { %v7948_v9 = vpop.f32.mrf.mxu1  ;;  %v7827_v26 = vpop.f32.mrf.mxu0 }
 0xcb9   :  { %v8111_v13 = vmul.f32 %v8084_v61, %v7826_v10  ;;  %v7828_v15 = vadd.f32 %v7827_v26, %v7787_v35 }
 0xcba   :  { %v7950_v7 = vpop.f32.mrf.mxu1  ;;  %v7829_v14 = vpop.f32.mrf.mxu0 }
 0xcbb   :  { %v8150_v46 = vadd.f32 %v8123_v54, %v8111_v13  ;;  %v8112_v55 = vmul.f32 %v8088_v39, %v7828_v15 }
 0xcbc   :  { %v7952_v30 = vpop.f32.mrf.mxu1  ;;  %v7830_v40 = vpop.f32.mrf.mxu0 }
 0xcbd   :  { %v8156_v59 = vand.u32 2147483647, %v8150_v46  ;;  %v8151_v44 = vadd.f32 %v8127_v17, %v8112_v55  ;;  %vm8180_vm12 = vcmp.ge.f32.partialorder %v8150_v46, 0.0  ;;  %v8100_v40 = vrot.slane %v9336_v36, %v8554_v29 }
 0xcbe   :  { %v7953_v53 = vpop.f32.mrf.mxu1 }
 0xcbf   :  { %v8162_v34 = vsub.f32 0.0, %v8156_v59  ;;  %v8157_v16 = vand.u32 2147483647, %v8151_v44  ;;  %vm8181_vm13 = vcmp.ge.f32.partialorder %v8151_v44, 0.0 }
 0xcc1   :  { %v8168_v42 = vmul.f32 1.442695, %v8162_v34  ;;  %v8163_v8 = vsub.f32 0.0, %v8157_v16  ;;  %v8139_v34 = vrot.slane %v9338_v45, %v8554_v29  ;;  %v8104_v16 = vrot.slane %v9336_v36, %v8557_v31 }
 0xcc3   :  { %8296 = vpow2.f32 %v8168_v42  ;;  %v8170_v32 = vmul.f32 1.442695, %v8163_v8 }
 0xcc5   :  { %8298 = vpow2.f32 %v8170_v32 }
 0xcd0   :  { %v8297_v24 = vpop.eup %8296 }
 0xcd1   :  { %v8186_v33 = vadd.f32 1.0, %v8297_v24 }
 0xcd2   :  { %v8299_v28 = vpop.eup %8298 }
 0xcd3   :  { %8300 = vrcp.f32 %v8186_v33  ;;  %v8187_v38 = vadd.f32 1.0, %v8299_v28 }
 0xcd5   :  { %8302 = vrcp.f32 %v8187_v38 }
 0xce0   :  { %v8301_v12 = vpop.eup %8300 }
 0xce1   :  { %v8204_v11 = vmul.f32 %v8301_v12, %v8297_v24  ;;  %v8143_v24 = vrot.slane %v9338_v45, %v8557_v31 }
 0xce2   :  { %v8303_v60 = vpop.eup %8302 }
 0xce3   :  { %v8210_v2 = vsel %vm8180_vm12, %v8301_v12, %v8204_v11  ;;  %v8205_v48 = vmul.f32 %v8303_v60, %v8299_v28 }
 0xce4   :  { %8235 = vst [vmem:[%s9393_s4 + $0x60] sm:$0xff] %v8210_v2 }
 0xce5   :  { %v8211_v56 = vsel %vm8181_vm13, %v8303_v60, %v8205_v48 }
 0xce6   :  { %8236 = vst [vmem:[%s9393_s4 + $0x68] sm:$0xff] %v8211_v56 }
 0xcf6   :  { %v7907_v41 = vpop.f32.mrf.mxu0 }
 0xcf7   :  { %v7908_v62 = vadd.f32 %v7907_v41, %v9332_v57  ;;  %v8135_v57 = vrot.slane %v9338_v45, %v8523_v51 }
 0xcf8   :  { %v7909_v58 = vpop.f32.mrf.mxu0  ;;  %v8030_v0 = vpop.f32.mrf.mxu1 }
 0xcf9   :  { %v7949_v50 = vadd.f32 %v7948_v9, %v7908_v62  ;;  %v7910_v22 = vadd.f32 %v7909_v58, %v9334_v43 }
 0xcfa   :  { %v7911_v3 = vpop.f32.mrf.mxu0  ;;  %v8032_v47 = vpop.f32.mrf.mxu1 }
 0xcfb   :  { %v8113_v27 = vmul.f32 %v8092_v18, %v7949_v50  ;;  %v7951_v25 = vadd.f32 %v7950_v7, %v7910_v22 }
 0xcfc   :  { %v7912_v63 = vpop.f32.mrf.mxu0  ;;  %v8034_v5 = vpop.f32.mrf.mxu1 }
 0xcfd   :  { %v8152_v6 = vadd.f32 %v8131_v20, %v8113_v27  ;;  %v8114_v52 = vmul.f32 %v8096_v21, %v7951_v25 }
 0xcfe   :  { %v8035_v4 = vpop.f32.mrf.mxu1 }
 0xcff   :  { %v8158_v1 = vand.u32 2147483647, %v8152_v6  ;;  %v8153_v19 = vadd.f32 %v8135_v57, %v8114_v52  ;;  %vm8182_vm14 = vcmp.ge.f32.partialorder %v8152_v6, 0.0 }
 0xd01   :  { %v8164_v49 = vsub.f32 0.0, %v8158_v1  ;;  %v8159_v23 = vand.u32 2147483647, %v8153_v19  ;;  %vm8183_vm15 = vcmp.ge.f32.partialorder %v8153_v19, 0.0 }
 0xd03   :  { %v8172_v43 = vmul.f32 1.442695, %v8164_v49  ;;  %v8165_v61 = vsub.f32 0.0, %v8159_v23 }
 0xd05   :  { %8304 = vpow2.f32 %v8172_v43  ;;  %v8174_v37 = vmul.f32 1.442695, %v8165_v61 }
 0xd07   :  { %8306 = vpow2.f32 %v8174_v37 }
 0xd12   :  { %v8305_v35 = vpop.eup %8304 }
 0xd13   :  { %v8188_v10 = vadd.f32 1.0, %v8305_v35 }
 0xd14   :  { %v8307_v54 = vpop.eup %8306 }
 0xd15   :  { %8308 = vrcp.f32 %v8188_v10  ;;  %v8189_v39 = vadd.f32 1.0, %v8307_v54 }
 0xd17   :  { %8310 = vrcp.f32 %v8189_v39 }
 0xd22   :  { %v8309_v51 = vpop.eup %8308 }
 0xd23   :  { %v8206_v9 = vmul.f32 %v8309_v51, %v8305_v35 }
 0xd24   :  { %v8311_v26 = vpop.eup %8310 }
 0xd25   :  { %v8212_v13 = vsel %vm8182_vm14, %v8309_v51, %v8206_v9  ;;  %v8207_v15 = vmul.f32 %v8311_v26, %v8307_v54 }
 0xd26   :  { %8237 = vst [vmem:[%s9393_s4 + $0x70] sm:$0xff] %v8212_v13 }
 0xd27   :  { %v8213_v17 = vsel %vm8183_vm15, %v8311_v26, %v8207_v15 }
 0xd28   :  { %8238 = vst [vmem:[%s9393_s4 + $0x78] sm:$0xff] %v8213_v17 }
 0xd36   :  { %v7989_v7 = vpop.f32.mrf.mxu0 }
 0xd37   :  { %v8031_v30 = vadd.f32 %v8030_v0, %v7989_v7 }
 0xd38   :  { %v7991_v14 = vpop.f32.mrf.mxu0 }
 0xd39   :  { %v8033_v44 = vadd.f32 %v8032_v47, %v7991_v14 }
 0xd3a   :  { %v7993_v46 = vpop.f32.mrf.mxu0 }
 0xd3c   :  { %v7994_v55 = vpop.f32.mrf.mxu0 }
 0xd76   :  { %v8071_v59 = vpop.f32.mrf.mxu0 }
 0xd77   :  { %v8072_v53 = vadd.f32 %v8071_v59, %v8031_v30 }
 0xd78   :  { %v8073_v42 = vpop.f32.mrf.mxu0 }
 0xd79   :  { %v8115_v8 = vmul.f32 %v8100_v40, %v8072_v53  ;;  %v8074_v32 = vadd.f32 %v8073_v42, %v8033_v44 }
 0xd7a   :  { %v8075_v33 = vpop.f32.mrf.mxu0 }
 0xd7b   :  { %v8154_v28 = vadd.f32 %v8139_v34, %v8115_v8  ;;  %v8116_v38 = vmul.f32 %v8104_v16, %v8074_v32 }
 0xd7c   :  { %v8076_v12 = vpop.f32.mrf.mxu0 }
 0xd7d   :  { %v8160_v11 = vand.u32 2147483647, %v8154_v28  ;;  %v8155_v60 = vadd.f32 %v8143_v24, %v8116_v38  ;;  %vm8184_vm0 = vcmp.ge.f32.partialorder %v8154_v28, 0.0 }
 0xd7f   :  { %v8166_v2 = vsub.f32 0.0, %v8160_v11  ;;  %v8161_v48 = vand.u32 2147483647, %v8155_v60  ;;  %vm8185_vm1 = vcmp.ge.f32.partialorder %v8155_v60, 0.0 }
 0xd81   :  { %v8176_v56 = vmul.f32 1.442695, %v8166_v2  ;;  %v8167_v41 = vsub.f32 0.0, %v8161_v48 }
 0xd83   :  { %8312 = vpow2.f32 %v8176_v56  ;;  %v8178_v29 = vmul.f32 1.442695, %v8167_v41 }
 0xd85   :  { %8314 = vpow2.f32 %v8178_v29 }
 0xd90   :  { %v8313_v36 = vpop.eup %8312 }
 0xd91   :  { %v8190_v62 = vadd.f32 1.0, %v8313_v36 }
 0xd92   :  { %v8315_v18 = vpop.eup %8314 }
 0xd93   :  { %8316 = vrcp.f32 %v8190_v62  ;;  %v8191_v58 = vadd.f32 1.0, %v8315_v18 }
 0xd95   :  { %8318 = vrcp.f32 %v8191_v58 }
 0xda0   :  { %v8317_v31 = vpop.eup %8316 }
 0xda1   :  { %v8208_v45 = vmul.f32 %v8317_v31, %v8313_v36 }
 0xda2   :  { %v8319_v0 = vpop.eup %8318 }
 0xda3   :  { %v8214_v50 = vsel %vm8184_vm0, %v8317_v31, %v8208_v45  ;;  %v8209_v20 = vmul.f32 %v8319_v0, %v8315_v18 }
 0xda4   :  { %8239 = vst [vmem:[%s9393_s4 + $0x80] sm:$0xff] %v8214_v50 }
 0xda5   :  { %v8215_v22 = vsel %vm8185_vm1, %v8319_v0, %v8209_v20 }
 0xda6   :  { %8240 = vst [vmem:[%s9393_s4 + $0x88] sm:$0xff] %v8215_v22 }
 0xda7   :  { %8227 = vsyncpa [#allocation3], 1 }
 0xda8   :  { %8228 = vsyncpa [#allocation5], 1 }

</bundles_post_ra>
